<compile_context>
chip_gen: v5e
topology: v5e:2x2
jax: 0.10.0
libtpu: 0.0.40
codegen_flags: <defaults>
</compile_context>

<pallas_src>
import functools

import jax
import jax.numpy as jnp
import numpy as np
from jax.experimental import pallas as pl
from jax.experimental.pallas import tpu as pltpu

BN_EPS = 1e-5


# ------------------------------ tiling helpers --------------------------------
def _round_up(x, m):
    return ((x + m - 1) // m) * m


def _preferred_wide_tile():
    """256-wide K/N tiles on v6e/v7x-class MXUs (2x256x256); 128 on v2..v5."""
    try:
        kind = jax.devices()[0].device_kind.lower()
    except Exception:
        return 128
    if any(v in kind for v in ("v2", "v3", "v4", "v5")):
        return 128
    return 256


_WIDE = _preferred_wide_tile()


def _tile_for(dim_padded):
    """Tile for an N/K-like (lane) dimension that is already padded."""
    if dim_padded < 128:
        return dim_padded                      # full-dim block, no padding
    if _WIDE == 256 and dim_padded % 256 == 0:
        return 256
    return 128


def _pad_cast(x, shape, dtype):
    if x.shape == shape:
        return x.astype(dtype)
    out = jnp.zeros(shape, dtype)
    return out.at[: x.shape[0], : x.shape[1]].set(x.astype(dtype))


# ------------------------------- Pallas kernel ---------------------------------
def _fused_matmul_kernel(a_ref, w_ref, scale_ref, shift_ref, *refs,
                         apply_relu, has_residual):
    if has_residual:
        res_ref, o_ref, acc_ref = refs
    else:
        o_ref, acc_ref = refs

    k = pl.program_id(2)

    @pl.when(k == 0)
    def _():
        acc_ref[...] = jnp.zeros_like(acc_ref)

    # bf16 x bf16 -> f32 accumulate on the MXU.
    acc_ref[...] += jnp.dot(a_ref[...], w_ref[...],
                            preferred_element_type=jnp.float32)

    @pl.when(k == pl.num_programs(2) - 1)
    def _():
        out = acc_ref[...] * scale_ref[...] + shift_ref[...]
        if has_residual:
            out = out + res_ref[...].astype(jnp.float32)
        if apply_relu:
            out = jnp.maximum(out, 0.0)
        o_ref[...] = out.astype(o_ref.dtype)


def fused_matmul(a, w_p, scale_p, shift_p, residual=None, relu=True,
                 out_dtype=jnp.bfloat16):
    """a: (M, K) with K <= Kp.  w_p: (Kp, Np) bf16 (pre-packed/padded).
    scale_p/shift_p: (1, Np) f32.  residual: (M, Np) or None.
    Returns (M, Np) in out_dtype."""
    M, K = a.shape
    Kp, Np = w_p.shape

    TM = min(128, _round_up(M, 8))
    Mp = _round_up(M, TM)
    TK = _tile_for(Kp)
    TN = _tile_for(Np)

    a_p = _pad_cast(a, (Mp, Kp), jnp.bfloat16)

    operands = [a_p, w_p, scale_p, shift_p]
    in_specs = [
        pl.BlockSpec((TM, TK), lambda i, j, k: (i, k)),
        pl.BlockSpec((TK, TN), lambda i, j, k: (k, j)),
        pl.BlockSpec((1, TN), lambda i, j, k: (0, j)),
        pl.BlockSpec((1, TN), lambda i, j, k: (0, j)),
    ]
    has_residual = residual is not None
    if has_residual:
        operands.append(_pad_cast(residual, (Mp, Np), jnp.bfloat16))
        in_specs.append(pl.BlockSpec((TM, TN), lambda i, j, k: (i, j)))

    kernel = functools.partial(_fused_matmul_kernel, apply_relu=relu,
                               has_residual=has_residual)

    out = pl.pallas_call(
        kernel,
        out_shape=jax.ShapeDtypeStruct((Mp, Np), out_dtype),
        grid_spec=pltpu.PrefetchScalarGridSpec(
            num_scalar_prefetch=0,
            grid=(Mp // TM, Np // TN, Kp // TK),
            in_specs=in_specs,
            out_specs=pl.BlockSpec((TM, TN), lambda i, j, k: (i, j)),
            scratch_shapes=[pltpu.VMEM((TM, TN), jnp.float32)],
        ),
        compiler_params=pltpu.CompilerParams(
            dimension_semantics=("parallel", "parallel", "arbitrary")),
    )(*operands)
    return out if Mp == M else out[:M]


# -------------------------------- conv helpers ---------------------------------
def im2col(x_nhwc, kh, kw, stride, padding):
    """bf16 in, bf16 patches out: (B*oh*ow, kh*kw*C)."""
    if padding:
        x = jnp.pad(x_nhwc,
                    ((0, 0), (padding, padding), (padding, padding), (0, 0)))
    else:
        x = x_nhwc
    B, H, W, C = x.shape
    oh = (H - kh) // stride + 1
    ow = (W - kw) // stride + 1
    if kh == 1 and kw == 1:
        patches = x[:, ::stride, ::stride, :]
    else:
        cols = []
        for i in range(kh):
            for j in range(kw):
                cols.append(x[:, i:i + (oh - 1) * stride + 1:stride,
                               j:j + (ow - 1) * stride + 1:stride, :])
        patches = jnp.concatenate(cols, axis=-1)
    return patches.reshape(B * oh * ow, kh * kw * C), oh, ow


def conv_bn(x_nhwc, cp, kh, kw, stride, padding, relu, residual=None):
    B = x_nhwc.shape[0]
    patches, oh, ow = im2col(x_nhwc, kh, kw, stride, padding)
    cout = cp["w"].shape[1]           # Np == cout for all convs (64..512)
    res2 = None if residual is None else residual.reshape(-1, cout)
    out = fused_matmul(patches, cp["w"], cp["scale"], cp["shift"],
                       residual=res2, relu=relu, out_dtype=jnp.bfloat16)
    return out.reshape(B, oh, ow, cout)


def basic_block(x, bp, stride):
    identity = x
    out = conv_bn(x, bp["conv1"], 3, 3, stride=stride, padding=1, relu=True)
    if "down" in bp:
        identity = conv_bn(x, bp["down"], 1, 1, stride=stride, padding=0,
                           relu=False)
    # conv2 -> bn2 -> (+identity) -> relu, fused in the kernel epilogue.
    return conv_bn(out, bp["conv2"], 3, 3, stride=1, padding=1, relu=True,
                   residual=identity)


# -------------------------- parameter build & packing --------------------------
def _conv_w(key, cout, cin, k):
    fan_in = cin * k * k
    return jax.random.normal(key, (cout, cin, k, k), jnp.float32) / np.sqrt(fan_in)


def _bn_p(key, c):
    k1, k2, k3 = jax.random.split(key, 3)
    return dict(
        gamma=1.0 + 0.1 * jax.random.normal(k1, (c,), jnp.float32),
        beta=0.1 * jax.random.normal(k2, (c,), jnp.float32),
        mean=0.1 * jax.random.normal(k3, (c,), jnp.float32),
        var=jnp.ones((c,), jnp.float32),
    )


def make_params(key, num_classes):
    keys = iter(jax.random.split(key, 64))
    p = {}
    p["conv1_w"] = _conv_w(next(keys), 64, 3, 3)
    p["bn1"] = _bn_p(next(keys), 64)

    def block(cin, cout, downsample):
        b = dict(
            conv1_w=_conv_w(next(keys), cout, cin, 3),
            bn1=_bn_p(next(keys), cout),
            conv2_w=_conv_w(next(keys), cout, cout, 3),
            bn2=_bn_p(next(keys), cout),
        )
        if downsample:
            b["down_w"] = _conv_w(next(keys), cout, cin, 1)
            b["down_bn"] = _bn_p(next(keys), cout)
        return b

    p["layer1"] = block(64, 64, downsample=False)
    p["layer2"] = block(64, 128, downsample=True)
    p["layer3"] = block(128, 256, downsample=True)
    p["layer4"] = block(256, 512, downsample=True)
    p["fc_w"] = jax.random.normal(next(keys), (num_classes, 512),
                                  jnp.float32) / np.sqrt(512)
    p["fc_b"] = 0.01 * jax.random.normal(next(keys), (num_classes,), jnp.float32)
    return p


def _fold_bn(bn):
    scale = bn["gamma"] / jnp.sqrt(bn["var"] + BN_EPS)
    shift = bn["beta"] - bn["mean"] * scale
    return scale, shift


def _pack_conv(w_oihw, bn):
    """Pre-transpose OIHW -> (K, N), fold BN, pad to (Kp, Np), cast to bf16."""
    cout, cin, kh, kw = w_oihw.shape
    K, N = kh * kw * cin, cout
    Kp = _round_up(K, 128)
    Np = N if N < 128 else _round_up(N, 128)
    w2 = jnp.transpose(w_oihw, (2, 3, 1, 0)).reshape(K, N)
    w_p = jnp.zeros((Kp, Np), jnp.bfloat16).at[:K, :N].set(
        w2.astype(jnp.bfloat16))
    scale, shift = _fold_bn(bn)
    sc = jnp.zeros((1, Np), jnp.float32).at[0, :N].set(scale.astype(jnp.float32))
    sh = jnp.zeros((1, Np), jnp.float32).at[0, :N].set(shift.astype(jnp.float32))
    return dict(w=w_p, scale=sc, shift=sh)


def _pack_fc(w, b):
    """fc (num_classes, 512) -> padded (512, 128) bf16 + bias as shift."""
    n_cls, K = w.shape
    Kp = _round_up(K, 128)
    Np = _round_up(max(n_cls, 128), 128)
    w_p = jnp.zeros((Kp, Np), jnp.bfloat16).at[:K, :n_cls].set(
        jnp.transpose(w).astype(jnp.bfloat16))
    sc = jnp.ones((1, Np), jnp.float32)
    sh = jnp.zeros((1, Np), jnp.float32).at[0, :n_cls].set(
        b.astype(jnp.float32))
    return dict(w=w_p, scale=sc, shift=sh)


def pack_params(raw):
    def pack_block(bp):
        out = dict(conv1=_pack_conv(bp["conv1_w"], bp["bn1"]),
                   conv2=_pack_conv(bp["conv2_w"], bp["bn2"]))
        if "down_w" in bp:
            out["down"] = _pack_conv(bp["down_w"], bp["down_bn"])
        return out

    return dict(
        stem=_pack_conv(raw["conv1_w"], raw["bn1"]),
        layer1=pack_block(raw["layer1"]),
        layer2=pack_block(raw["layer2"]),
        layer3=pack_block(raw["layer3"]),
        layer4=pack_block(raw["layer4"]),
        fc=_pack_fc(raw["fc_w"], raw["fc_b"]),
    )


# ----------------------------------- forward -----------------------------------
@functools.partial(jax.jit, static_argnames=("num_classes",))
def custom_resnet18_forward(packed, x_nchw, *, num_classes):
    x = jnp.transpose(x_nchw, (0, 2, 3, 1)).astype(jnp.bfloat16)   # NCHW -> NHWC
    x = conv_bn(x, packed["stem"], 3, 3, stride=1, padding=1, relu=True)
    # maxpool = Identity
    x = basic_block(x, packed["layer1"], stride=1)
    x = basic_block(x, packed["layer2"], stride=2)
    x = basic_block(x, packed["layer3"], stride=2)
    x = basic_block(x, packed["layer4"], stride=2)
    feat = jnp.mean(x.astype(jnp.float32), axis=(1, 2))             # (B, 512)
    fc = packed["fc"]
    logits = fused_matmul(feat, fc["w"], fc["scale"], fc["shift"],
                          residual=None, relu=False, out_dtype=jnp.float32)
    return logits[:, :num_classes]


# ------------------------------------- main -------------------------------------
if __name__ == "__main__":
    num_classes = 10
    key = jax.random.PRNGKey(0)
    k_params, k_x = jax.random.split(key)
    raw_params = make_params(k_params, num_classes)
    packed = pack_params(raw_params)                 # weight/BN prep hoisted out
    x = jax.random.normal(k_x, (2, 3, 16, 16), jnp.float32)         # NCHW input

    logits = custom_resnet18_forward(packed, x, num_classes=num_classes)
    logits = jax.block_until_ready(logits)
    assert logits.shape == (2, num_classes)
    assert bool(jnp.all(jnp.isfinite(logits)))
    print("KERNEL_OK")
</pallas_src>

<mosaic_0001>
module attributes {stable_mosaic.version = 11 : i64} {
  func.func @_fused_matmul_kernel(%arg0: i32, %arg1: i32, %arg2: i32, %arg3: memref<128x128xbf16, #tpu.memory_space<vmem>>, %arg4: memref<128x64xbf16, #tpu.memory_space<vmem>>, %arg5: memref<1x64xf32, #tpu.memory_space<vmem>>, %arg6: memref<1x64xf32, #tpu.memory_space<vmem>>, %arg7: memref<128x64xbf16, #tpu.memory_space<vmem>>, %arg8: memref<128x64xf32, #tpu.memory_space<vmem>>) attributes {dimension_semantics = [#tpu.dimension_semantics<parallel>, #tpu.dimension_semantics<parallel>, #tpu.dimension_semantics<arbitrary>], iteration_bounds = array<i64: 4, 1, 1>, scalar_prefetch = 0 : i64, scratch_operands = 1 : i64, tpu.core_type = #tpu.core_type<tc>, window_params = [{transform_indices = @transform_0, window_bounds = array<i64: 128, 128>}, {transform_indices = @transform_1, window_bounds = array<i64: 128, 64>}, {transform_indices = @transform_2, window_bounds = array<i64: 1, 64>}, {transform_indices = @transform_3, window_bounds = array<i64: 1, 64>}, {transform_indices = @transform_4, window_bounds = array<i64: 128, 64>}]} {
    %c0_i32 = arith.constant 0 : i32
    %0 = arith.cmpi eq, %arg2, %c0_i32 : i32
    %1 = arith.extui %0 : i1 to i32
    %c0_i32_0 = arith.constant 0 : i32
    %2 = arith.cmpi ne, %1, %c0_i32_0 : i32
    scf.if %2 {
      %cst_10 = arith.constant 0.000000e+00 : f32
      %12 = vector.broadcast %cst_10 : f32 to vector<128x64xf32>
      %c0_11 = arith.constant 0 : index
      %c0_12 = arith.constant 0 : index
      %13 = vector.load %arg8[%c0_11, %c0_12] : memref<128x64xf32, #tpu.memory_space<vmem>>, vector<128x64xf32>
      tpu.vector_store %arg8[%c0_11, %c0_12], %12 {strides = array<i32>} : memref<128x64xf32, #tpu.memory_space<vmem>>, vector<128x64xf32>,
    } else {
    }
    %c0 = arith.constant 0 : index
    %c0_1 = arith.constant 0 : index
    %3 = vector.load %arg8[%c0, %c0_1] : memref<128x64xf32, #tpu.memory_space<vmem>>, vector<128x64xf32>
    %c0_2 = arith.constant 0 : index
    %c0_3 = arith.constant 0 : index
    %4 = vector.load %arg3[%c0_2, %c0_3] : memref<128x128xbf16, #tpu.memory_space<vmem>>, vector<128x128xbf16>
    %c0_4 = arith.constant 0 : index
    %c0_5 = arith.constant 0 : index
    %5 = vector.load %arg4[%c0_4, %c0_5] : memref<128x64xbf16, #tpu.memory_space<vmem>>, vector<128x64xbf16>
    %cst = arith.constant dense<0.000000e+00> : vector<128x64xf32>
    %6 = tpu.matmul %4, %5, %cst {dimension_numbers = #tpu.dot_dimension_numbers<[1], [0], [0], [1], [0, 0, 1, 1], [], []>} : vector<128x128xbf16>, vector<128x64xbf16>, vector<128x64xf32> -> vector<128x64xf32>
    %7 = arith.addf %3, %6 : vector<128x64xf32>
    %c0_6 = arith.constant 0 : index
    %c0_7 = arith.constant 0 : index
    %8 = vector.load %arg8[%c0_6, %c0_7] : memref<128x64xf32, #tpu.memory_space<vmem>>, vector<128x64xf32>
    tpu.vector_store %arg8[%c0_6, %c0_7], %7 {strides = array<i32>} : memref<128x64xf32, #tpu.memory_space<vmem>>, vector<128x64xf32>,
    %c0_i32_8 = arith.constant 0 : i32
    %9 = arith.cmpi eq, %arg2, %c0_i32_8 : i32
    %10 = arith.extui %9 : i1 to i32
    %c0_i32_9 = arith.constant 0 : i32
    %11 = arith.cmpi ne, %10, %c0_i32_9 : i32
    scf.if %11 {
      %c0_10 = arith.constant 0 : index
      %c0_11 = arith.constant 0 : index
      %12 = vector.load %arg8[%c0_10, %c0_11] : memref<128x64xf32, #tpu.memory_space<vmem>>, vector<128x64xf32>
      %c0_12 = arith.constant 0 : index
      %c0_13 = arith.constant 0 : index
      %13 = vector.load %arg5[%c0_12, %c0_13] : memref<1x64xf32, #tpu.memory_space<vmem>>, vector<1x64xf32>
      %14 = vector.broadcast %13 : vector<1x64xf32> to vector<128x64xf32>
      %15 = arith.mulf %12, %14 : vector<128x64xf32>
      %c0_14 = arith.constant 0 : index
      %c0_15 = arith.constant 0 : index
      %16 = vector.load %arg6[%c0_14, %c0_15] : memref<1x64xf32, #tpu.memory_space<vmem>>, vector<1x64xf32>
      %17 = vector.broadcast %16 : vector<1x64xf32> to vector<128x64xf32>
      %18 = arith.addf %15, %17 : vector<128x64xf32>
      %cst_16 = arith.constant 0.000000e+00 : f32
      %19 = vector.broadcast %cst_16 : f32 to vector<128x64xf32>
      %20 = arith.maximumf %18, %19 : vector<128x64xf32>
      %21 = arith.truncf %20 : vector<128x64xf32> to vector<128x64xbf16>
      %c0_17 = arith.constant 0 : index
      %c0_18 = arith.constant 0 : index
      %22 = vector.load %arg7[%c0_17, %c0_18] : memref<128x64xbf16, #tpu.memory_space<vmem>>, vector<128x64xbf16>
      tpu.vector_store %arg7[%c0_17, %c0_18], %21 {strides = array<i32>} : memref<128x64xbf16, #tpu.memory_space<vmem>>, vector<128x64xbf16>,
    } else {
    }
    return
  }
  func.func @transform_0(%arg0: i32, %arg1: i32, %arg2: i32) -> (i32, i32) {
    %c0_i32 = arith.constant 0 : i32
    return %arg0, %arg2 : i32, i32
  }
  func.func @transform_1(%arg0: i32, %arg1: i32, %arg2: i32) -> (i32, i32) {
    %c0_i32 = arith.constant 0 : i32
    return %arg2, %arg1 : i32, i32
  }
  func.func @transform_2(%arg0: i32, %arg1: i32, %arg2: i32) -> (i32, i32) {
    %c0_i32 = arith.constant 0 : i32
    %c0_i32_0 = arith.constant 0 : i32
    return %c0_i32, %arg1 : i32, i32
  }
  func.func @transform_3(%arg0: i32, %arg1: i32, %arg2: i32) -> (i32, i32) {
    %c0_i32 = arith.constant 0 : i32
    %c0_i32_0 = arith.constant 0 : i32
    return %c0_i32, %arg1 : i32, i32
  }
  func.func @transform_4(%arg0: i32, %arg1: i32, %arg2: i32) -> (i32, i32) {
    %c0_i32 = arith.constant 0 : i32
    return %arg0, %arg1 : i32, i32
  }
}

module attributes {stable_mosaic.version = 11 : i64} {
  func.func @_fused_matmul_kernel(%arg0: i32, %arg1: i32, %arg2: i32, %arg3: memref<128x128xbf16, #tpu.memory_space<vmem>>, %arg4: memref<128x64xbf16, #tpu.memory_space<vmem>>, %arg5: memref<1x64xf32, #tpu.memory_space<vmem>>, %arg6: memref<1x64xf32, #tpu.memory_space<vmem>>, %arg7: memref<128x64xbf16, #tpu.memory_space<vmem>>, %arg8: memref<128x64xf32, #tpu.memory_space<vmem>>) attributes {dimension_semantics = [#tpu.dimension_semantics<parallel>, #tpu.dimension_semantics<parallel>, #tpu.dimension_semantics<arbitrary>], iteration_bounds = array<i64: 4, 1, 5>, scalar_prefetch = 0 : i64, scratch_operands = 1 : i64, tpu.core_type = #tpu.core_type<tc>, window_params = [{transform_indices = @transform_0, window_bounds = array<i64: 128, 128>}, {transform_indices = @transform_1, window_bounds = array<i64: 128, 64>}, {transform_indices = @transform_2, window_bounds = array<i64: 1, 64>}, {transform_indices = @transform_3, window_bounds = array<i64: 1, 64>}, {transform_indices = @transform_4, window_bounds = array<i64: 128, 64>}]} {
    %c0_i32 = arith.constant 0 : i32
    %0 = arith.cmpi eq, %arg2, %c0_i32 : i32
    %1 = arith.extui %0 : i1 to i32
    %c0_i32_0 = arith.constant 0 : i32
    %2 = arith.cmpi ne, %1, %c0_i32_0 : i32
    scf.if %2 {
      %cst_9 = arith.constant 0.000000e+00 : f32
      %12 = vector.broadcast %cst_9 : f32 to vector<128x64xf32>
      %c0_10 = arith.constant 0 : index
      %c0_11 = arith.constant 0 : index
      %13 = vector.load %arg8[%c0_10, %c0_11] : memref<128x64xf32, #tpu.memory_space<vmem>>, vector<128x64xf32>
      tpu.vector_store %arg8[%c0_10, %c0_11], %12 {strides = array<i32>} : memref<128x64xf32, #tpu.memory_space<vmem>>, vector<128x64xf32>,
    } else {
    }
    %c0 = arith.constant 0 : index
    %c0_1 = arith.constant 0 : index
    %3 = vector.load %arg8[%c0, %c0_1] : memref<128x64xf32, #tpu.memory_space<vmem>>, vector<128x64xf32>
    %c0_2 = arith.constant 0 : index
    %c0_3 = arith.constant 0 : index
    %4 = vector.load %arg3[%c0_2, %c0_3] : memref<128x128xbf16, #tpu.memory_space<vmem>>, vector<128x128xbf16>
    %c0_4 = arith.constant 0 : index
    %c0_5 = arith.constant 0 : index
    %5 = vector.load %arg4[%c0_4, %c0_5] : memref<128x64xbf16, #tpu.memory_space<vmem>>, vector<128x64xbf16>
    %cst = arith.constant dense<0.000000e+00> : vector<128x64xf32>
    %6 = tpu.matmul %4, %5, %cst {dimension_numbers = #tpu.dot_dimension_numbers<[1], [0], [0], [1], [0, 0, 1, 1], [], []>} : vector<128x128xbf16>, vector<128x64xbf16>, vector<128x64xf32> -> vector<128x64xf32>
    %7 = arith.addf %3, %6 : vector<128x64xf32>
    %c0_6 = arith.constant 0 : index
    %c0_7 = arith.constant 0 : index
    %8 = vector.load %arg8[%c0_6, %c0_7] : memref<128x64xf32, #tpu.memory_space<vmem>>, vector<128x64xf32>
    tpu.vector_store %arg8[%c0_6, %c0_7], %7 {strides = array<i32>} : memref<128x64xf32, #tpu.memory_space<vmem>>, vector<128x64xf32>,
    %c4_i32 = arith.constant 4 : i32
    %9 = arith.cmpi eq, %arg2, %c4_i32 : i32
    %10 = arith.extui %9 : i1 to i32
    %c0_i32_8 = arith.constant 0 : i32
    %11 = arith.cmpi ne, %10, %c0_i32_8 : i32
    scf.if %11 {
      %c0_9 = arith.constant 0 : index
      %c0_10 = arith.constant 0 : index
      %12 = vector.load %arg8[%c0_9, %c0_10] : memref<128x64xf32, #tpu.memory_space<vmem>>, vector<128x64xf32>
      %c0_11 = arith.constant 0 : index
      %c0_12 = arith.constant 0 : index
      %13 = vector.load %arg5[%c0_11, %c0_12] : memref<1x64xf32, #tpu.memory_space<vmem>>, vector<1x64xf32>
      %14 = vector.broadcast %13 : vector<1x64xf32> to vector<128x64xf32>
      %15 = arith.mulf %12, %14 : vector<128x64xf32>
      %c0_13 = arith.constant 0 : index
      %c0_14 = arith.constant 0 : index
      %16 = vector.load %arg6[%c0_13, %c0_14] : memref<1x64xf32, #tpu.memory_space<vmem>>, vector<1x64xf32>
      %17 = vector.broadcast %16 : vector<1x64xf32> to vector<128x64xf32>
      %18 = arith.addf %15, %17 : vector<128x64xf32>
      %cst_15 = arith.constant 0.000000e+00 : f32
      %19 = vector.broadcast %cst_15 : f32 to vector<128x64xf32>
      %20 = arith.maximumf %18, %19 : vector<128x64xf32>
      %21 = arith.truncf %20 : vector<128x64xf32> to vector<128x64xbf16>
      %c0_16 = arith.constant 0 : index
      %c0_17 = arith.constant 0 : index
      %22 = vector.load %arg7[%c0_16, %c0_17] : memref<128x64xbf16, #tpu.memory_space<vmem>>, vector<128x64xbf16>
      tpu.vector_store %arg7[%c0_16, %c0_17], %21 {strides = array<i32>} : memref<128x64xbf16, #tpu.memory_space<vmem>>, vector<128x64xbf16>,
    } else {
    }
    return
  }
  func.func @transform_0(%arg0: i32, %arg1: i32, %arg2: i32) -> (i32, i32) {
    %c0_i32 = arith.constant 0 : i32
    return %arg0, %arg2 : i32, i32
  }
  func.func @transform_1(%arg0: i32, %arg1: i32, %arg2: i32) -> (i32, i32) {
    %c0_i32 = arith.constant 0 : i32
    return %arg2, %arg1 : i32, i32
  }
  func.func @transform_2(%arg0: i32, %arg1: i32, %arg2: i32) -> (i32, i32) {
    %c0_i32 = arith.constant 0 : i32
    %c0_i32_0 = arith.constant 0 : i32
    return %c0_i32, %arg1 : i32, i32
  }
  func.func @transform_3(%arg0: i32, %arg1: i32, %arg2: i32) -> (i32, i32) {
    %c0_i32 = arith.constant 0 : i32
    %c0_i32_0 = arith.constant 0 : i32
    return %c0_i32, %arg1 : i32, i32
  }
  func.func @transform_4(%arg0: i32, %arg1: i32, %arg2: i32) -> (i32, i32) {
    %c0_i32 = arith.constant 0 : i32
    return %arg0, %arg1 : i32, i32
  }
}

module attributes {stable_mosaic.version = 11 : i64} {
  func.func @_fused_matmul_kernel(%arg0: i32, %arg1: i32, %arg2: i32, %arg3: memref<128x128xbf16, #tpu.memory_space<vmem>>, %arg4: memref<128x64xbf16, #tpu.memory_space<vmem>>, %arg5: memref<1x64xf32, #tpu.memory_space<vmem>>, %arg6: memref<1x64xf32, #tpu.memory_space<vmem>>, %arg7: memref<128x64xbf16, #tpu.memory_space<vmem>>, %arg8: memref<128x64xbf16, #tpu.memory_space<vmem>>, %arg9: memref<128x64xf32, #tpu.memory_space<vmem>>) attributes {dimension_semantics = [#tpu.dimension_semantics<parallel>, #tpu.dimension_semantics<parallel>, #tpu.dimension_semantics<arbitrary>], iteration_bounds = array<i64: 4, 1, 5>, scalar_prefetch = 0 : i64, scratch_operands = 1 : i64, tpu.core_type = #tpu.core_type<tc>, window_params = [{transform_indices = @transform_0, window_bounds = array<i64: 128, 128>}, {transform_indices = @transform_1, window_bounds = array<i64: 128, 64>}, {transform_indices = @transform_2, window_bounds = array<i64: 1, 64>}, {transform_indices = @transform_3, window_bounds = array<i64: 1, 64>}, {transform_indices = @transform_4, window_bounds = array<i64: 128, 64>}, {transform_indices = @transform_5, window_bounds = array<i64: 128, 64>}]} {
    %c0_i32 = arith.constant 0 : i32
    %0 = arith.cmpi eq, %arg2, %c0_i32 : i32
    %1 = arith.extui %0 : i1 to i32
    %c0_i32_0 = arith.constant 0 : i32
    %2 = arith.cmpi ne, %1, %c0_i32_0 : i32
    scf.if %2 {
      %cst_9 = arith.constant 0.000000e+00 : f32
      %12 = vector.broadcast %cst_9 : f32 to vector<128x64xf32>
      %c0_10 = arith.constant 0 : index
      %c0_11 = arith.constant 0 : index
      %13 = vector.load %arg9[%c0_10, %c0_11] : memref<128x64xf32, #tpu.memory_space<vmem>>, vector<128x64xf32>
      tpu.vector_store %arg9[%c0_10, %c0_11], %12 {strides = array<i32>} : memref<128x64xf32, #tpu.memory_space<vmem>>, vector<128x64xf32>,
    } else {
    }
    %c0 = arith.constant 0 : index
    %c0_1 = arith.constant 0 : index
    %3 = vector.load %arg9[%c0, %c0_1] : memref<128x64xf32, #tpu.memory_space<vmem>>, vector<128x64xf32>
    %c0_2 = arith.constant 0 : index
    %c0_3 = arith.constant 0 : index
    %4 = vector.load %arg3[%c0_2, %c0_3] : memref<128x128xbf16, #tpu.memory_space<vmem>>, vector<128x128xbf16>
    %c0_4 = arith.constant 0 : index
    %c0_5 = arith.constant 0 : index
    %5 = vector.load %arg4[%c0_4, %c0_5] : memref<128x64xbf16, #tpu.memory_space<vmem>>, vector<128x64xbf16>
    %cst = arith.constant dense<0.000000e+00> : vector<128x64xf32>
    %6 = tpu.matmul %4, %5, %cst {dimension_numbers = #tpu.dot_dimension_numbers<[1], [0], [0], [1], [0, 0, 1, 1], [], []>} : vector<128x128xbf16>, vector<128x64xbf16>, vector<128x64xf32> -> vector<128x64xf32>
    %7 = arith.addf %3, %6 : vector<128x64xf32>
    %c0_6 = arith.constant 0 : index
    %c0_7 = arith.constant 0 : index
    %8 = vector.load %arg9[%c0_6, %c0_7] : memref<128x64xf32, #tpu.memory_space<vmem>>, vector<128x64xf32>
    tpu.vector_store %arg9[%c0_6, %c0_7], %7 {strides = array<i32>} : memref<128x64xf32, #tpu.memory_space<vmem>>, vector<128x64xf32>,
    %c4_i32 = arith.constant 4 : i32
    %9 = arith.cmpi eq, %arg2, %c4_i32 : i32
    %10 = arith.extui %9 : i1 to i32
    %c0_i32_8 = arith.constant 0 : i32
    %11 = arith.cmpi ne, %10, %c0_i32_8 : i32
    scf.if %11 {
      %c0_9 = arith.constant 0 : index
      %c0_10 = arith.constant 0 : index
      %12 = vector.load %arg9[%c0_9, %c0_10] : memref<128x64xf32, #tpu.memory_space<vmem>>, vector<128x64xf32>
      %c0_11 = arith.constant 0 : index
      %c0_12 = arith.constant 0 : index
      %13 = vector.load %arg5[%c0_11, %c0_12] : memref<1x64xf32, #tpu.memory_space<vmem>>, vector<1x64xf32>
      %14 = vector.broadcast %13 : vector<1x64xf32> to vector<128x64xf32>
      %15 = arith.mulf %12, %14 : vector<128x64xf32>
      %c0_13 = arith.constant 0 : index
      %c0_14 = arith.constant 0 : index
      %16 = vector.load %arg6[%c0_13, %c0_14] : memref<1x64xf32, #tpu.memory_space<vmem>>, vector<1x64xf32>
      %17 = vector.broadcast %16 : vector<1x64xf32> to vector<128x64xf32>
      %18 = arith.addf %15, %17 : vector<128x64xf32>
      %c0_15 = arith.constant 0 : index
      %c0_16 = arith.constant 0 : index
      %19 = vector.load %arg7[%c0_15, %c0_16] : memref<128x64xbf16, #tpu.memory_space<vmem>>, vector<128x64xbf16>
      %20 = arith.extf %19 : vector<128x64xbf16> to vector<128x64xf32>
      %21 = arith.addf %18, %20 : vector<128x64xf32>
      %cst_17 = arith.constant 0.000000e+00 : f32
      %22 = vector.broadcast %cst_17 : f32 to vector<128x64xf32>
      %23 = arith.maximumf %21, %22 : vector<128x64xf32>
      %24 = arith.truncf %23 : vector<128x64xf32> to vector<128x64xbf16>
      %c0_18 = arith.constant 0 : index
      %c0_19 = arith.constant 0 : index
      %25 = vector.load %arg8[%c0_18, %c0_19] : memref<128x64xbf16, #tpu.memory_space<vmem>>, vector<128x64xbf16>
      tpu.vector_store %arg8[%c0_18, %c0_19], %24 {strides = array<i32>} : memref<128x64xbf16, #tpu.memory_space<vmem>>, vector<128x64xbf16>,
    } else {
    }
    return
  }
  func.func @transform_0(%arg0: i32, %arg1: i32, %arg2: i32) -> (i32, i32) {
    %c0_i32 = arith.constant 0 : i32
    return %arg0, %arg2 : i32, i32
  }
  func.func @transform_1(%arg0: i32, %arg1: i32, %arg2: i32) -> (i32, i32) {
    %c0_i32 = arith.constant 0 : i32
    return %arg2, %arg1 : i32, i32
  }
  func.func @transform_2(%arg0: i32, %arg1: i32, %arg2: i32) -> (i32, i32) {
    %c0_i32 = arith.constant 0 : i32
    %c0_i32_0 = arith.constant 0 : i32
    return %c0_i32, %arg1 : i32, i32
  }
  func.func @transform_3(%arg0: i32, %arg1: i32, %arg2: i32) -> (i32, i32) {
    %c0_i32 = arith.constant 0 : i32
    %c0_i32_0 = arith.constant 0 : i32
    return %c0_i32, %arg1 : i32, i32
  }
  func.func @transform_4(%arg0: i32, %arg1: i32, %arg2: i32) -> (i32, i32) {
    %c0_i32 = arith.constant 0 : i32
    return %arg0, %arg1 : i32, i32
  }
  func.func @transform_5(%arg0: i32, %arg1: i32, %arg2: i32) -> (i32, i32) {
    %c0_i32 = arith.constant 0 : i32
    return %arg0, %arg1 : i32, i32
  }
}

module attributes {stable_mosaic.version = 11 : i64} {
  func.func @_fused_matmul_kernel(%arg0: i32, %arg1: i32, %arg2: i32, %arg3: memref<128x128xbf16, #tpu.memory_space<vmem>>, %arg4: memref<128x128xbf16, #tpu.memory_space<vmem>>, %arg5: memref<1x128xf32, #tpu.memory_space<vmem>>, %arg6: memref<1x128xf32, #tpu.memory_space<vmem>>, %arg7: memref<128x128xbf16, #tpu.memory_space<vmem>>, %arg8: memref<128x128xf32, #tpu.memory_space<vmem>>) attributes {dimension_semantics = [#tpu.dimension_semantics<parallel>, #tpu.dimension_semantics<parallel>, #tpu.dimension_semantics<arbitrary>], iteration_bounds = array<i64: 1, 1, 5>, scalar_prefetch = 0 : i64, scratch_operands = 1 : i64, tpu.core_type = #tpu.core_type<tc>, window_params = [{transform_indices = @transform_0, window_bounds = array<i64: 128, 128>}, {transform_indices = @transform_1, window_bounds = array<i64: 128, 128>}, {transform_indices = @transform_2, window_bounds = array<i64: 1, 128>}, {transform_indices = @transform_3, window_bounds = array<i64: 1, 128>}, {transform_indices = @transform_4, window_bounds = array<i64: 128, 128>}]} {
    %c0_i32 = arith.constant 0 : i32
    %0 = arith.cmpi eq, %arg2, %c0_i32 : i32
    %1 = arith.extui %0 : i1 to i32
    %c0_i32_0 = arith.constant 0 : i32
    %2 = arith.cmpi ne, %1, %c0_i32_0 : i32
    scf.if %2 {
      %cst_9 = arith.constant 0.000000e+00 : f32
      %12 = vector.broadcast %cst_9 : f32 to vector<128x128xf32>
      %c0_10 = arith.constant 0 : index
      %c0_11 = arith.constant 0 : index
      %13 = vector.load %arg8[%c0_10, %c0_11] : memref<128x128xf32, #tpu.memory_space<vmem>>, vector<128x128xf32>
      tpu.vector_store %arg8[%c0_10, %c0_11], %12 {strides = array<i32>} : memref<128x128xf32, #tpu.memory_space<vmem>>, vector<128x128xf32>,
    } else {
    }
    %c0 = arith.constant 0 : index
    %c0_1 = arith.constant 0 : index
    %3 = vector.load %arg8[%c0, %c0_1] : memref<128x128xf32, #tpu.memory_space<vmem>>, vector<128x128xf32>
    %c0_2 = arith.constant 0 : index
    %c0_3 = arith.constant 0 : index
    %4 = vector.load %arg3[%c0_2, %c0_3] : memref<128x128xbf16, #tpu.memory_space<vmem>>, vector<128x128xbf16>
    %c0_4 = arith.constant 0 : index
    %c0_5 = arith.constant 0 : index
    %5 = vector.load %arg4[%c0_4, %c0_5] : memref<128x128xbf16, #tpu.memory_space<vmem>>, vector<128x128xbf16>
    %cst = arith.constant dense<0.000000e+00> : vector<128x128xf32>
    %6 = tpu.matmul %4, %5, %cst {dimension_numbers = #tpu.dot_dimension_numbers<[1], [0], [0], [1], [0, 0, 1, 1], [], []>} : vector<128x128xbf16>, vector<128x128xbf16>, vector<128x128xf32> -> vector<128x128xf32>
    %7 = arith.addf %3, %6 : vector<128x128xf32>
    %c0_6 = arith.constant 0 : index
    %c0_7 = arith.constant 0 : index
    %8 = vector.load %arg8[%c0_6, %c0_7] : memref<128x128xf32, #tpu.memory_space<vmem>>, vector<128x128xf32>
    tpu.vector_store %arg8[%c0_6, %c0_7], %7 {strides = array<i32>} : memref<128x128xf32, #tpu.memory_space<vmem>>, vector<128x128xf32>,
    %c4_i32 = arith.constant 4 : i32
    %9 = arith.cmpi eq, %arg2, %c4_i32 : i32
    %10 = arith.extui %9 : i1 to i32
    %c0_i32_8 = arith.constant 0 : i32
    %11 = arith.cmpi ne, %10, %c0_i32_8 : i32
    scf.if %11 {
      %c0_9 = arith.constant 0 : index
      %c0_10 = arith.constant 0 : index
      %12 = vector.load %arg8[%c0_9, %c0_10] : memref<128x128xf32, #tpu.memory_space<vmem>>, vector<128x128xf32>
      %c0_11 = arith.constant 0 : index
      %c0_12 = arith.constant 0 : index
      %13 = vector.load %arg5[%c0_11, %c0_12] : memref<1x128xf32, #tpu.memory_space<vmem>>, vector<1x128xf32>
      %14 = vector.broadcast %13 : vector<1x128xf32> to vector<128x128xf32>
      %15 = arith.mulf %12, %14 : vector<128x128xf32>
      %c0_13 = arith.constant 0 : index
      %c0_14 = arith.constant 0 : index
      %16 = vector.load %arg6[%c0_13, %c0_14] : memref<1x128xf32, #tpu.memory_space<vmem>>, vector<1x128xf32>
      %17 = vector.broadcast %16 : vector<1x128xf32> to vector<128x128xf32>
      %18 = arith.addf %15, %17 : vector<128x128xf32>
      %cst_15 = arith.constant 0.000000e+00 : f32
      %19 = vector.broadcast %cst_15 : f32 to vector<128x128xf32>
      %20 = arith.maximumf %18, %19 : vector<128x128xf32>
      %21 = arith.truncf %20 : vector<128x128xf32> to vector<128x128xbf16>
      %c0_16 = arith.constant 0 : index
      %c0_17 = arith.constant 0 : index
      %22 = vector.load %arg7[%c0_16, %c0_17] : memref<128x128xbf16, #tpu.memory_space<vmem>>, vector<128x128xbf16>
      tpu.vector_store %arg7[%c0_16, %c0_17], %21 {strides = array<i32>} : memref<128x128xbf16, #tpu.memory_space<vmem>>, vector<128x128xbf16>,
    } else {
    }
    return
  }
  func.func @transform_0(%arg0: i32, %arg1: i32, %arg2: i32) -> (i32, i32) {
    %c0_i32 = arith.constant 0 : i32
    return %arg0, %arg2 : i32, i32
  }
  func.func @transform_1(%arg0: i32, %arg1: i32, %arg2: i32) -> (i32, i32) {
    %c0_i32 = arith.constant 0 : i32
    return %arg2, %arg1 : i32, i32
  }
  func.func @transform_2(%arg0: i32, %arg1: i32, %arg2: i32) -> (i32, i32) {
    %c0_i32 = arith.constant 0 : i32
    %c0_i32_0 = arith.constant 0 : i32
    return %c0_i32, %arg1 : i32, i32
  }
  func.func @transform_3(%arg0: i32, %arg1: i32, %arg2: i32) -> (i32, i32) {
    %c0_i32 = arith.constant 0 : i32
    %c0_i32_0 = arith.constant 0 : i32
    return %c0_i32, %arg1 : i32, i32
  }
  func.func @transform_4(%arg0: i32, %arg1: i32, %arg2: i32) -> (i32, i32) {
    %c0_i32 = arith.constant 0 : i32
    return %arg0, %arg1 : i32, i32
  }
}

module attributes {stable_mosaic.version = 11 : i64} {
  func.func @_fused_matmul_kernel(%arg0: i32, %arg1: i32, %arg2: i32, %arg3: memref<128x128xbf16, #tpu.memory_space<vmem>>, %arg4: memref<128x128xbf16, #tpu.memory_space<vmem>>, %arg5: memref<1x128xf32, #tpu.memory_space<vmem>>, %arg6: memref<1x128xf32, #tpu.memory_space<vmem>>, %arg7: memref<128x128xbf16, #tpu.memory_space<vmem>>, %arg8: memref<128x128xf32, #tpu.memory_space<vmem>>) attributes {dimension_semantics = [#tpu.dimension_semantics<parallel>, #tpu.dimension_semantics<parallel>, #tpu.dimension_semantics<arbitrary>], iteration_bounds = array<i64: 1, 1, 1>, scalar_prefetch = 0 : i64, scratch_operands = 1 : i64, tpu.core_type = #tpu.core_type<tc>, window_params = [{transform_indices = @transform_0, window_bounds = array<i64: 128, 128>}, {transform_indices = @transform_1, window_bounds = array<i64: 128, 128>}, {transform_indices = @transform_2, window_bounds = array<i64: 1, 128>}, {transform_indices = @transform_3, window_bounds = array<i64: 1, 128>}, {transform_indices = @transform_4, window_bounds = array<i64: 128, 128>}]} {
    %c0_i32 = arith.constant 0 : i32
    %0 = arith.cmpi eq, %arg2, %c0_i32 : i32
    %1 = arith.extui %0 : i1 to i32
    %c0_i32_0 = arith.constant 0 : i32
    %2 = arith.cmpi ne, %1, %c0_i32_0 : i32
    scf.if %2 {
      %cst_10 = arith.constant 0.000000e+00 : f32
      %12 = vector.broadcast %cst_10 : f32 to vector<128x128xf32>
      %c0_11 = arith.constant 0 : index
      %c0_12 = arith.constant 0 : index
      %13 = vector.load %arg8[%c0_11, %c0_12] : memref<128x128xf32, #tpu.memory_space<vmem>>, vector<128x128xf32>
      tpu.vector_store %arg8[%c0_11, %c0_12], %12 {strides = array<i32>} : memref<128x128xf32, #tpu.memory_space<vmem>>, vector<128x128xf32>,
    } else {
    }
    %c0 = arith.constant 0 : index
    %c0_1 = arith.constant 0 : index
    %3 = vector.load %arg8[%c0, %c0_1] : memref<128x128xf32, #tpu.memory_space<vmem>>, vector<128x128xf32>
    %c0_2 = arith.constant 0 : index
    %c0_3 = arith.constant 0 : index
    %4 = vector.load %arg3[%c0_2, %c0_3] : memref<128x128xbf16, #tpu.memory_space<vmem>>, vector<128x128xbf16>
    %c0_4 = arith.constant 0 : index
    %c0_5 = arith.constant 0 : index
    %5 = vector.load %arg4[%c0_4, %c0_5] : memref<128x128xbf16, #tpu.memory_space<vmem>>, vector<128x128xbf16>
    %cst = arith.constant dense<0.000000e+00> : vector<128x128xf32>
    %6 = tpu.matmul %4, %5, %cst {dimension_numbers = #tpu.dot_dimension_numbers<[1], [0], [0], [1], [0, 0, 1, 1], [], []>} : vector<128x128xbf16>, vector<128x128xbf16>, vector<128x128xf32> -> vector<128x128xf32>
    %7 = arith.addf %3, %6 : vector<128x128xf32>
    %c0_6 = arith.constant 0 : index
    %c0_7 = arith.constant 0 : index
    %8 = vector.load %arg8[%c0_6, %c0_7] : memref<128x128xf32, #tpu.memory_space<vmem>>, vector<128x128xf32>
    tpu.vector_store %arg8[%c0_6, %c0_7], %7 {strides = array<i32>} : memref<128x128xf32, #tpu.memory_space<vmem>>, vector<128x128xf32>,
    %c0_i32_8 = arith.constant 0 : i32
    %9 = arith.cmpi eq, %arg2, %c0_i32_8 : i32
    %10 = arith.extui %9 : i1 to i32
    %c0_i32_9 = arith.constant 0 : i32
    %11 = arith.cmpi ne, %10, %c0_i32_9 : i32
    scf.if %11 {
      %c0_10 = arith.constant 0 : index
      %c0_11 = arith.constant 0 : index
      %12 = vector.load %arg8[%c0_10, %c0_11] : memref<128x128xf32, #tpu.memory_space<vmem>>, vector<128x128xf32>
      %c0_12 = arith.constant 0 : index
      %c0_13 = arith.constant 0 : index
      %13 = vector.load %arg5[%c0_12, %c0_13] : memref<1x128xf32, #tpu.memory_space<vmem>>, vector<1x128xf32>
      %14 = vector.broadcast %13 : vector<1x128xf32> to vector<128x128xf32>
      %15 = arith.mulf %12, %14 : vector<128x128xf32>
      %c0_14 = arith.constant 0 : index
      %c0_15 = arith.constant 0 : index
      %16 = vector.load %arg6[%c0_14, %c0_15] : memref<1x128xf32, #tpu.memory_space<vmem>>, vector<1x128xf32>
      %17 = vector.broadcast %16 : vector<1x128xf32> to vector<128x128xf32>
      %18 = arith.addf %15, %17 : vector<128x128xf32>
      %19 = arith.truncf %18 : vector<128x128xf32> to vector<128x128xbf16>
      %c0_16 = arith.constant 0 : index
      %c0_17 = arith.constant 0 : index
      %20 = vector.load %arg7[%c0_16, %c0_17] : memref<128x128xbf16, #tpu.memory_space<vmem>>, vector<128x128xbf16>
      tpu.vector_store %arg7[%c0_16, %c0_17], %19 {strides = array<i32>} : memref<128x128xbf16, #tpu.memory_space<vmem>>, vector<128x128xbf16>,
    } else {
    }
    return
  }
  func.func @transform_0(%arg0: i32, %arg1: i32, %arg2: i32) -> (i32, i32) {
    %c0_i32 = arith.constant 0 : i32
    return %arg0, %arg2 : i32, i32
  }
  func.func @transform_1(%arg0: i32, %arg1: i32, %arg2: i32) -> (i32, i32) {
    %c0_i32 = arith.constant 0 : i32
    return %arg2, %arg1 : i32, i32
  }
  func.func @transform_2(%arg0: i32, %arg1: i32, %arg2: i32) -> (i32, i32) {
    %c0_i32 = arith.constant 0 : i32
    %c0_i32_0 = arith.constant 0 : i32
    return %c0_i32, %arg1 : i32, i32
  }
  func.func @transform_3(%arg0: i32, %arg1: i32, %arg2: i32) -> (i32, i32) {
    %c0_i32 = arith.constant 0 : i32
    %c0_i32_0 = arith.constant 0 : i32
    return %c0_i32, %arg1 : i32, i32
  }
  func.func @transform_4(%arg0: i32, %arg1: i32, %arg2: i32) -> (i32, i32) {
    %c0_i32 = arith.constant 0 : i32
    return %arg0, %arg1 : i32, i32
  }
}

module attributes {stable_mosaic.version = 11 : i64} {
  func.func @_fused_matmul_kernel(%arg0: i32, %arg1: i32, %arg2: i32, %arg3: memref<128x128xbf16, #tpu.memory_space<vmem>>, %arg4: memref<128x128xbf16, #tpu.memory_space<vmem>>, %arg5: memref<1x128xf32, #tpu.memory_space<vmem>>, %arg6: memref<1x128xf32, #tpu.memory_space<vmem>>, %arg7: memref<128x128xbf16, #tpu.memory_space<vmem>>, %arg8: memref<128x128xbf16, #tpu.memory_space<vmem>>, %arg9: memref<128x128xf32, #tpu.memory_space<vmem>>) attributes {dimension_semantics = [#tpu.dimension_semantics<parallel>, #tpu.dimension_semantics<parallel>, #tpu.dimension_semantics<arbitrary>], iteration_bounds = array<i64: 1, 1, 9>, scalar_prefetch = 0 : i64, scratch_operands = 1 : i64, tpu.core_type = #tpu.core_type<tc>, window_params = [{transform_indices = @transform_0, window_bounds = array<i64: 128, 128>}, {transform_indices = @transform_1, window_bounds = array<i64: 128, 128>}, {transform_indices = @transform_2, window_bounds = array<i64: 1, 128>}, {transform_indices = @transform_3, window_bounds = array<i64: 1, 128>}, {transform_indices = @transform_4, window_bounds = array<i64: 128, 128>}, {transform_indices = @transform_5, window_bounds = array<i64: 128, 128>}]} {
    %c0_i32 = arith.constant 0 : i32
    %0 = arith.cmpi eq, %arg2, %c0_i32 : i32
    %1 = arith.extui %0 : i1 to i32
    %c0_i32_0 = arith.constant 0 : i32
    %2 = arith.cmpi ne, %1, %c0_i32_0 : i32
    scf.if %2 {
      %cst_9 = arith.constant 0.000000e+00 : f32
      %12 = vector.broadcast %cst_9 : f32 to vector<128x128xf32>
      %c0_10 = arith.constant 0 : index
      %c0_11 = arith.constant 0 : index
      %13 = vector.load %arg9[%c0_10, %c0_11] : memref<128x128xf32, #tpu.memory_space<vmem>>, vector<128x128xf32>
      tpu.vector_store %arg9[%c0_10, %c0_11], %12 {strides = array<i32>} : memref<128x128xf32, #tpu.memory_space<vmem>>, vector<128x128xf32>,
    } else {
    }
    %c0 = arith.constant 0 : index
    %c0_1 = arith.constant 0 : index
    %3 = vector.load %arg9[%c0, %c0_1] : memref<128x128xf32, #tpu.memory_space<vmem>>, vector<128x128xf32>
    %c0_2 = arith.constant 0 : index
    %c0_3 = arith.constant 0 : index
    %4 = vector.load %arg3[%c0_2, %c0_3] : memref<128x128xbf16, #tpu.memory_space<vmem>>, vector<128x128xbf16>
    %c0_4 = arith.constant 0 : index
    %c0_5 = arith.constant 0 : index
    %5 = vector.load %arg4[%c0_4, %c0_5] : memref<128x128xbf16, #tpu.memory_space<vmem>>, vector<128x128xbf16>
    %cst = arith.constant dense<0.000000e+00> : vector<128x128xf32>
    %6 = tpu.matmul %4, %5, %cst {dimension_numbers = #tpu.dot_dimension_numbers<[1], [0], [0], [1], [0, 0, 1, 1], [], []>} : vector<128x128xbf16>, vector<128x128xbf16>, vector<128x128xf32> -> vector<128x128xf32>
    %7 = arith.addf %3, %6 : vector<128x128xf32>
    %c0_6 = arith.constant 0 : index
    %c0_7 = arith.constant 0 : index
    %8 = vector.load %arg9[%c0_6, %c0_7] : memref<128x128xf32, #tpu.memory_space<vmem>>, vector<128x128xf32>
    tpu.vector_store %arg9[%c0_6, %c0_7], %7 {strides = array<i32>} : memref<128x128xf32, #tpu.memory_space<vmem>>, vector<128x128xf32>,
    %c8_i32 = arith.constant 8 : i32
    %9 = arith.cmpi eq, %arg2, %c8_i32 : i32
    %10 = arith.extui %9 : i1 to i32
    %c0_i32_8 = arith.constant 0 : i32
    %11 = arith.cmpi ne, %10, %c0_i32_8 : i32
    scf.if %11 {
      %c0_9 = arith.constant 0 : index
      %c0_10 = arith.constant 0 : index
      %12 = vector.load %arg9[%c0_9, %c0_10] : memref<128x128xf32, #tpu.memory_space<vmem>>, vector<128x128xf32>
      %c0_11 = arith.constant 0 : index
      %c0_12 = arith.constant 0 : index
      %13 = vector.load %arg5[%c0_11, %c0_12] : memref<1x128xf32, #tpu.memory_space<vmem>>, vector<1x128xf32>
      %14 = vector.broadcast %13 : vector<1x128xf32> to vector<128x128xf32>
      %15 = arith.mulf %12, %14 : vector<128x128xf32>
      %c0_13 = arith.constant 0 : index
      %c0_14 = arith.constant 0 : index
      %16 = vector.load %arg6[%c0_13, %c0_14] : memref<1x128xf32, #tpu.memory_space<vmem>>, vector<1x128xf32>
      %17 = vector.broadcast %16 : vector<1x128xf32> to vector<128x128xf32>
      %18 = arith.addf %15, %17 : vector<128x128xf32>
      %c0_15 = arith.constant 0 : index
      %c0_16 = arith.constant 0 : index
      %19 = vector.load %arg7[%c0_15, %c0_16] : memref<128x128xbf16, #tpu.memory_space<vmem>>, vector<128x128xbf16>
      %20 = arith.extf %19 : vector<128x128xbf16> to vector<128x128xf32>
      %21 = arith.addf %18, %20 : vector<128x128xf32>
      %cst_17 = arith.constant 0.000000e+00 : f32
      %22 = vector.broadcast %cst_17 : f32 to vector<128x128xf32>
      %23 = arith.maximumf %21, %22 : vector<128x128xf32>
      %24 = arith.truncf %23 : vector<128x128xf32> to vector<128x128xbf16>
      %c0_18 = arith.constant 0 : index
      %c0_19 = arith.constant 0 : index
      %25 = vector.load %arg8[%c0_18, %c0_19] : memref<128x128xbf16, #tpu.memory_space<vmem>>, vector<128x128xbf16>
      tpu.vector_store %arg8[%c0_18, %c0_19], %24 {strides = array<i32>} : memref<128x128xbf16, #tpu.memory_space<vmem>>, vector<128x128xbf16>,
    } else {
    }
    return
  }
  func.func @transform_0(%arg0: i32, %arg1: i32, %arg2: i32) -> (i32, i32) {
    %c0_i32 = arith.constant 0 : i32
    return %arg0, %arg2 : i32, i32
  }
  func.func @transform_1(%arg0: i32, %arg1: i32, %arg2: i32) -> (i32, i32) {
    %c0_i32 = arith.constant 0 : i32
    return %arg2, %arg1 : i32, i32
  }
  func.func @transform_2(%arg0: i32, %arg1: i32, %arg2: i32) -> (i32, i32) {
    %c0_i32 = arith.constant 0 : i32
    %c0_i32_0 = arith.constant 0 : i32
    return %c0_i32, %arg1 : i32, i32
  }
  func.func @transform_3(%arg0: i32, %arg1: i32, %arg2: i32) -> (i32, i32) {
    %c0_i32 = arith.constant 0 : i32
    %c0_i32_0 = arith.constant 0 : i32
    return %c0_i32, %arg1 : i32, i32
  }
  func.func @transform_4(%arg0: i32, %arg1: i32, %arg2: i32) -> (i32, i32) {
    %c0_i32 = arith.constant 0 : i32
    return %arg0, %arg1 : i32, i32
  }
  func.func @transform_5(%arg0: i32, %arg1: i32, %arg2: i32) -> (i32, i32) {
    %c0_i32 = arith.constant 0 : i32
    return %arg0, %arg1 : i32, i32
  }
}

module attributes {stable_mosaic.version = 11 : i64} {
  func.func @_fused_matmul_kernel(%arg0: i32, %arg1: i32, %arg2: i32, %arg3: memref<32x128xbf16, #tpu.memory_space<vmem>>, %arg4: memref<128x256xbf16, #tpu.memory_space<vmem>>, %arg5: memref<1x256xf32, #tpu.memory_space<vmem>>, %arg6: memref<1x256xf32, #tpu.memory_space<vmem>>, %arg7: memref<32x256xbf16, #tpu.memory_space<vmem>>, %arg8: memref<32x256xf32, #tpu.memory_space<vmem>>) attributes {dimension_semantics = [#tpu.dimension_semantics<parallel>, #tpu.dimension_semantics<parallel>, #tpu.dimension_semantics<arbitrary>], iteration_bounds = array<i64: 1, 1, 9>, scalar_prefetch = 0 : i64, scratch_operands = 1 : i64, tpu.core_type = #tpu.core_type<tc>, window_params = [{transform_indices = @transform_0, window_bounds = array<i64: 32, 128>}, {transform_indices = @transform_1, window_bounds = array<i64: 128, 256>}, {transform_indices = @transform_2, window_bounds = array<i64: 1, 256>}, {transform_indices = @transform_3, window_bounds = array<i64: 1, 256>}, {transform_indices = @transform_4, window_bounds = array<i64: 32, 256>}]} {
    %c0_i32 = arith.constant 0 : i32
    %0 = arith.cmpi eq, %arg2, %c0_i32 : i32
    %1 = arith.extui %0 : i1 to i32
    %c0_i32_0 = arith.constant 0 : i32
    %2 = arith.cmpi ne, %1, %c0_i32_0 : i32
    scf.if %2 {
      %cst_9 = arith.constant 0.000000e+00 : f32
      %12 = vector.broadcast %cst_9 : f32 to vector<32x256xf32>
      %c0_10 = arith.constant 0 : index
      %c0_11 = arith.constant 0 : index
      %13 = vector.load %arg8[%c0_10, %c0_11] : memref<32x256xf32, #tpu.memory_space<vmem>>, vector<32x256xf32>
      tpu.vector_store %arg8[%c0_10, %c0_11], %12 {strides = array<i32>} : memref<32x256xf32, #tpu.memory_space<vmem>>, vector<32x256xf32>,
    } else {
    }
    %c0 = arith.constant 0 : index
    %c0_1 = arith.constant 0 : index
    %3 = vector.load %arg8[%c0, %c0_1] : memref<32x256xf32, #tpu.memory_space<vmem>>, vector<32x256xf32>
    %c0_2 = arith.constant 0 : index
    %c0_3 = arith.constant 0 : index
    %4 = vector.load %arg3[%c0_2, %c0_3] : memref<32x128xbf16, #tpu.memory_space<vmem>>, vector<32x128xbf16>
    %c0_4 = arith.constant 0 : index
    %c0_5 = arith.constant 0 : index
    %5 = vector.load %arg4[%c0_4, %c0_5] : memref<128x256xbf16, #tpu.memory_space<vmem>>, vector<128x256xbf16>
    %cst = arith.constant dense<0.000000e+00> : vector<32x256xf32>
    %6 = tpu.matmul %4, %5, %cst {dimension_numbers = #tpu.dot_dimension_numbers<[1], [0], [0], [1], [0, 0, 1, 1], [], []>} : vector<32x128xbf16>, vector<128x256xbf16>, vector<32x256xf32> -> vector<32x256xf32>
    %7 = arith.addf %3, %6 : vector<32x256xf32>
    %c0_6 = arith.constant 0 : index
    %c0_7 = arith.constant 0 : index
    %8 = vector.load %arg8[%c0_6, %c0_7] : memref<32x256xf32, #tpu.memory_space<vmem>>, vector<32x256xf32>
    tpu.vector_store %arg8[%c0_6, %c0_7], %7 {strides = array<i32>} : memref<32x256xf32, #tpu.memory_space<vmem>>, vector<32x256xf32>,
    %c8_i32 = arith.constant 8 : i32
    %9 = arith.cmpi eq, %arg2, %c8_i32 : i32
    %10 = arith.extui %9 : i1 to i32
    %c0_i32_8 = arith.constant 0 : i32
    %11 = arith.cmpi ne, %10, %c0_i32_8 : i32
    scf.if %11 {
      %c0_9 = arith.constant 0 : index
      %c0_10 = arith.constant 0 : index
      %12 = vector.load %arg8[%c0_9, %c0_10] : memref<32x256xf32, #tpu.memory_space<vmem>>, vector<32x256xf32>
      %c0_11 = arith.constant 0 : index
      %c0_12 = arith.constant 0 : index
      %13 = vector.load %arg5[%c0_11, %c0_12] : memref<1x256xf32, #tpu.memory_space<vmem>>, vector<1x256xf32>
      %14 = vector.broadcast %13 : vector<1x256xf32> to vector<32x256xf32>
      %15 = arith.mulf %12, %14 : vector<32x256xf32>
      %c0_13 = arith.constant 0 : index
      %c0_14 = arith.constant 0 : index
      %16 = vector.load %arg6[%c0_13, %c0_14] : memref<1x256xf32, #tpu.memory_space<vmem>>, vector<1x256xf32>
      %17 = vector.broadcast %16 : vector<1x256xf32> to vector<32x256xf32>
      %18 = arith.addf %15, %17 : vector<32x256xf32>
      %cst_15 = arith.constant 0.000000e+00 : f32
      %19 = vector.broadcast %cst_15 : f32 to vector<32x256xf32>
      %20 = arith.maximumf %18, %19 : vector<32x256xf32>
      %21 = arith.truncf %20 : vector<32x256xf32> to vector<32x256xbf16>
      %c0_16 = arith.constant 0 : index
      %c0_17 = arith.constant 0 : index
      %22 = vector.load %arg7[%c0_16, %c0_17] : memref<32x256xbf16, #tpu.memory_space<vmem>>, vector<32x256xbf16>
      tpu.vector_store %arg7[%c0_16, %c0_17], %21 {strides = array<i32>} : memref<32x256xbf16, #tpu.memory_space<vmem>>, vector<32x256xbf16>,
    } else {
    }
    return
  }
  func.func @transform_0(%arg0: i32, %arg1: i32, %arg2: i32) -> (i32, i32) {
    %c0_i32 = arith.constant 0 : i32
    return %arg0, %arg2 : i32, i32
  }
  func.func @transform_1(%arg0: i32, %arg1: i32, %arg2: i32) -> (i32, i32) {
    %c0_i32 = arith.constant 0 : i32
    return %arg2, %arg1 : i32, i32
  }
  func.func @transform_2(%arg0: i32, %arg1: i32, %arg2: i32) -> (i32, i32) {
    %c0_i32 = arith.constant 0 : i32
    %c0_i32_0 = arith.constant 0 : i32
    return %c0_i32, %arg1 : i32, i32
  }
  func.func @transform_3(%arg0: i32, %arg1: i32, %arg2: i32) -> (i32, i32) {
    %c0_i32 = arith.constant 0 : i32
    %c0_i32_0 = arith.constant 0 : i32
    return %c0_i32, %arg1 : i32, i32
  }
  func.func @transform_4(%arg0: i32, %arg1: i32, %arg2: i32) -> (i32, i32) {
    %c0_i32 = arith.constant 0 : i32
    return %arg0, %arg1 : i32, i32
  }
}

module attributes {stable_mosaic.version = 11 : i64} {
  func.func @_fused_matmul_kernel(%arg0: i32, %arg1: i32, %arg2: i32, %arg3: memref<32x256xbf16, #tpu.memory_space<vmem>>, %arg4: memref<256x256xbf16, #tpu.memory_space<vmem>>, %arg5: memref<1x256xf32, #tpu.memory_space<vmem>>, %arg6: memref<1x256xf32, #tpu.memory_space<vmem>>, %arg7: memref<32x256xbf16, #tpu.memory_space<vmem>>, %arg8: memref<32x256xbf16, #tpu.memory_space<vmem>>, %arg9: memref<32x256xf32, #tpu.memory_space<vmem>>) attributes {dimension_semantics = [#tpu.dimension_semantics<parallel>, #tpu.dimension_semantics<parallel>, #tpu.dimension_semantics<arbitrary>], iteration_bounds = array<i64: 1, 1, 9>, scalar_prefetch = 0 : i64, scratch_operands = 1 : i64, tpu.core_type = #tpu.core_type<tc>, window_params = [{transform_indices = @transform_0, window_bounds = array<i64: 32, 256>}, {transform_indices = @transform_1, window_bounds = array<i64: 256, 256>}, {transform_indices = @transform_2, window_bounds = array<i64: 1, 256>}, {transform_indices = @transform_3, window_bounds = array<i64: 1, 256>}, {transform_indices = @transform_4, window_bounds = array<i64: 32, 256>}, {transform_indices = @transform_5, window_bounds = array<i64: 32, 256>}]} {
    %c0_i32 = arith.constant 0 : i32
    %0 = arith.cmpi eq, %arg2, %c0_i32 : i32
    %1 = arith.extui %0 : i1 to i32
    %c0_i32_0 = arith.constant 0 : i32
    %2 = arith.cmpi ne, %1, %c0_i32_0 : i32
    scf.if %2 {
      %cst_9 = arith.constant 0.000000e+00 : f32
      %12 = vector.broadcast %cst_9 : f32 to vector<32x256xf32>
      %c0_10 = arith.constant 0 : index
      %c0_11 = arith.constant 0 : index
      %13 = vector.load %arg9[%c0_10, %c0_11] : memref<32x256xf32, #tpu.memory_space<vmem>>, vector<32x256xf32>
      tpu.vector_store %arg9[%c0_10, %c0_11], %12 {strides = array<i32>} : memref<32x256xf32, #tpu.memory_space<vmem>>, vector<32x256xf32>,
    } else {
    }
    %c0 = arith.constant 0 : index
    %c0_1 = arith.constant 0 : index
    %3 = vector.load %arg9[%c0, %c0_1] : memref<32x256xf32, #tpu.memory_space<vmem>>, vector<32x256xf32>
    %c0_2 = arith.constant 0 : index
    %c0_3 = arith.constant 0 : index
    %4 = vector.load %arg3[%c0_2, %c0_3] : memref<32x256xbf16, #tpu.memory_space<vmem>>, vector<32x256xbf16>
    %c0_4 = arith.constant 0 : index
    %c0_5 = arith.constant 0 : index
    %5 = vector.load %arg4[%c0_4, %c0_5] : memref<256x256xbf16, #tpu.memory_space<vmem>>, vector<256x256xbf16>
    %cst = arith.constant dense<0.000000e+00> : vector<32x256xf32>
    %6 = tpu.matmul %4, %5, %cst {dimension_numbers = #tpu.dot_dimension_numbers<[1], [0], [0], [1], [0, 0, 1, 1], [], []>} : vector<32x256xbf16>, vector<256x256xbf16>, vector<32x256xf32> -> vector<32x256xf32>
    %7 = arith.addf %3, %6 : vector<32x256xf32>
    %c0_6 = arith.constant 0 : index
    %c0_7 = arith.constant 0 : index
    %8 = vector.load %arg9[%c0_6, %c0_7] : memref<32x256xf32, #tpu.memory_space<vmem>>, vector<32x256xf32>
    tpu.vector_store %arg9[%c0_6, %c0_7], %7 {strides = array<i32>} : memref<32x256xf32, #tpu.memory_space<vmem>>, vector<32x256xf32>,
    %c8_i32 = arith.constant 8 : i32
    %9 = arith.cmpi eq, %arg2, %c8_i32 : i32
    %10 = arith.extui %9 : i1 to i32
    %c0_i32_8 = arith.constant 0 : i32
    %11 = arith.cmpi ne, %10, %c0_i32_8 : i32
    scf.if %11 {
      %c0_9 = arith.constant 0 : index
      %c0_10 = arith.constant 0 : index
      %12 = vector.load %arg9[%c0_9, %c0_10] : memref<32x256xf32, #tpu.memory_space<vmem>>, vector<32x256xf32>
      %c0_11 = arith.constant 0 : index
      %c0_12 = arith.constant 0 : index
      %13 = vector.load %arg5[%c0_11, %c0_12] : memref<1x256xf32, #tpu.memory_space<vmem>>, vector<1x256xf32>
      %14 = vector.broadcast %13 : vector<1x256xf32> to vector<32x256xf32>
      %15 = arith.mulf %12, %14 : vector<32x256xf32>
      %c0_13 = arith.constant 0 : index
      %c0_14 = arith.constant 0 : index
      %16 = vector.load %arg6[%c0_13, %c0_14] : memref<1x256xf32, #tpu.memory_space<vmem>>, vector<1x256xf32>
      %17 = vector.broadcast %16 : vector<1x256xf32> to vector<32x256xf32>
      %18 = arith.addf %15, %17 : vector<32x256xf32>
      %c0_15 = arith.constant 0 : index
      %c0_16 = arith.constant 0 : index
      %19 = vector.load %arg7[%c0_15, %c0_16] : memref<32x256xbf16, #tpu.memory_space<vmem>>, vector<32x256xbf16>
      %20 = arith.extf %19 : vector<32x256xbf16> to vector<32x256xf32>
      %21 = arith.addf %18, %20 : vector<32x256xf32>
      %cst_17 = arith.constant 0.000000e+00 : f32
      %22 = vector.broadcast %cst_17 : f32 to vector<32x256xf32>
      %23 = arith.maximumf %21, %22 : vector<32x256xf32>
      %24 = arith.truncf %23 : vector<32x256xf32> to vector<32x256xbf16>
      %c0_18 = arith.constant 0 : index
      %c0_19 = arith.constant 0 : index
      %25 = vector.load %arg8[%c0_18, %c0_19] : memref<32x256xbf16, #tpu.memory_space<vmem>>, vector<32x256xbf16>
      tpu.vector_store %arg8[%c0_18, %c0_19], %24 {strides = array<i32>} : memref<32x256xbf16, #tpu.memory_space<vmem>>, vector<32x256xbf16>,
    } else {
    }
    return
  }
  func.func @transform_0(%arg0: i32, %arg1: i32, %arg2: i32) -> (i32, i32) {
    %c0_i32 = arith.constant 0 : i32
    return %arg0, %arg2 : i32, i32
  }
  func.func @transform_1(%arg0: i32, %arg1: i32, %arg2: i32) -> (i32, i32) {
    %c0_i32 = arith.constant 0 : i32
    return %arg2, %arg1 : i32, i32
  }
  func.func @transform_2(%arg0: i32, %arg1: i32, %arg2: i32) -> (i32, i32) {
    %c0_i32 = arith.constant 0 : i32
    %c0_i32_0 = arith.constant 0 : i32
    return %c0_i32, %arg1 : i32, i32
  }
  func.func @transform_3(%arg0: i32, %arg1: i32, %arg2: i32) -> (i32, i32) {
    %c0_i32 = arith.constant 0 : i32
    %c0_i32_0 = arith.constant 0 : i32
    return %c0_i32, %arg1 : i32, i32
  }
  func.func @transform_4(%arg0: i32, %arg1: i32, %arg2: i32) -> (i32, i32) {
    %c0_i32 = arith.constant 0 : i32
    return %arg0, %arg1 : i32, i32
  }
  func.func @transform_5(%arg0: i32, %arg1: i32, %arg2: i32) -> (i32, i32) {
    %c0_i32 = arith.constant 0 : i32
    return %arg0, %arg1 : i32, i32
  }
}

module attributes {stable_mosaic.version = 11 : i64} {
  func.func @_fused_matmul_kernel(%arg0: i32, %arg1: i32, %arg2: i32, %arg3: memref<32x128xbf16, #tpu.memory_space<vmem>>, %arg4: memref<128x256xbf16, #tpu.memory_space<vmem>>, %arg5: memref<1x256xf32, #tpu.memory_space<vmem>>, %arg6: memref<1x256xf32, #tpu.memory_space<vmem>>, %arg7: memref<32x256xbf16, #tpu.memory_space<vmem>>, %arg8: memref<32x256xf32, #tpu.memory_space<vmem>>) attributes {dimension_semantics = [#tpu.dimension_semantics<parallel>, #tpu.dimension_semantics<parallel>, #tpu.dimension_semantics<arbitrary>], iteration_bounds = array<i64: 1, 1, 1>, scalar_prefetch = 0 : i64, scratch_operands = 1 : i64, tpu.core_type = #tpu.core_type<tc>, window_params = [{transform_indices = @transform_0, window_bounds = array<i64: 32, 128>}, {transform_indices = @transform_1, window_bounds = array<i64: 128, 256>}, {transform_indices = @transform_2, window_bounds = array<i64: 1, 256>}, {transform_indices = @transform_3, window_bounds = array<i64: 1, 256>}, {transform_indices = @transform_4, window_bounds = array<i64: 32, 256>}]} {
    %c0_i32 = arith.constant 0 : i32
    %0 = arith.cmpi eq, %arg2, %c0_i32 : i32
    %1 = arith.extui %0 : i1 to i32
    %c0_i32_0 = arith.constant 0 : i32
    %2 = arith.cmpi ne, %1, %c0_i32_0 : i32
    scf.if %2 {
      %cst_10 = arith.constant 0.000000e+00 : f32
      %12 = vector.broadcast %cst_10 : f32 to vector<32x256xf32>
      %c0_11 = arith.constant 0 : index
      %c0_12 = arith.constant 0 : index
      %13 = vector.load %arg8[%c0_11, %c0_12] : memref<32x256xf32, #tpu.memory_space<vmem>>, vector<32x256xf32>
      tpu.vector_store %arg8[%c0_11, %c0_12], %12 {strides = array<i32>} : memref<32x256xf32, #tpu.memory_space<vmem>>, vector<32x256xf32>,
    } else {
    }
    %c0 = arith.constant 0 : index
    %c0_1 = arith.constant 0 : index
    %3 = vector.load %arg8[%c0, %c0_1] : memref<32x256xf32, #tpu.memory_space<vmem>>, vector<32x256xf32>
    %c0_2 = arith.constant 0 : index
    %c0_3 = arith.constant 0 : index
    %4 = vector.load %arg3[%c0_2, %c0_3] : memref<32x128xbf16, #tpu.memory_space<vmem>>, vector<32x128xbf16>
    %c0_4 = arith.constant 0 : index
    %c0_5 = arith.constant 0 : index
    %5 = vector.load %arg4[%c0_4, %c0_5] : memref<128x256xbf16, #tpu.memory_space<vmem>>, vector<128x256xbf16>
    %cst = arith.constant dense<0.000000e+00> : vector<32x256xf32>
    %6 = tpu.matmul %4, %5, %cst {dimension_numbers = #tpu.dot_dimension_numbers<[1], [0], [0], [1], [0, 0, 1, 1], [], []>} : vector<32x128xbf16>, vector<128x256xbf16>, vector<32x256xf32> -> vector<32x256xf32>
    %7 = arith.addf %3, %6 : vector<32x256xf32>
    %c0_6 = arith.constant 0 : index
    %c0_7 = arith.constant 0 : index
    %8 = vector.load %arg8[%c0_6, %c0_7] : memref<32x256xf32, #tpu.memory_space<vmem>>, vector<32x256xf32>
    tpu.vector_store %arg8[%c0_6, %c0_7], %7 {strides = array<i32>} : memref<32x256xf32, #tpu.memory_space<vmem>>, vector<32x256xf32>,
    %c0_i32_8 = arith.constant 0 : i32
    %9 = arith.cmpi eq, %arg2, %c0_i32_8 : i32
    %10 = arith.extui %9 : i1 to i32
    %c0_i32_9 = arith.constant 0 : i32
    %11 = arith.cmpi ne, %10, %c0_i32_9 : i32
    scf.if %11 {
      %c0_10 = arith.constant 0 : index
      %c0_11 = arith.constant 0 : index
      %12 = vector.load %arg8[%c0_10, %c0_11] : memref<32x256xf32, #tpu.memory_space<vmem>>, vector<32x256xf32>
      %c0_12 = arith.constant 0 : index
      %c0_13 = arith.constant 0 : index
      %13 = vector.load %arg5[%c0_12, %c0_13] : memref<1x256xf32, #tpu.memory_space<vmem>>, vector<1x256xf32>
      %14 = vector.broadcast %13 : vector<1x256xf32> to vector<32x256xf32>
      %15 = arith.mulf %12, %14 : vector<32x256xf32>
      %c0_14 = arith.constant 0 : index
      %c0_15 = arith.constant 0 : index
      %16 = vector.load %arg6[%c0_14, %c0_15] : memref<1x256xf32, #tpu.memory_space<vmem>>, vector<1x256xf32>
      %17 = vector.broadcast %16 : vector<1x256xf32> to vector<32x256xf32>
      %18 = arith.addf %15, %17 : vector<32x256xf32>
      %19 = arith.truncf %18 : vector<32x256xf32> to vector<32x256xbf16>
      %c0_16 = arith.constant 0 : index
      %c0_17 = arith.constant 0 : index
      %20 = vector.load %arg7[%c0_16, %c0_17] : memref<32x256xbf16, #tpu.memory_space<vmem>>, vector<32x256xbf16>
      tpu.vector_store %arg7[%c0_16, %c0_17], %19 {strides = array<i32>} : memref<32x256xbf16, #tpu.memory_space<vmem>>, vector<32x256xbf16>,
    } else {
    }
    return
  }
  func.func @transform_0(%arg0: i32, %arg1: i32, %arg2: i32) -> (i32, i32) {
    %c0_i32 = arith.constant 0 : i32
    return %arg0, %arg2 : i32, i32
  }
  func.func @transform_1(%arg0: i32, %arg1: i32, %arg2: i32) -> (i32, i32) {
    %c0_i32 = arith.constant 0 : i32
    return %arg2, %arg1 : i32, i32
  }
  func.func @transform_2(%arg0: i32, %arg1: i32, %arg2: i32) -> (i32, i32) {
    %c0_i32 = arith.constant 0 : i32
    %c0_i32_0 = arith.constant 0 : i32
    return %c0_i32, %arg1 : i32, i32
  }
  func.func @transform_3(%arg0: i32, %arg1: i32, %arg2: i32) -> (i32, i32) {
    %c0_i32 = arith.constant 0 : i32
    %c0_i32_0 = arith.constant 0 : i32
    return %c0_i32, %arg1 : i32, i32
  }
  func.func @transform_4(%arg0: i32, %arg1: i32, %arg2: i32) -> (i32, i32) {
    %c0_i32 = arith.constant 0 : i32
    return %arg0, %arg1 : i32, i32
  }
}

module attributes {stable_mosaic.version = 11 : i64} {
  func.func @_fused_matmul_kernel(%arg0: i32, %arg1: i32, %arg2: i32, %arg3: memref<8x256xbf16, #tpu.memory_space<vmem>>, %arg4: memref<256x256xbf16, #tpu.memory_space<vmem>>, %arg5: memref<1x256xf32, #tpu.memory_space<vmem>>, %arg6: memref<1x256xf32, #tpu.memory_space<vmem>>, %arg7: memref<8x256xbf16, #tpu.memory_space<vmem>>, %arg8: memref<8x256xf32, #tpu.memory_space<vmem>>) attributes {dimension_semantics = [#tpu.dimension_semantics<parallel>, #tpu.dimension_semantics<parallel>, #tpu.dimension_semantics<arbitrary>], iteration_bounds = array<i64: 1, 2, 9>, scalar_prefetch = 0 : i64, scratch_operands = 1 : i64, tpu.core_type = #tpu.core_type<tc>, window_params = [{transform_indices = @transform_0, window_bounds = array<i64: 8, 256>}, {transform_indices = @transform_1, window_bounds = array<i64: 256, 256>}, {transform_indices = @transform_2, window_bounds = array<i64: 1, 256>}, {transform_indices = @transform_3, window_bounds = array<i64: 1, 256>}, {transform_indices = @transform_4, window_bounds = array<i64: 8, 256>}]} {
    %c0_i32 = arith.constant 0 : i32
    %0 = arith.cmpi eq, %arg2, %c0_i32 : i32
    %1 = arith.extui %0 : i1 to i32
    %c0_i32_0 = arith.constant 0 : i32
    %2 = arith.cmpi ne, %1, %c0_i32_0 : i32
    scf.if %2 {
      %cst_9 = arith.constant 0.000000e+00 : f32
      %12 = vector.broadcast %cst_9 : f32 to vector<8x256xf32>
      %c0_10 = arith.constant 0 : index
      %c0_11 = arith.constant 0 : index
      %13 = vector.load %arg8[%c0_10, %c0_11] : memref<8x256xf32, #tpu.memory_space<vmem>>, vector<8x256xf32>
      tpu.vector_store %arg8[%c0_10, %c0_11], %12 {strides = array<i32>} : memref<8x256xf32, #tpu.memory_space<vmem>>, vector<8x256xf32>,
    } else {
    }
    %c0 = arith.constant 0 : index
    %c0_1 = arith.constant 0 : index
    %3 = vector.load %arg8[%c0, %c0_1] : memref<8x256xf32, #tpu.memory_space<vmem>>, vector<8x256xf32>
    %c0_2 = arith.constant 0 : index
    %c0_3 = arith.constant 0 : index
    %4 = vector.load %arg3[%c0_2, %c0_3] : memref<8x256xbf16, #tpu.memory_space<vmem>>, vector<8x256xbf16>
    %c0_4 = arith.constant 0 : index
    %c0_5 = arith.constant 0 : index
    %5 = vector.load %arg4[%c0_4, %c0_5] : memref<256x256xbf16, #tpu.memory_space<vmem>>, vector<256x256xbf16>
    %cst = arith.constant dense<0.000000e+00> : vector<8x256xf32>
    %6 = tpu.matmul %4, %5, %cst {dimension_numbers = #tpu.dot_dimension_numbers<[1], [0], [0], [1], [0, 0, 1, 1], [], []>} : vector<8x256xbf16>, vector<256x256xbf16>, vector<8x256xf32> -> vector<8x256xf32>
    %7 = arith.addf %3, %6 : vector<8x256xf32>
    %c0_6 = arith.constant 0 : index
    %c0_7 = arith.constant 0 : index
    %8 = vector.load %arg8[%c0_6, %c0_7] : memref<8x256xf32, #tpu.memory_space<vmem>>, vector<8x256xf32>
    tpu.vector_store %arg8[%c0_6, %c0_7], %7 {strides = array<i32>} : memref<8x256xf32, #tpu.memory_space<vmem>>, vector<8x256xf32>,
    %c8_i32 = arith.constant 8 : i32
    %9 = arith.cmpi eq, %arg2, %c8_i32 : i32
    %10 = arith.extui %9 : i1 to i32
    %c0_i32_8 = arith.constant 0 : i32
    %11 = arith.cmpi ne, %10, %c0_i32_8 : i32
    scf.if %11 {
      %c0_9 = arith.constant 0 : index
      %c0_10 = arith.constant 0 : index
      %12 = vector.load %arg8[%c0_9, %c0_10] : memref<8x256xf32, #tpu.memory_space<vmem>>, vector<8x256xf32>
      %c0_11 = arith.constant 0 : index
      %c0_12 = arith.constant 0 : index
      %13 = vector.load %arg5[%c0_11, %c0_12] : memref<1x256xf32, #tpu.memory_space<vmem>>, vector<1x256xf32>
      %14 = vector.broadcast %13 : vector<1x256xf32> to vector<8x256xf32>
      %15 = arith.mulf %12, %14 : vector<8x256xf32>
      %c0_13 = arith.constant 0 : index
      %c0_14 = arith.constant 0 : index
      %16 = vector.load %arg6[%c0_13, %c0_14] : memref<1x256xf32, #tpu.memory_space<vmem>>, vector<1x256xf32>
      %17 = vector.broadcast %16 : vector<1x256xf32> to vector<8x256xf32>
      %18 = arith.addf %15, %17 : vector<8x256xf32>
      %cst_15 = arith.constant 0.000000e+00 : f32
      %19 = vector.broadcast %cst_15 : f32 to vector<8x256xf32>
      %20 = arith.maximumf %18, %19 : vector<8x256xf32>
      %21 = arith.truncf %20 : vector<8x256xf32> to vector<8x256xbf16>
      %c0_16 = arith.constant 0 : index
      %c0_17 = arith.constant 0 : index
      %22 = vector.load %arg7[%c0_16, %c0_17] : memref<8x256xbf16, #tpu.memory_space<vmem>>, vector<8x256xbf16>
      tpu.vector_store %arg7[%c0_16, %c0_17], %21 {strides = array<i32>} : memref<8x256xbf16, #tpu.memory_space<vmem>>, vector<8x256xbf16>,
    } else {
    }
    return
  }
  func.func @transform_0(%arg0: i32, %arg1: i32, %arg2: i32) -> (i32, i32) {
    %c0_i32 = arith.constant 0 : i32
    return %arg0, %arg2 : i32, i32
  }
  func.func @transform_1(%arg0: i32, %arg1: i32, %arg2: i32) -> (i32, i32) {
    %c0_i32 = arith.constant 0 : i32
    return %arg2, %arg1 : i32, i32
  }
  func.func @transform_2(%arg0: i32, %arg1: i32, %arg2: i32) -> (i32, i32) {
    %c0_i32 = arith.constant 0 : i32
    %c0_i32_0 = arith.constant 0 : i32
    return %c0_i32, %arg1 : i32, i32
  }
  func.func @transform_3(%arg0: i32, %arg1: i32, %arg2: i32) -> (i32, i32) {
    %c0_i32 = arith.constant 0 : i32
    %c0_i32_0 = arith.constant 0 : i32
    return %c0_i32, %arg1 : i32, i32
  }
  func.func @transform_4(%arg0: i32, %arg1: i32, %arg2: i32) -> (i32, i32) {
    %c0_i32 = arith.constant 0 : i32
    return %arg0, %arg1 : i32, i32
  }
}

module attributes {stable_mosaic.version = 11 : i64} {
  func.func @_fused_matmul_kernel(%arg0: i32, %arg1: i32, %arg2: i32, %arg3: memref<8x256xbf16, #tpu.memory_space<vmem>>, %arg4: memref<256x256xbf16, #tpu.memory_space<vmem>>, %arg5: memref<1x256xf32, #tpu.memory_space<vmem>>, %arg6: memref<1x256xf32, #tpu.memory_space<vmem>>, %arg7: memref<8x256xbf16, #tpu.memory_space<vmem>>, %arg8: memref<8x256xf32, #tpu.memory_space<vmem>>) attributes {dimension_semantics = [#tpu.dimension_semantics<parallel>, #tpu.dimension_semantics<parallel>, #tpu.dimension_semantics<arbitrary>], iteration_bounds = array<i64: 1, 2, 1>, scalar_prefetch = 0 : i64, scratch_operands = 1 : i64, tpu.core_type = #tpu.core_type<tc>, window_params = [{transform_indices = @transform_0, window_bounds = array<i64: 8, 256>}, {transform_indices = @transform_1, window_bounds = array<i64: 256, 256>}, {transform_indices = @transform_2, window_bounds = array<i64: 1, 256>}, {transform_indices = @transform_3, window_bounds = array<i64: 1, 256>}, {transform_indices = @transform_4, window_bounds = array<i64: 8, 256>}]} {
    %c0_i32 = arith.constant 0 : i32
    %0 = arith.cmpi eq, %arg2, %c0_i32 : i32
    %1 = arith.extui %0 : i1 to i32
    %c0_i32_0 = arith.constant 0 : i32
    %2 = arith.cmpi ne, %1, %c0_i32_0 : i32
    scf.if %2 {
      %cst_10 = arith.constant 0.000000e+00 : f32
      %12 = vector.broadcast %cst_10 : f32 to vector<8x256xf32>
      %c0_11 = arith.constant 0 : index
      %c0_12 = arith.constant 0 : index
      %13 = vector.load %arg8[%c0_11, %c0_12] : memref<8x256xf32, #tpu.memory_space<vmem>>, vector<8x256xf32>
      tpu.vector_store %arg8[%c0_11, %c0_12], %12 {strides = array<i32>} : memref<8x256xf32, #tpu.memory_space<vmem>>, vector<8x256xf32>,
    } else {
    }
    %c0 = arith.constant 0 : index
    %c0_1 = arith.constant 0 : index
    %3 = vector.load %arg8[%c0, %c0_1] : memref<8x256xf32, #tpu.memory_space<vmem>>, vector<8x256xf32>
    %c0_2 = arith.constant 0 : index
    %c0_3 = arith.constant 0 : index
    %4 = vector.load %arg3[%c0_2, %c0_3] : memref<8x256xbf16, #tpu.memory_space<vmem>>, vector<8x256xbf16>
    %c0_4 = arith.constant 0 : index
    %c0_5 = arith.constant 0 : index
    %5 = vector.load %arg4[%c0_4, %c0_5] : memref<256x256xbf16, #tpu.memory_space<vmem>>, vector<256x256xbf16>
    %cst = arith.constant dense<0.000000e+00> : vector<8x256xf32>
    %6 = tpu.matmul %4, %5, %cst {dimension_numbers = #tpu.dot_dimension_numbers<[1], [0], [0], [1], [0, 0, 1, 1], [], []>} : vector<8x256xbf16>, vector<256x256xbf16>, vector<8x256xf32> -> vector<8x256xf32>
    %7 = arith.addf %3, %6 : vector<8x256xf32>
    %c0_6 = arith.constant 0 : index
    %c0_7 = arith.constant 0 : index
    %8 = vector.load %arg8[%c0_6, %c0_7] : memref<8x256xf32, #tpu.memory_space<vmem>>, vector<8x256xf32>
    tpu.vector_store %arg8[%c0_6, %c0_7], %7 {strides = array<i32>} : memref<8x256xf32, #tpu.memory_space<vmem>>, vector<8x256xf32>,
    %c0_i32_8 = arith.constant 0 : i32
    %9 = arith.cmpi eq, %arg2, %c0_i32_8 : i32
    %10 = arith.extui %9 : i1 to i32
    %c0_i32_9 = arith.constant 0 : i32
    %11 = arith.cmpi ne, %10, %c0_i32_9 : i32
    scf.if %11 {
      %c0_10 = arith.constant 0 : index
      %c0_11 = arith.constant 0 : index
      %12 = vector.load %arg8[%c0_10, %c0_11] : memref<8x256xf32, #tpu.memory_space<vmem>>, vector<8x256xf32>
      %c0_12 = arith.constant 0 : index
      %c0_13 = arith.constant 0 : index
      %13 = vector.load %arg5[%c0_12, %c0_13] : memref<1x256xf32, #tpu.memory_space<vmem>>, vector<1x256xf32>
      %14 = vector.broadcast %13 : vector<1x256xf32> to vector<8x256xf32>
      %15 = arith.mulf %12, %14 : vector<8x256xf32>
      %c0_14 = arith.constant 0 : index
      %c0_15 = arith.constant 0 : index
      %16 = vector.load %arg6[%c0_14, %c0_15] : memref<1x256xf32, #tpu.memory_space<vmem>>, vector<1x256xf32>
      %17 = vector.broadcast %16 : vector<1x256xf32> to vector<8x256xf32>
      %18 = arith.addf %15, %17 : vector<8x256xf32>
      %19 = arith.truncf %18 : vector<8x256xf32> to vector<8x256xbf16>
      %c0_16 = arith.constant 0 : index
      %c0_17 = arith.constant 0 : index
      %20 = vector.load %arg7[%c0_16, %c0_17] : memref<8x256xbf16, #tpu.memory_space<vmem>>, vector<8x256xbf16>
      tpu.vector_store %arg7[%c0_16, %c0_17], %19 {strides = array<i32>} : memref<8x256xbf16, #tpu.memory_space<vmem>>, vector<8x256xbf16>,
    } else {
    }
    return
  }
  func.func @transform_0(%arg0: i32, %arg1: i32, %arg2: i32) -> (i32, i32) {
    %c0_i32 = arith.constant 0 : i32
    return %arg0, %arg2 : i32, i32
  }
  func.func @transform_1(%arg0: i32, %arg1: i32, %arg2: i32) -> (i32, i32) {
    %c0_i32 = arith.constant 0 : i32
    return %arg2, %arg1 : i32, i32
  }
  func.func @transform_2(%arg0: i32, %arg1: i32, %arg2: i32) -> (i32, i32) {
    %c0_i32 = arith.constant 0 : i32
    %c0_i32_0 = arith.constant 0 : i32
    return %c0_i32, %arg1 : i32, i32
  }
  func.func @transform_3(%arg0: i32, %arg1: i32, %arg2: i32) -> (i32, i32) {
    %c0_i32 = arith.constant 0 : i32
    %c0_i32_0 = arith.constant 0 : i32
    return %c0_i32, %arg1 : i32, i32
  }
  func.func @transform_4(%arg0: i32, %arg1: i32, %arg2: i32) -> (i32, i32) {
    %c0_i32 = arith.constant 0 : i32
    return %arg0, %arg1 : i32, i32
  }
}

module attributes {stable_mosaic.version = 11 : i64} {
  func.func @_fused_matmul_kernel(%arg0: i32, %arg1: i32, %arg2: i32, %arg3: memref<8x256xbf16, #tpu.memory_space<vmem>>, %arg4: memref<256x256xbf16, #tpu.memory_space<vmem>>, %arg5: memref<1x256xf32, #tpu.memory_space<vmem>>, %arg6: memref<1x256xf32, #tpu.memory_space<vmem>>, %arg7: memref<8x256xbf16, #tpu.memory_space<vmem>>, %arg8: memref<8x256xbf16, #tpu.memory_space<vmem>>, %arg9: memref<8x256xf32, #tpu.memory_space<vmem>>) attributes {dimension_semantics = [#tpu.dimension_semantics<parallel>, #tpu.dimension_semantics<parallel>, #tpu.dimension_semantics<arbitrary>], iteration_bounds = array<i64: 1, 2, 18>, scalar_prefetch = 0 : i64, scratch_operands = 1 : i64, tpu.core_type = #tpu.core_type<tc>, window_params = [{transform_indices = @transform_0, window_bounds = array<i64: 8, 256>}, {transform_indices = @transform_1, window_bounds = array<i64: 256, 256>}, {transform_indices = @transform_2, window_bounds = array<i64: 1, 256>}, {transform_indices = @transform_3, window_bounds = array<i64: 1, 256>}, {transform_indices = @transform_4, window_bounds = array<i64: 8, 256>}, {transform_indices = @transform_5, window_bounds = array<i64: 8, 256>}]} {
    %c0_i32 = arith.constant 0 : i32
    %0 = arith.cmpi eq, %arg2, %c0_i32 : i32
    %1 = arith.extui %0 : i1 to i32
    %c0_i32_0 = arith.constant 0 : i32
    %2 = arith.cmpi ne, %1, %c0_i32_0 : i32
    scf.if %2 {
      %cst_9 = arith.constant 0.000000e+00 : f32
      %12 = vector.broadcast %cst_9 : f32 to vector<8x256xf32>
      %c0_10 = arith.constant 0 : index
      %c0_11 = arith.constant 0 : index
      %13 = vector.load %arg9[%c0_10, %c0_11] : memref<8x256xf32, #tpu.memory_space<vmem>>, vector<8x256xf32>
      tpu.vector_store %arg9[%c0_10, %c0_11], %12 {strides = array<i32>} : memref<8x256xf32, #tpu.memory_space<vmem>>, vector<8x256xf32>,
    } else {
    }
    %c0 = arith.constant 0 : index
    %c0_1 = arith.constant 0 : index
    %3 = vector.load %arg9[%c0, %c0_1] : memref<8x256xf32, #tpu.memory_space<vmem>>, vector<8x256xf32>
    %c0_2 = arith.constant 0 : index
    %c0_3 = arith.constant 0 : index
    %4 = vector.load %arg3[%c0_2, %c0_3] : memref<8x256xbf16, #tpu.memory_space<vmem>>, vector<8x256xbf16>
    %c0_4 = arith.constant 0 : index
    %c0_5 = arith.constant 0 : index
    %5 = vector.load %arg4[%c0_4, %c0_5] : memref<256x256xbf16, #tpu.memory_space<vmem>>, vector<256x256xbf16>
    %cst = arith.constant dense<0.000000e+00> : vector<8x256xf32>
    %6 = tpu.matmul %4, %5, %cst {dimension_numbers = #tpu.dot_dimension_numbers<[1], [0], [0], [1], [0, 0, 1, 1], [], []>} : vector<8x256xbf16>, vector<256x256xbf16>, vector<8x256xf32> -> vector<8x256xf32>
    %7 = arith.addf %3, %6 : vector<8x256xf32>
    %c0_6 = arith.constant 0 : index
    %c0_7 = arith.constant 0 : index
    %8 = vector.load %arg9[%c0_6, %c0_7] : memref<8x256xf32, #tpu.memory_space<vmem>>, vector<8x256xf32>
    tpu.vector_store %arg9[%c0_6, %c0_7], %7 {strides = array<i32>} : memref<8x256xf32, #tpu.memory_space<vmem>>, vector<8x256xf32>,
    %c17_i32 = arith.constant 17 : i32
    %9 = arith.cmpi eq, %arg2, %c17_i32 : i32
    %10 = arith.extui %9 : i1 to i32
    %c0_i32_8 = arith.constant 0 : i32
    %11 = arith.cmpi ne, %10, %c0_i32_8 : i32
    scf.if %11 {
      %c0_9 = arith.constant 0 : index
      %c0_10 = arith.constant 0 : index
      %12 = vector.load %arg9[%c0_9, %c0_10] : memref<8x256xf32, #tpu.memory_space<vmem>>, vector<8x256xf32>
      %c0_11 = arith.constant 0 : index
      %c0_12 = arith.constant 0 : index
      %13 = vector.load %arg5[%c0_11, %c0_12] : memref<1x256xf32, #tpu.memory_space<vmem>>, vector<1x256xf32>
      %14 = vector.broadcast %13 : vector<1x256xf32> to vector<8x256xf32>
      %15 = arith.mulf %12, %14 : vector<8x256xf32>
      %c0_13 = arith.constant 0 : index
      %c0_14 = arith.constant 0 : index
      %16 = vector.load %arg6[%c0_13, %c0_14] : memref<1x256xf32, #tpu.memory_space<vmem>>, vector<1x256xf32>
      %17 = vector.broadcast %16 : vector<1x256xf32> to vector<8x256xf32>
      %18 = arith.addf %15, %17 : vector<8x256xf32>
      %c0_15 = arith.constant 0 : index
      %c0_16 = arith.constant 0 : index
      %19 = vector.load %arg7[%c0_15, %c0_16] : memref<8x256xbf16, #tpu.memory_space<vmem>>, vector<8x256xbf16>
      %20 = arith.extf %19 : vector<8x256xbf16> to vector<8x256xf32>
      %21 = arith.addf %18, %20 : vector<8x256xf32>
      %cst_17 = arith.constant 0.000000e+00 : f32
      %22 = vector.broadcast %cst_17 : f32 to vector<8x256xf32>
      %23 = arith.maximumf %21, %22 : vector<8x256xf32>
      %24 = arith.truncf %23 : vector<8x256xf32> to vector<8x256xbf16>
      %c0_18 = arith.constant 0 : index
      %c0_19 = arith.constant 0 : index
      %25 = vector.load %arg8[%c0_18, %c0_19] : memref<8x256xbf16, #tpu.memory_space<vmem>>, vector<8x256xbf16>
      tpu.vector_store %arg8[%c0_18, %c0_19], %24 {strides = array<i32>} : memref<8x256xbf16, #tpu.memory_space<vmem>>, vector<8x256xbf16>,
    } else {
    }
    return
  }
  func.func @transform_0(%arg0: i32, %arg1: i32, %arg2: i32) -> (i32, i32) {
    %c0_i32 = arith.constant 0 : i32
    return %arg0, %arg2 : i32, i32
  }
  func.func @transform_1(%arg0: i32, %arg1: i32, %arg2: i32) -> (i32, i32) {
    %c0_i32 = arith.constant 0 : i32
    return %arg2, %arg1 : i32, i32
  }
  func.func @transform_2(%arg0: i32, %arg1: i32, %arg2: i32) -> (i32, i32) {
    %c0_i32 = arith.constant 0 : i32
    %c0_i32_0 = arith.constant 0 : i32
    return %c0_i32, %arg1 : i32, i32
  }
  func.func @transform_3(%arg0: i32, %arg1: i32, %arg2: i32) -> (i32, i32) {
    %c0_i32 = arith.constant 0 : i32
    %c0_i32_0 = arith.constant 0 : i32
    return %c0_i32, %arg1 : i32, i32
  }
  func.func @transform_4(%arg0: i32, %arg1: i32, %arg2: i32) -> (i32, i32) {
    %c0_i32 = arith.constant 0 : i32
    return %arg0, %arg1 : i32, i32
  }
  func.func @transform_5(%arg0: i32, %arg1: i32, %arg2: i32) -> (i32, i32) {
    %c0_i32 = arith.constant 0 : i32
    return %arg0, %arg1 : i32, i32
  }
}

module attributes {stable_mosaic.version = 11 : i64} {
  func.func @_fused_matmul_kernel(%arg0: i32, %arg1: i32, %arg2: i32, %arg3: memref<8x256xbf16, #tpu.memory_space<vmem>>, %arg4: memref<256x128xbf16, #tpu.memory_space<vmem>>, %arg5: memref<1x128xf32, #tpu.memory_space<vmem>>, %arg6: memref<1x128xf32, #tpu.memory_space<vmem>>, %arg7: memref<8x128xf32, #tpu.memory_space<vmem>>, %arg8: memref<8x128xf32, #tpu.memory_space<vmem>>) attributes {dimension_semantics = [#tpu.dimension_semantics<parallel>, #tpu.dimension_semantics<parallel>, #tpu.dimension_semantics<arbitrary>], iteration_bounds = array<i64: 1, 1, 2>, scalar_prefetch = 0 : i64, scratch_operands = 1 : i64, tpu.core_type = #tpu.core_type<tc>, window_params = [{transform_indices = @transform_0, window_bounds = array<i64: 8, 256>}, {transform_indices = @transform_1, window_bounds = array<i64: 256, 128>}, {transform_indices = @transform_2, window_bounds = array<i64: 1, 128>}, {transform_indices = @transform_3, window_bounds = array<i64: 1, 128>}, {transform_indices = @transform_4, window_bounds = array<i64: 8, 128>}]} {
    %c0_i32 = arith.constant 0 : i32
    %0 = arith.cmpi eq, %arg2, %c0_i32 : i32
    %1 = arith.extui %0 : i1 to i32
    %c0_i32_0 = arith.constant 0 : i32
    %2 = arith.cmpi ne, %1, %c0_i32_0 : i32
    scf.if %2 {
      %cst_9 = arith.constant 0.000000e+00 : f32
      %12 = vector.broadcast %cst_9 : f32 to vector<8x128xf32>
      %c0_10 = arith.constant 0 : index
      %c0_11 = arith.constant 0 : index
      %13 = vector.load %arg8[%c0_10, %c0_11] : memref<8x128xf32, #tpu.memory_space<vmem>>, vector<8x128xf32>
      tpu.vector_store %arg8[%c0_10, %c0_11], %12 {strides = array<i32>} : memref<8x128xf32, #tpu.memory_space<vmem>>, vector<8x128xf32>,
    } else {
    }
    %c0 = arith.constant 0 : index
    %c0_1 = arith.constant 0 : index
    %3 = vector.load %arg8[%c0, %c0_1] : memref<8x128xf32, #tpu.memory_space<vmem>>, vector<8x128xf32>
    %c0_2 = arith.constant 0 : index
    %c0_3 = arith.constant 0 : index
    %4 = vector.load %arg3[%c0_2, %c0_3] : memref<8x256xbf16, #tpu.memory_space<vmem>>, vector<8x256xbf16>
    %c0_4 = arith.constant 0 : index
    %c0_5 = arith.constant 0 : index
    %5 = vector.load %arg4[%c0_4, %c0_5] : memref<256x128xbf16, #tpu.memory_space<vmem>>, vector<256x128xbf16>
    %cst = arith.constant dense<0.000000e+00> : vector<8x128xf32>
    %6 = tpu.matmul %4, %5, %cst {dimension_numbers = #tpu.dot_dimension_numbers<[1], [0], [0], [1], [0, 0, 1, 1], [], []>} : vector<8x256xbf16>, vector<256x128xbf16>, vector<8x128xf32> -> vector<8x128xf32>
    %7 = arith.addf %3, %6 : vector<8x128xf32>
    %c0_6 = arith.constant 0 : index
    %c0_7 = arith.constant 0 : index
    %8 = vector.load %arg8[%c0_6, %c0_7] : memref<8x128xf32, #tpu.memory_space<vmem>>, vector<8x128xf32>
    tpu.vector_store %arg8[%c0_6, %c0_7], %7 {strides = array<i32>} : memref<8x128xf32, #tpu.memory_space<vmem>>, vector<8x128xf32>,
    %c1_i32 = arith.constant 1 : i32
    %9 = arith.cmpi eq, %arg2, %c1_i32 : i32
    %10 = arith.extui %9 : i1 to i32
    %c0_i32_8 = arith.constant 0 : i32
    %11 = arith.cmpi ne, %10, %c0_i32_8 : i32
    scf.if %11 {
      %c0_9 = arith.constant 0 : index
      %c0_10 = arith.constant 0 : index
      %12 = vector.load %arg8[%c0_9, %c0_10] : memref<8x128xf32, #tpu.memory_space<vmem>>, vector<8x128xf32>
      %c0_11 = arith.constant 0 : index
      %c0_12 = arith.constant 0 : index
      %13 = vector.load %arg5[%c0_11, %c0_12] : memref<1x128xf32, #tpu.memory_space<vmem>>, vector<1x128xf32>
      %14 = vector.broadcast %13 : vector<1x128xf32> to vector<8x128xf32>
      %15 = arith.mulf %12, %14 : vector<8x128xf32>
      %c0_13 = arith.constant 0 : index
      %c0_14 = arith.constant 0 : index
      %16 = vector.load %arg6[%c0_13, %c0_14] : memref<1x128xf32, #tpu.memory_space<vmem>>, vector<1x128xf32>
      %17 = vector.broadcast %16 : vector<1x128xf32> to vector<8x128xf32>
      %18 = arith.addf %15, %17 : vector<8x128xf32>
      %c0_15 = arith.constant 0 : index
      %c0_16 = arith.constant 0 : index
      %19 = vector.load %arg7[%c0_15, %c0_16] : memref<8x128xf32, #tpu.memory_space<vmem>>, vector<8x128xf32>
      tpu.vector_store %arg7[%c0_15, %c0_16], %18 {strides = array<i32>} : memref<8x128xf32, #tpu.memory_space<vmem>>, vector<8x128xf32>,
    } else {
    }
    return
  }
  func.func @transform_0(%arg0: i32, %arg1: i32, %arg2: i32) -> (i32, i32) {
    %c0_i32 = arith.constant 0 : i32
    return %arg0, %arg2 : i32, i32
  }
  func.func @transform_1(%arg0: i32, %arg1: i32, %arg2: i32) -> (i32, i32) {
    %c0_i32 = arith.constant 0 : i32
    return %arg2, %arg1 : i32, i32
  }
  func.func @transform_2(%arg0: i32, %arg1: i32, %arg2: i32) -> (i32, i32) {
    %c0_i32 = arith.constant 0 : i32
    %c0_i32_0 = arith.constant 0 : i32
    return %c0_i32, %arg1 : i32, i32
  }
  func.func @transform_3(%arg0: i32, %arg1: i32, %arg2: i32) -> (i32, i32) {
    %c0_i32 = arith.constant 0 : i32
    %c0_i32_0 = arith.constant 0 : i32
    return %c0_i32, %arg1 : i32, i32
  }
  func.func @transform_4(%arg0: i32, %arg1: i32, %arg2: i32) -> (i32, i32) {
    %c0_i32 = arith.constant 0 : i32
    return %arg0, %arg1 : i32, i32
  }
}

</mosaic_0001>

<bundles_post_ra>
// kernel: custom_resnet18_forward.13
= control target key start
LH: loop header
LB: loop body
LE: loop exit
PB: predicated region body
PF: predicated region fallthrough
CT: control target
= control target key end

     0   :  { %9 = vsyncpa [#allocation4], 0  ;;  %s1278_s0 = inlined_call_operand.vmem [shape: bf16[512,128], index: 0, kind: input, shape index: {}]   ;;  %s1279_s1 = inlined_call_operand.vmem [shape: bf16[128,64], index: 1, kind: input, shape index: {}]   ;;  %s1280_s2 = inlined_call_operand.hbm [shape: f32[1,64], index: 2, kind: input, shape index: {}]   ;;  %s1281_s3 = inlined_call_operand.hbm [shape: f32[1,64], index: 3, kind: input, shape index: {}]   ;;  %s1282_s4 = inlined_call_operand.vmem [shape: bf16[512,64], index: 4, kind: output, shape index: {}]  }
   0x1   :  { %10 = vsyncpa [#allocation6], 0  ;;  %s1080_s15 = smov 0   ;;  %s1082_s16 = smov 0  }
   0x2   :  { %s1084_s17 = smov 0  }
   0x3 LB: > { %s792_s18 = sadd.s32 4294967295, %s1050_s17   ;;  %s35_s19 = sadd.s32 1, %s1046_s16  ;;  %s1050_s17 = sphi %s1084_s17, %s16_s17   ;;  %s1046_s16 = sphi %s1082_s16, %s1286_s16   ;;  %s1042_s15 = sphi %s1080_s15, %s1285_s15  }
   0x4   : > { %p37_p0 = scmp.ge.s32.totalorder %s35_s19, 4  ;;  %p794_p1 = scmp.ge.s32.totalorder %s1050_s17, 1 }
   0x5   : > { %p176_p2 = scmp.lt.s32.totalorder %s1050_s17, 5  ;;  %p1105_p4 = scmp.eq.s32.totalorder %s792_s18, 0 }
   0x6   : > { %s1288_s19 = smov (%p37_p0, %s35_s19), 0  ;;  %s201_s24 = sshll.u32 %s1280_s2, 4  ;;  %s202_s24 = int_to_ptr.hbm [resolvable:$true] %s201_s24 }
   0x7   : > { %p1101_p3 = pnand %p794_p1, %p176_p2  ;;  %s1052_s25 = smov [#allocation3]  }
   0x8   : > { %s203_s26 = sshll.u32 %s1052_s25, 4  ;;  %s214_s29 = sshll.u32 %s1281_s3, 4  ;;  %s204_s26 = int_to_ptr.vmem [resolvable:$true] %s203_s26  ;;  %s215_s29 = int_to_ptr.hbm [resolvable:$true] %s214_s29 }
   0x9   : > { %p920_p5 = pneg %p1101_p3  ;;  %s1053_s30 = smov [#allocation5]  }
   0xa   : > { %s216_s5 = sshll.u32 %s1053_s30, 4  ;;  %241 = sbr.rel (%p1101_p3) target bundleno = 228 (0xe4), region = 36  ;;  %s217_s5 = int_to_ptr.vmem [resolvable:$true] %s216_s5 }
   0xb   : > { %p921_p6 = pnand %p1105_p4, %p920_p5 }
   0xd   : > { %923 = dma.hbm_to_vmem [thread:$0]  (!%p921_p6), %s202_s24, 16, %s204_s26, [#allocation4]  }
   0xe   : > { %926 = dma.hbm_to_vmem [thread:$0]  (!%p921_p6), %s215_s29, 16, %s217_s5, [#allocation6]  }
   0xf   : > { %1033 = dma.done.wait (%p1105_p4), [#allocation4], 16  }
  0x10   : > { %1035 = vsyncadd (%p1105_p4), [#allocation4], 4294967280 }
  0x11   : > { %1037 = dma.done.wait (%p1105_p4), [#allocation6], 16  }
  0x12   : > { %1039 = vsyncadd (%p1105_p4), [#allocation6], 4294967280  ;;  %v887_v0 = vld [vmem:[%s1279_s1 + $0x38] sm:$0xff]  ;;  %v886_v1 = vld [vmem:[%s1279_s1 + $0x30] sm:$0xff]  ;;  %s802_s14 = sshll.u32 %s1042_s15, 4  ;;  %vm318_vm0 = vcmask 523264  }
  0x13   : > { %479 = vmatpush.bf16.msra.mxu0 %v887_v0  ;;  %888 = vmatpush.bf16.msra.mxu1 %v887_v0  ;;  %v885_v2 = vld [vmem:[%s1279_s1 + $0x28] sm:$0xff]  ;;  %v884_v3 = vld [vmem:[%s1279_s1 + $0x20] sm:$0xff]  ;;  %v883_v4 = vld [vmem:[%s1279_s1 + $0x18] sm:$0xff]  ;;  %p288_p7 = scmp.lt.s32.totalorder %s802_s14, 63  ;;  %v1054_v6 = vmov 0.0   ;;  %vm652_vm1 = vcmask 519168  }
  0x14   : > { %889 = vmatpush.bf16.msra.mxu2 %v887_v0  ;;  %890 = vmatpush.bf16.msra.mxu3 %v887_v0  ;;  %v882_v5 = vld [vmem:[%s1279_s1 + $0x10] sm:$0xff]  ;;  %319 = vst.msk [vmem:[#allocation2] sm:$0xff] %vm318_vm0, %v1054_v6  ;;  %v881_v7 = vld [vmem:[%s1279_s1 + $0x8] sm:$0xff]  ;;  %v880_v8 = vld [vmem:[%s1279_s1] sm:$0xff] }
  0x15   : > { %s1290_s14 = smov (!%p288_p7, %s802_s14), 63  ;;  %320 = vst.msk [vmem:[#allocation2 + $0x8] sm:$0xff] %vm318_vm0, %v1054_v6  ;;  %v1180_v27 = vld [vmem:[#allocation3] ss:$0 sm:$0xff]  ;;  %v1182_v34 = vld [vmem:[#allocation5] ss:$0 sm:$0xff] }
  0x16   : > { %321 = vst.msk [vmem:[#allocation2 + $0x10] sm:$0xff] %vm318_vm0, %v1054_v6  ;;  %s803_s24 = sshll.u32 %s1290_s14, 2 }
  0x17   : > { %480 = vmatpush.bf16.msra.mxu0 %v886_v1  ;;  %891 = vmatpush.bf16.msra.mxu1 %v886_v1  ;;  %322 = vst.msk [vmem:[#allocation2 + $0x18] sm:$0xff] %vm318_vm0, %v1054_v6  ;;  %s294_s29 = scalar_lea.vmem %s1278_s0, %s803_s24  ;;  %s1197_s6 = scalar_lea.vmem %s1282_s4, %s803_s24 }
  0x18   : > { %892 = vmatpush.bf16.msra.mxu2 %v886_v1  ;;  %893 = vmatpush.bf16.msra.mxu3 %v886_v1  ;;  %323 = vst.msk [vmem:[#allocation2 + $0x20] sm:$0xff] %vm318_vm0, %v1054_v6  ;;  %v872_v9 = vld [vmem:[%s294_s29] sm:$0xff]  ;;  %v874_v10 = vld [vmem:[%s294_s29 + $0x10] sm:$0xff]  ;;  %v873_v13 = vld [vmem:[%s294_s29 + $0x8] sm:$0xff] }
  0x19   : > { %324 = vst.msk [vmem:[#allocation2 + $0x28] sm:$0xff] %vm318_vm0, %v1054_v6  ;;  %v876_v11 = vld [vmem:[%s294_s29 + $0x20] sm:$0xff]  ;;  %v878_v12 = vld [vmem:[%s294_s29 + $0x30] sm:$0xff]  ;;  %v875_v14 = vld [vmem:[%s294_s29 + $0x18] sm:$0xff] }
  0x1a   : > { %325 = vst.msk [vmem:[#allocation2 + $0x30] sm:$0xff] %vm318_vm0, %v1054_v6  ;;  %v877_v15 = vld [vmem:[%s294_s29 + $0x28] sm:$0xff]  ;;  %v879_v16 = vld [vmem:[%s294_s29 + $0x38] sm:$0xff] }
  0x1b   : > { %481 = vmatpush.bf16.msra.mxu0 %v885_v2  ;;  %894 = vmatpush.bf16.msra.mxu1 %v885_v2  ;;  %326 = vst.msk [vmem:[#allocation2 + $0x38] sm:$0xff] %vm318_vm0, %v1054_v6  ;;  %v335_v17 = vld [vmem:[#allocation2] sm:$0xff] }
  0x1c   : > { %895 = vmatpush.bf16.msra.mxu2 %v885_v2  ;;  %896 = vmatpush.bf16.msra.mxu3 %v885_v2  ;;  %327 = vst.msk [vmem:[#allocation2 + $0x40] sm:$0xff] %vm318_vm0, %v1054_v6  ;;  %v336_v25 = vld [vmem:[#allocation2 + $0x8] sm:$0xff] }
  0x1d   : > { %328 = vst.msk [vmem:[#allocation2 + $0x48] sm:$0xff] %vm318_vm0, %v1054_v6  ;;  %v337_v48 = vld [vmem:[#allocation2 + $0x10] sm:$0xff] }
  0x1e   : > { %329 = vst.msk [vmem:[#allocation2 + $0x50] sm:$0xff] %vm318_vm0, %v1054_v6 }
  0x1f   : > { %482 = vmatpush.bf16.msra.mxu0 %v884_v3  ;;  %897 = vmatpush.bf16.msra.mxu1 %v884_v3  ;;  %330 = vst.msk [vmem:[#allocation2 + $0x58] sm:$0xff] %vm318_vm0, %v1054_v6  ;;  %v339_v18 = vld [vmem:[#allocation2 + $0x20] sm:$0xff] }
  0x20   : > { %898 = vmatpush.bf16.msra.mxu2 %v884_v3  ;;  %899 = vmatpush.bf16.msra.mxu3 %v884_v3  ;;  %331 = vst.msk [vmem:[#allocation2 + $0x60] sm:$0xff] %vm318_vm0, %v1054_v6  ;;  %v340_v26 = vld [vmem:[#allocation2 + $0x28] sm:$0xff] }
  0x21   : > { %332 = vst.msk [vmem:[#allocation2 + $0x68] sm:$0xff] %vm318_vm0, %v1054_v6  ;;  %v341_v52 = vld [vmem:[#allocation2 + $0x30] sm:$0xff] }
  0x22   : > { %333 = vst.msk [vmem:[#allocation2 + $0x70] sm:$0xff] %vm318_vm0, %v1054_v6 }
  0x23   : > { %483 = vmatpush.bf16.msra.mxu0 %v883_v4  ;;  %900 = vmatpush.bf16.msra.mxu1 %v883_v4  ;;  %334 = vst.msk [vmem:[#allocation2 + $0x78] sm:$0xff] %vm318_vm0, %v1054_v6  ;;  %v343_v23 = vld [vmem:[#allocation2 + $0x40] sm:$0xff] }
  0x24   : > { %901 = vmatpush.bf16.msra.mxu2 %v883_v4  ;;  %902 = vmatpush.bf16.msra.mxu3 %v883_v4  ;;  %v344_v42 = vld [vmem:[#allocation2 + $0x48] sm:$0xff] }
  0x27   : > { %484 = vmatpush.bf16.msra.mxu0 %v882_v5  ;;  %903 = vmatpush.bf16.msra.mxu1 %v882_v5  ;;  %v347_v24 = vld [vmem:[#allocation2 + $0x60] sm:$0xff] }
  0x28   : > { %904 = vmatpush.bf16.msra.mxu2 %v882_v5  ;;  %905 = vmatpush.bf16.msra.mxu3 %v882_v5  ;;  %v348_v44 = vld [vmem:[#allocation2 + $0x68] sm:$0xff] }
  0x2b   : > { %485 = vmatpush.bf16.msra.mxu0 %v881_v7  ;;  %906 = vmatpush.bf16.msra.mxu1 %v881_v7 }
  0x2c   : > { %907 = vmatpush.bf16.msra.mxu2 %v881_v7  ;;  %908 = vmatpush.bf16.msra.mxu3 %v881_v7 }
  0x2f   : > { %486 = vmatpush.bf16.msra.mxu0 %v880_v8  ;;  %909 = vmatpush.bf16.msra.mxu1 %v880_v8 }
  0x30   : > { %910 = vmatpush.bf16.msra.mxu2 %v880_v8  ;;  %911 = vmatpush.bf16.msra.mxu3 %v880_v8 }
  0x32   : > { %487 = vmatmul.bf16.vlgmr.msra.gmra.mxu0 %v872_v9  ;;  %497 = vmatmul.bf16.vlgmr.msra.gmra.mxu1 %v874_v10  ;;  %v345_v9 = vld [vmem:[#allocation2 + $0x50] sm:$0xff] }
  0x33   : > { %507 = vmatmul.bf16.vlgmr.msra.gmra.mxu2 %v876_v11  ;;  %517 = vmatmul.bf16.vlgmr.msra.gmra.mxu3 %v878_v12 }
  0x42   : > { %492 = vmatmul.bf16.gmra.mxu0 %v873_v13  ;;  %502 = vmatmul.bf16.gmra.mxu1 %v875_v14  ;;  %v349_v14 = vld [vmem:[#allocation2 + $0x70] sm:$0xff] }
  0x43   : > { %512 = vmatmul.bf16.gmra.mxu2 %v877_v15  ;;  %522 = vmatmul.bf16.gmra.mxu3 %v879_v16 }
  0xaf   : > { %v488_v19 = vpop.f32.mrf.mxu0  ;;  %v498_v20 = vpop.f32.mrf.mxu1 }
  0xb0   : > { %v528_v21 = vadd.f32 %v488_v19, %v335_v17  ;;  %v532_v22 = vadd.f32 %v498_v20, %v339_v18  ;;  %v338_v18 = vld [vmem:[#allocation2 + $0x18] sm:$0xff] }
  0xb2   : > { %545 = vst.msk [vmem:[#allocation2] sm:$0xff] %vm318_vm0, %v528_v21 }
  0xb3   : > { %549 = vst.msk [vmem:[#allocation2 + $0x20] sm:$0xff] %vm318_vm0, %v532_v22 }
  0xb6   : > { %v508_v28 = vpop.f32.mrf.mxu2  ;;  %v518_v29 = vpop.f32.mrf.mxu3 }
  0xb7   : > { %v536_v30 = vadd.f32 %v508_v28, %v343_v23  ;;  %v540_v31 = vadd.f32 %v518_v29, %v347_v24  ;;  %v490_v32 = vpop.f32.mrf.mxu0  ;;  %v500_v33 = vpop.f32.mrf.mxu1  ;;  %v342_v23 = vld [vmem:[#allocation2 + $0x38] sm:$0xff] }
  0xb8   : > { %v529_v35 = vadd.f32 %v490_v32, %v336_v25  ;;  %v533_v36 = vadd.f32 %v500_v33, %v340_v26 }
  0xb9   : > { %v564_v37 = vld [vmem:[#allocation2] sm:$0xff]  ;;  %553 = vst.msk [vmem:[#allocation2 + $0x40] sm:$0xff] %vm318_vm0, %v536_v30 }
  0xba   : > { %v584_v38 = vmul.f32 %v1180_v27, %v564_v37  ;;  %v568_v39 = vld [vmem:[#allocation2 + $0x20] sm:$0xff]  ;;  %557 = vst.msk [vmem:[#allocation2 + $0x60] sm:$0xff] %vm318_vm0, %v540_v31 }
  0xbb   : > { %v588_v40 = vmul.f32 %v1180_v27, %v568_v39  ;;  %546 = vst.msk [vmem:[#allocation2 + $0x8] sm:$0xff] %vm318_vm0, %v529_v35  ;;  %v346_v35 = vld [vmem:[#allocation2 + $0x58] sm:$0xff] }
  0xbc   : > { %v604_v41 = vadd.f32 %v1182_v34, %v584_v38  ;;  %550 = vst.msk [vmem:[#allocation2 + $0x28] sm:$0xff] %vm318_vm0, %v533_v36  ;;  %v350_v36 = vld [vmem:[#allocation2 + $0x78] sm:$0xff] }
  0xbd   : > { %v608_v43 = vadd.f32 %v1182_v34, %v588_v40 }
  0xbe   : > { %v620_v45 = vmax.f32 %v604_v41, 0.0  ;;  %v510_v46 = vpop.f32.mrf.mxu2  ;;  %v520_v47 = vpop.f32.mrf.mxu3 }
  0xbf   : > { %v624_v49 = vmax.f32 %v608_v43, 0.0  ;;  %v537_v50 = vadd.f32 %v510_v46, %v344_v42  ;;  %v493_v51 = vpop.f32.mrf.mxu0  ;;  %v503_v53 = vpop.f32.mrf.mxu1  ;;  %v541_v56 = vadd.f32 %v520_v47, %v348_v44 }
  0xc0   : > { %v636_v54 = vpack.c.bf16 %v620_v45, %v620_v45  ;;  %v572_v55 = vld [vmem:[#allocation2 + $0x40] sm:$0xff]  ;;  %v530_v60 = vadd.f32 %v493_v51, %v337_v48  ;;  %v534_v63 = vadd.f32 %v503_v53, %v341_v52 }
  0xc1   : > { %v640_v57 = vpack.c.bf16 %v624_v49, %v624_v49  ;;  %v592_v58 = vmul.f32 %v1180_v27, %v572_v55  ;;  %v576_v59 = vld [vmem:[#allocation2 + $0x60] sm:$0xff]  ;;  %554 = vst.msk [vmem:[#allocation2 + $0x48] sm:$0xff] %vm318_vm0, %v537_v50 }
  0xc2   : > { %653 = vst.msk [vmem:[%s1197_s6] sm:$0xf] %vm652_vm1, %v636_v54  ;;  %v596_v61 = vmul.f32 %v1180_v27, %v576_v59  ;;  %v565_v62 = vld [vmem:[#allocation2 + $0x8] sm:$0xff] }
  0xc3   : > { %657 = vst.msk [vmem:[%s1197_s6 + $0x10] sm:$0xf] %vm652_vm1, %v640_v57  ;;  %v612_v0 = vadd.f32 %v1182_v34, %v592_v58  ;;  %v585_v1 = vmul.f32 %v1180_v27, %v565_v62  ;;  %v569_v2 = vld [vmem:[#allocation2 + $0x28] sm:$0xff] }
  0xc4   : > { %v616_v3 = vadd.f32 %v1182_v34, %v596_v61  ;;  %v589_v4 = vmul.f32 %v1180_v27, %v569_v2  ;;  %558 = vst.msk [vmem:[#allocation2 + $0x68] sm:$0xff] %vm318_vm0, %v541_v56 }
  0xc5   : > { %v628_v5 = vmax.f32 %v612_v0, 0.0  ;;  %v605_v6 = vadd.f32 %v1182_v34, %v585_v1  ;;  %547 = vst.msk [vmem:[#allocation2 + $0x10] sm:$0xff] %vm318_vm0, %v530_v60 }
  0xc6   : > { %v632_v7 = vmax.f32 %v616_v3, 0.0  ;;  %v609_v8 = vadd.f32 %v1182_v34, %v589_v4  ;;  %551 = vst.msk [vmem:[#allocation2 + $0x30] sm:$0xff] %vm318_vm0, %v534_v63  ;;  %v513_v10 = vpop.f32.mrf.mxu2  ;;  %v523_v11 = vpop.f32.mrf.mxu3 }
  0xc7   : > { %v644_v12 = vpack.c.bf16 %v628_v5, %v628_v5  ;;  %v621_v13 = vmax.f32 %v605_v6, 0.0  ;;  %v495_v19 = vpop.f32.mrf.mxu0  ;;  %v538_v22 = vadd.f32 %v513_v10, %v345_v9  ;;  %v505_v24 = vpop.f32.mrf.mxu1  ;;  %v542_v26 = vadd.f32 %v523_v11, %v349_v14 }
  0xc8   : > { %v648_v15 = vpack.c.bf16 %v632_v7, %v632_v7  ;;  %v625_v16 = vmax.f32 %v609_v8, 0.0  ;;  %v573_v17 = vld [vmem:[#allocation2 + $0x48] sm:$0xff]  ;;  %v531_v30 = vadd.f32 %v495_v19, %v338_v18  ;;  %v535_v33 = vadd.f32 %v505_v24, %v342_v23 }
  0xc9   : > { %661 = vst.msk [vmem:[%s1197_s6 + $0x20] sm:$0xf] %vm652_vm1, %v644_v12  ;;  %v637_v20 = vpack.c.bf16 %v621_v13, %v621_v13  ;;  %v593_v21 = vmul.f32 %v1180_v27, %v573_v17 }
  0xca   : > { %665 = vst.msk [vmem:[%s1197_s6 + $0x30] sm:$0xf] %vm652_vm1, %v648_v15  ;;  %v641_v25 = vpack.c.bf16 %v625_v16, %v625_v16 }
  0xcb   : > { %654 = vst.msk [vmem:[%s1197_s6 + $0x4] sm:$0xf] %vm652_vm1, %v637_v20  ;;  %v613_v28 = vadd.f32 %v1182_v34, %v593_v21  ;;  %v577_v29 = vld [vmem:[#allocation2 + $0x68] sm:$0xff] }
  0xcc   : > { %658 = vst.msk [vmem:[%s1197_s6 + $0x14] sm:$0xf] %vm652_vm1, %v641_v25  ;;  %v597_v31 = vmul.f32 %v1180_v27, %v577_v29  ;;  %v566_v32 = vld [vmem:[#allocation2 + $0x10] sm:$0xff] }
  0xcd   : > { %v629_v37 = vmax.f32 %v613_v28, 0.0  ;;  %v586_v38 = vmul.f32 %v1180_v27, %v566_v32  ;;  %v570_v39 = vld [vmem:[#allocation2 + $0x30] sm:$0xff]  ;;  %555 = vst.msk [vmem:[#allocation2 + $0x50] sm:$0xff] %vm318_vm0, %v538_v22 }
  0xce   : > { %v617_v40 = vadd.f32 %v1182_v34, %v597_v31  ;;  %v590_v41 = vmul.f32 %v1180_v27, %v570_v39  ;;  %559 = vst.msk [vmem:[#allocation2 + $0x70] sm:$0xff] %vm318_vm0, %v542_v26  ;;  %v515_v42 = vpop.f32.mrf.mxu2  ;;  %v525_v43 = vpop.f32.mrf.mxu3 }
  0xcf   : > { %v645_v44 = vpack.c.bf16 %v629_v37, %v629_v37  ;;  %v606_v45 = vadd.f32 %v1182_v34, %v586_v38  ;;  %548 = vst.msk [vmem:[#allocation2 + $0x18] sm:$0xff] %vm318_vm0, %v531_v30  ;;  %v539_v46 = vadd.f32 %v515_v42, %v346_v35  ;;  %v543_v47 = vadd.f32 %v525_v43, %v350_v36 }
  0xd0   : > { %v633_v48 = vmax.f32 %v617_v40, 0.0  ;;  %v610_v49 = vadd.f32 %v1182_v34, %v590_v41  ;;  %552 = vst.msk [vmem:[#allocation2 + $0x38] sm:$0xff] %vm318_vm0, %v535_v33 }
  0xd1   : > { %662 = vst.msk [vmem:[%s1197_s6 + $0x24] sm:$0xf] %vm652_vm1, %v645_v44  ;;  %v622_v50 = vmax.f32 %v606_v45, 0.0 }
  0xd2   : > { %v649_v51 = vpack.c.bf16 %v633_v48, %v633_v48  ;;  %v626_v52 = vmax.f32 %v610_v49, 0.0  ;;  %556 = vst.msk [vmem:[#allocation2 + $0x58] sm:$0xff] %vm318_vm0, %v539_v46 }
  0xd3   : > { %v638_v53 = vpack.c.bf16 %v622_v50, %v622_v50  ;;  %560 = vst.msk [vmem:[#allocation2 + $0x78] sm:$0xff] %vm318_vm0, %v543_v47 }
  0xd4   : > { %666 = vst.msk [vmem:[%s1197_s6 + $0x34] sm:$0xf] %vm652_vm1, %v649_v51  ;;  %v642_v54 = vpack.c.bf16 %v626_v52, %v626_v52  ;;  %v574_v55 = vld [vmem:[#allocation2 + $0x50] sm:$0xff] }
  0xd5   : > { %655 = vst.msk [vmem:[%s1197_s6 + $0x8] sm:$0xf] %vm652_vm1, %v638_v53  ;;  %v594_v56 = vmul.f32 %v1180_v27, %v574_v55  ;;  %v578_v57 = vld [vmem:[#allocation2 + $0x70] sm:$0xff] }
  0xd6   : > { %659 = vst.msk [vmem:[%s1197_s6 + $0x18] sm:$0xf] %vm652_vm1, %v642_v54  ;;  %v598_v58 = vmul.f32 %v1180_v27, %v578_v57  ;;  %v567_v59 = vld [vmem:[#allocation2 + $0x18] sm:$0xff] }
  0xd7   : > { %v614_v60 = vadd.f32 %v1182_v34, %v594_v56  ;;  %v587_v61 = vmul.f32 %v1180_v27, %v567_v59  ;;  %v571_v62 = vld [vmem:[#allocation2 + $0x38] sm:$0xff] }
  0xd8   : > { %v618_v63 = vadd.f32 %v1182_v34, %v598_v58  ;;  %v591_v0 = vmul.f32 %v1180_v27, %v571_v62 }
  0xd9   : > { %v630_v1 = vmax.f32 %v614_v60, 0.0  ;;  %v607_v2 = vadd.f32 %v1182_v34, %v587_v61  ;;  %v575_v3 = vld [vmem:[#allocation2 + $0x58] sm:$0xff] }
  0xda   : > { %v634_v4 = vmax.f32 %v618_v63, 0.0  ;;  %v611_v5 = vadd.f32 %v1182_v34, %v591_v0  ;;  %v595_v6 = vmul.f32 %v1180_v27, %v575_v3  ;;  %v579_v7 = vld [vmem:[#allocation2 + $0x78] sm:$0xff] }
  0xdb   : > { %v646_v8 = vpack.c.bf16 %v630_v1, %v630_v1  ;;  %v623_v9 = vmax.f32 %v607_v2, 0.0  ;;  %v599_v10 = vmul.f32 %v1180_v27, %v579_v7 }
  0xdc   : > { %v650_v11 = vpack.c.bf16 %v634_v4, %v634_v4  ;;  %v627_v12 = vmax.f32 %v611_v5, 0.0  ;;  %v615_v13 = vadd.f32 %v1182_v34, %v595_v6 }
  0xdd   : > { %663 = vst.msk [vmem:[%s1197_s6 + $0x28] sm:$0xf] %vm652_vm1, %v646_v8  ;;  %v639_v14 = vpack.c.bf16 %v623_v9, %v623_v9  ;;  %v619_v15 = vadd.f32 %v1182_v34, %v599_v10 }
  0xde   : > { %667 = vst.msk [vmem:[%s1197_s6 + $0x38] sm:$0xf] %vm652_vm1, %v650_v11  ;;  %v643_v16 = vpack.c.bf16 %v627_v12, %v627_v12  ;;  %v631_v17 = vmax.f32 %v615_v13, 0.0 }
  0xdf   : > { %656 = vst.msk [vmem:[%s1197_s6 + $0xc] sm:$0xf] %vm652_vm1, %v639_v14  ;;  %v635_v18 = vmax.f32 %v619_v15, 0.0 }
  0xe0   : > { %660 = vst.msk [vmem:[%s1197_s6 + $0x1c] sm:$0xf] %vm652_vm1, %v643_v16  ;;  %v647_v27 = vpack.c.bf16 %v631_v17, %v631_v17 }
  0xe1   : > { %v651_v19 = vpack.c.bf16 %v635_v18, %v635_v18 }
  0xe2   : > { %664 = vst.msk [vmem:[%s1197_s6 + $0x2c] sm:$0xf] %vm652_vm1, %v647_v27 }
  0xe3   : > { %668 = vst.msk [vmem:[%s1197_s6 + $0x3c] sm:$0xf] %vm652_vm1, %v651_v19 }
  0xe4 PF: > { %s16_s17 = sadd.s32 1, %s1050_s17   ;;  %s1285_s15 = smov %s1046_s16 }
  0xe5   : > { %p13_p8 = scmp.ge.s32.totalorder %s16_s17, 6   ;;  %s1286_s16 = smov %s1288_s19 }
  0xe7   :  { %15 = sbr.rel (!%p13_p8) target bundleno = 3 (0x3), region = 88 }
  0xec   :  { %697 = vsyncpa [#allocation4], 1 }
  0xed   :  { %699 = vsyncpa [#allocation4 + $0x1], 1 }
  0xee   :  { %700 = vsyncpa [#allocation6], 1 }

// kernel: custom_resnet18_forward.14
= control target key start
LH: loop header
LB: loop body
LE: loop exit
PB: predicated region body
PF: predicated region fallthrough
CT: control target
= control target key end

     0   :  { %s1146_s15 = smov 0   ;;  %s1148_s16 = smov 0   ;;  %s1386_s0 = inlined_call_operand.vmem [shape: bf16[512,640], index: 0, kind: input, shape index: {}]   ;;  %s1387_s1 = inlined_call_operand.vmem [shape: bf16[640,64], index: 1, kind: input, shape index: {}]   ;;  %s1388_s2 = inlined_call_operand.vmem [shape: f32[1,64], index: 2, kind: input, shape index: {}]   ;;  %s1389_s3 = inlined_call_operand.vmem [shape: f32[1,64], index: 3, kind: input, shape index: {}]   ;;  %s1390_s4 = inlined_call_operand.vmem [shape: bf16[512,64], index: 4, kind: output, shape index: {}]  }
   0x1   :  { %s1150_s17 = smov 0   ;;  %s1152_s18 = smov 0  }
   0x2   :  { %s1154_s19 = smov 0   ;;  %s1156_s20 = smov 0  }
   0x3   :  { %s1158_s21 = smov 0  }
   0x4 LB: > { %s26_s22 = sadd.s32 1, %s1110_s19  ;;  %s33_s23 = sadd.s32 1, %s1114_s20  ;;  %s1118_s21 = sphi %s1158_s21, %s14_s21   ;;  %s1114_s20 = sphi %s1156_s20, %s1396_s20   ;;  %s1110_s19 = sphi %s1154_s19, %s1395_s19   ;;  %s1106_s18 = sphi %s1152_s18, %s1394_s18   ;;  %s1102_s17 = sphi %s1150_s17, %s1393_s17   ;;  %s1098_s16 = sphi %s1148_s16, %s1392_s16   ;;  %s1094_s15 = sphi %s1146_s15, %s1391_s15  }
   0x5   : > { %p27_p0 = scmp.ge.s32.totalorder %s26_s22, 5  ;;  %p49_p1 = scmp.ne.s32.totalorder %s1098_s16, %s1094_s15 }
   0x6   : > { %p50_p2 = scmp.eq.s32.totalorder %s1118_s21, 0  ;;  %s42_s27 = sadd.s32 1, %s1098_s16 }
   0x7   : > { %s1398_s22 = smov (%p27_p0, %s26_s22), 0  ;;  %s1400_s23 = smov (!%p27_p0, %s33_s23), %s1114_s20 }
   0x8   : > { %p51_p3 = por %p50_p2, %p49_p1  ;;  %p35_p4 = scmp.ge.s32.totalorder %s1400_s23, 4 }
   0x9   : > { %s38_s24 = ssub.s32 %s1110_s19, %s1398_s22  ;;  %p885_p6 = scmp.ge.s32.totalorder %s1118_s21, 20 }
   0xa   : > { %s1402_s23 = smov (%p35_p4, %s1400_s23), 0 }
   0xb   : > { %s37_s25 = ssub.s32 %s1114_s20, %s1402_s23  ;;  %195 = sbr.rel (%p885_p6) target bundleno = 39 (0x27), region = 24 }
   0xc   : > { %s39_s26 = sor.u32 %s38_s24, %s37_s25 }
   0xd   : > { %p40_p5 = scmp.eq.s32.totalorder %s39_s26, 0 }
   0xf   : > { %s1197_s28 = scalar_select %p40_p5, %s1098_s16, %s42_s27  }
  0x10   : > { %198 = sbr.rel (!%p51_p3) target bundleno = 39 (0x27), region = 28  ;;  %s200_s29 = sand.u32 (%p51_p3), 1, %s1098_s16  }
  0x11   : > { %s1004_s30 = smul.u32 (%p51_p3), 80, %s1114_s20  ;;  %s886_s5 = sshll.u32 (%p51_p3), %s200_s29, 6 }
  0x12   : > { %s202_s11 = scalar_lea.vmem (%p51_p3), [#allocation3], %s886_s5 }
  0x13   : > { %s205_s6 = sadd.s32 (%p51_p3), %s1110_s19, %s1004_s30 }
  0x14   : > { %s889_s7 = sshll.u32 (%p51_p3), %s205_s6, 2 }
  0x15   : > { %s1206_s10 = scalar_lea.vmem %s1386_s0, %s889_s7 }
  0x16   : > { %v224_v0 = vld [vmem:[%s1206_s10] sm:$0xf]  ;;  %v226_v1 = vld [vmem:[%s1206_s10 + $0x14] sm:$0xf]  ;;  %v228_v2 = vld [vmem:[%s1206_s10 + $0x28] sm:$0xf] }
  0x17   : > { %225 = vst [vmem:[%s202_s11] sm:$0xf] %v224_v0  ;;  %v230_v3 = vld [vmem:[%s1206_s10 + $0x3c] sm:$0xf]  ;;  %v232_v4 = vld [vmem:[%s1206_s10 + $0x50] sm:$0xf] }
  0x18   : > { %227 = vst [vmem:[%s202_s11 + $0x4] sm:$0xf] %v226_v1  ;;  %v234_v5 = vld [vmem:[%s1206_s10 + $0x64] sm:$0xf]  ;;  %v236_v6 = vld [vmem:[%s1206_s10 + $0x78] sm:$0xf] }
  0x19   : > { %229 = vst [vmem:[%s202_s11 + $0x8] sm:$0xf] %v228_v2  ;;  %v238_v7 = vld [vmem:[%s1206_s10 + $0x8c] sm:$0xf]  ;;  %v240_v8 = vld [vmem:[%s1206_s10 + $0xa0] sm:$0xf] }
  0x1a   : > { %231 = vst [vmem:[%s202_s11 + $0xc] sm:$0xf] %v230_v3  ;;  %v242_v9 = vld [vmem:[%s1206_s10 + $0xb4] sm:$0xf]  ;;  %v244_v10 = vld [vmem:[%s1206_s10 + $0xc8] sm:$0xf] }
  0x1b   : > { %233 = vst [vmem:[%s202_s11 + $0x10] sm:$0xf] %v232_v4  ;;  %v246_v11 = vld [vmem:[%s1206_s10 + $0xdc] sm:$0xf]  ;;  %v248_v12 = vld [vmem:[%s1206_s10 + $0xf0] sm:$0xf] }
  0x1c   : > { %235 = vst [vmem:[%s202_s11 + $0x14] sm:$0xf] %v234_v5  ;;  %v250_v13 = vld [vmem:[%s1206_s10 + $0x104] sm:$0xf]  ;;  %v252_v14 = vld [vmem:[%s1206_s10 + $0x118] sm:$0xf] }
  0x1d   : > { %237 = vst [vmem:[%s202_s11 + $0x18] sm:$0xf] %v236_v6  ;;  %v254_v15 = vld [vmem:[%s1206_s10 + $0x12c] sm:$0xf] }
  0x1e   : > { %239 = vst [vmem:[%s202_s11 + $0x1c] sm:$0xf] %v238_v7 }
  0x1f   : > { %241 = vst [vmem:[%s202_s11 + $0x20] sm:$0xf] %v240_v8 }
  0x20   : > { %243 = vst [vmem:[%s202_s11 + $0x24] sm:$0xf] %v242_v9 }
  0x21   : > { %245 = vst [vmem:[%s202_s11 + $0x28] sm:$0xf] %v244_v10 }
  0x22   : > { %247 = vst [vmem:[%s202_s11 + $0x2c] sm:$0xf] %v246_v11 }
  0x23   : > { %249 = vst [vmem:[%s202_s11 + $0x30] sm:$0xf] %v248_v12 }
  0x24   : > { %251 = vst [vmem:[%s202_s11 + $0x34] sm:$0xf] %v250_v13 }
  0x25   : > { %253 = vst [vmem:[%s202_s11 + $0x38] sm:$0xf] %v252_v14 }
  0x26   : > { %255 = vst [vmem:[%s202_s11 + $0x3c] sm:$0xf] %v254_v15 }
  0x27 PF: > { %p890_p7 = scmp.ge.s32.totalorder %s1118_s21, 1  ;;  %p322_p8 = scmp.lt.s32.totalorder %s1118_s21, 21 }
  0x29   : > { %p323_p9 = pnand %p890_p7, %p322_p8 }
  0x2a   : > { %s329_s12 = sand.u32 (!%p323_p9), 1, %s1094_s15   ;;  %s892_s13 = sshll.u32 (!%p323_p9), %s1102_s17, 4 }
  0x2b   : > { %326 = sbr.rel (%p323_p9) target bundleno = 292 (0x124), region = 73  ;;  %s891_s14 = sshll.u32 (!%p323_p9), %s329_s12, 6 }
  0x2c   : > { %p373_p10 = scmp.lt.s32.totalorder (!%p323_p9), %s892_s13, 79  ;;  %s894_s24 = sshll.u32 (!%p323_p9), %s1106_s18, 4 }
  0x2d   : > { %p388_p11 = scmp.lt.s32.totalorder (!%p323_p9), %s894_s24, 63  ;;  %s1239_s15 = scalar_lea.vmem (!%p323_p9), [#allocation3], %s891_s14 }
  0x2e   : > { %p896_p12 = scmp.ne.s32.totalorder (!%p323_p9), %s1102_s17, 0 }
  0x30   : > { %s1404_s13 = smov (!%p373_p10, %s892_s13), 79  ;;  %s1406_s24 = smov (!%p388_p11, %s894_s24), 63 }
  0x31   : > { %s893_s25 = sshll.u32 %s1404_s13, 2  ;;  %s895_s30 = sshll.u32 %s1406_s24, 2 }
  0x32   : > { %s1232_s29 = scalar_lea.vmem %s1387_s1, %s893_s25  ;;  %s1237_s7 = scalar_lea.vmem %s1390_s4, %s895_s30 }
  0x33   : > { %399 = sbr.rel (%p896_p12) target bundleno = 73 (0x49), region = 81 }
  0x38   : > { %vm400_vm0 = vcmask 523264   ;;  %v1120_v16 = vmov 0.0  }
  0x39   : > { %401 = vst.msk [vmem:[#allocation2] sm:$0xff] %vm400_vm0, %v1120_v16 }
  0x3a   : > { %402 = vst.msk [vmem:[#allocation2 + $0x8] sm:$0xff] %vm400_vm0, %v1120_v16 }
  0x3b   : > { %403 = vst.msk [vmem:[#allocation2 + $0x10] sm:$0xff] %vm400_vm0, %v1120_v16 }
  0x3c   : > { %404 = vst.msk [vmem:[#allocation2 + $0x18] sm:$0xff] %vm400_vm0, %v1120_v16 }
  0x3d   : > { %405 = vst.msk [vmem:[#allocation2 + $0x20] sm:$0xff] %vm400_vm0, %v1120_v16 }
  0x3e   : > { %406 = vst.msk [vmem:[#allocation2 + $0x28] sm:$0xff] %vm400_vm0, %v1120_v16 }
  0x3f   : > { %407 = vst.msk [vmem:[#allocation2 + $0x30] sm:$0xff] %vm400_vm0, %v1120_v16 }
  0x40   : > { %408 = vst.msk [vmem:[#allocation2 + $0x38] sm:$0xff] %vm400_vm0, %v1120_v16 }
  0x41   : > { %409 = vst.msk [vmem:[#allocation2 + $0x40] sm:$0xff] %vm400_vm0, %v1120_v16 }
  0x42   : > { %410 = vst.msk [vmem:[#allocation2 + $0x48] sm:$0xff] %vm400_vm0, %v1120_v16 }
  0x43   : > { %411 = vst.msk [vmem:[#allocation2 + $0x50] sm:$0xff] %vm400_vm0, %v1120_v16 }
  0x44   : > { %412 = vst.msk [vmem:[#allocation2 + $0x58] sm:$0xff] %vm400_vm0, %v1120_v16 }
  0x45   : > { %413 = vst.msk [vmem:[#allocation2 + $0x60] sm:$0xff] %vm400_vm0, %v1120_v16 }
  0x46   : > { %414 = vst.msk [vmem:[#allocation2 + $0x68] sm:$0xff] %vm400_vm0, %v1120_v16 }
  0x47   : > { %415 = vst.msk [vmem:[#allocation2 + $0x70] sm:$0xff] %vm400_vm0, %v1120_v16 }
  0x48   : > { %416 = vst.msk [vmem:[#allocation2 + $0x78] sm:$0xff] %vm400_vm0, %v1120_v16 }
  0x49 PF: > { %v979_v17 = vld [vmem:[%s1232_s29 + $0x38] sm:$0xff]  ;;  %v978_v18 = vld [vmem:[%s1232_s29 + $0x30] sm:$0xff]  ;;  %v977_v19 = vld [vmem:[%s1232_s29 + $0x28] sm:$0xff]  ;;  %vm626_vm1 = vcmask 523264   ;;  %p961_p13 = scmp.ne.s32.totalorder %s1102_s17, 4 }
  0x4a   : > { %561 = vmatpush.bf16.msra.mxu0 %v979_v17  ;;  %980 = vmatpush.bf16.msra.mxu1 %v979_v17  ;;  %v976_v20 = vld [vmem:[%s1232_s29 + $0x20] sm:$0xff]  ;;  %v975_v21 = vld [vmem:[%s1232_s29 + $0x18] sm:$0xff]  ;;  %v974_v22 = vld [vmem:[%s1232_s29 + $0x10] sm:$0xff] }
  0x4b   : > { %981 = vmatpush.bf16.msra.mxu2 %v979_v17  ;;  %982 = vmatpush.bf16.msra.mxu3 %v979_v17  ;;  %v973_v23 = vld [vmem:[%s1232_s29 + $0x8] sm:$0xff]  ;;  %v972_v24 = vld [vmem:[%s1232_s29] sm:$0xff]  ;;  %v966_v26 = vld [vmem:[%s1239_s15 + $0x10] sm:$0xff] }
  0x4c   : > { %v964_v25 = vld [vmem:[%s1239_s15] sm:$0xff]  ;;  %v970_v28 = vld [vmem:[%s1239_s15 + $0x30] sm:$0xff]  ;;  %v965_v29 = vld [vmem:[%s1239_s15 + $0x8] sm:$0xff] }
  0x4d   : > { %v968_v27 = vld [vmem:[%s1239_s15 + $0x20] sm:$0xff]  ;;  %v967_v30 = vld [vmem:[%s1239_s15 + $0x18] sm:$0xff]  ;;  %v969_v31 = vld [vmem:[%s1239_s15 + $0x28] sm:$0xff] }
  0x4e   : > { %562 = vmatpush.bf16.msra.mxu0 %v978_v18  ;;  %983 = vmatpush.bf16.msra.mxu1 %v978_v18  ;;  %v971_v32 = vld [vmem:[%s1239_s15 + $0x38] sm:$0xff]  ;;  %v417_v33 = vld [vmem:[#allocation2] sm:$0xff]  ;;  %v418_v41 = vld [vmem:[#allocation2 + $0x8] sm:$0xff] }
  0x4f   : > { %984 = vmatpush.bf16.msra.mxu2 %v978_v18  ;;  %985 = vmatpush.bf16.msra.mxu3 %v978_v18  ;;  %v421_v34 = vld [vmem:[#allocation2 + $0x20] sm:$0xff]  ;;  %v422_v42 = vld [vmem:[#allocation2 + $0x28] sm:$0xff]  ;;  %v419_v53 = vld [vmem:[#allocation2 + $0x10] sm:$0xff] }
  0x50   : > { %v425_v39 = vld [vmem:[#allocation2 + $0x40] sm:$0xff]  ;;  %v426_v51 = vld [vmem:[#allocation2 + $0x48] sm:$0xff]  ;;  %v423_v54 = vld [vmem:[#allocation2 + $0x30] sm:$0xff] }
  0x51   : > { %v429_v40 = vld [vmem:[#allocation2 + $0x60] sm:$0xff]  ;;  %v430_v52 = vld [vmem:[#allocation2 + $0x68] sm:$0xff]  ;;  %v427_v63 = vld [vmem:[#allocation2 + $0x50] sm:$0xff] }
  0x52   : > { %563 = vmatpush.bf16.msra.mxu0 %v977_v19  ;;  %986 = vmatpush.bf16.msra.mxu1 %v977_v19  ;;  %v431_v0 = vld [vmem:[#allocation2 + $0x70] sm:$0xff]  ;;  %v420_v1 = vld [vmem:[#allocation2 + $0x18] sm:$0xff] }
  0x53   : > { %987 = vmatpush.bf16.msra.mxu2 %v977_v19  ;;  %988 = vmatpush.bf16.msra.mxu3 %v977_v19  ;;  %v424_v2 = vld [vmem:[#allocation2 + $0x38] sm:$0xff] }
  0x54   : > { %v428_v11 = vld [vmem:[#allocation2 + $0x58] sm:$0xff] }
  0x55   : > { %v432_v12 = vld [vmem:[#allocation2 + $0x78] sm:$0xff] }
  0x56   : > { %564 = vmatpush.bf16.msra.mxu0 %v976_v20  ;;  %989 = vmatpush.bf16.msra.mxu1 %v976_v20 }
  0x57   : > { %990 = vmatpush.bf16.msra.mxu2 %v976_v20  ;;  %991 = vmatpush.bf16.msra.mxu3 %v976_v20 }
  0x5a   : > { %565 = vmatpush.bf16.msra.mxu0 %v975_v21  ;;  %992 = vmatpush.bf16.msra.mxu1 %v975_v21 }
  0x5b   : > { %993 = vmatpush.bf16.msra.mxu2 %v975_v21  ;;  %994 = vmatpush.bf16.msra.mxu3 %v975_v21 }
  0x5e   : > { %566 = vmatpush.bf16.msra.mxu0 %v974_v22  ;;  %995 = vmatpush.bf16.msra.mxu1 %v974_v22 }
  0x5f   : > { %996 = vmatpush.bf16.msra.mxu2 %v974_v22  ;;  %997 = vmatpush.bf16.msra.mxu3 %v974_v22 }
  0x62   : > { %567 = vmatpush.bf16.msra.mxu0 %v973_v23  ;;  %998 = vmatpush.bf16.msra.mxu1 %v973_v23 }
  0x63   : > { %999 = vmatpush.bf16.msra.mxu2 %v973_v23  ;;  %1000 = vmatpush.bf16.msra.mxu3 %v973_v23 }
  0x66   : > { %568 = vmatpush.bf16.msra.mxu0 %v972_v24  ;;  %1001 = vmatpush.bf16.msra.mxu1 %v972_v24 }
  0x67   : > { %1002 = vmatpush.bf16.msra.mxu2 %v972_v24  ;;  %1003 = vmatpush.bf16.msra.mxu3 %v972_v24 }
  0x69   : > { %569 = vmatmul.bf16.vlgmr.msra.gmra.mxu0 %v964_v25  ;;  %579 = vmatmul.bf16.vlgmr.msra.gmra.mxu1 %v966_v26 }
  0x6a   : > { %589 = vmatmul.bf16.vlgmr.msra.gmra.mxu2 %v968_v27  ;;  %599 = vmatmul.bf16.vlgmr.msra.gmra.mxu3 %v970_v28 }
  0x79   : > { %574 = vmatmul.bf16.gmra.mxu0 %v965_v29  ;;  %584 = vmatmul.bf16.gmra.mxu1 %v967_v30 }
  0x7a   : > { %594 = vmatmul.bf16.gmra.mxu2 %v969_v31  ;;  %604 = vmatmul.bf16.gmra.mxu3 %v971_v32 }
  0xe6   : > { %v570_v35 = vpop.f32.mrf.mxu0  ;;  %v580_v36 = vpop.f32.mrf.mxu1 }
  0xe7   : > { %v610_v37 = vadd.f32 %v570_v35, %v417_v33  ;;  %v614_v38 = vadd.f32 %v580_v36, %v421_v34 }
  0xe9   : > { %627 = vst.msk [vmem:[#allocation2] sm:$0xff] %vm626_vm1, %v610_v37 }
  0xea   : > { %631 = vst.msk [vmem:[#allocation2 + $0x20] sm:$0xff] %vm626_vm1, %v614_v38 }
  0xed   : > { %v590_v43 = vpop.f32.mrf.mxu2  ;;  %v600_v44 = vpop.f32.mrf.mxu3 }
  0xee   : > { %v618_v45 = vadd.f32 %v590_v43, %v425_v39  ;;  %v622_v46 = vadd.f32 %v600_v44, %v429_v40  ;;  %v572_v47 = vpop.f32.mrf.mxu0  ;;  %v582_v48 = vpop.f32.mrf.mxu1 }
  0xef   : > { %v611_v49 = vadd.f32 %v572_v47, %v418_v41  ;;  %v615_v50 = vadd.f32 %v582_v48, %v422_v42 }
  0xf0   : > { %635 = vst.msk [vmem:[#allocation2 + $0x40] sm:$0xff] %vm626_vm1, %v618_v45 }
  0xf1   : > { %639 = vst.msk [vmem:[#allocation2 + $0x60] sm:$0xff] %vm626_vm1, %v622_v46 }
  0xf2   : > { %628 = vst.msk [vmem:[#allocation2 + $0x8] sm:$0xff] %vm626_vm1, %v611_v49 }
  0xf3   : > { %632 = vst.msk [vmem:[#allocation2 + $0x28] sm:$0xff] %vm626_vm1, %v615_v50 }
  0xf5   : > { %v592_v55 = vpop.f32.mrf.mxu2  ;;  %v602_v56 = vpop.f32.mrf.mxu3 }
  0xf6   : > { %v619_v57 = vadd.f32 %v592_v55, %v426_v51  ;;  %v623_v58 = vadd.f32 %v602_v56, %v430_v52  ;;  %v575_v59 = vpop.f32.mrf.mxu0  ;;  %v585_v60 = vpop.f32.mrf.mxu1 }
  0xf7   : > { %v612_v61 = vadd.f32 %v575_v59, %v419_v53  ;;  %v616_v62 = vadd.f32 %v585_v60, %v423_v54 }
  0xf8   : > { %636 = vst.msk [vmem:[#allocation2 + $0x48] sm:$0xff] %vm626_vm1, %v619_v57 }
  0xf9   : > { %640 = vst.msk [vmem:[#allocation2 + $0x68] sm:$0xff] %vm626_vm1, %v623_v58 }
  0xfa   : > { %629 = vst.msk [vmem:[#allocation2 + $0x10] sm:$0xff] %vm626_vm1, %v612_v61 }
  0xfb   : > { %633 = vst.msk [vmem:[#allocation2 + $0x30] sm:$0xff] %vm626_vm1, %v616_v62 }
  0xfd   : > { %v595_v3 = vpop.f32.mrf.mxu2  ;;  %v605_v4 = vpop.f32.mrf.mxu3 }
  0xfe   : > { %v620_v5 = vadd.f32 %v595_v3, %v427_v63  ;;  %v624_v6 = vadd.f32 %v605_v4, %v431_v0  ;;  %v577_v7 = vpop.f32.mrf.mxu0  ;;  %v587_v8 = vpop.f32.mrf.mxu1 }
  0xff   : > { %v613_v9 = vadd.f32 %v577_v7, %v420_v1  ;;  %v617_v10 = vadd.f32 %v587_v8, %v424_v2 }
 0x100   : > { %637 = vst.msk [vmem:[#allocation2 + $0x50] sm:$0xff] %vm626_vm1, %v620_v5 }
 0x101   : > { %641 = vst.msk [vmem:[#allocation2 + $0x70] sm:$0xff] %vm626_vm1, %v624_v6 }
 0x102   : > { %630 = vst.msk [vmem:[#allocation2 + $0x18] sm:$0xff] %vm626_vm1, %v613_v9 }
 0x103   : > { %634 = vst.msk [vmem:[#allocation2 + $0x38] sm:$0xff] %vm626_vm1, %v617_v10 }
 0x105   : > { %v597_v13 = vpop.f32.mrf.mxu2  ;;  %v607_v14 = vpop.f32.mrf.mxu3  ;;  %646 = sbr.rel (%p961_p13) target bundleno = 292 (0x124), region = 85 }
 0x106   : > { %v621_v15 = vadd.f32 %v597_v13, %v428_v11  ;;  %v625_v16 = vadd.f32 %v607_v14, %v432_v12 }
 0x108   : > { %638 = vst.msk [vmem:[#allocation2 + $0x58] sm:$0xff] %vm626_vm1, %v621_v15 }
 0x109   : > { %642 = vst.msk [vmem:[#allocation2 + $0x78] sm:$0xff] %vm626_vm1, %v625_v16 }
 0x10a   : > { %v647_v17 = vld [vmem:[#allocation2] sm:$0xff]  ;;  %v648_v20 = vld [vmem:[#allocation2 + $0x8] sm:$0xff]  ;;  %v649_v23 = vld [vmem:[#allocation2 + $0x10] sm:$0xff]  ;;  %vm735_vm2 = vcmask 519168  }
 0x10b   : > { %v1294_v18 = vld [vmem:[%s1388_s2] ss:$0 sm:$0xff]  ;;  %v650_v24 = vld [vmem:[#allocation2 + $0x18] sm:$0xff]  ;;  %v652_v29 = vld [vmem:[#allocation2 + $0x28] sm:$0xff] }
 0x10c   : > { %v1299_v19 = vld [vmem:[%s1389_s3] ss:$0 sm:$0xff]  ;;  %v667_v21 = vmul.f32 %v1294_v18, %v647_v17  ;;  %v668_v22 = vmul.f32 %v1294_v18, %v648_v20  ;;  %v669_v26 = vmul.f32 %v1294_v18, %v649_v23  ;;  %v670_v27 = vmul.f32 %v1294_v18, %v650_v24  ;;  %v653_v30 = vld [vmem:[#allocation2 + $0x30] sm:$0xff]  ;;  %v654_v31 = vld [vmem:[#allocation2 + $0x38] sm:$0xff] }
 0x10d   : > { %v651_v25 = vld [vmem:[#allocation2 + $0x20] sm:$0xff]  ;;  %v672_v34 = vmul.f32 %v1294_v18, %v652_v29  ;;  %v673_v35 = vmul.f32 %v1294_v18, %v653_v30  ;;  %v674_v39 = vmul.f32 %v1294_v18, %v654_v31  ;;  %v656_v49 = vld [vmem:[#allocation2 + $0x48] sm:$0xff]  ;;  %v657_v54 = vld [vmem:[#allocation2 + $0x50] sm:$0xff] }
 0x10e   : > { %v671_v28 = vmul.f32 %v1294_v18, %v651_v25  ;;  %v687_v32 = vadd.f32 %v1299_v19, %v667_v21  ;;  %v688_v33 = vadd.f32 %v1299_v19, %v668_v22  ;;  %v689_v36 = vadd.f32 %v1299_v19, %v669_v26  ;;  %v655_v48 = vld [vmem:[#allocation2 + $0x40] sm:$0xff]  ;;  %v660_v61 = vld [vmem:[#allocation2 + $0x68] sm:$0xff]  ;;  %v661_v62 = vld [vmem:[#allocation2 + $0x70] sm:$0xff] }
 0x10f   : > { %v690_v37 = vadd.f32 %v1299_v19, %v670_v27  ;;  %v692_v42 = vadd.f32 %v1299_v19, %v672_v34  ;;  %v693_v43 = vadd.f32 %v1299_v19, %v673_v35  ;;  %v694_v47 = vadd.f32 %v1299_v19, %v674_v39  ;;  %v658_v55 = vld [vmem:[#allocation2 + $0x58] sm:$0xff]  ;;  %v659_v56 = vld [vmem:[#allocation2 + $0x60] sm:$0xff] }
 0x110   : > { %v691_v38 = vadd.f32 %v1299_v19, %v671_v28  ;;  %v703_v40 = vmax.f32 %v687_v32, 0.0  ;;  %v704_v41 = vmax.f32 %v688_v33, 0.0  ;;  %v705_v44 = vmax.f32 %v689_v36, 0.0  ;;  %v662_v3 = vld [vmem:[#allocation2 + $0x78] sm:$0xff] }
 0x111   : > { %v706_v45 = vmax.f32 %v690_v37, 0.0  ;;  %v708_v52 = vmax.f32 %v692_v42, 0.0  ;;  %v709_v53 = vmax.f32 %v693_v43, 0.0  ;;  %v710_v60 = vmax.f32 %v694_v47, 0.0 }
 0x112   : > { %v707_v46 = vmax.f32 %v691_v38, 0.0  ;;  %v719_v50 = vpack.c.bf16 %v703_v40, %v703_v40  ;;  %v720_v51 = vpack.c.bf16 %v704_v41, %v704_v41  ;;  %v721_v57 = vpack.c.bf16 %v705_v44, %v705_v44 }
 0x113   : > { %v722_v58 = vpack.c.bf16 %v706_v45, %v706_v45  ;;  %v724_v63 = vpack.c.bf16 %v708_v52, %v708_v52  ;;  %v725_v0 = vpack.c.bf16 %v709_v53, %v709_v53  ;;  %v675_v1 = vmul.f32 %v1294_v18, %v655_v48 }
 0x114   : > { %v723_v59 = vpack.c.bf16 %v707_v46, %v707_v46  ;;  %736 = vst.msk [vmem:[%s1237_s7] sm:$0xf] %vm735_vm2, %v719_v50  ;;  %v676_v2 = vmul.f32 %v1294_v18, %v656_v49  ;;  %v726_v4 = vpack.c.bf16 %v710_v60, %v710_v60  ;;  %v677_v5 = vmul.f32 %v1294_v18, %v657_v54 }
 0x115   : > { %737 = vst.msk [vmem:[%s1237_s7 + $0x4] sm:$0xf] %vm735_vm2, %v720_v51  ;;  %v678_v6 = vmul.f32 %v1294_v18, %v658_v55  ;;  %v679_v7 = vmul.f32 %v1294_v18, %v659_v56  ;;  %v695_v8 = vadd.f32 %v1299_v19, %v675_v1  ;;  %v680_v10 = vmul.f32 %v1294_v18, %v660_v61 }
 0x116   : > { %738 = vst.msk [vmem:[%s1237_s7 + $0x8] sm:$0xf] %vm735_vm2, %v721_v57  ;;  %v696_v9 = vadd.f32 %v1299_v19, %v676_v2  ;;  %v681_v11 = vmul.f32 %v1294_v18, %v661_v62  ;;  %v697_v12 = vadd.f32 %v1299_v19, %v677_v5  ;;  %v682_v15 = vmul.f32 %v1294_v18, %v662_v3 }
 0x117   : > { %739 = vst.msk [vmem:[%s1237_s7 + $0xc] sm:$0xf] %vm735_vm2, %v722_v58  ;;  %v698_v13 = vadd.f32 %v1299_v19, %v678_v6  ;;  %v699_v14 = vadd.f32 %v1299_v19, %v679_v7  ;;  %v711_v16 = vmax.f32 %v695_v8, 0.0  ;;  %v700_v20 = vadd.f32 %v1299_v19, %v680_v10 }
 0x118   : > { %740 = vst.msk [vmem:[%s1237_s7 + $0x10] sm:$0xf] %vm735_vm2, %v723_v59  ;;  %v712_v17 = vmax.f32 %v696_v9, 0.0  ;;  %v701_v21 = vadd.f32 %v1299_v19, %v681_v11  ;;  %v713_v22 = vmax.f32 %v697_v12, 0.0  ;;  %v702_v25 = vadd.f32 %v1299_v19, %v682_v15 }
 0x119   : > { %741 = vst.msk [vmem:[%s1237_s7 + $0x14] sm:$0xf] %vm735_vm2, %v724_v63  ;;  %v714_v23 = vmax.f32 %v698_v13, 0.0  ;;  %v715_v24 = vmax.f32 %v699_v14, 0.0  ;;  %v727_v18 = vpack.c.bf16 %v711_v16, %v711_v16  ;;  %v716_v27 = vmax.f32 %v700_v20, 0.0 }
 0x11a   : > { %742 = vst.msk [vmem:[%s1237_s7 + $0x18] sm:$0xf] %vm735_vm2, %v725_v0  ;;  %v728_v26 = vpack.c.bf16 %v712_v17, %v712_v17  ;;  %v717_v28 = vmax.f32 %v701_v21, 0.0  ;;  %v729_v29 = vpack.c.bf16 %v713_v22, %v713_v22  ;;  %v718_v31 = vmax.f32 %v702_v25, 0.0 }
 0x11b   : > { %743 = vst.msk [vmem:[%s1237_s7 + $0x1c] sm:$0xf] %vm735_vm2, %v726_v4  ;;  %v730_v30 = vpack.c.bf16 %v714_v23, %v714_v23  ;;  %v731_v32 = vpack.c.bf16 %v715_v24, %v715_v24  ;;  %v732_v19 = vpack.c.bf16 %v716_v27, %v716_v27 }
 0x11c   : > { %744 = vst.msk [vmem:[%s1237_s7 + $0x20] sm:$0xf] %vm735_vm2, %v727_v18  ;;  %v733_v33 = vpack.c.bf16 %v717_v28, %v717_v28  ;;  %v734_v34 = vpack.c.bf16 %v718_v31, %v718_v31 }
 0x11d   : > { %745 = vst.msk [vmem:[%s1237_s7 + $0x24] sm:$0xf] %vm735_vm2, %v728_v26 }
 0x11e   : > { %746 = vst.msk [vmem:[%s1237_s7 + $0x28] sm:$0xf] %vm735_vm2, %v729_v29 }
 0x11f   : > { %747 = vst.msk [vmem:[%s1237_s7 + $0x2c] sm:$0xf] %vm735_vm2, %v730_v30 }
 0x120   : > { %748 = vst.msk [vmem:[%s1237_s7 + $0x30] sm:$0xf] %vm735_vm2, %v731_v32 }
 0x121   : > { %749 = vst.msk [vmem:[%s1237_s7 + $0x34] sm:$0xf] %vm735_vm2, %v732_v19 }
 0x122   : > { %750 = vst.msk [vmem:[%s1237_s7 + $0x38] sm:$0xf] %vm735_vm2, %v733_v33 }
 0x123   : > { %751 = vst.msk [vmem:[%s1237_s7 + $0x3c] sm:$0xf] %vm735_vm2, %v734_v34 }
 0x124 PF: > { %s14_s21 = sadd.s32 1, %s1118_s21   ;;  %s1391_s15 = smov %s1098_s16 }
 0x125   : > { %p11_p0 = scmp.ge.s32.totalorder %s14_s21, 22   ;;  %s1392_s16 = smov %s1197_s28 }
 0x126   : > { %s1393_s17 = smov %s1110_s19  ;;  %s1394_s18 = smov %s1114_s20 }
 0x127   : > { %s1395_s19 = smov %s1398_s22  ;;  %s1396_s20 = smov %s1402_s23 }
 0x128   :  { %13 = sbr.rel (!%p11_p0) target bundleno = 4 (0x4), region = 129 }

// kernel: custom_resnet18_forward.15
= control target key start
LH: loop header
LB: loop body
LE: loop exit
PB: predicated region body
PF: predicated region fallthrough
CT: control target
= control target key end

     0   :  { %s1315_s18 = smov 0   ;;  %s1317_s19 = smov 0   ;;  %s1568_s0 = inlined_call_operand.vmem [shape: bf16[512,640], index: 0, kind: input, shape index: {}]   ;;  %s1569_s1 = inlined_call_operand.vmem [shape: bf16[640,64], index: 1, kind: input, shape index: {}]   ;;  %s1570_s2 = inlined_call_operand.vmem [shape: f32[1,64], index: 2, kind: input, shape index: {}]   ;;  %s1571_s3 = inlined_call_operand.vmem [shape: f32[1,64], index: 3, kind: input, shape index: {}]   ;;  %s1572_s4 = inlined_call_operand.vmem [shape: bf16[512,64], index: 4, kind: input, shape index: {}]   ;;  %s1573_s5 = inlined_call_operand.vmem [shape: bf16[512,64], index: 5, kind: output, shape index: {}]  }
   0x1   :  { %s1319_s20 = smov 0   ;;  %s1321_s21 = smov 0  }
   0x2   :  { %s1323_s22 = smov 0   ;;  %s1325_s23 = smov 0  }
   0x3   :  { %s1327_s24 = smov 0  }
   0x4 LB: > { %s27_s25 = sadd.s32 1, %s1274_s22  ;;  %s34_s26 = sadd.s32 1, %s1278_s23  ;;  %s1282_s24 = sphi %s1327_s24, %s15_s24   ;;  %s1278_s23 = sphi %s1325_s23, %s1579_s23   ;;  %s1274_s22 = sphi %s1323_s22, %s1578_s22   ;;  %s1270_s21 = sphi %s1321_s21, %s1577_s21   ;;  %s1266_s20 = sphi %s1319_s20, %s1576_s20   ;;  %s1262_s19 = sphi %s1317_s19, %s1575_s19   ;;  %s1258_s18 = sphi %s1315_s18, %s1574_s18  }
   0x5   : > { %p28_p0 = scmp.ge.s32.totalorder %s27_s25, 5  ;;  %p50_p1 = scmp.ne.s32.totalorder %s1262_s19, %s1258_s18 }
   0x6   : > { %p51_p2 = scmp.eq.s32.totalorder %s1282_s24, 0  ;;  %s43_s30 = sadd.s32 1, %s1262_s19 }
   0x7   : > { %s1581_s25 = smov (%p28_p0, %s27_s25), 0  ;;  %s1583_s26 = smov (!%p28_p0, %s34_s26), %s1278_s23 }
   0x8   : > { %p52_p3 = por %p51_p2, %p50_p1  ;;  %p36_p4 = scmp.ge.s32.totalorder %s1583_s26, 4 }
   0x9   : > { %s39_s27 = ssub.s32 %s1274_s22, %s1581_s25  ;;  %p1008_p6 = scmp.ge.s32.totalorder %s1282_s24, 20 }
   0xa   : > { %s1585_s26 = smov (%p36_p4, %s1583_s26), 0 }
   0xb   : > { %s38_s28 = ssub.s32 %s1278_s23, %s1585_s26  ;;  %224 = sbr.rel (%p1008_p6) target bundleno = 39 (0x27), region = 24 }
   0xc   : > { %s40_s29 = sor.u32 %s39_s27, %s38_s28 }
   0xd   : > { %p41_p5 = scmp.eq.s32.totalorder %s40_s29, 0 }
   0xf   : > { %s1366_s6 = scalar_select %p41_p5, %s1262_s19, %s43_s30  }
  0x10   : > { %227 = sbr.rel (!%p52_p3) target bundleno = 39 (0x27), region = 28  ;;  %s229_s7 = sand.u32 (%p52_p3), 1, %s1262_s19  }
  0x11   : > { %s1168_s8 = smul.u32 (%p52_p3), 80, %s1278_s23  ;;  %s1009_s9 = sshll.u32 (%p52_p3), %s229_s7, 6 }
  0x12   : > { %s231_s15 = scalar_lea.vmem (%p52_p3), [#allocation3], %s1009_s9 }
  0x13   : > { %s234_s10 = sadd.s32 (%p52_p3), %s1274_s22, %s1168_s8 }
  0x14   : > { %s1012_s11 = sshll.u32 (%p52_p3), %s234_s10, 2 }
  0x15   : > { %s1375_s14 = scalar_lea.vmem %s1568_s0, %s1012_s11 }
  0x16   : > { %v253_v0 = vld [vmem:[%s1375_s14] sm:$0xf]  ;;  %v255_v1 = vld [vmem:[%s1375_s14 + $0x14] sm:$0xf]  ;;  %v257_v2 = vld [vmem:[%s1375_s14 + $0x28] sm:$0xf] }
  0x17   : > { %254 = vst [vmem:[%s231_s15] sm:$0xf] %v253_v0  ;;  %v259_v3 = vld [vmem:[%s1375_s14 + $0x3c] sm:$0xf]  ;;  %v261_v4 = vld [vmem:[%s1375_s14 + $0x50] sm:$0xf] }
  0x18   : > { %256 = vst [vmem:[%s231_s15 + $0x4] sm:$0xf] %v255_v1  ;;  %v263_v5 = vld [vmem:[%s1375_s14 + $0x64] sm:$0xf]  ;;  %v265_v6 = vld [vmem:[%s1375_s14 + $0x78] sm:$0xf] }
  0x19   : > { %258 = vst [vmem:[%s231_s15 + $0x8] sm:$0xf] %v257_v2  ;;  %v267_v7 = vld [vmem:[%s1375_s14 + $0x8c] sm:$0xf]  ;;  %v269_v8 = vld [vmem:[%s1375_s14 + $0xa0] sm:$0xf] }
  0x1a   : > { %260 = vst [vmem:[%s231_s15 + $0xc] sm:$0xf] %v259_v3  ;;  %v271_v9 = vld [vmem:[%s1375_s14 + $0xb4] sm:$0xf]  ;;  %v273_v10 = vld [vmem:[%s1375_s14 + $0xc8] sm:$0xf] }
  0x1b   : > { %262 = vst [vmem:[%s231_s15 + $0x10] sm:$0xf] %v261_v4  ;;  %v275_v11 = vld [vmem:[%s1375_s14 + $0xdc] sm:$0xf]  ;;  %v277_v12 = vld [vmem:[%s1375_s14 + $0xf0] sm:$0xf] }
  0x1c   : > { %264 = vst [vmem:[%s231_s15 + $0x14] sm:$0xf] %v263_v5  ;;  %v279_v13 = vld [vmem:[%s1375_s14 + $0x104] sm:$0xf]  ;;  %v281_v14 = vld [vmem:[%s1375_s14 + $0x118] sm:$0xf] }
  0x1d   : > { %266 = vst [vmem:[%s231_s15 + $0x18] sm:$0xf] %v265_v6  ;;  %v283_v15 = vld [vmem:[%s1375_s14 + $0x12c] sm:$0xf] }
  0x1e   : > { %268 = vst [vmem:[%s231_s15 + $0x1c] sm:$0xf] %v267_v7 }
  0x1f   : > { %270 = vst [vmem:[%s231_s15 + $0x20] sm:$0xf] %v269_v8 }
  0x20   : > { %272 = vst [vmem:[%s231_s15 + $0x24] sm:$0xf] %v271_v9 }
  0x21   : > { %274 = vst [vmem:[%s231_s15 + $0x28] sm:$0xf] %v273_v10 }
  0x22   : > { %276 = vst [vmem:[%s231_s15 + $0x2c] sm:$0xf] %v275_v11 }
  0x23   : > { %278 = vst [vmem:[%s231_s15 + $0x30] sm:$0xf] %v277_v12 }
  0x24   : > { %280 = vst [vmem:[%s231_s15 + $0x34] sm:$0xf] %v279_v13 }
  0x25   : > { %282 = vst [vmem:[%s231_s15 + $0x38] sm:$0xf] %v281_v14 }
  0x26   : > { %284 = vst [vmem:[%s231_s15 + $0x3c] sm:$0xf] %v283_v15 }
  0x27 PF: > { %p1013_p7 = scmp.ge.s32.totalorder %s1282_s24, 1  ;;  %p363_p8 = scmp.lt.s32.totalorder %s1282_s24, 21 }
  0x29   : > { %p364_p9 = pnand %p1013_p7, %p363_p8 }
  0x2a   : > { %s370_s16 = sand.u32 (!%p364_p9), 1, %s1258_s18   ;;  %s1015_s17 = sshll.u32 (!%p364_p9), %s1266_s20, 4 }
  0x2b   : > { %367 = sbr.rel (%p364_p9) target bundleno = 299 (0x12b), region = 77  ;;  %s1014_s27 = sshll.u32 (!%p364_p9), %s370_s16, 6 }
  0x2c   : > { %p424_p10 = scmp.lt.s32.totalorder (!%p364_p9), %s1015_s17, 79  ;;  %s1017_s28 = sshll.u32 (!%p364_p9), %s1270_s21, 4 }
  0x2d   : > { %p439_p11 = scmp.lt.s32.totalorder (!%p364_p9), %s1017_s28, 63  ;;  %s1413_s21 = scalar_lea.vmem (!%p364_p9), [#allocation3], %s1014_s27 }
  0x2e   : > { %p1021_p12 = scmp.ne.s32.totalorder (!%p364_p9), %s1266_s20, 0 }
  0x30   : > { %s1587_s17 = smov (!%p424_p10, %s1015_s17), 79  ;;  %s1589_s28 = smov (!%p439_p11, %s1017_s28), 63 }
  0x31   : > { %s1016_s29 = sshll.u32 %s1587_s17, 2  ;;  %s1018_s9 = sshll.u32 %s1589_s28, 2 }
  0x32   : > { %s1401_s8 = scalar_lea.vmem %s1569_s1, %s1016_s29  ;;  %s1406_s12 = scalar_lea.vmem %s1572_s4, %s1018_s9 }
  0x33   : > { %s1411_s14 = scalar_lea.vmem %s1573_s5, %s1018_s9  ;;  %459 = sbr.rel (%p1021_p12) target bundleno = 73 (0x49), region = 85 }
  0x38   : > { %vm460_vm0 = vcmask 523264   ;;  %v1284_v16 = vmov 0.0  }
  0x39   : > { %461 = vst.msk [vmem:[#allocation2] sm:$0xff] %vm460_vm0, %v1284_v16 }
  0x3a   : > { %462 = vst.msk [vmem:[#allocation2 + $0x8] sm:$0xff] %vm460_vm0, %v1284_v16 }
  0x3b   : > { %463 = vst.msk [vmem:[#allocation2 + $0x10] sm:$0xff] %vm460_vm0, %v1284_v16 }
  0x3c   : > { %464 = vst.msk [vmem:[#allocation2 + $0x18] sm:$0xff] %vm460_vm0, %v1284_v16 }
  0x3d   : > { %465 = vst.msk [vmem:[#allocation2 + $0x20] sm:$0xff] %vm460_vm0, %v1284_v16 }
  0x3e   : > { %466 = vst.msk [vmem:[#allocation2 + $0x28] sm:$0xff] %vm460_vm0, %v1284_v16 }
  0x3f   : > { %467 = vst.msk [vmem:[#allocation2 + $0x30] sm:$0xff] %vm460_vm0, %v1284_v16 }
  0x40   : > { %468 = vst.msk [vmem:[#allocation2 + $0x38] sm:$0xff] %vm460_vm0, %v1284_v16 }
  0x41   : > { %469 = vst.msk [vmem:[#allocation2 + $0x40] sm:$0xff] %vm460_vm0, %v1284_v16 }
  0x42   : > { %470 = vst.msk [vmem:[#allocation2 + $0x48] sm:$0xff] %vm460_vm0, %v1284_v16 }
  0x43   : > { %471 = vst.msk [vmem:[#allocation2 + $0x50] sm:$0xff] %vm460_vm0, %v1284_v16 }
  0x44   : > { %472 = vst.msk [vmem:[#allocation2 + $0x58] sm:$0xff] %vm460_vm0, %v1284_v16 }
  0x45   : > { %473 = vst.msk [vmem:[#allocation2 + $0x60] sm:$0xff] %vm460_vm0, %v1284_v16 }
  0x46   : > { %474 = vst.msk [vmem:[#allocation2 + $0x68] sm:$0xff] %vm460_vm0, %v1284_v16 }
  0x47   : > { %475 = vst.msk [vmem:[#allocation2 + $0x70] sm:$0xff] %vm460_vm0, %v1284_v16 }
  0x48   : > { %476 = vst.msk [vmem:[#allocation2 + $0x78] sm:$0xff] %vm460_vm0, %v1284_v16 }
  0x49 PF: > { %v1104_v17 = vld [vmem:[%s1401_s8 + $0x38] sm:$0xff]  ;;  %v1103_v18 = vld [vmem:[%s1401_s8 + $0x30] sm:$0xff]  ;;  %v1102_v19 = vld [vmem:[%s1401_s8 + $0x28] sm:$0xff]  ;;  %vm686_vm1 = vcmask 523264   ;;  %p1086_p13 = scmp.ne.s32.totalorder %s1266_s20, 4 }
  0x4a   : > { %621 = vmatpush.bf16.msra.mxu0 %v1104_v17  ;;  %1144 = vmatpush.bf16.msra.mxu1 %v1104_v17  ;;  %v1101_v20 = vld [vmem:[%s1401_s8 + $0x20] sm:$0xff]  ;;  %v1100_v21 = vld [vmem:[%s1401_s8 + $0x18] sm:$0xff]  ;;  %v1099_v22 = vld [vmem:[%s1401_s8 + $0x10] sm:$0xff] }
  0x4b   : > { %1145 = vmatpush.bf16.msra.mxu2 %v1104_v17  ;;  %1146 = vmatpush.bf16.msra.mxu3 %v1104_v17  ;;  %v1098_v23 = vld [vmem:[%s1401_s8 + $0x8] sm:$0xff]  ;;  %v1097_v24 = vld [vmem:[%s1401_s8] sm:$0xff]  ;;  %v1091_v26 = vld [vmem:[%s1413_s21 + $0x10] sm:$0xff] }
  0x4c   : > { %v1089_v25 = vld [vmem:[%s1413_s21] sm:$0xff]  ;;  %v1095_v28 = vld [vmem:[%s1413_s21 + $0x30] sm:$0xff]  ;;  %v1090_v29 = vld [vmem:[%s1413_s21 + $0x8] sm:$0xff] }
  0x4d   : > { %v1093_v27 = vld [vmem:[%s1413_s21 + $0x20] sm:$0xff]  ;;  %v1092_v30 = vld [vmem:[%s1413_s21 + $0x18] sm:$0xff]  ;;  %v1094_v31 = vld [vmem:[%s1413_s21 + $0x28] sm:$0xff] }
  0x4e   : > { %622 = vmatpush.bf16.msra.mxu0 %v1103_v18  ;;  %1147 = vmatpush.bf16.msra.mxu1 %v1103_v18  ;;  %v1096_v32 = vld [vmem:[%s1413_s21 + $0x38] sm:$0xff]  ;;  %v477_v33 = vld [vmem:[#allocation2] sm:$0xff]  ;;  %v478_v41 = vld [vmem:[#allocation2 + $0x8] sm:$0xff] }
  0x4f   : > { %1148 = vmatpush.bf16.msra.mxu2 %v1103_v18  ;;  %1149 = vmatpush.bf16.msra.mxu3 %v1103_v18  ;;  %v481_v34 = vld [vmem:[#allocation2 + $0x20] sm:$0xff]  ;;  %v482_v42 = vld [vmem:[#allocation2 + $0x28] sm:$0xff]  ;;  %v479_v53 = vld [vmem:[#allocation2 + $0x10] sm:$0xff] }
  0x50   : > { %v485_v39 = vld [vmem:[#allocation2 + $0x40] sm:$0xff]  ;;  %v486_v51 = vld [vmem:[#allocation2 + $0x48] sm:$0xff]  ;;  %v483_v54 = vld [vmem:[#allocation2 + $0x30] sm:$0xff] }
  0x51   : > { %v489_v40 = vld [vmem:[#allocation2 + $0x60] sm:$0xff]  ;;  %v490_v52 = vld [vmem:[#allocation2 + $0x68] sm:$0xff]  ;;  %v487_v63 = vld [vmem:[#allocation2 + $0x50] sm:$0xff] }
  0x52   : > { %623 = vmatpush.bf16.msra.mxu0 %v1102_v19  ;;  %1150 = vmatpush.bf16.msra.mxu1 %v1102_v19  ;;  %v491_v0 = vld [vmem:[#allocation2 + $0x70] sm:$0xff]  ;;  %v480_v1 = vld [vmem:[#allocation2 + $0x18] sm:$0xff] }
  0x53   : > { %1151 = vmatpush.bf16.msra.mxu2 %v1102_v19  ;;  %1152 = vmatpush.bf16.msra.mxu3 %v1102_v19  ;;  %v484_v2 = vld [vmem:[#allocation2 + $0x38] sm:$0xff] }
  0x54   : > { %v488_v11 = vld [vmem:[#allocation2 + $0x58] sm:$0xff] }
  0x55   : > { %v492_v12 = vld [vmem:[#allocation2 + $0x78] sm:$0xff] }
  0x56   : > { %624 = vmatpush.bf16.msra.mxu0 %v1101_v20  ;;  %1153 = vmatpush.bf16.msra.mxu1 %v1101_v20 }
  0x57   : > { %1154 = vmatpush.bf16.msra.mxu2 %v1101_v20  ;;  %1155 = vmatpush.bf16.msra.mxu3 %v1101_v20 }
  0x5a   : > { %625 = vmatpush.bf16.msra.mxu0 %v1100_v21  ;;  %1156 = vmatpush.bf16.msra.mxu1 %v1100_v21 }
  0x5b   : > { %1157 = vmatpush.bf16.msra.mxu2 %v1100_v21  ;;  %1158 = vmatpush.bf16.msra.mxu3 %v1100_v21 }
  0x5e   : > { %626 = vmatpush.bf16.msra.mxu0 %v1099_v22  ;;  %1159 = vmatpush.bf16.msra.mxu1 %v1099_v22 }
  0x5f   : > { %1160 = vmatpush.bf16.msra.mxu2 %v1099_v22  ;;  %1161 = vmatpush.bf16.msra.mxu3 %v1099_v22 }
  0x62   : > { %627 = vmatpush.bf16.msra.mxu0 %v1098_v23  ;;  %1162 = vmatpush.bf16.msra.mxu1 %v1098_v23 }
  0x63   : > { %1163 = vmatpush.bf16.msra.mxu2 %v1098_v23  ;;  %1164 = vmatpush.bf16.msra.mxu3 %v1098_v23 }
  0x66   : > { %628 = vmatpush.bf16.msra.mxu0 %v1097_v24  ;;  %1165 = vmatpush.bf16.msra.mxu1 %v1097_v24 }
  0x67   : > { %1166 = vmatpush.bf16.msra.mxu2 %v1097_v24  ;;  %1167 = vmatpush.bf16.msra.mxu3 %v1097_v24 }
  0x69   : > { %629 = vmatmul.bf16.vlgmr.msra.gmra.mxu0 %v1089_v25  ;;  %639 = vmatmul.bf16.vlgmr.msra.gmra.mxu1 %v1091_v26 }
  0x6a   : > { %649 = vmatmul.bf16.vlgmr.msra.gmra.mxu2 %v1093_v27  ;;  %659 = vmatmul.bf16.vlgmr.msra.gmra.mxu3 %v1095_v28 }
  0x79   : > { %634 = vmatmul.bf16.gmra.mxu0 %v1090_v29  ;;  %644 = vmatmul.bf16.gmra.mxu1 %v1092_v30 }
  0x7a   : > { %654 = vmatmul.bf16.gmra.mxu2 %v1094_v31  ;;  %664 = vmatmul.bf16.gmra.mxu3 %v1096_v32 }
  0xe6   : > { %v630_v35 = vpop.f32.mrf.mxu0  ;;  %v640_v36 = vpop.f32.mrf.mxu1 }
  0xe7   : > { %v670_v37 = vadd.f32 %v630_v35, %v477_v33  ;;  %v674_v38 = vadd.f32 %v640_v36, %v481_v34 }
  0xe9   : > { %687 = vst.msk [vmem:[#allocation2] sm:$0xff] %vm686_vm1, %v670_v37 }
  0xea   : > { %691 = vst.msk [vmem:[#allocation2 + $0x20] sm:$0xff] %vm686_vm1, %v674_v38 }
  0xed   : > { %v650_v43 = vpop.f32.mrf.mxu2  ;;  %v660_v44 = vpop.f32.mrf.mxu3 }
  0xee   : > { %v678_v45 = vadd.f32 %v650_v43, %v485_v39  ;;  %v682_v46 = vadd.f32 %v660_v44, %v489_v40  ;;  %v632_v47 = vpop.f32.mrf.mxu0  ;;  %v642_v48 = vpop.f32.mrf.mxu1 }
  0xef   : > { %v671_v49 = vadd.f32 %v632_v47, %v478_v41  ;;  %v675_v50 = vadd.f32 %v642_v48, %v482_v42 }
  0xf0   : > { %695 = vst.msk [vmem:[#allocation2 + $0x40] sm:$0xff] %vm686_vm1, %v678_v45 }
  0xf1   : > { %699 = vst.msk [vmem:[#allocation2 + $0x60] sm:$0xff] %vm686_vm1, %v682_v46 }
  0xf2   : > { %688 = vst.msk [vmem:[#allocation2 + $0x8] sm:$0xff] %vm686_vm1, %v671_v49 }
  0xf3   : > { %692 = vst.msk [vmem:[#allocation2 + $0x28] sm:$0xff] %vm686_vm1, %v675_v50 }
  0xf5   : > { %v652_v55 = vpop.f32.mrf.mxu2  ;;  %v662_v56 = vpop.f32.mrf.mxu3 }
  0xf6   : > { %v679_v57 = vadd.f32 %v652_v55, %v486_v51  ;;  %v683_v58 = vadd.f32 %v662_v56, %v490_v52  ;;  %v635_v59 = vpop.f32.mrf.mxu0  ;;  %v645_v60 = vpop.f32.mrf.mxu1 }
  0xf7   : > { %v672_v61 = vadd.f32 %v635_v59, %v479_v53  ;;  %v676_v62 = vadd.f32 %v645_v60, %v483_v54 }
  0xf8   : > { %696 = vst.msk [vmem:[#allocation2 + $0x48] sm:$0xff] %vm686_vm1, %v679_v57 }
  0xf9   : > { %700 = vst.msk [vmem:[#allocation2 + $0x68] sm:$0xff] %vm686_vm1, %v683_v58 }
  0xfa   : > { %689 = vst.msk [vmem:[#allocation2 + $0x10] sm:$0xff] %vm686_vm1, %v672_v61 }
  0xfb   : > { %693 = vst.msk [vmem:[#allocation2 + $0x30] sm:$0xff] %vm686_vm1, %v676_v62 }
  0xfd   : > { %v655_v3 = vpop.f32.mrf.mxu2  ;;  %v665_v4 = vpop.f32.mrf.mxu3 }
  0xfe   : > { %v680_v5 = vadd.f32 %v655_v3, %v487_v63  ;;  %v684_v6 = vadd.f32 %v665_v4, %v491_v0  ;;  %v637_v7 = vpop.f32.mrf.mxu0  ;;  %v647_v8 = vpop.f32.mrf.mxu1 }
  0xff   : > { %v673_v9 = vadd.f32 %v637_v7, %v480_v1  ;;  %v677_v10 = vadd.f32 %v647_v8, %v484_v2 }
 0x100   : > { %697 = vst.msk [vmem:[#allocation2 + $0x50] sm:$0xff] %vm686_vm1, %v680_v5 }
 0x101   : > { %701 = vst.msk [vmem:[#allocation2 + $0x70] sm:$0xff] %vm686_vm1, %v684_v6 }
 0x102   : > { %690 = vst.msk [vmem:[#allocation2 + $0x18] sm:$0xff] %vm686_vm1, %v673_v9 }
 0x103   : > { %694 = vst.msk [vmem:[#allocation2 + $0x38] sm:$0xff] %vm686_vm1, %v677_v10 }
 0x105   : > { %v657_v13 = vpop.f32.mrf.mxu2  ;;  %v667_v14 = vpop.f32.mrf.mxu3  ;;  %706 = sbr.rel (%p1086_p13) target bundleno = 299 (0x12b), region = 89 }
 0x106   : > { %v681_v15 = vadd.f32 %v657_v13, %v488_v11  ;;  %v685_v16 = vadd.f32 %v667_v14, %v492_v12 }
 0x108   : > { %698 = vst.msk [vmem:[#allocation2 + $0x58] sm:$0xff] %vm686_vm1, %v681_v15 }
 0x109   : > { %702 = vst.msk [vmem:[#allocation2 + $0x78] sm:$0xff] %vm686_vm1, %v685_v16 }
 0x10a   : > { %v707_v17 = vld [vmem:[#allocation2] sm:$0xff]  ;;  %vm843_vm2 = vcmask 519168   ;;  %v708_v23 = vld [vmem:[#allocation2 + $0x8] sm:$0xff]  ;;  %v709_v25 = vld [vmem:[#allocation2 + $0x10] sm:$0xff] }
 0x10b   : > { %v1468_v18 = vld [vmem:[%s1570_s2] ss:$0 sm:$0xff]  ;;  %v1137_v26 = vld [vmem:[%s1406_s12 + $0x8] sm:$0xff]   ;;  %v710_v30 = vld [vmem:[#allocation2 + $0x18] sm:$0xff] }
 0x10c   : > { %v1473_v19 = vld [vmem:[%s1571_s3] ss:$0 sm:$0xff]  ;;  %v727_v21 = vmul.f32 %v1468_v18, %v707_v17  ;;  %v728_v27 = vmul.f32 %v1468_v18, %v708_v23  ;;  %v729_v28 = vmul.f32 %v1468_v18, %v709_v25  ;;  %v1111_v29 = vunpack.c.l.bf16 %v1137_v26  ;;  %v1138_v33 = vld [vmem:[%s1406_s12 + $0x10] sm:$0xff]   ;;  %v712_v38 = vld [vmem:[#allocation2 + $0x28] sm:$0xff] }
 0x10d   : > { %v1106_v20 = vld [vmem:[%s1406_s12] sm:$0xff]   ;;  %v1112_v31 = vunpack.c.h.bf16 %v1137_v26  ;;  %v730_v35 = vmul.f32 %v1468_v18, %v710_v30  ;;  %v1115_v37 = vunpack.c.l.bf16 %v1138_v33  ;;  %v713_v39 = vld [vmem:[#allocation2 + $0x30] sm:$0xff]  ;;  %v1139_v40 = vld [vmem:[%s1406_s12 + $0x18] sm:$0xff]   ;;  %v732_v43 = vmul.f32 %v1468_v18, %v712_v38 }
 0x10e   : > { %v1107_v22 = vunpack.c.l.bf16 %v1106_v20  ;;  %v1108_v24 = vunpack.c.h.bf16 %v1106_v20  ;;  %v711_v32 = vld [vmem:[#allocation2 + $0x20] sm:$0xff]  ;;  %v747_v34 = vadd.f32 %v1473_v19, %v727_v21  ;;  %v748_v41 = vadd.f32 %v1473_v19, %v728_v27  ;;  %v714_v49 = vld [vmem:[#allocation2 + $0x38] sm:$0xff]  ;;  %v716_v4 = vld [vmem:[#allocation2 + $0x48] sm:$0xff] }
 0x10f   : > { %v731_v36 = vmul.f32 %v1468_v18, %v711_v32  ;;  %v749_v42 = vadd.f32 %v1473_v19, %v729_v28  ;;  %v1116_v44 = vunpack.c.h.bf16 %v1138_v33  ;;  %v750_v46 = vadd.f32 %v1473_v19, %v730_v35  ;;  %v715_v2 = vld [vmem:[#allocation2 + $0x40] sm:$0xff]  ;;  %v717_v9 = vld [vmem:[#allocation2 + $0x50] sm:$0xff]  ;;  %v1141_v14 = vld [vmem:[%s1406_s12 + $0x28] sm:$0xff]  }
 0x110   : > { %v795_v45 = vadd.f32 %v1107_v22, %v747_v34  ;;  %v733_v48 = vmul.f32 %v1468_v18, %v713_v39  ;;  %v796_v50 = vadd.f32 %v1108_v24, %v748_v41  ;;  %v752_v52 = vadd.f32 %v1473_v19, %v732_v43  ;;  %v1140_v3 = vld [vmem:[%s1406_s12 + $0x20] sm:$0xff]   ;;  %v718_v15 = vld [vmem:[#allocation2 + $0x58] sm:$0xff]  ;;  %v1142_v27 = vld [vmem:[%s1406_s12 + $0x30] sm:$0xff]  }
 0x111   : > { %v751_v47 = vadd.f32 %v1473_v19, %v731_v36  ;;  %v797_v51 = vadd.f32 %v1111_v29, %v749_v42  ;;  %v1119_v53 = vunpack.c.l.bf16 %v1139_v40  ;;  %v798_v55 = vadd.f32 %v1112_v31, %v750_v46  ;;  %v719_v22 = vld [vmem:[#allocation2 + $0x60] sm:$0xff]  ;;  %v720_v32 = vld [vmem:[#allocation2 + $0x68] sm:$0xff]  ;;  %v721_v41 = vld [vmem:[#allocation2 + $0x70] sm:$0xff] }
 0x112   : > { %v811_v54 = vmax.f32 %v795_v45, 0.0  ;;  %v753_v57 = vadd.f32 %v1473_v19, %v733_v48  ;;  %v812_v58 = vmax.f32 %v796_v50, 0.0  ;;  %v800_v60 = vadd.f32 %v1116_v44, %v752_v52  ;;  %v1143_v46 = vld [vmem:[%s1406_s12 + $0x38] sm:$0xff]  }
 0x113   : > { %v799_v56 = vadd.f32 %v1115_v37, %v751_v47  ;;  %v813_v59 = vmax.f32 %v797_v51, 0.0  ;;  %v734_v61 = vmul.f32 %v1468_v18, %v714_v49  ;;  %v814_v63 = vmax.f32 %v798_v55, 0.0  ;;  %v722_v55 = vld [vmem:[#allocation2 + $0x78] sm:$0xff] }
 0x114   : > { %v827_v62 = vpack.c.bf16 %v811_v54, %v811_v54  ;;  %v801_v1 = vadd.f32 %v1119_v53, %v753_v57  ;;  %v828_v5 = vpack.c.bf16 %v812_v58, %v812_v58  ;;  %v816_v7 = vmax.f32 %v800_v60, 0.0 }
 0x115   : > { %v815_v0 = vmax.f32 %v799_v56, 0.0  ;;  %v829_v6 = vpack.c.bf16 %v813_v59, %v813_v59  ;;  %v754_v8 = vadd.f32 %v1473_v19, %v734_v61  ;;  %v830_v10 = vpack.c.bf16 %v814_v63, %v814_v63 }
 0x116   : > { %844 = vst.msk [vmem:[%s1411_s14] sm:$0xf] %vm843_vm2, %v827_v62  ;;  %v817_v12 = vmax.f32 %v801_v1, 0.0  ;;  %v1120_v13 = vunpack.c.h.bf16 %v1139_v40  ;;  %v832_v16 = vpack.c.bf16 %v816_v7, %v816_v7  ;;  %v735_v17 = vmul.f32 %v1468_v18, %v715_v2 }
 0x117   : > { %v831_v11 = vpack.c.bf16 %v815_v0, %v815_v0  ;;  %845 = vst.msk [vmem:[%s1411_s14 + $0x4] sm:$0xf] %vm843_vm2, %v828_v5  ;;  %v1123_v20 = vunpack.c.l.bf16 %v1140_v3  ;;  %v736_v21 = vmul.f32 %v1468_v18, %v716_v4  ;;  %v1124_v25 = vunpack.c.h.bf16 %v1140_v3 }
 0x118   : > { %846 = vst.msk [vmem:[%s1411_s14 + $0x8] sm:$0xf] %vm843_vm2, %v829_v6  ;;  %v833_v23 = vpack.c.bf16 %v817_v12, %v817_v12  ;;  %v802_v24 = vadd.f32 %v1120_v13, %v754_v8  ;;  %v737_v26 = vmul.f32 %v1468_v18, %v717_v9  ;;  %v755_v28 = vadd.f32 %v1473_v19, %v735_v17 }
 0x119   : > { %847 = vst.msk [vmem:[%s1411_s14 + $0xc] sm:$0xf] %vm843_vm2, %v830_v10  ;;  %v756_v29 = vadd.f32 %v1473_v19, %v736_v21  ;;  %v1127_v30 = vunpack.c.l.bf16 %v1141_v14  ;;  %v738_v31 = vmul.f32 %v1468_v18, %v718_v15  ;;  %v1128_v35 = vunpack.c.h.bf16 %v1141_v14 }
 0x11a   : > { %848 = vst.msk [vmem:[%s1411_s14 + $0x10] sm:$0xf] %vm843_vm2, %v831_v11  ;;  %v818_v33 = vmax.f32 %v802_v24, 0.0  ;;  %v757_v34 = vadd.f32 %v1473_v19, %v737_v26  ;;  %v739_v36 = vmul.f32 %v1468_v18, %v719_v22  ;;  %v803_v37 = vadd.f32 %v1123_v20, %v755_v28 }
 0x11b   : > { %849 = vst.msk [vmem:[%s1411_s14 + $0x14] sm:$0xf] %vm843_vm2, %v832_v16  ;;  %v804_v38 = vadd.f32 %v1124_v25, %v756_v29  ;;  %v758_v39 = vadd.f32 %v1473_v19, %v738_v31  ;;  %v1131_v40 = vunpack.c.l.bf16 %v1142_v27  ;;  %v740_v45 = vmul.f32 %v1468_v18, %v720_v32 }
 0x11c   : > { %850 = vst.msk [vmem:[%s1411_s14 + $0x18] sm:$0xf] %vm843_vm2, %v833_v23  ;;  %v834_v42 = vpack.c.bf16 %v818_v33, %v818_v33  ;;  %v805_v43 = vadd.f32 %v1127_v30, %v757_v34  ;;  %v759_v44 = vadd.f32 %v1473_v19, %v739_v36  ;;  %v819_v47 = vmax.f32 %v803_v37, 0.0 }
 0x11d   : > { %v820_v48 = vmax.f32 %v804_v38, 0.0  ;;  %v806_v49 = vadd.f32 %v1128_v35, %v758_v39  ;;  %v1132_v50 = vunpack.c.h.bf16 %v1142_v27  ;;  %v760_v53 = vadd.f32 %v1473_v19, %v740_v45 }
 0x11e   : > { %851 = vst.msk [vmem:[%s1411_s14 + $0x1c] sm:$0xf] %vm843_vm2, %v834_v42  ;;  %v821_v51 = vmax.f32 %v805_v43, 0.0  ;;  %v807_v52 = vadd.f32 %v1131_v40, %v759_v44  ;;  %v741_v54 = vmul.f32 %v1468_v18, %v721_v41  ;;  %v835_v56 = vpack.c.bf16 %v819_v47, %v819_v47 }
 0x11f   : > { %v836_v57 = vpack.c.bf16 %v820_v48, %v820_v48  ;;  %v822_v58 = vmax.f32 %v806_v49, 0.0  ;;  %v1135_v59 = vunpack.c.l.bf16 %v1143_v46  ;;  %v808_v62 = vadd.f32 %v1132_v50, %v760_v53 }
 0x120   : > { %v837_v60 = vpack.c.bf16 %v821_v51, %v821_v51  ;;  %v823_v61 = vmax.f32 %v807_v52, 0.0  ;;  %v761_v63 = vadd.f32 %v1473_v19, %v741_v54  ;;  %852 = vst.msk [vmem:[%s1411_s14 + $0x20] sm:$0xf] %vm843_vm2, %v835_v56  ;;  %v742_v1 = vmul.f32 %v1468_v18, %v722_v55 }
 0x121   : > { %v838_v0 = vpack.c.bf16 %v822_v58, %v822_v58  ;;  %v1136_v2 = vunpack.c.h.bf16 %v1143_v46  ;;  %853 = vst.msk [vmem:[%s1411_s14 + $0x24] sm:$0xf] %vm843_vm2, %v836_v57  ;;  %v824_v4 = vmax.f32 %v808_v62, 0.0 }
 0x122   : > { %v839_v3 = vpack.c.bf16 %v823_v61, %v823_v61  ;;  %v809_v5 = vadd.f32 %v1135_v59, %v761_v63  ;;  %854 = vst.msk [vmem:[%s1411_s14 + $0x28] sm:$0xf] %vm843_vm2, %v837_v60  ;;  %v762_v6 = vadd.f32 %v1473_v19, %v742_v1 }
 0x123   : > { %855 = vst.msk [vmem:[%s1411_s14 + $0x2c] sm:$0xf] %vm843_vm2, %v838_v0  ;;  %v840_v7 = vpack.c.bf16 %v824_v4, %v824_v4 }
 0x124   : > { %v825_v8 = vmax.f32 %v809_v5, 0.0  ;;  %856 = vst.msk [vmem:[%s1411_s14 + $0x30] sm:$0xf] %vm843_vm2, %v839_v3  ;;  %v810_v9 = vadd.f32 %v1136_v2, %v762_v6 }
 0x125   : > { %857 = vst.msk [vmem:[%s1411_s14 + $0x34] sm:$0xf] %vm843_vm2, %v840_v7 }
 0x126   : > { %v841_v18 = vpack.c.bf16 %v825_v8, %v825_v8  ;;  %v826_v10 = vmax.f32 %v810_v9, 0.0 }
 0x128   : > { %858 = vst.msk [vmem:[%s1411_s14 + $0x38] sm:$0xf] %vm843_vm2, %v841_v18  ;;  %v842_v11 = vpack.c.bf16 %v826_v10, %v826_v10 }
 0x12a   : > { %859 = vst.msk [vmem:[%s1411_s14 + $0x3c] sm:$0xf] %vm843_vm2, %v842_v11 }
 0x12b PF: > { %s15_s24 = sadd.s32 1, %s1282_s24   ;;  %s1574_s18 = smov %s1262_s19 }
 0x12c   : > { %p12_p0 = scmp.ge.s32.totalorder %s15_s24, 22   ;;  %s1575_s19 = smov %s1366_s6 }
 0x12d   : > { %s1576_s20 = smov %s1274_s22  ;;  %s1577_s21 = smov %s1278_s23 }
 0x12e   : > { %s1578_s22 = smov %s1581_s25  ;;  %s1579_s23 = smov %s1585_s26 }
 0x12f   :  { %14 = sbr.rel (!%p12_p0) target bundleno = 4 (0x4), region = 136 }

// kernel: custom_resnet18_forward.16
= control target key start
LH: loop header
LB: loop body
LE: loop exit
PB: predicated region body
PF: predicated region fallthrough
CT: control target
= control target key end

     0   :  { %s1148_s15 = smov 0   ;;  %s1150_s16 = smov 0   ;;  %s1301_s0 = inlined_call_operand.vmem [shape: bf16[128,640], index: 0, kind: input, shape index: {}]   ;;  %s1302_s1 = inlined_call_operand.vmem [shape: bf16[640,128], index: 1, kind: input, shape index: {}]   ;;  %s1303_s2 = inlined_call_operand.vmem [shape: f32[1,128], index: 2, kind: input, shape index: {}]   ;;  %s1304_s3 = inlined_call_operand.vmem [shape: f32[1,128], index: 3, kind: input, shape index: {}]   ;;  %s1305_s4 = inlined_call_operand.vmem [shape: bf16[128,128], index: 4, kind: output, shape index: {}]  }
   0x1   :  { %s1152_s17 = smov 0   ;;  %s1154_s18 = smov 0  }
   0x2   :  { %s1156_s19 = smov 0  }
   0x3 LB: > { %s26_s20 = sadd.s32 1, %s1116_s18  ;;  %p49_p1 = scmp.ne.s32.totalorder %s1108_s16, %s1104_s15  ;;  %s1120_s19 = sphi %s1156_s19, %s14_s19   ;;  %s1116_s18 = sphi %s1154_s18, %s1309_s18   ;;  %s1112_s17 = sphi %s1152_s17, %s1308_s17   ;;  %s1108_s16 = sphi %s1150_s16, %s1307_s16   ;;  %s1104_s15 = sphi %s1148_s15, %s1306_s15  }
   0x4   : > { %p27_p0 = scmp.ge.s32.totalorder %s26_s20, 5  ;;  %p50_p2 = scmp.eq.s32.totalorder %s1120_s19, 0 }
   0x5   : > { %s42_s22 = sadd.s32 1, %s1108_s16  ;;  %p875_p5 = scmp.ge.s32.totalorder %s1120_s19, 5 }
   0x6   : > { %s1311_s20 = smov (%p27_p0, %s26_s20), 0  ;;  %p51_p3 = por %p50_p2, %p49_p1 }
   0x7   : > { %s38_s21 = ssub.s32 %s1116_s18, %s1311_s20  ;;  %195 = sbr.rel (%p875_p5) target bundleno = 32 (0x20), region = 24 }
   0x8   : > { %p40_p4 = scmp.eq.s32.totalorder %s38_s21, 0 }
   0xa   : > { %s1183_s23 = scalar_select %p40_p4, %s1108_s16, %s42_s22  }
   0xc   : > { %198 = sbr.rel (!%p51_p3) target bundleno = 32 (0x20), region = 28  ;;  %s200_s24 = sand.u32 (%p51_p3), 1, %s1108_s16  }
   0xd   : > { %s877_s25 = sshll.u32 (%p51_p3), %s1116_s18, 2  ;;  %s876_s26 = sshll.u32 (%p51_p3), %s200_s24, 6 }
   0xe   : > { %s1191_s29 = scalar_lea.vmem (%p51_p3), %s1301_s0, %s877_s25  ;;  %s202_s30 = scalar_lea.vmem (%p51_p3), [#allocation3], %s876_s26 }
   0xf   : > { %v224_v0 = vld [vmem:[%s1191_s29] sm:$0xf] (%p51_p3)  ;;  %v226_v1 = vld [vmem:[%s1191_s29 + $0x14] sm:$0xf] (%p51_p3)  ;;  %v228_v2 = vld [vmem:[%s1191_s29 + $0x28] sm:$0xf] (%p51_p3) }
  0x10   : > { %225 = vst [vmem:[%s202_s30] sm:$0xf] (%p51_p3), %v224_v0  ;;  %v230_v3 = vld [vmem:[%s1191_s29 + $0x3c] sm:$0xf] (%p51_p3)  ;;  %v232_v4 = vld [vmem:[%s1191_s29 + $0x50] sm:$0xf] (%p51_p3) }
  0x11   : > { %227 = vst [vmem:[%s202_s30 + $0x4] sm:$0xf] %v226_v1  ;;  %v234_v5 = vld [vmem:[%s1191_s29 + $0x64] sm:$0xf]  ;;  %v236_v6 = vld [vmem:[%s1191_s29 + $0x78] sm:$0xf] }
  0x12   : > { %229 = vst [vmem:[%s202_s30 + $0x8] sm:$0xf] %v228_v2  ;;  %v238_v7 = vld [vmem:[%s1191_s29 + $0x8c] sm:$0xf]  ;;  %v240_v8 = vld [vmem:[%s1191_s29 + $0xa0] sm:$0xf] }
  0x13   : > { %231 = vst [vmem:[%s202_s30 + $0xc] sm:$0xf] %v230_v3  ;;  %v242_v9 = vld [vmem:[%s1191_s29 + $0xb4] sm:$0xf]  ;;  %v244_v10 = vld [vmem:[%s1191_s29 + $0xc8] sm:$0xf] }
  0x14   : > { %233 = vst [vmem:[%s202_s30 + $0x10] sm:$0xf] %v232_v4  ;;  %v246_v11 = vld [vmem:[%s1191_s29 + $0xdc] sm:$0xf]  ;;  %v248_v12 = vld [vmem:[%s1191_s29 + $0xf0] sm:$0xf] }
  0x15   : > { %235 = vst [vmem:[%s202_s30 + $0x14] sm:$0xf] %v234_v5  ;;  %v250_v13 = vld [vmem:[%s1191_s29 + $0x104] sm:$0xf]  ;;  %v252_v14 = vld [vmem:[%s1191_s29 + $0x118] sm:$0xf] }
  0x16   : > { %237 = vst [vmem:[%s202_s30 + $0x18] sm:$0xf] %v236_v6  ;;  %v254_v15 = vld [vmem:[%s1191_s29 + $0x12c] sm:$0xf] }
  0x17   : > { %239 = vst [vmem:[%s202_s30 + $0x1c] sm:$0xf] %v238_v7 }
  0x18   : > { %241 = vst [vmem:[%s202_s30 + $0x20] sm:$0xf] %v240_v8 }
  0x19   : > { %243 = vst [vmem:[%s202_s30 + $0x24] sm:$0xf] %v242_v9 }
  0x1a   : > { %245 = vst [vmem:[%s202_s30 + $0x28] sm:$0xf] %v244_v10 }
  0x1b   : > { %247 = vst [vmem:[%s202_s30 + $0x2c] sm:$0xf] %v246_v11 }
  0x1c   : > { %249 = vst [vmem:[%s202_s30 + $0x30] sm:$0xf] %v248_v12 }
  0x1d   : > { %251 = vst [vmem:[%s202_s30 + $0x34] sm:$0xf] %v250_v13 }
  0x1e   : > { %253 = vst [vmem:[%s202_s30 + $0x38] sm:$0xf] %v252_v14 }
  0x1f   : > { %255 = vst [vmem:[%s202_s30 + $0x3c] sm:$0xf] %v254_v15 }
  0x20 PF: > { %p878_p6 = scmp.ge.s32.totalorder %s1120_s19, 1  ;;  %p322_p7 = scmp.lt.s32.totalorder %s1120_s19, 6 }
  0x22   : > { %p323_p8 = pnand %p878_p6, %p322_p7 }
  0x23   : > { %s329_s5 = sand.u32 (!%p323_p8), 1, %s1104_s15   ;;  %s880_s6 = sshll.u32 (!%p323_p8), %s1112_s17, 4 }
  0x24   : > { %326 = sbr.rel (%p323_p8) target bundleno = 277 (0x115), region = 73  ;;  %s879_s7 = sshll.u32 (!%p323_p8), %s329_s5, 6 }
  0x25   : > { %p373_p9 = scmp.lt.s32.totalorder (!%p323_p8), %s880_s6, 79  ;;  %s1218_s12 = scalar_lea.vmem (!%p323_p8), [#allocation3], %s879_s7 }
  0x26   : > { %p882_p10 = scmp.ne.s32.totalorder (!%p323_p8), %s1112_s17, 0 }
  0x29   : > { %s1313_s6 = smov (!%p373_p9, %s880_s6), 79  ;;  %399 = sbr.rel (%p882_p10) target bundleno = 63 (0x3f), region = 81 }
  0x2a   : > { %s881_s8 = sshll.u32 %s1313_s6, 2 }
  0x2b   : > { %s1216_s11 = scalar_lea.vmem %s1302_s1, %s881_s8 }
  0x2e   : > { %v1122_v16 = vmov 0.0  }
  0x2f   : > { %400 = vst [vmem:[#allocation2 + $0x30] sm:$0xff] %v1122_v16 }
  0x30   : > { %401 = vst [vmem:[#allocation2] sm:$0xff] %v1122_v16 }
  0x31   : > { %402 = vst [vmem:[#allocation2 + $0x58] sm:$0xff] %v1122_v16 }
  0x32   : > { %403 = vst [vmem:[#allocation2 + $0x18] sm:$0xff] %v1122_v16 }
  0x33   : > { %404 = vst [vmem:[#allocation2 + $0x50] sm:$0xff] %v1122_v16 }
  0x34   : > { %405 = vst [vmem:[#allocation2 + $0x68] sm:$0xff] %v1122_v16 }
  0x35   : > { %406 = vst [vmem:[#allocation2 + $0x8] sm:$0xff] %v1122_v16 }
  0x36   : > { %407 = vst [vmem:[#allocation2 + $0x48] sm:$0xff] %v1122_v16 }
  0x37   : > { %408 = vst [vmem:[#allocation2 + $0x40] sm:$0xff] %v1122_v16 }
  0x38   : > { %409 = vst [vmem:[#allocation2 + $0x20] sm:$0xff] %v1122_v16 }
  0x39   : > { %410 = vst [vmem:[#allocation2 + $0x10] sm:$0xff] %v1122_v16 }
  0x3a   : > { %411 = vst [vmem:[#allocation2 + $0x38] sm:$0xff] %v1122_v16 }
  0x3b   : > { %412 = vst [vmem:[#allocation2 + $0x60] sm:$0xff] %v1122_v16 }
  0x3c   : > { %413 = vst [vmem:[#allocation2 + $0x70] sm:$0xff] %v1122_v16 }
  0x3d   : > { %414 = vst [vmem:[#allocation2 + $0x78] sm:$0xff] %v1122_v16 }
  0x3e   : > { %415 = vst [vmem:[#allocation2 + $0x28] sm:$0xff] %v1122_v16 }
  0x3f PF: > { %v967_v17 = vld [vmem:[%s1216_s11 + $0x38] sm:$0xff]  ;;  %v966_v18 = vld [vmem:[%s1216_s11 + $0x30] sm:$0xff]  ;;  %v965_v19 = vld [vmem:[%s1216_s11 + $0x28] sm:$0xff]  ;;  %p947_p11 = scmp.ne.s32.totalorder %s1112_s17, 4 }
  0x40   : > { %560 = vmatpush.bf16.msra.mxu0 %v967_v17  ;;  %1015 = vmatpush.bf16.msra.mxu1 %v967_v17  ;;  %v964_v20 = vld [vmem:[%s1216_s11 + $0x20] sm:$0xff]  ;;  %v963_v21 = vld [vmem:[%s1216_s11 + $0x18] sm:$0xff]  ;;  %v962_v22 = vld [vmem:[%s1216_s11 + $0x10] sm:$0xff] }
  0x41   : > { %1016 = vmatpush.bf16.msra.mxu2 %v967_v17  ;;  %1017 = vmatpush.bf16.msra.mxu3 %v967_v17  ;;  %v961_v23 = vld [vmem:[%s1216_s11 + $0x8] sm:$0xff]  ;;  %v960_v24 = vld [vmem:[%s1216_s11] sm:$0xff]  ;;  %v954_v26 = vld [vmem:[%s1218_s12 + $0x10] sm:$0xff] }
  0x42   : > { %v952_v25 = vld [vmem:[%s1218_s12] sm:$0xff]  ;;  %v958_v28 = vld [vmem:[%s1218_s12 + $0x30] sm:$0xff]  ;;  %v953_v29 = vld [vmem:[%s1218_s12 + $0x8] sm:$0xff] }
  0x43   : > { %v956_v27 = vld [vmem:[%s1218_s12 + $0x20] sm:$0xff]  ;;  %v955_v30 = vld [vmem:[%s1218_s12 + $0x18] sm:$0xff]  ;;  %v957_v31 = vld [vmem:[%s1218_s12 + $0x28] sm:$0xff] }
  0x44   : > { %561 = vmatpush.bf16.msra.mxu0 %v966_v18  ;;  %1018 = vmatpush.bf16.msra.mxu1 %v966_v18  ;;  %v959_v32 = vld [vmem:[%s1218_s12 + $0x38] sm:$0xff]  ;;  %v416_v33 = vld [vmem:[#allocation2 + $0x30] sm:$0xff]  ;;  %v424_v39 = vld [vmem:[#allocation2 + $0x40] sm:$0xff] }
  0x45   : > { %1019 = vmatpush.bf16.msra.mxu2 %v966_v18  ;;  %1020 = vmatpush.bf16.msra.mxu3 %v966_v18  ;;  %v420_v34 = vld [vmem:[#allocation2 + $0x50] sm:$0xff]  ;;  %v428_v40 = vld [vmem:[#allocation2 + $0x60] sm:$0xff]  ;;  %v421_v42 = vld [vmem:[#allocation2 + $0x68] sm:$0xff] }
  0x46   : > { %v417_v41 = vld [vmem:[#allocation2] sm:$0xff]  ;;  %v429_v52 = vld [vmem:[#allocation2 + $0x70] sm:$0xff]  ;;  %v418_v53 = vld [vmem:[#allocation2 + $0x58] sm:$0xff] }
  0x47   : > { %v425_v51 = vld [vmem:[#allocation2 + $0x20] sm:$0xff]  ;;  %v422_v54 = vld [vmem:[#allocation2 + $0x8] sm:$0xff]  ;;  %v426_v63 = vld [vmem:[#allocation2 + $0x10] sm:$0xff] }
  0x48   : > { %562 = vmatpush.bf16.msra.mxu0 %v965_v19  ;;  %1021 = vmatpush.bf16.msra.mxu1 %v965_v19  ;;  %v430_v0 = vld [vmem:[#allocation2 + $0x78] sm:$0xff]  ;;  %v423_v2 = vld [vmem:[#allocation2 + $0x48] sm:$0xff] }
  0x49   : > { %1022 = vmatpush.bf16.msra.mxu2 %v965_v19  ;;  %1023 = vmatpush.bf16.msra.mxu3 %v965_v19  ;;  %v419_v1 = vld [vmem:[#allocation2 + $0x18] sm:$0xff]  ;;  %v431_v12 = vld [vmem:[#allocation2 + $0x28] sm:$0xff] }
  0x4a   : > { %v427_v11 = vld [vmem:[#allocation2 + $0x38] sm:$0xff] }
  0x4c   : > { %563 = vmatpush.bf16.msra.mxu0 %v964_v20  ;;  %1024 = vmatpush.bf16.msra.mxu1 %v964_v20 }
  0x4d   : > { %1025 = vmatpush.bf16.msra.mxu2 %v964_v20  ;;  %1026 = vmatpush.bf16.msra.mxu3 %v964_v20 }
  0x50   : > { %564 = vmatpush.bf16.msra.mxu0 %v963_v21  ;;  %1027 = vmatpush.bf16.msra.mxu1 %v963_v21 }
  0x51   : > { %1028 = vmatpush.bf16.msra.mxu2 %v963_v21  ;;  %1029 = vmatpush.bf16.msra.mxu3 %v963_v21 }
  0x54   : > { %565 = vmatpush.bf16.msra.mxu0 %v962_v22  ;;  %1030 = vmatpush.bf16.msra.mxu1 %v962_v22 }
  0x55   : > { %1031 = vmatpush.bf16.msra.mxu2 %v962_v22  ;;  %1032 = vmatpush.bf16.msra.mxu3 %v962_v22 }
  0x58   : > { %566 = vmatpush.bf16.msra.mxu0 %v961_v23  ;;  %1033 = vmatpush.bf16.msra.mxu1 %v961_v23 }
  0x59   : > { %1034 = vmatpush.bf16.msra.mxu2 %v961_v23  ;;  %1035 = vmatpush.bf16.msra.mxu3 %v961_v23 }
  0x5c   : > { %567 = vmatpush.bf16.msra.mxu0 %v960_v24  ;;  %1036 = vmatpush.bf16.msra.mxu1 %v960_v24 }
  0x5d   : > { %1037 = vmatpush.bf16.msra.mxu2 %v960_v24  ;;  %1038 = vmatpush.bf16.msra.mxu3 %v960_v24 }
  0x5f   : > { %568 = vmatmul.bf16.vlgmr.msra.gmra.mxu0 %v952_v25  ;;  %578 = vmatmul.bf16.vlgmr.msra.gmra.mxu1 %v954_v26 }
  0x60   : > { %588 = vmatmul.bf16.vlgmr.msra.gmra.mxu2 %v956_v27  ;;  %598 = vmatmul.bf16.vlgmr.msra.gmra.mxu3 %v958_v28 }
  0x6f   : > { %573 = vmatmul.bf16.gmra.mxu0 %v953_v29  ;;  %583 = vmatmul.bf16.gmra.mxu1 %v955_v30 }
  0x70   : > { %593 = vmatmul.bf16.gmra.mxu2 %v957_v31  ;;  %603 = vmatmul.bf16.gmra.mxu3 %v959_v32 }
  0xdc   : > { %v569_v35 = vpop.f32.mrf.mxu0  ;;  %v579_v36 = vpop.f32.mrf.mxu1 }
  0xdd   : > { %v609_v37 = vadd.f32 %v569_v35, %v416_v33  ;;  %v613_v38 = vadd.f32 %v579_v36, %v420_v34 }
  0xdf   : > { %625 = vst [vmem:[#allocation2 + $0x30] sm:$0xff] %v609_v37 }
  0xe0   : > { %629 = vst [vmem:[#allocation2 + $0x50] sm:$0xff] %v613_v38 }
  0xe3   : > { %v589_v43 = vpop.f32.mrf.mxu2  ;;  %v599_v44 = vpop.f32.mrf.mxu3 }
  0xe4   : > { %v617_v45 = vadd.f32 %v589_v43, %v424_v39  ;;  %v621_v46 = vadd.f32 %v599_v44, %v428_v40  ;;  %v571_v47 = vpop.f32.mrf.mxu0  ;;  %v581_v48 = vpop.f32.mrf.mxu1 }
  0xe5   : > { %v610_v49 = vadd.f32 %v571_v47, %v417_v41  ;;  %v614_v50 = vadd.f32 %v581_v48, %v421_v42 }
  0xe6   : > { %633 = vst [vmem:[#allocation2 + $0x40] sm:$0xff] %v617_v45 }
  0xe7   : > { %637 = vst [vmem:[#allocation2 + $0x60] sm:$0xff] %v621_v46 }
  0xe8   : > { %626 = vst [vmem:[#allocation2] sm:$0xff] %v610_v49 }
  0xe9   : > { %630 = vst [vmem:[#allocation2 + $0x68] sm:$0xff] %v614_v50 }
  0xeb   : > { %v591_v55 = vpop.f32.mrf.mxu2  ;;  %v601_v56 = vpop.f32.mrf.mxu3 }
  0xec   : > { %v618_v57 = vadd.f32 %v591_v55, %v425_v51  ;;  %v622_v58 = vadd.f32 %v601_v56, %v429_v52  ;;  %v574_v59 = vpop.f32.mrf.mxu0  ;;  %v584_v60 = vpop.f32.mrf.mxu1 }
  0xed   : > { %v611_v61 = vadd.f32 %v574_v59, %v418_v53  ;;  %v615_v62 = vadd.f32 %v584_v60, %v422_v54 }
  0xee   : > { %634 = vst [vmem:[#allocation2 + $0x20] sm:$0xff] %v618_v57 }
  0xef   : > { %638 = vst [vmem:[#allocation2 + $0x70] sm:$0xff] %v622_v58 }
  0xf0   : > { %627 = vst [vmem:[#allocation2 + $0x58] sm:$0xff] %v611_v61 }
  0xf1   : > { %631 = vst [vmem:[#allocation2 + $0x8] sm:$0xff] %v615_v62 }
  0xf3   : > { %v594_v3 = vpop.f32.mrf.mxu2  ;;  %v604_v4 = vpop.f32.mrf.mxu3 }
  0xf4   : > { %v619_v5 = vadd.f32 %v594_v3, %v426_v63  ;;  %v623_v6 = vadd.f32 %v604_v4, %v430_v0  ;;  %v576_v7 = vpop.f32.mrf.mxu0  ;;  %v586_v8 = vpop.f32.mrf.mxu1 }
  0xf5   : > { %v612_v9 = vadd.f32 %v576_v7, %v419_v1  ;;  %v616_v10 = vadd.f32 %v586_v8, %v423_v2 }
  0xf6   : > { %635 = vst [vmem:[#allocation2 + $0x10] sm:$0xff] %v619_v5 }
  0xf7   : > { %639 = vst [vmem:[#allocation2 + $0x78] sm:$0xff] %v623_v6 }
  0xf8   : > { %628 = vst [vmem:[#allocation2 + $0x18] sm:$0xff] %v612_v9 }
  0xf9   : > { %632 = vst [vmem:[#allocation2 + $0x48] sm:$0xff] %v616_v10 }
  0xfb   : > { %v596_v13 = vpop.f32.mrf.mxu2  ;;  %v606_v14 = vpop.f32.mrf.mxu3  ;;  %644 = sbr.rel (%p947_p11) target bundleno = 277 (0x115), region = 85 }
  0xfc   : > { %v620_v15 = vadd.f32 %v596_v13, %v427_v11  ;;  %v624_v16 = vadd.f32 %v606_v14, %v431_v12 }
  0xfe   : > { %636 = vst [vmem:[#allocation2 + $0x38] sm:$0xff] %v620_v15 }
  0xff   : > { %640 = vst [vmem:[#allocation2 + $0x28] sm:$0xff] %v624_v16 }
 0x100   : > { %v645_v17 = vld [vmem:[#allocation2 + $0x30] sm:$0xff]  ;;  %v646_v18 = vld [vmem:[#allocation2] sm:$0xff]  ;;  %v647_v21 = vld [vmem:[#allocation2 + $0x58] sm:$0xff] }
 0x101   : > { %v1080_v19 = vld [vmem:[%s1303_s2] ss:$0 sm:$0xff]  ;;  %v648_v22 = vld [vmem:[#allocation2 + $0x18] sm:$0xff]  ;;  %v649_v23 = vld [vmem:[#allocation2 + $0x50] sm:$0xff] }
 0x102   : > { %v1244_v20 = vld [vmem:[%s1304_s3] ss:$0 sm:$0xff]  ;;  %v665_v24 = vmul.f32 %v1080_v19, %v645_v17  ;;  %v666_v25 = vmul.f32 %v1080_v19, %v646_v18  ;;  %v667_v26 = vmul.f32 %v1080_v19, %v647_v21  ;;  %v668_v27 = vmul.f32 %v1080_v19, %v648_v22  ;;  %v650_v28 = vld [vmem:[#allocation2 + $0x68] sm:$0xff]  ;;  %v655_v49 = vld [vmem:[#allocation2 + $0x10] sm:$0xff] }
 0x103   : > { %v651_v29 = vld [vmem:[#allocation2 + $0x8] sm:$0xff]  ;;  %v669_v31 = vmul.f32 %v1080_v19, %v649_v23  ;;  %v670_v32 = vmul.f32 %v1080_v19, %v650_v28  ;;  %v653_v43 = vld [vmem:[#allocation2 + $0x40] sm:$0xff]  ;;  %v658_v56 = vld [vmem:[#allocation2 + $0x70] sm:$0xff]  ;;  %v675_v1 = vmul.f32 %v1080_v19, %v655_v49 }
 0x104   : > { %v652_v30 = vld [vmem:[#allocation2 + $0x48] sm:$0xff]  ;;  %v671_v33 = vmul.f32 %v1080_v19, %v651_v29  ;;  %v685_v35 = vadd.f32 %v1244_v20, %v665_v24  ;;  %v686_v36 = vadd.f32 %v1244_v20, %v666_v25  ;;  %v687_v37 = vadd.f32 %v1244_v20, %v667_v26  ;;  %v654_v44 = vld [vmem:[#allocation2 + $0x20] sm:$0xff]  ;;  %v659_v61 = vld [vmem:[#allocation2 + $0x78] sm:$0xff] }
 0x105   : > { %v672_v34 = vmul.f32 %v1080_v19, %v652_v30  ;;  %v688_v38 = vadd.f32 %v1244_v20, %v668_v27  ;;  %v689_v39 = vadd.f32 %v1244_v20, %v669_v31  ;;  %v690_v40 = vadd.f32 %v1244_v20, %v670_v32  ;;  %v656_v50 = vld [vmem:[#allocation2 + $0x38] sm:$0xff]  ;;  %v657_v55 = vld [vmem:[#allocation2 + $0x60] sm:$0xff] }
 0x106   : > { %v691_v41 = vadd.f32 %v1244_v20, %v671_v33  ;;  %v701_v45 = vmax.f32 %v685_v35, 0.0  ;;  %v702_v46 = vmax.f32 %v686_v36, 0.0  ;;  %v703_v47 = vmax.f32 %v687_v37, 0.0  ;;  %v660_v62 = vld [vmem:[#allocation2 + $0x28] sm:$0xff] }
 0x107   : > { %v692_v42 = vadd.f32 %v1244_v20, %v672_v34  ;;  %v704_v48 = vmax.f32 %v688_v38, 0.0  ;;  %v705_v51 = vmax.f32 %v689_v39, 0.0  ;;  %v706_v52 = vmax.f32 %v690_v40, 0.0 }
 0x108   : > { %v707_v53 = vmax.f32 %v691_v41, 0.0  ;;  %v971_v57 = vpack.c.bf16 %v702_v46, %v701_v45  ;;  %v673_v59 = vmul.f32 %v1080_v19, %v653_v43  ;;  %v674_v60 = vmul.f32 %v1080_v19, %v654_v44 }
 0x109   : > { %v708_v54 = vmax.f32 %v692_v42, 0.0  ;;  %v976_v58 = vpack.c.bf16 %v704_v48, %v703_v47  ;;  %v981_v63 = vpack.c.bf16 %v706_v52, %v705_v51  ;;  %v676_v2 = vmul.f32 %v1080_v19, %v656_v50 }
 0x10a   : > { %972 = vst [vmem:[%s1305_s4] sm:$0xff] %v971_v57   ;;  %v693_v3 = vadd.f32 %v1244_v20, %v673_v59  ;;  %v694_v4 = vadd.f32 %v1244_v20, %v674_v60  ;;  %v677_v5 = vmul.f32 %v1080_v19, %v657_v55  ;;  %v678_v6 = vmul.f32 %v1080_v19, %v658_v56 }
 0x10b   : > { %v986_v0 = vpack.c.bf16 %v708_v54, %v707_v53  ;;  %1008 = vst [vmem:[%s1305_s4 + $0x8] sm:$0xff] %v976_v58   ;;  %v695_v7 = vadd.f32 %v1244_v20, %v675_v1  ;;  %v696_v8 = vadd.f32 %v1244_v20, %v676_v2  ;;  %v679_v9 = vmul.f32 %v1080_v19, %v659_v61 }
 0x10c   : > { %v680_v10 = vmul.f32 %v1080_v19, %v660_v62  ;;  %1009 = vst [vmem:[%s1305_s4 + $0x10] sm:$0xff] %v981_v63   ;;  %v709_v11 = vmax.f32 %v693_v3, 0.0  ;;  %v710_v12 = vmax.f32 %v694_v4, 0.0  ;;  %v697_v13 = vadd.f32 %v1244_v20, %v677_v5 }
 0x10d   : > { %v698_v14 = vadd.f32 %v1244_v20, %v678_v6  ;;  %1010 = vst [vmem:[%s1305_s4 + $0x18] sm:$0xff] %v986_v0   ;;  %v711_v15 = vmax.f32 %v695_v7, 0.0  ;;  %v712_v16 = vmax.f32 %v696_v8, 0.0  ;;  %v699_v17 = vadd.f32 %v1244_v20, %v679_v9 }
 0x10e   : > { %v700_v18 = vadd.f32 %v1244_v20, %v680_v10  ;;  %v991_v19 = vpack.c.bf16 %v710_v12, %v709_v11  ;;  %v713_v21 = vmax.f32 %v697_v13, 0.0 }
 0x10f   : > { %v714_v22 = vmax.f32 %v698_v14, 0.0  ;;  %v996_v23 = vpack.c.bf16 %v712_v16, %v711_v15  ;;  %v715_v24 = vmax.f32 %v699_v17, 0.0 }
 0x110   : > { %v716_v25 = vmax.f32 %v700_v18, 0.0  ;;  %1011 = vst [vmem:[%s1305_s4 + $0x20] sm:$0xff] %v991_v19  }
 0x111   : > { %v1001_v26 = vpack.c.bf16 %v714_v22, %v713_v21  ;;  %1012 = vst [vmem:[%s1305_s4 + $0x28] sm:$0xff] %v996_v23  }
 0x112   : > { %v1006_v27 = vpack.c.bf16 %v716_v25, %v715_v24 }
 0x113   : > { %1013 = vst [vmem:[%s1305_s4 + $0x30] sm:$0xff] %v1001_v26  }
 0x114   : > { %1014 = vst [vmem:[%s1305_s4 + $0x38] sm:$0xff] %v1006_v27  }
 0x115 PF: > { %s14_s19 = sadd.s32 1, %s1120_s19   ;;  %s1306_s15 = smov %s1108_s16 }
 0x116   : > { %p11_p12 = scmp.ge.s32.totalorder %s14_s19, 7   ;;  %s1307_s16 = smov %s1183_s23 }
 0x117   : > { %s1308_s17 = smov %s1116_s18  ;;  %s1309_s18 = smov %s1311_s20 }
 0x118   :  { %13 = sbr.rel (!%p11_p12) target bundleno = 3 (0x3), region = 129 }

// kernel: custom_resnet18_forward.17
= control target key start
LH: loop header
LB: loop body
LE: loop exit
PB: predicated region body
PF: predicated region fallthrough
CT: control target
= control target key end

     0   :  { %s613_s1 = inlined_call_operand.vmem [shape: bf16[128,128], index: 1, kind: input, shape index: {}]   ;;  %s614_s2 = inlined_call_operand.vmem [shape: f32[1,128], index: 2, kind: input, shape index: {}]   ;;  %s615_s3 = inlined_call_operand.vmem [shape: f32[1,128], index: 3, kind: input, shape index: {}]   ;;  %s616_s0 = inlined_call_operand.vmem [shape: bf16[128,128], index: 0, kind: input, shape index: {}]   ;;  %s617_s4 = inlined_call_operand.vmem [shape: bf16[128,128], index: 4, kind: output, shape index: {}]  }
   0x1   :  { %v436_v0 = vld [vmem:[%s613_s1 + $0x38] sm:$0xff]  ;;  %v435_v1 = vld [vmem:[%s613_s1 + $0x30] sm:$0xff]  ;;  %v434_v2 = vld [vmem:[%s613_s1 + $0x28] sm:$0xff] }
   0x2   :  { %181 = vmatpush.bf16.msra.mxu0 %v436_v0  ;;  %484 = vmatpush.bf16.msra.mxu1 %v436_v0  ;;  %v433_v3 = vld [vmem:[%s613_s1 + $0x20] sm:$0xff]  ;;  %v432_v4 = vld [vmem:[%s613_s1 + $0x18] sm:$0xff]  ;;  %v431_v5 = vld [vmem:[%s613_s1 + $0x10] sm:$0xff] }
   0x3   :  { %485 = vmatpush.bf16.msra.mxu2 %v436_v0  ;;  %486 = vmatpush.bf16.msra.mxu3 %v436_v0  ;;  %v430_v6 = vld [vmem:[%s613_s1 + $0x8] sm:$0xff]  ;;  %v429_v7 = vld [vmem:[%s613_s1] sm:$0xff]  ;;  %v423_v9 = vld [vmem:[%s616_s0 + $0x10] sm:$0xff] }
   0x4   :  { %v421_v8 = vld [vmem:[%s616_s0] sm:$0xff]  ;;  %v427_v11 = vld [vmem:[%s616_s0 + $0x30] sm:$0xff]  ;;  %v422_v12 = vld [vmem:[%s616_s0 + $0x8] sm:$0xff] }
   0x5   :  { %v425_v10 = vld [vmem:[%s616_s0 + $0x20] sm:$0xff]  ;;  %v424_v13 = vld [vmem:[%s616_s0 + $0x18] sm:$0xff]  ;;  %v426_v14 = vld [vmem:[%s616_s0 + $0x28] sm:$0xff] }
   0x6   :  { %182 = vmatpush.bf16.msra.mxu0 %v435_v1  ;;  %487 = vmatpush.bf16.msra.mxu1 %v435_v1  ;;  %v428_v15 = vld [vmem:[%s616_s0 + $0x38] sm:$0xff]  ;;  %v508_v18 = vld [vmem:[%s614_s2] ss:$0 sm:$0xff] }
   0x7   :  { %488 = vmatpush.bf16.msra.mxu2 %v435_v1  ;;  %489 = vmatpush.bf16.msra.mxu3 %v435_v1  ;;  %v509_v20 = vld [vmem:[%s615_s3] ss:$0 sm:$0xff] }
   0xa   :  { %183 = vmatpush.bf16.msra.mxu0 %v434_v2  ;;  %490 = vmatpush.bf16.msra.mxu1 %v434_v2 }
   0xb   :  { %491 = vmatpush.bf16.msra.mxu2 %v434_v2  ;;  %492 = vmatpush.bf16.msra.mxu3 %v434_v2 }
   0xe   :  { %184 = vmatpush.bf16.msra.mxu0 %v433_v3  ;;  %493 = vmatpush.bf16.msra.mxu1 %v433_v3 }
   0xf   :  { %494 = vmatpush.bf16.msra.mxu2 %v433_v3  ;;  %495 = vmatpush.bf16.msra.mxu3 %v433_v3 }
  0x12   :  { %185 = vmatpush.bf16.msra.mxu0 %v432_v4  ;;  %496 = vmatpush.bf16.msra.mxu1 %v432_v4 }
  0x13   :  { %497 = vmatpush.bf16.msra.mxu2 %v432_v4  ;;  %498 = vmatpush.bf16.msra.mxu3 %v432_v4 }
  0x16   :  { %186 = vmatpush.bf16.msra.mxu0 %v431_v5  ;;  %499 = vmatpush.bf16.msra.mxu1 %v431_v5 }
  0x17   :  { %500 = vmatpush.bf16.msra.mxu2 %v431_v5  ;;  %501 = vmatpush.bf16.msra.mxu3 %v431_v5 }
  0x1a   :  { %187 = vmatpush.bf16.msra.mxu0 %v430_v6  ;;  %502 = vmatpush.bf16.msra.mxu1 %v430_v6 }
  0x1b   :  { %503 = vmatpush.bf16.msra.mxu2 %v430_v6  ;;  %504 = vmatpush.bf16.msra.mxu3 %v430_v6 }
  0x1e   :  { %188 = vmatpush.bf16.msra.mxu0 %v429_v7  ;;  %505 = vmatpush.bf16.msra.mxu1 %v429_v7 }
  0x1f   :  { %506 = vmatpush.bf16.msra.mxu2 %v429_v7  ;;  %507 = vmatpush.bf16.msra.mxu3 %v429_v7 }
  0x21   :  { %189 = vmatmul.bf16.vlgmr.msra.gmra.mxu0 %v421_v8  ;;  %199 = vmatmul.bf16.vlgmr.msra.gmra.mxu1 %v423_v9 }
  0x22   :  { %209 = vmatmul.bf16.vlgmr.msra.gmra.mxu2 %v425_v10  ;;  %219 = vmatmul.bf16.vlgmr.msra.gmra.mxu3 %v427_v11 }
  0x31   :  { %194 = vmatmul.bf16.gmra.mxu0 %v422_v12  ;;  %204 = vmatmul.bf16.gmra.mxu1 %v424_v13 }
  0x32   :  { %214 = vmatmul.bf16.gmra.mxu2 %v426_v14  ;;  %224 = vmatmul.bf16.gmra.mxu3 %v428_v15 }
  0x9e   :  { %v190_v16 = vpop.f32.mrf.mxu0  ;;  %v200_v17 = vpop.f32.mrf.mxu1 }
  0x9f   :  { %v285_v19 = vmul.f32 %v508_v18, %v190_v16  ;;  %v289_v21 = vmul.f32 %v508_v18, %v200_v17 }
  0xa1   :  { %v305_v28 = vadd.f32 %v509_v20, %v285_v19  ;;  %v309_v29 = vadd.f32 %v509_v20, %v289_v21 }
  0xa5   :  { %v210_v22 = vpop.f32.mrf.mxu2  ;;  %v220_v23 = vpop.f32.mrf.mxu3 }
  0xa6   :  { %v192_v24 = vpop.f32.mrf.mxu0  ;;  %v202_v25 = vpop.f32.mrf.mxu1  ;;  %v293_v34 = vmul.f32 %v508_v18, %v210_v22  ;;  %v297_v35 = vmul.f32 %v508_v18, %v220_v23 }
  0xa7   :  { %v286_v26 = vmul.f32 %v508_v18, %v192_v24  ;;  %v290_v27 = vmul.f32 %v508_v18, %v202_v25 }
  0xa8   :  { %v313_v42 = vadd.f32 %v509_v20, %v293_v34  ;;  %v317_v43 = vadd.f32 %v509_v20, %v297_v35 }
  0xa9   :  { %v306_v30 = vadd.f32 %v509_v20, %v286_v26  ;;  %v310_v31 = vadd.f32 %v509_v20, %v290_v27 }
  0xab   :  { %v440_v32 = vpack.c.bf16 %v306_v30, %v305_v28  ;;  %v450_v33 = vpack.c.bf16 %v310_v31, %v309_v29 }
  0xad   :  { %441 = vst [vmem:[%s617_s4] sm:$0xff] %v440_v32   ;;  %v212_v36 = vpop.f32.mrf.mxu2  ;;  %v222_v37 = vpop.f32.mrf.mxu3 }
  0xae   :  { %478 = vst [vmem:[%s617_s4 + $0x10] sm:$0xff] %v450_v33   ;;  %v294_v38 = vmul.f32 %v508_v18, %v212_v36  ;;  %v298_v39 = vmul.f32 %v508_v18, %v222_v37  ;;  %v195_v40 = vpop.f32.mrf.mxu0  ;;  %v205_v41 = vpop.f32.mrf.mxu1 }
  0xaf   :  { %v287_v48 = vmul.f32 %v508_v18, %v195_v40  ;;  %v291_v49 = vmul.f32 %v508_v18, %v205_v41 }
  0xb0   :  { %v314_v44 = vadd.f32 %v509_v20, %v294_v38  ;;  %v318_v45 = vadd.f32 %v509_v20, %v298_v39 }
  0xb1   :  { %v307_v56 = vadd.f32 %v509_v20, %v287_v48  ;;  %v311_v57 = vadd.f32 %v509_v20, %v291_v49 }
  0xb2   :  { %v460_v46 = vpack.c.bf16 %v314_v44, %v313_v42  ;;  %v470_v47 = vpack.c.bf16 %v318_v45, %v317_v43 }
  0xb4   :  { %480 = vst [vmem:[%s617_s4 + $0x20] sm:$0xff] %v460_v46  }
  0xb5   :  { %482 = vst [vmem:[%s617_s4 + $0x30] sm:$0xff] %v470_v47   ;;  %v215_v50 = vpop.f32.mrf.mxu2  ;;  %v225_v51 = vpop.f32.mrf.mxu3 }
  0xb6   :  { %v197_v52 = vpop.f32.mrf.mxu0  ;;  %v207_v53 = vpop.f32.mrf.mxu1  ;;  %v295_v62 = vmul.f32 %v508_v18, %v215_v50  ;;  %v299_v63 = vmul.f32 %v508_v18, %v225_v51 }
  0xb7   :  { %v288_v54 = vmul.f32 %v508_v18, %v197_v52  ;;  %v292_v55 = vmul.f32 %v508_v18, %v207_v53 }
  0xb8   :  { %v315_v4 = vadd.f32 %v509_v20, %v295_v62  ;;  %v319_v5 = vadd.f32 %v509_v20, %v299_v63 }
  0xb9   :  { %v308_v58 = vadd.f32 %v509_v20, %v288_v54  ;;  %v312_v59 = vadd.f32 %v509_v20, %v292_v55 }
  0xbb   :  { %v445_v60 = vpack.c.bf16 %v308_v58, %v307_v56  ;;  %v455_v61 = vpack.c.bf16 %v312_v59, %v311_v57 }
  0xbd   :  { %477 = vst [vmem:[%s617_s4 + $0x8] sm:$0xff] %v445_v60   ;;  %v217_v0 = vpop.f32.mrf.mxu2  ;;  %v227_v1 = vpop.f32.mrf.mxu3 }
  0xbe   :  { %479 = vst [vmem:[%s617_s4 + $0x18] sm:$0xff] %v455_v61   ;;  %v296_v2 = vmul.f32 %v508_v18, %v217_v0  ;;  %v300_v3 = vmul.f32 %v508_v18, %v227_v1 }
  0xc0   :  { %v316_v6 = vadd.f32 %v509_v20, %v296_v2  ;;  %v320_v7 = vadd.f32 %v509_v20, %v300_v3 }
  0xc2   :  { %v465_v8 = vpack.c.bf16 %v316_v6, %v315_v4  ;;  %v475_v9 = vpack.c.bf16 %v320_v7, %v319_v5 }
  0xc4   :  { %481 = vst [vmem:[%s617_s4 + $0x28] sm:$0xff] %v465_v8  }
  0xc5   :  { %483 = vst [vmem:[%s617_s4 + $0x38] sm:$0xff] %v475_v9  }

// kernel: custom_resnet18_forward.18
= control target key start
LH: loop header
LB: loop body
LE: loop exit
PB: predicated region body
PF: predicated region fallthrough
CT: control target
= control target key end

     0   :  { %s1319_s18 = smov 0   ;;  %s1321_s19 = smov 0   ;;  %s1514_s0 = inlined_call_operand.vmem [shape: bf16[128,1152], index: 0, kind: input, shape index: {}]   ;;  %s1515_s1 = inlined_call_operand.vmem [shape: bf16[1152,128], index: 1, kind: input, shape index: {}]   ;;  %s1516_s2 = inlined_call_operand.vmem [shape: f32[1,128], index: 2, kind: input, shape index: {}]   ;;  %s1517_s3 = inlined_call_operand.vmem [shape: f32[1,128], index: 3, kind: input, shape index: {}]   ;;  %s1518_s4 = inlined_call_operand.vmem [shape: bf16[128,128], index: 4, kind: input, shape index: {}]   ;;  %s1519_s5 = inlined_call_operand.vmem [shape: bf16[128,128], index: 5, kind: output, shape index: {}]  }
   0x1   :  { %s1323_s20 = smov 0   ;;  %s1325_s21 = smov 0  }
   0x2   :  { %s1327_s22 = smov 0  }
   0x3 LB: > { %s27_s23 = sadd.s32 1, %s1282_s21  ;;  %p50_p1 = scmp.ne.s32.totalorder %s1274_s19, %s1270_s18  ;;  %s1286_s22 = sphi %s1327_s22, %s15_s22   ;;  %s1282_s21 = sphi %s1325_s21, %s1523_s21   ;;  %s1278_s20 = sphi %s1323_s20, %s1522_s20   ;;  %s1274_s19 = sphi %s1321_s19, %s1521_s19   ;;  %s1270_s18 = sphi %s1319_s18, %s1520_s18  }
   0x4   : > { %p28_p0 = scmp.ge.s32.totalorder %s27_s23, 9  ;;  %p51_p2 = scmp.eq.s32.totalorder %s1286_s22, 0 }
   0x5   : > { %s43_s25 = sadd.s32 1, %s1274_s19  ;;  %p1002_p5 = scmp.ge.s32.totalorder %s1286_s22, 9 }
   0x6   : > { %s1525_s23 = smov (%p28_p0, %s27_s23), 0  ;;  %p52_p3 = por %p51_p2, %p50_p1 }
   0x7   : > { %s39_s24 = ssub.s32 %s1282_s21, %s1525_s23  ;;  %236 = sbr.rel (%p1002_p5) target bundleno = 32 (0x20), region = 28 }
   0x8   : > { %p41_p4 = scmp.eq.s32.totalorder %s39_s24, 0 }
   0xa   : > { %s1354_s26 = scalar_select %p41_p4, %s1274_s19, %s43_s25  }
   0xc   : > { %239 = sbr.rel (!%p52_p3) target bundleno = 32 (0x20), region = 32  ;;  %s241_s27 = sand.u32 (%p52_p3), 1, %s1274_s19  }
   0xd   : > { %s1004_s28 = sshll.u32 (%p52_p3), %s1282_s21, 2  ;;  %s1003_s29 = sshll.u32 (%p52_p3), %s241_s27, 6 }
   0xe   : > { %s1362_s7 = scalar_lea.vmem (%p52_p3), %s1514_s0, %s1004_s28  ;;  %s243_s8 = scalar_lea.vmem (%p52_p3), [#allocation3], %s1003_s29 }
   0xf   : > { %v265_v0 = vld [vmem:[%s1362_s7] sm:$0xf] (%p52_p3)  ;;  %v267_v1 = vld [vmem:[%s1362_s7 + $0x24] sm:$0xf] (%p52_p3)  ;;  %v269_v2 = vld [vmem:[%s1362_s7 + $0x48] sm:$0xf] (%p52_p3) }
  0x10   : > { %266 = vst [vmem:[%s243_s8] sm:$0xf] (%p52_p3), %v265_v0  ;;  %v271_v3 = vld [vmem:[%s1362_s7 + $0x6c] sm:$0xf] (%p52_p3)  ;;  %v273_v4 = vld [vmem:[%s1362_s7 + $0x90] sm:$0xf] (%p52_p3) }
  0x11   : > { %268 = vst [vmem:[%s243_s8 + $0x4] sm:$0xf] %v267_v1  ;;  %v275_v5 = vld [vmem:[%s1362_s7 + $0xb4] sm:$0xf]  ;;  %v277_v6 = vld [vmem:[%s1362_s7 + $0xd8] sm:$0xf] }
  0x12   : > { %270 = vst [vmem:[%s243_s8 + $0x8] sm:$0xf] %v269_v2  ;;  %v279_v7 = vld [vmem:[%s1362_s7 + $0xfc] sm:$0xf]  ;;  %v281_v8 = vld [vmem:[%s1362_s7 + $0x120] sm:$0xf] }
  0x13   : > { %272 = vst [vmem:[%s243_s8 + $0xc] sm:$0xf] %v271_v3  ;;  %v283_v9 = vld [vmem:[%s1362_s7 + $0x144] sm:$0xf]  ;;  %v285_v10 = vld [vmem:[%s1362_s7 + $0x168] sm:$0xf] }
  0x14   : > { %274 = vst [vmem:[%s243_s8 + $0x10] sm:$0xf] %v273_v4  ;;  %v287_v11 = vld [vmem:[%s1362_s7 + $0x18c] sm:$0xf]  ;;  %v289_v12 = vld [vmem:[%s1362_s7 + $0x1b0] sm:$0xf] }
  0x15   : > { %276 = vst [vmem:[%s243_s8 + $0x14] sm:$0xf] %v275_v5  ;;  %v291_v13 = vld [vmem:[%s1362_s7 + $0x1d4] sm:$0xf]  ;;  %v293_v14 = vld [vmem:[%s1362_s7 + $0x1f8] sm:$0xf] }
  0x16   : > { %278 = vst [vmem:[%s243_s8 + $0x18] sm:$0xf] %v277_v6  ;;  %v295_v15 = vld [vmem:[%s1362_s7 + $0x21c] sm:$0xf] }
  0x17   : > { %280 = vst [vmem:[%s243_s8 + $0x1c] sm:$0xf] %v279_v7 }
  0x18   : > { %282 = vst [vmem:[%s243_s8 + $0x20] sm:$0xf] %v281_v8 }
  0x19   : > { %284 = vst [vmem:[%s243_s8 + $0x24] sm:$0xf] %v283_v9 }
  0x1a   : > { %286 = vst [vmem:[%s243_s8 + $0x28] sm:$0xf] %v285_v10 }
  0x1b   : > { %288 = vst [vmem:[%s243_s8 + $0x2c] sm:$0xf] %v287_v11 }
  0x1c   : > { %290 = vst [vmem:[%s243_s8 + $0x30] sm:$0xf] %v289_v12 }
  0x1d   : > { %292 = vst [vmem:[%s243_s8 + $0x34] sm:$0xf] %v291_v13 }
  0x1e   : > { %294 = vst [vmem:[%s243_s8 + $0x38] sm:$0xf] %v293_v14 }
  0x1f   : > { %296 = vst [vmem:[%s243_s8 + $0x3c] sm:$0xf] %v295_v15 }
  0x20 PF: > { %p1005_p6 = scmp.ge.s32.totalorder %s1286_s22, 1  ;;  %p363_p7 = scmp.lt.s32.totalorder %s1286_s22, 10 }
  0x22   : > { %p364_p8 = pnand %p1005_p6, %p363_p7 }
  0x23   : > { %s370_s9 = sand.u32 (!%p364_p8), 1, %s1270_s18   ;;  %s1007_s10 = sshll.u32 (!%p364_p8), %s1278_s20, 4 }
  0x24   : > { %367 = sbr.rel (%p364_p8) target bundleno = 286 (0x11e), region = 77  ;;  %s1006_s11 = sshll.u32 (!%p364_p8), %s370_s9, 6 }
  0x25   : > { %p424_p9 = scmp.lt.s32.totalorder (!%p364_p8), %s1007_s10, 143  ;;  %s1389_s16 = scalar_lea.vmem (!%p364_p8), [#allocation3], %s1006_s11 }
  0x26   : > { %p1009_p10 = scmp.ne.s32.totalorder (!%p364_p8), %s1278_s20, 0 }
  0x29   : > { %s1527_s10 = smov (!%p424_p9, %s1007_s10), 143  ;;  %459 = sbr.rel (%p1009_p10) target bundleno = 63 (0x3f), region = 85 }
  0x2a   : > { %s1008_s12 = sshll.u32 %s1527_s10, 2 }
  0x2b   : > { %s1387_s15 = scalar_lea.vmem %s1515_s1, %s1008_s12 }
  0x2e   : > { %v1288_v16 = vmov 0.0  }
  0x2f   : > { %460 = vst [vmem:[#allocation2 + $0x30] sm:$0xff] %v1288_v16 }
  0x30   : > { %461 = vst [vmem:[#allocation2] sm:$0xff] %v1288_v16 }
  0x31   : > { %462 = vst [vmem:[#allocation2 + $0x58] sm:$0xff] %v1288_v16 }
  0x32   : > { %463 = vst [vmem:[#allocation2 + $0x18] sm:$0xff] %v1288_v16 }
  0x33   : > { %464 = vst [vmem:[#allocation2 + $0x50] sm:$0xff] %v1288_v16 }
  0x34   : > { %465 = vst [vmem:[#allocation2 + $0x68] sm:$0xff] %v1288_v16 }
  0x35   : > { %466 = vst [vmem:[#allocation2 + $0x8] sm:$0xff] %v1288_v16 }
  0x36   : > { %467 = vst [vmem:[#allocation2 + $0x48] sm:$0xff] %v1288_v16 }
  0x37   : > { %468 = vst [vmem:[#allocation2 + $0x40] sm:$0xff] %v1288_v16 }
  0x38   : > { %469 = vst [vmem:[#allocation2 + $0x20] sm:$0xff] %v1288_v16 }
  0x39   : > { %470 = vst [vmem:[#allocation2 + $0x10] sm:$0xff] %v1288_v16 }
  0x3a   : > { %471 = vst [vmem:[#allocation2 + $0x38] sm:$0xff] %v1288_v16 }
  0x3b   : > { %472 = vst [vmem:[#allocation2 + $0x60] sm:$0xff] %v1288_v16 }
  0x3c   : > { %473 = vst [vmem:[#allocation2 + $0x70] sm:$0xff] %v1288_v16 }
  0x3d   : > { %474 = vst [vmem:[#allocation2 + $0x78] sm:$0xff] %v1288_v16 }
  0x3e   : > { %475 = vst [vmem:[#allocation2 + $0x28] sm:$0xff] %v1288_v16 }
  0x3f PF: > { %v1094_v17 = vld [vmem:[%s1387_s15 + $0x38] sm:$0xff]  ;;  %v1093_v18 = vld [vmem:[%s1387_s15 + $0x30] sm:$0xff]  ;;  %v1092_v19 = vld [vmem:[%s1387_s15 + $0x28] sm:$0xff]  ;;  %p1074_p11 = scmp.ne.s32.totalorder %s1278_s20, 8 }
  0x40   : > { %620 = vmatpush.bf16.msra.mxu0 %v1094_v17  ;;  %1181 = vmatpush.bf16.msra.mxu1 %v1094_v17  ;;  %v1091_v20 = vld [vmem:[%s1387_s15 + $0x20] sm:$0xff]  ;;  %v1090_v21 = vld [vmem:[%s1387_s15 + $0x18] sm:$0xff]  ;;  %v1089_v22 = vld [vmem:[%s1387_s15 + $0x10] sm:$0xff] }
  0x41   : > { %1182 = vmatpush.bf16.msra.mxu2 %v1094_v17  ;;  %1183 = vmatpush.bf16.msra.mxu3 %v1094_v17  ;;  %v1088_v23 = vld [vmem:[%s1387_s15 + $0x8] sm:$0xff]  ;;  %v1087_v24 = vld [vmem:[%s1387_s15] sm:$0xff]  ;;  %v1081_v26 = vld [vmem:[%s1389_s16 + $0x10] sm:$0xff] }
  0x42   : > { %v1079_v25 = vld [vmem:[%s1389_s16] sm:$0xff]  ;;  %v1085_v28 = vld [vmem:[%s1389_s16 + $0x30] sm:$0xff]  ;;  %v1080_v29 = vld [vmem:[%s1389_s16 + $0x8] sm:$0xff] }
  0x43   : > { %v1083_v27 = vld [vmem:[%s1389_s16 + $0x20] sm:$0xff]  ;;  %v1082_v30 = vld [vmem:[%s1389_s16 + $0x18] sm:$0xff]  ;;  %v1084_v31 = vld [vmem:[%s1389_s16 + $0x28] sm:$0xff] }
  0x44   : > { %621 = vmatpush.bf16.msra.mxu0 %v1093_v18  ;;  %1184 = vmatpush.bf16.msra.mxu1 %v1093_v18  ;;  %v1086_v32 = vld [vmem:[%s1389_s16 + $0x38] sm:$0xff]  ;;  %v476_v33 = vld [vmem:[#allocation2 + $0x30] sm:$0xff]  ;;  %v484_v39 = vld [vmem:[#allocation2 + $0x40] sm:$0xff] }
  0x45   : > { %1185 = vmatpush.bf16.msra.mxu2 %v1093_v18  ;;  %1186 = vmatpush.bf16.msra.mxu3 %v1093_v18  ;;  %v480_v34 = vld [vmem:[#allocation2 + $0x50] sm:$0xff]  ;;  %v488_v40 = vld [vmem:[#allocation2 + $0x60] sm:$0xff]  ;;  %v481_v42 = vld [vmem:[#allocation2 + $0x68] sm:$0xff] }
  0x46   : > { %v477_v41 = vld [vmem:[#allocation2] sm:$0xff]  ;;  %v489_v52 = vld [vmem:[#allocation2 + $0x70] sm:$0xff]  ;;  %v478_v53 = vld [vmem:[#allocation2 + $0x58] sm:$0xff] }
  0x47   : > { %v485_v51 = vld [vmem:[#allocation2 + $0x20] sm:$0xff]  ;;  %v482_v54 = vld [vmem:[#allocation2 + $0x8] sm:$0xff]  ;;  %v486_v63 = vld [vmem:[#allocation2 + $0x10] sm:$0xff] }
  0x48   : > { %622 = vmatpush.bf16.msra.mxu0 %v1092_v19  ;;  %1187 = vmatpush.bf16.msra.mxu1 %v1092_v19  ;;  %v490_v0 = vld [vmem:[#allocation2 + $0x78] sm:$0xff]  ;;  %v483_v2 = vld [vmem:[#allocation2 + $0x48] sm:$0xff] }
  0x49   : > { %1188 = vmatpush.bf16.msra.mxu2 %v1092_v19  ;;  %1189 = vmatpush.bf16.msra.mxu3 %v1092_v19  ;;  %v479_v1 = vld [vmem:[#allocation2 + $0x18] sm:$0xff]  ;;  %v491_v12 = vld [vmem:[#allocation2 + $0x28] sm:$0xff] }
  0x4a   : > { %v487_v11 = vld [vmem:[#allocation2 + $0x38] sm:$0xff] }
  0x4c   : > { %623 = vmatpush.bf16.msra.mxu0 %v1091_v20  ;;  %1190 = vmatpush.bf16.msra.mxu1 %v1091_v20 }
  0x4d   : > { %1191 = vmatpush.bf16.msra.mxu2 %v1091_v20  ;;  %1192 = vmatpush.bf16.msra.mxu3 %v1091_v20 }
  0x50   : > { %624 = vmatpush.bf16.msra.mxu0 %v1090_v21  ;;  %1193 = vmatpush.bf16.msra.mxu1 %v1090_v21 }
  0x51   : > { %1194 = vmatpush.bf16.msra.mxu2 %v1090_v21  ;;  %1195 = vmatpush.bf16.msra.mxu3 %v1090_v21 }
  0x54   : > { %625 = vmatpush.bf16.msra.mxu0 %v1089_v22  ;;  %1196 = vmatpush.bf16.msra.mxu1 %v1089_v22 }
  0x55   : > { %1197 = vmatpush.bf16.msra.mxu2 %v1089_v22  ;;  %1198 = vmatpush.bf16.msra.mxu3 %v1089_v22 }
  0x58   : > { %626 = vmatpush.bf16.msra.mxu0 %v1088_v23  ;;  %1199 = vmatpush.bf16.msra.mxu1 %v1088_v23 }
  0x59   : > { %1200 = vmatpush.bf16.msra.mxu2 %v1088_v23  ;;  %1201 = vmatpush.bf16.msra.mxu3 %v1088_v23 }
  0x5c   : > { %627 = vmatpush.bf16.msra.mxu0 %v1087_v24  ;;  %1202 = vmatpush.bf16.msra.mxu1 %v1087_v24 }
  0x5d   : > { %1203 = vmatpush.bf16.msra.mxu2 %v1087_v24  ;;  %1204 = vmatpush.bf16.msra.mxu3 %v1087_v24 }
  0x5f   : > { %628 = vmatmul.bf16.vlgmr.msra.gmra.mxu0 %v1079_v25  ;;  %638 = vmatmul.bf16.vlgmr.msra.gmra.mxu1 %v1081_v26 }
  0x60   : > { %648 = vmatmul.bf16.vlgmr.msra.gmra.mxu2 %v1083_v27  ;;  %658 = vmatmul.bf16.vlgmr.msra.gmra.mxu3 %v1085_v28 }
  0x6f   : > { %633 = vmatmul.bf16.gmra.mxu0 %v1080_v29  ;;  %643 = vmatmul.bf16.gmra.mxu1 %v1082_v30 }
  0x70   : > { %653 = vmatmul.bf16.gmra.mxu2 %v1084_v31  ;;  %663 = vmatmul.bf16.gmra.mxu3 %v1086_v32 }
  0xdc   : > { %v629_v35 = vpop.f32.mrf.mxu0  ;;  %v639_v36 = vpop.f32.mrf.mxu1 }
  0xdd   : > { %v669_v37 = vadd.f32 %v629_v35, %v476_v33  ;;  %v673_v38 = vadd.f32 %v639_v36, %v480_v34 }
  0xdf   : > { %685 = vst [vmem:[#allocation2 + $0x30] sm:$0xff] %v669_v37 }
  0xe0   : > { %689 = vst [vmem:[#allocation2 + $0x50] sm:$0xff] %v673_v38 }
  0xe3   : > { %v649_v43 = vpop.f32.mrf.mxu2  ;;  %v659_v44 = vpop.f32.mrf.mxu3 }
  0xe4   : > { %v677_v45 = vadd.f32 %v649_v43, %v484_v39  ;;  %v681_v46 = vadd.f32 %v659_v44, %v488_v40  ;;  %v631_v47 = vpop.f32.mrf.mxu0  ;;  %v641_v48 = vpop.f32.mrf.mxu1 }
  0xe5   : > { %v670_v49 = vadd.f32 %v631_v47, %v477_v41  ;;  %v674_v50 = vadd.f32 %v641_v48, %v481_v42 }
  0xe6   : > { %693 = vst [vmem:[#allocation2 + $0x40] sm:$0xff] %v677_v45 }
  0xe7   : > { %697 = vst [vmem:[#allocation2 + $0x60] sm:$0xff] %v681_v46 }
  0xe8   : > { %686 = vst [vmem:[#allocation2] sm:$0xff] %v670_v49 }
  0xe9   : > { %690 = vst [vmem:[#allocation2 + $0x68] sm:$0xff] %v674_v50 }
  0xeb   : > { %v651_v55 = vpop.f32.mrf.mxu2  ;;  %v661_v56 = vpop.f32.mrf.mxu3 }
  0xec   : > { %v678_v57 = vadd.f32 %v651_v55, %v485_v51  ;;  %v682_v58 = vadd.f32 %v661_v56, %v489_v52  ;;  %v634_v59 = vpop.f32.mrf.mxu0  ;;  %v644_v60 = vpop.f32.mrf.mxu1 }
  0xed   : > { %v671_v61 = vadd.f32 %v634_v59, %v478_v53  ;;  %v675_v62 = vadd.f32 %v644_v60, %v482_v54 }
  0xee   : > { %694 = vst [vmem:[#allocation2 + $0x20] sm:$0xff] %v678_v57 }
  0xef   : > { %698 = vst [vmem:[#allocation2 + $0x70] sm:$0xff] %v682_v58 }
  0xf0   : > { %687 = vst [vmem:[#allocation2 + $0x58] sm:$0xff] %v671_v61 }
  0xf1   : > { %691 = vst [vmem:[#allocation2 + $0x8] sm:$0xff] %v675_v62 }
  0xf3   : > { %v654_v3 = vpop.f32.mrf.mxu2  ;;  %v664_v4 = vpop.f32.mrf.mxu3 }
  0xf4   : > { %v679_v5 = vadd.f32 %v654_v3, %v486_v63  ;;  %v683_v6 = vadd.f32 %v664_v4, %v490_v0  ;;  %v636_v7 = vpop.f32.mrf.mxu0  ;;  %v646_v8 = vpop.f32.mrf.mxu1 }
  0xf5   : > { %v672_v9 = vadd.f32 %v636_v7, %v479_v1  ;;  %v676_v10 = vadd.f32 %v646_v8, %v483_v2 }
  0xf6   : > { %695 = vst [vmem:[#allocation2 + $0x10] sm:$0xff] %v679_v5 }
  0xf7   : > { %699 = vst [vmem:[#allocation2 + $0x78] sm:$0xff] %v683_v6 }
  0xf8   : > { %688 = vst [vmem:[#allocation2 + $0x18] sm:$0xff] %v672_v9 }
  0xf9   : > { %692 = vst [vmem:[#allocation2 + $0x48] sm:$0xff] %v676_v10 }
  0xfb   : > { %v656_v13 = vpop.f32.mrf.mxu2  ;;  %v666_v14 = vpop.f32.mrf.mxu3  ;;  %704 = sbr.rel (%p1074_p11) target bundleno = 286 (0x11e), region = 89 }
  0xfc   : > { %v680_v15 = vadd.f32 %v656_v13, %v487_v11  ;;  %v684_v16 = vadd.f32 %v666_v14, %v491_v12 }
  0xfe   : > { %696 = vst [vmem:[#allocation2 + $0x38] sm:$0xff] %v680_v15 }
  0xff   : > { %700 = vst [vmem:[#allocation2 + $0x28] sm:$0xff] %v684_v16 }
 0x100   : > { %v705_v17 = vld [vmem:[#allocation2 + $0x30] sm:$0xff]  ;;  %v706_v18 = vld [vmem:[#allocation2] sm:$0xff]  ;;  %v707_v22 = vld [vmem:[#allocation2 + $0x58] sm:$0xff] }
 0x101   : > { %v1412_v19 = vld [vmem:[%s1516_s2] ss:$0 sm:$0xff]  ;;  %v708_v23 = vld [vmem:[#allocation2 + $0x18] sm:$0xff]  ;;  %v1167_v28 = vld [vmem:[%s1518_s4 + $0x8] sm:$0xff]  }
 0x102   : > { %v1417_v20 = vld [vmem:[%s1517_s3] ss:$0 sm:$0xff]  ;;  %v725_v24 = vmul.f32 %v1412_v19, %v705_v17  ;;  %v726_v25 = vmul.f32 %v1412_v19, %v706_v18  ;;  %v709_v29 = vld [vmem:[#allocation2 + $0x50] sm:$0xff]  ;;  %v710_v30 = vld [vmem:[#allocation2 + $0x68] sm:$0xff]  ;;  %v727_v31 = vmul.f32 %v1412_v19, %v707_v22  ;;  %v728_v32 = vmul.f32 %v1412_v19, %v708_v23 }
 0x103   : > { %v1096_v21 = vld [vmem:[%s1518_s4] sm:$0xff]   ;;  %v1101_v33 = vunpack.c.l.bf16 %v1167_v28  ;;  %v1102_v34 = vunpack.c.h.bf16 %v1167_v28  ;;  %v1168_v35 = vld [vmem:[%s1518_s4 + $0x10] sm:$0xff]   ;;  %v729_v38 = vmul.f32 %v1412_v19, %v709_v29  ;;  %v730_v39 = vmul.f32 %v1412_v19, %v710_v30  ;;  %v711_v40 = vld [vmem:[#allocation2 + $0x8] sm:$0xff] }
 0x104   : > { %v1097_v26 = vunpack.c.l.bf16 %v1096_v21  ;;  %v1098_v27 = vunpack.c.h.bf16 %v1096_v21  ;;  %v745_v36 = vadd.f32 %v1417_v20, %v725_v24  ;;  %v746_v37 = vadd.f32 %v1417_v20, %v726_v25  ;;  %v712_v41 = vld [vmem:[#allocation2 + $0x48] sm:$0xff]  ;;  %v1169_v54 = vld [vmem:[%s1518_s4 + $0x18] sm:$0xff]   ;;  %v713_v59 = vld [vmem:[#allocation2 + $0x40] sm:$0xff] }
 0x105   : > { %v747_v42 = vadd.f32 %v1417_v20, %v727_v31  ;;  %v748_v43 = vadd.f32 %v1417_v20, %v728_v32  ;;  %v1105_v44 = vunpack.c.l.bf16 %v1168_v35  ;;  %v1106_v45 = vunpack.c.h.bf16 %v1168_v35  ;;  %v714_v60 = vld [vmem:[#allocation2 + $0x20] sm:$0xff]  ;;  %v715_v6 = vld [vmem:[#allocation2 + $0x10] sm:$0xff]  ;;  %v716_v11 = vld [vmem:[#allocation2 + $0x38] sm:$0xff] }
 0x106   : > { %v793_v46 = vadd.f32 %v1097_v26, %v745_v36  ;;  %v794_v47 = vadd.f32 %v1098_v27, %v746_v37  ;;  %v749_v48 = vadd.f32 %v1417_v20, %v729_v38  ;;  %v750_v49 = vadd.f32 %v1417_v20, %v730_v39  ;;  %v1170_v1 = vld [vmem:[%s1518_s4 + $0x20] sm:$0xff]   ;;  %v1171_v12 = vld [vmem:[%s1518_s4 + $0x28] sm:$0xff]   ;;  %v718_v24 = vld [vmem:[#allocation2 + $0x70] sm:$0xff] }
 0x107   : > { %v795_v50 = vadd.f32 %v1101_v33, %v747_v42  ;;  %v796_v51 = vadd.f32 %v1102_v34, %v748_v43  ;;  %v731_v52 = vmul.f32 %v1412_v19, %v711_v40  ;;  %v732_v53 = vmul.f32 %v1412_v19, %v712_v41  ;;  %v717_v23 = vld [vmem:[#allocation2 + $0x60] sm:$0xff]  ;;  %v1172_v25 = vld [vmem:[%s1518_s4 + $0x30] sm:$0xff]   ;;  %v719_v38 = vld [vmem:[#allocation2 + $0x78] sm:$0xff] }
 0x108   : > { %v809_v55 = vmax.f32 %v793_v46, 0.0  ;;  %v810_v56 = vmax.f32 %v794_v47, 0.0  ;;  %v797_v57 = vadd.f32 %v1105_v44, %v749_v48  ;;  %v798_v58 = vadd.f32 %v1106_v45, %v750_v49  ;;  %v720_v39 = vld [vmem:[#allocation2 + $0x28] sm:$0xff]  ;;  %v1173_v44 = vld [vmem:[%s1518_s4 + $0x38] sm:$0xff]  }
 0x109   : > { %v811_v61 = vmax.f32 %v795_v50, 0.0  ;;  %v812_v62 = vmax.f32 %v796_v51, 0.0  ;;  %v751_v63 = vadd.f32 %v1417_v20, %v731_v52  ;;  %v752_v0 = vadd.f32 %v1417_v20, %v732_v53 }
 0x10a   : > { %v1130_v2 = vpack.c.bf16 %v810_v56, %v809_v55  ;;  %v813_v3 = vmax.f32 %v797_v57, 0.0  ;;  %v814_v4 = vmax.f32 %v798_v58, 0.0  ;;  %v1109_v5 = vunpack.c.l.bf16 %v1169_v54 }
 0x10b   : > { %v1135_v7 = vpack.c.bf16 %v812_v62, %v811_v61  ;;  %v1110_v8 = vunpack.c.h.bf16 %v1169_v54  ;;  %v733_v9 = vmul.f32 %v1412_v19, %v713_v59  ;;  %v734_v10 = vmul.f32 %v1412_v19, %v714_v60 }
 0x10c   : > { %1131 = vst [vmem:[%s1519_s5] sm:$0xff] %v1130_v2   ;;  %v1140_v13 = vpack.c.bf16 %v814_v4, %v813_v3  ;;  %v799_v14 = vadd.f32 %v1109_v5, %v751_v63  ;;  %v1113_v15 = vunpack.c.l.bf16 %v1170_v1  ;;  %v1114_v16 = vunpack.c.h.bf16 %v1170_v1 }
 0x10d   : > { %1174 = vst [vmem:[%s1519_s5 + $0x8] sm:$0xff] %v1135_v7   ;;  %v800_v17 = vadd.f32 %v1110_v8, %v752_v0  ;;  %v753_v18 = vadd.f32 %v1417_v20, %v733_v9  ;;  %v754_v21 = vadd.f32 %v1417_v20, %v734_v10  ;;  %v735_v22 = vmul.f32 %v1412_v19, %v715_v6 }
 0x10e   : > { %1175 = vst [vmem:[%s1519_s5 + $0x10] sm:$0xff] %v1140_v13   ;;  %v815_v26 = vmax.f32 %v799_v14, 0.0  ;;  %v736_v27 = vmul.f32 %v1412_v19, %v716_v11  ;;  %v1117_v28 = vunpack.c.l.bf16 %v1171_v12  ;;  %v1118_v29 = vunpack.c.h.bf16 %v1171_v12 }
 0x10f   : > { %v816_v30 = vmax.f32 %v800_v17, 0.0  ;;  %v801_v31 = vadd.f32 %v1113_v15, %v753_v18  ;;  %v802_v32 = vadd.f32 %v1114_v16, %v754_v21  ;;  %v755_v33 = vadd.f32 %v1417_v20, %v735_v22 }
 0x110   : > { %v756_v34 = vadd.f32 %v1417_v20, %v736_v27  ;;  %v737_v35 = vmul.f32 %v1412_v19, %v717_v23  ;;  %v738_v36 = vmul.f32 %v1412_v19, %v718_v24  ;;  %v1121_v37 = vunpack.c.l.bf16 %v1172_v25 }
 0x111   : > { %v1145_v40 = vpack.c.bf16 %v816_v30, %v815_v26  ;;  %v817_v41 = vmax.f32 %v801_v31, 0.0  ;;  %v818_v42 = vmax.f32 %v802_v32, 0.0  ;;  %v803_v43 = vadd.f32 %v1117_v28, %v755_v33 }
 0x112   : > { %v804_v45 = vadd.f32 %v1118_v29, %v756_v34  ;;  %v757_v46 = vadd.f32 %v1417_v20, %v737_v35  ;;  %v758_v47 = vadd.f32 %v1417_v20, %v738_v36  ;;  %v1122_v48 = vunpack.c.h.bf16 %v1172_v25 }
 0x113   : > { %1176 = vst [vmem:[%s1519_s5 + $0x18] sm:$0xff] %v1145_v40   ;;  %v1150_v49 = vpack.c.bf16 %v818_v42, %v817_v41  ;;  %v819_v50 = vmax.f32 %v803_v43, 0.0  ;;  %v739_v51 = vmul.f32 %v1412_v19, %v719_v38  ;;  %v740_v52 = vmul.f32 %v1412_v19, %v720_v39 }
 0x114   : > { %v820_v53 = vmax.f32 %v804_v45, 0.0  ;;  %v805_v54 = vadd.f32 %v1121_v37, %v757_v46  ;;  %v806_v55 = vadd.f32 %v1122_v48, %v758_v47  ;;  %v1125_v56 = vunpack.c.l.bf16 %v1173_v44 }
 0x115   : > { %1177 = vst [vmem:[%s1519_s5 + $0x20] sm:$0xff] %v1150_v49   ;;  %v759_v57 = vadd.f32 %v1417_v20, %v739_v51  ;;  %v760_v58 = vadd.f32 %v1417_v20, %v740_v52  ;;  %v1126_v59 = vunpack.c.h.bf16 %v1173_v44 }
 0x116   : > { %v1155_v60 = vpack.c.bf16 %v820_v53, %v819_v50  ;;  %v821_v61 = vmax.f32 %v805_v54, 0.0  ;;  %v822_v62 = vmax.f32 %v806_v55, 0.0 }
 0x117   : > { %v807_v63 = vadd.f32 %v1125_v56, %v759_v57  ;;  %v808_v0 = vadd.f32 %v1126_v59, %v760_v58 }
 0x118   : > { %1178 = vst [vmem:[%s1519_s5 + $0x28] sm:$0xff] %v1155_v60   ;;  %v1160_v19 = vpack.c.bf16 %v822_v62, %v821_v61 }
 0x119   : > { %v823_v1 = vmax.f32 %v807_v63, 0.0  ;;  %v824_v2 = vmax.f32 %v808_v0, 0.0 }
 0x11a   : > { %1179 = vst [vmem:[%s1519_s5 + $0x30] sm:$0xff] %v1160_v19  }
 0x11b   : > { %v1165_v3 = vpack.c.bf16 %v824_v2, %v823_v1 }
 0x11d   : > { %1180 = vst [vmem:[%s1519_s5 + $0x38] sm:$0xff] %v1165_v3  }
 0x11e PF: > { %s15_s22 = sadd.s32 1, %s1286_s22   ;;  %s1520_s18 = smov %s1274_s19 }
 0x11f   : > { %p12_p12 = scmp.ge.s32.totalorder %s15_s22, 11   ;;  %s1521_s19 = smov %s1354_s26 }
 0x120   : > { %s1522_s20 = smov %s1282_s21  ;;  %s1523_s21 = smov %s1525_s23 }
 0x121   :  { %14 = sbr.rel (!%p12_p12) target bundleno = 3 (0x3), region = 136 }

// kernel: custom_resnet18_forward.19
= control target key start
LH: loop header
LB: loop body
LE: loop exit
PB: predicated region body
PF: predicated region fallthrough
CT: control target
= control target key end

     0   :  { %s979_s15 = smov 0   ;;  %s981_s16 = smov 0   ;;  %s1105_s0 = inlined_call_operand.vmem [shape: bf16[32,1152], index: 0, kind: input, shape index: {}]   ;;  %s1106_s1 = inlined_call_operand.vmem [shape: bf16[1152,256], index: 1, kind: input, shape index: {}]   ;;  %s1107_s2 = inlined_call_operand.vmem [shape: f32[1,256], index: 2, kind: input, shape index: {}]   ;;  %s1108_s3 = inlined_call_operand.vmem [shape: f32[1,256], index: 3, kind: input, shape index: {}]   ;;  %s1109_s4 = inlined_call_operand.vmem [shape: bf16[32,256], index: 4, kind: output, shape index: {}]  }
   0x1   :  { %s983_s17 = smov 0   ;;  %s985_s18 = smov 0  }
   0x2   :  { %s987_s19 = smov 0  }
   0x3 LB: > { %s26_s20 = sadd.s32 1, %s947_s18  ;;  %p49_p1 = scmp.ne.s32.totalorder %s939_s16, %s935_s15  ;;  %s951_s19 = sphi %s987_s19, %s14_s19   ;;  %s947_s18 = sphi %s985_s18, %s1113_s18   ;;  %s943_s17 = sphi %s983_s17, %s1112_s17   ;;  %s939_s16 = sphi %s981_s16, %s1111_s16   ;;  %s935_s15 = sphi %s979_s15, %s1110_s15  }
   0x4   : > { %p27_p0 = scmp.ge.s32.totalorder %s26_s20, 9  ;;  %p50_p2 = scmp.eq.s32.totalorder %s951_s19, 0 }
   0x5   : > { %s42_s22 = sadd.s32 1, %s939_s16  ;;  %p751_p5 = scmp.ge.s32.totalorder %s951_s19, 9 }
   0x6   : > { %s1115_s20 = smov (%p27_p0, %s26_s20), 0  ;;  %p51_p3 = por %p50_p2, %p49_p1 }
   0x7   : > { %s38_s21 = ssub.s32 %s947_s18, %s1115_s20  ;;  %199 = sbr.rel (%p751_p5) target bundleno = 20 (0x14), region = 24 }
   0x8   : > { %p40_p4 = scmp.eq.s32.totalorder %s38_s21, 0 }
   0xa   : > { %s1014_s23 = scalar_select %p40_p4, %s939_s16, %s42_s22  }
   0xc   : > { %202 = sbr.rel (!%p51_p3) target bundleno = 20 (0x14), region = 28  ;;  %s204_s24 = sand.u32 (%p51_p3), 1, %s939_s16  }
   0xd   : > { %s753_s25 = sshll.u32 (%p51_p3), %s947_s18, 2  ;;  %s752_s26 = sshll.u32 (%p51_p3), %s204_s24, 4 }
   0xe   : > { %s211_s29 = scalar_lea.vmem (%p51_p3), %s1105_s0, %s753_s25  ;;  %s206_s30 = scalar_lea.vmem (%p51_p3), [#allocation3], %s752_s26 }
   0xf   : > { %v228_v0 = vld [vmem:[%s211_s29] sm:$0xf] (%p51_p3)  ;;  %v230_v1 = vld [vmem:[%s211_s29 + $0x24] sm:$0xf] (%p51_p3)  ;;  %v232_v2 = vld [vmem:[%s211_s29 + $0x48] sm:$0xf] (%p51_p3) }
  0x10   : > { %229 = vst [vmem:[%s206_s30] sm:$0xf] (%p51_p3), %v228_v0  ;;  %v234_v3 = vld [vmem:[%s211_s29 + $0x6c] sm:$0xf] (%p51_p3) }
  0x11   : > { %231 = vst [vmem:[%s206_s30 + $0x4] sm:$0xf] %v230_v1 }
  0x12   : > { %233 = vst [vmem:[%s206_s30 + $0x8] sm:$0xf] %v232_v2 }
  0x13   : > { %235 = vst [vmem:[%s206_s30 + $0xc] sm:$0xf] %v234_v3 }
  0x14 PF: > { %p754_p6 = scmp.ge.s32.totalorder %s951_s19, 1  ;;  %p281_p7 = scmp.lt.s32.totalorder %s951_s19, 10 }
  0x16   : > { %p282_p8 = pnand %p754_p6, %p281_p7 }
  0x17   : > { %s288_s5 = sand.u32 (!%p282_p8), 1, %s935_s15   ;;  %s756_s6 = sshll.u32 (!%p282_p8), %s943_s17, 4 }
  0x18   : > { %285 = sbr.rel (%p282_p8) target bundleno = 237 (0xed), region = 73  ;;  %s1026_s7 = sshll.u32 (!%p282_p8), %s288_s5, 4 }
  0x19   : > { %p339_p9 = scmp.lt.s32.totalorder (!%p282_p8), %s756_s6, 143  ;;  %s290_s12 = scalar_lea.vmem (!%p282_p8), [#allocation3], %s1026_s7 }
  0x1a   : > { %p759_p10 = scmp.ne.s32.totalorder (!%p282_p8), %s943_s17, 0 }
  0x1d   : > { %s1117_s6 = smov (!%p339_p9, %s756_s6), 143  ;;  %374 = sbr.rel (%p759_p10) target bundleno = 43 (0x2b), region = 81 }
  0x1e   : > { %s837_s8 = sshll.u32 %s1117_s6, 3 }
  0x1f   : > { %s1031_s11 = scalar_lea.vmem %s1106_s1, %s837_s8 }
  0x22   : > { %v953_v4 = vmov 0.0  }
  0x23   : > { %375 = vst [vmem:[#allocation2 + $0x30] sm:$0xff] %v953_v4 }
  0x24   : > { %376 = vst [vmem:[#allocation2] sm:$0xff] %v953_v4 }
  0x25   : > { %377 = vst [vmem:[#allocation2 + $0x18] sm:$0xff] %v953_v4 }
  0x26   : > { %378 = vst [vmem:[#allocation2 + $0x10] sm:$0xff] %v953_v4 }
  0x27   : > { %379 = vst [vmem:[#allocation2 + $0x8] sm:$0xff] %v953_v4 }
  0x28   : > { %380 = vst [vmem:[#allocation2 + $0x20] sm:$0xff] %v953_v4 }
  0x29   : > { %381 = vst [vmem:[#allocation2 + $0x28] sm:$0xff] %v953_v4 }
  0x2a   : > { %382 = vst [vmem:[#allocation2 + $0x38] sm:$0xff] %v953_v4 }
  0x2b PF: > { %v826_v5 = vld [vmem:[%s1031_s11 + $0x70] sm:$0xf]  ;;  %v855_v6 = vld [vmem:[%s1031_s11 + $0x74] sm:$0xf0]  ;;  %v854_v7 = vld [vmem:[%s1031_s11 + $0x74] sm:$0xf] }
  0x2c   : > { %v827_v8 = vor.u32 %v855_v6, %v826_v5  ;;  %v828_v9 = vld [vmem:[%s1031_s11 + $0x78] sm:$0xf0]  ;;  %v818_v10 = vld [vmem:[%s1031_s11 + $0x60] sm:$0xf]  ;;  %v853_v11 = vld [vmem:[%s1031_s11 + $0x64] sm:$0xf0] }
  0x2d   : > { %v831_v12 = vor.u32 %v854_v7, %v828_v9  ;;  %v852_v13 = vld [vmem:[%s1031_s11 + $0x64] sm:$0xf]  ;;  %v820_v14 = vld [vmem:[%s1031_s11 + $0x68] sm:$0xf0]  ;;  %v819_v15 = vor.u32 %v853_v11, %v818_v10  ;;  %v810_v17 = vld [vmem:[%s1031_s11 + $0x50] sm:$0xf] }
  0x2e   : > { %503 = vmatpush.bf16.msra.mxu0 %v827_v8  ;;  %856 = vmatpush.bf16.msra.mxu2 %v827_v8  ;;  %v823_v16 = vor.u32 %v852_v13, %v820_v14  ;;  %v851_v18 = vld [vmem:[%s1031_s11 + $0x54] sm:$0xf0]  ;;  %v850_v19 = vld [vmem:[%s1031_s11 + $0x54] sm:$0xf]  ;;  %v812_v20 = vld [vmem:[%s1031_s11 + $0x58] sm:$0xf0] }
  0x2f   : > { %522 = vmatpush.bf16.msra.mxu1 %v831_v12  ;;  %864 = vmatpush.bf16.msra.mxu3 %v831_v12  ;;  %v811_v21 = vor.u32 %v851_v18, %v810_v17  ;;  %v815_v22 = vor.u32 %v850_v19, %v812_v20  ;;  %v802_v23 = vld [vmem:[%s1031_s11 + $0x40] sm:$0xf]  ;;  %v849_v24 = vld [vmem:[%s1031_s11 + $0x44] sm:$0xf0]  ;;  %v848_v25 = vld [vmem:[%s1031_s11 + $0x44] sm:$0xf] }
  0x30   : > { %v804_v26 = vld [vmem:[%s1031_s11 + $0x48] sm:$0xf0]  ;;  %v803_v27 = vor.u32 %v849_v24, %v802_v23  ;;  %v794_v29 = vld [vmem:[%s1031_s11 + $0x30] sm:$0xf]  ;;  %v847_v30 = vld [vmem:[%s1031_s11 + $0x34] sm:$0xf0] }
  0x31   : > { %v807_v28 = vor.u32 %v848_v25, %v804_v26  ;;  %v846_v31 = vld [vmem:[%s1031_s11 + $0x34] sm:$0xf]  ;;  %v796_v32 = vld [vmem:[%s1031_s11 + $0x38] sm:$0xf0]  ;;  %v795_v33 = vor.u32 %v847_v30, %v794_v29  ;;  %v786_v35 = vld [vmem:[%s1031_s11 + $0x20] sm:$0xf] }
  0x32   : > { %504 = vmatpush.bf16.msra.mxu0 %v819_v15  ;;  %857 = vmatpush.bf16.msra.mxu2 %v819_v15  ;;  %v799_v34 = vor.u32 %v846_v31, %v796_v32  ;;  %v845_v36 = vld [vmem:[%s1031_s11 + $0x24] sm:$0xf0]  ;;  %v844_v37 = vld [vmem:[%s1031_s11 + $0x24] sm:$0xf]  ;;  %v788_v38 = vld [vmem:[%s1031_s11 + $0x28] sm:$0xf0] }
  0x33   : > { %523 = vmatpush.bf16.msra.mxu1 %v823_v16  ;;  %865 = vmatpush.bf16.msra.mxu3 %v823_v16  ;;  %v787_v39 = vor.u32 %v845_v36, %v786_v35  ;;  %v791_v40 = vor.u32 %v844_v37, %v788_v38  ;;  %v778_v41 = vld [vmem:[%s1031_s11 + $0x10] sm:$0xf]  ;;  %v843_v42 = vld [vmem:[%s1031_s11 + $0x14] sm:$0xf0]  ;;  %v842_v43 = vld [vmem:[%s1031_s11 + $0x14] sm:$0xf] }
  0x34   : > { %v780_v44 = vld [vmem:[%s1031_s11 + $0x18] sm:$0xf0]  ;;  %v779_v45 = vor.u32 %v843_v42, %v778_v41  ;;  %v770_v47 = vld [vmem:[%s1031_s11] sm:$0xf]  ;;  %v841_v48 = vld [vmem:[%s1031_s11 + $0x4] sm:$0xf0] }
  0x35   : > { %v783_v46 = vor.u32 %v842_v43, %v780_v44  ;;  %v840_v49 = vld [vmem:[%s1031_s11 + $0x4] sm:$0xf]  ;;  %v772_v50 = vld [vmem:[%s1031_s11 + $0x8] sm:$0xf0]  ;;  %v771_v51 = vor.u32 %v841_v48, %v770_v47  ;;  %v383_v55 = vld [vmem:[#allocation2 + $0x30] sm:$0xff]  ;;  %p832_p11 = scmp.ne.s32.totalorder %s943_s17, 8 }
  0x36   : > { %505 = vmatpush.bf16.msra.mxu0 %v811_v21  ;;  %858 = vmatpush.bf16.msra.mxu2 %v811_v21  ;;  %v775_v52 = vor.u32 %v840_v49, %v772_v50  ;;  %v838_v53 = vld [vmem:[%s290_s12] sm:$0xff]  ;;  %v839_v54 = vld [vmem:[%s290_s12 + $0x8] sm:$0xff] }
  0x37   : > { %524 = vmatpush.bf16.msra.mxu1 %v815_v22  ;;  %866 = vmatpush.bf16.msra.mxu3 %v815_v22  ;;  %v384_v56 = vld [vmem:[#allocation2] sm:$0xff]  ;;  %v387_v61 = vld [vmem:[#allocation2 + $0x8] sm:$0xff]  ;;  %v385_v0 = vld [vmem:[#allocation2 + $0x18] sm:$0xff] }
  0x38   : > { %v388_v62 = vld [vmem:[#allocation2 + $0x20] sm:$0xff]  ;;  %v386_v3 = vld [vmem:[#allocation2 + $0x10] sm:$0xff]  ;;  %v389_v9 = vld [vmem:[#allocation2 + $0x28] sm:$0xff] }
  0x39   : > { %v390_v10 = vld [vmem:[#allocation2 + $0x38] sm:$0xff] }
  0x3a   : > { %506 = vmatpush.bf16.msra.mxu0 %v803_v27  ;;  %859 = vmatpush.bf16.msra.mxu2 %v803_v27 }
  0x3b   : > { %525 = vmatpush.bf16.msra.mxu1 %v807_v28  ;;  %867 = vmatpush.bf16.msra.mxu3 %v807_v28 }
  0x3e   : > { %507 = vmatpush.bf16.msra.mxu0 %v795_v33  ;;  %860 = vmatpush.bf16.msra.mxu2 %v795_v33 }
  0x3f   : > { %526 = vmatpush.bf16.msra.mxu1 %v799_v34  ;;  %868 = vmatpush.bf16.msra.mxu3 %v799_v34 }
  0x42   : > { %508 = vmatpush.bf16.msra.mxu0 %v787_v39  ;;  %861 = vmatpush.bf16.msra.mxu2 %v787_v39 }
  0x43   : > { %527 = vmatpush.bf16.msra.mxu1 %v791_v40  ;;  %869 = vmatpush.bf16.msra.mxu3 %v791_v40 }
  0x46   : > { %509 = vmatpush.bf16.msra.mxu0 %v779_v45  ;;  %862 = vmatpush.bf16.msra.mxu2 %v779_v45 }
  0x47   : > { %528 = vmatpush.bf16.msra.mxu1 %v783_v46  ;;  %870 = vmatpush.bf16.msra.mxu3 %v783_v46 }
  0x4a   : > { %510 = vmatpush.bf16.msra.mxu0 %v771_v51  ;;  %863 = vmatpush.bf16.msra.mxu2 %v771_v51 }
  0x4b   : > { %529 = vmatpush.bf16.msra.mxu1 %v775_v52  ;;  %871 = vmatpush.bf16.msra.mxu3 %v775_v52 }
  0x4d   : > { %511 = vmatmul.bf16.vlgmr.msra.gmra.mxu0 %v838_v53  ;;  %516 = vmatmul.bf16.vlgmr.msra.gmra.mxu2 %v839_v54 }
  0x4e   : > { %530 = vmatmul.bf16.vlgmr.msra.gmra.mxu1 %v838_v53  ;;  %535 = vmatmul.bf16.vlgmr.msra.gmra.mxu3 %v839_v54 }
  0xca   : > { %v512_v57 = vpop.f32.mrf.mxu0 }
  0xcb   : > { %v541_v58 = vadd.f32 %v512_v57, %v383_v55  ;;  %v531_v59 = vpop.f32.mrf.mxu1 }
  0xcc   : > { %v542_v60 = vadd.f32 %v531_v59, %v384_v56 }
  0xcd   : > { %549 = vst [vmem:[#allocation2 + $0x30] sm:$0xff] %v541_v58 }
  0xce   : > { %550 = vst [vmem:[#allocation2] sm:$0xff] %v542_v60 }
  0xd0   : > { %v517_v63 = vpop.f32.mrf.mxu2 }
  0xd1   : > { %v545_v1 = vadd.f32 %v517_v63, %v387_v61  ;;  %v536_v2 = vpop.f32.mrf.mxu3 }
  0xd2   : > { %v546_v4 = vadd.f32 %v536_v2, %v388_v62  ;;  %v514_v5 = vpop.f32.mrf.mxu0 }
  0xd3   : > { %553 = vst [vmem:[#allocation2 + $0x8] sm:$0xff] %v545_v1  ;;  %v543_v6 = vadd.f32 %v514_v5, %v385_v0  ;;  %v533_v7 = vpop.f32.mrf.mxu1 }
  0xd4   : > { %554 = vst [vmem:[#allocation2 + $0x20] sm:$0xff] %v546_v4  ;;  %v544_v8 = vadd.f32 %v533_v7, %v386_v3 }
  0xd5   : > { %551 = vst [vmem:[#allocation2 + $0x18] sm:$0xff] %v543_v6 }
  0xd6   : > { %552 = vst [vmem:[#allocation2 + $0x10] sm:$0xff] %v544_v8 }
  0xd8   : > { %v519_v11 = vpop.f32.mrf.mxu2  ;;  %560 = sbr.rel (%p832_p11) target bundleno = 237 (0xed), region = 85 }
  0xd9   : > { %v547_v12 = vadd.f32 %v519_v11, %v389_v9  ;;  %v538_v13 = vpop.f32.mrf.mxu3 }
  0xda   : > { %v548_v14 = vadd.f32 %v538_v13, %v390_v10 }
  0xdb   : > { %555 = vst [vmem:[#allocation2 + $0x28] sm:$0xff] %v547_v12 }
  0xdc   : > { %556 = vst [vmem:[#allocation2 + $0x38] sm:$0xff] %v548_v14 }
  0xdd   : > { %v561_v15 = vld [vmem:[#allocation2 + $0x30] sm:$0xff]  ;;  %v562_v16 = vld [vmem:[#allocation2] sm:$0xff]  ;;  %v563_v21 = vld [vmem:[#allocation2 + $0x18] sm:$0xff] }
  0xde   : > { %v569_v17 = vld [vmem:[%s1107_s2] sm:$0x3]  ;;  %v564_v22 = vld [vmem:[#allocation2 + $0x10] sm:$0xff]  ;;  %v565_v25 = vld [vmem:[#allocation2 + $0x8] sm:$0xff] }
  0xdf   : > { %v571_v18 = vperm.slane %v569_v17, 0  ;;  %v572_v19 = vperm.slane %v569_v17, 1  ;;  %v583_v20 = vld [vmem:[%s1108_s3] sm:$0x3] }
  0xe0   : > { %v585_v23 = vperm.slane %v583_v20, 0  ;;  %v586_v24 = vperm.slane %v583_v20, 1  ;;  %v566_v26 = vld [vmem:[#allocation2 + $0x20] sm:$0xff] }
  0xe1   : > { %v575_v28 = vmul.f32 %v571_v18, %v561_v15  ;;  %v576_v29 = vmul.f32 %v572_v19, %v562_v16  ;;  %v577_v30 = vmul.f32 %v571_v18, %v563_v21  ;;  %v578_v31 = vmul.f32 %v572_v19, %v564_v22 }
  0xe2   : > { %v567_v27 = vld [vmem:[#allocation2 + $0x28] sm:$0xff]  ;;  %v579_v33 = vmul.f32 %v571_v18, %v565_v25  ;;  %v580_v34 = vmul.f32 %v572_v19, %v566_v26 }
  0xe3   : > { %v568_v32 = vld [vmem:[#allocation2 + $0x38] sm:$0xff]  ;;  %v581_v35 = vmul.f32 %v571_v18, %v567_v27  ;;  %v589_v37 = vadd.f32 %v585_v23, %v575_v28  ;;  %v590_v38 = vadd.f32 %v586_v24, %v576_v29  ;;  %v591_v39 = vadd.f32 %v585_v23, %v577_v30 }
  0xe4   : > { %v582_v36 = vmul.f32 %v572_v19, %v568_v32  ;;  %v592_v40 = vadd.f32 %v586_v24, %v578_v31  ;;  %v593_v41 = vadd.f32 %v585_v23, %v579_v33  ;;  %v594_v42 = vadd.f32 %v586_v24, %v580_v34 }
  0xe5   : > { %v595_v43 = vadd.f32 %v585_v23, %v581_v35  ;;  %v597_v45 = vmax.f32 %v589_v37, 0.0  ;;  %v598_v46 = vmax.f32 %v590_v38, 0.0  ;;  %v599_v47 = vmax.f32 %v591_v39, 0.0 }
  0xe6   : > { %v596_v44 = vadd.f32 %v586_v24, %v582_v36  ;;  %v600_v48 = vmax.f32 %v592_v40, 0.0  ;;  %v601_v49 = vmax.f32 %v593_v41, 0.0  ;;  %v602_v50 = vmax.f32 %v594_v42, 0.0 }
  0xe7   : > { %v603_v51 = vmax.f32 %v595_v43, 0.0  ;;  %v605_v53 = vpack.c.bf16 %v598_v46, %v597_v45 }
  0xe8   : > { %v604_v52 = vmax.f32 %v596_v44, 0.0  ;;  %v606_v54 = vpack.c.bf16 %v600_v48, %v599_v47  ;;  %v607_v55 = vpack.c.bf16 %v602_v50, %v601_v49 }
  0xe9   : > { %609 = vst [vmem:[%s1109_s4] sm:$0xff] %v605_v53 }
  0xea   : > { %v608_v56 = vpack.c.bf16 %v604_v52, %v603_v51  ;;  %610 = vst [vmem:[%s1109_s4 + $0x8] sm:$0xff] %v606_v54 }
  0xeb   : > { %611 = vst [vmem:[%s1109_s4 + $0x10] sm:$0xff] %v607_v55 }
  0xec   : > { %612 = vst [vmem:[%s1109_s4 + $0x18] sm:$0xff] %v608_v56 }
  0xed PF: > { %s14_s19 = sadd.s32 1, %s951_s19   ;;  %s1110_s15 = smov %s939_s16 }
  0xee   : > { %p11_p12 = scmp.ge.s32.totalorder %s14_s19, 11   ;;  %s1111_s16 = smov %s1014_s23 }
  0xef   : > { %s1112_s17 = smov %s947_s18  ;;  %s1113_s18 = smov %s1115_s20 }
  0xf0   :  { %13 = sbr.rel (!%p11_p12) target bundleno = 3 (0x3), region = 129 }

// kernel: custom_resnet18_forward.20
= control target key start
LH: loop header
LB: loop body
LE: loop exit
PB: predicated region body
PF: predicated region fallthrough
CT: control target
= control target key end

     0   :  { %s505_s1 = inlined_call_operand.vmem [shape: bf16[128,256], index: 1, kind: input, shape index: {}]   ;;  %s506_s0 = inlined_call_operand.vmem [shape: bf16[32,128], index: 0, kind: input, shape index: {}]   ;;  %s507_s2 = inlined_call_operand.vmem [shape: f32[1,256], index: 2, kind: input, shape index: {}]   ;;  %s508_s3 = inlined_call_operand.vmem [shape: f32[1,256], index: 3, kind: input, shape index: {}]   ;;  %s509_s4 = inlined_call_operand.vmem [shape: bf16[32,256], index: 4, kind: output, shape index: {}]  }
   0x1   :  { %v320_v0 = vld [vmem:[%s505_s1 + $0x70] sm:$0xf]  ;;  %v343_v1 = vld [vmem:[%s505_s1 + $0x74] sm:$0xf0]  ;;  %v342_v2 = vld [vmem:[%s505_s1 + $0x74] sm:$0xf] }
   0x2   :  { %v321_v3 = vor.u32 %v343_v1, %v320_v0  ;;  %v322_v4 = vld [vmem:[%s505_s1 + $0x78] sm:$0xf0]  ;;  %v312_v5 = vld [vmem:[%s505_s1 + $0x60] sm:$0xf]  ;;  %v341_v6 = vld [vmem:[%s505_s1 + $0x64] sm:$0xf0] }
   0x3   :  { %v325_v7 = vor.u32 %v342_v2, %v322_v4  ;;  %v340_v8 = vld [vmem:[%s505_s1 + $0x64] sm:$0xf]  ;;  %v314_v9 = vld [vmem:[%s505_s1 + $0x68] sm:$0xf0]  ;;  %v313_v10 = vor.u32 %v341_v6, %v312_v5  ;;  %v304_v12 = vld [vmem:[%s505_s1 + $0x50] sm:$0xf] }
   0x4   :  { %149 = vmatpush.bf16.msra.mxu0 %v321_v3  ;;  %344 = vmatpush.bf16.msra.mxu2 %v321_v3  ;;  %v317_v11 = vor.u32 %v340_v8, %v314_v9  ;;  %v339_v13 = vld [vmem:[%s505_s1 + $0x54] sm:$0xf0]  ;;  %v338_v14 = vld [vmem:[%s505_s1 + $0x54] sm:$0xf]  ;;  %v306_v15 = vld [vmem:[%s505_s1 + $0x58] sm:$0xf0] }
   0x5   :  { %168 = vmatpush.bf16.msra.mxu1 %v325_v7  ;;  %352 = vmatpush.bf16.msra.mxu3 %v325_v7  ;;  %v305_v16 = vor.u32 %v339_v13, %v304_v12  ;;  %v309_v17 = vor.u32 %v338_v14, %v306_v15  ;;  %v296_v18 = vld [vmem:[%s505_s1 + $0x40] sm:$0xf]  ;;  %v337_v19 = vld [vmem:[%s505_s1 + $0x44] sm:$0xf0]  ;;  %v336_v20 = vld [vmem:[%s505_s1 + $0x44] sm:$0xf] }
   0x6   :  { %v298_v21 = vld [vmem:[%s505_s1 + $0x48] sm:$0xf0]  ;;  %v297_v22 = vor.u32 %v337_v19, %v296_v18  ;;  %v288_v24 = vld [vmem:[%s505_s1 + $0x30] sm:$0xf]  ;;  %v335_v25 = vld [vmem:[%s505_s1 + $0x34] sm:$0xf0] }
   0x7   :  { %v301_v23 = vor.u32 %v336_v20, %v298_v21  ;;  %v334_v26 = vld [vmem:[%s505_s1 + $0x34] sm:$0xf]  ;;  %v290_v27 = vld [vmem:[%s505_s1 + $0x38] sm:$0xf0]  ;;  %v289_v28 = vor.u32 %v335_v25, %v288_v24  ;;  %v280_v30 = vld [vmem:[%s505_s1 + $0x20] sm:$0xf] }
   0x8   :  { %150 = vmatpush.bf16.msra.mxu0 %v313_v10  ;;  %345 = vmatpush.bf16.msra.mxu2 %v313_v10  ;;  %v293_v29 = vor.u32 %v334_v26, %v290_v27  ;;  %v333_v31 = vld [vmem:[%s505_s1 + $0x24] sm:$0xf0]  ;;  %v332_v32 = vld [vmem:[%s505_s1 + $0x24] sm:$0xf]  ;;  %v282_v33 = vld [vmem:[%s505_s1 + $0x28] sm:$0xf0] }
   0x9   :  { %169 = vmatpush.bf16.msra.mxu1 %v317_v11  ;;  %353 = vmatpush.bf16.msra.mxu3 %v317_v11  ;;  %v281_v34 = vor.u32 %v333_v31, %v280_v30  ;;  %v285_v35 = vor.u32 %v332_v32, %v282_v33  ;;  %v272_v36 = vld [vmem:[%s505_s1 + $0x10] sm:$0xf]  ;;  %v331_v37 = vld [vmem:[%s505_s1 + $0x14] sm:$0xf0]  ;;  %v330_v38 = vld [vmem:[%s505_s1 + $0x14] sm:$0xf] }
   0xa   :  { %v274_v39 = vld [vmem:[%s505_s1 + $0x18] sm:$0xf0]  ;;  %v273_v40 = vor.u32 %v331_v37, %v272_v36  ;;  %v264_v42 = vld [vmem:[%s505_s1] sm:$0xf]  ;;  %v329_v43 = vld [vmem:[%s505_s1 + $0x4] sm:$0xf0] }
   0xb   :  { %v277_v41 = vor.u32 %v330_v38, %v274_v39  ;;  %v328_v44 = vld [vmem:[%s505_s1 + $0x4] sm:$0xf]  ;;  %v266_v45 = vld [vmem:[%s505_s1 + $0x8] sm:$0xf0]  ;;  %v265_v46 = vor.u32 %v329_v43, %v264_v42  ;;  %v214_v50 = vld [vmem:[%s507_s2] sm:$0x3] }
   0xc   :  { %151 = vmatpush.bf16.msra.mxu0 %v305_v16  ;;  %346 = vmatpush.bf16.msra.mxu2 %v305_v16  ;;  %v269_v47 = vor.u32 %v328_v44, %v266_v45  ;;  %v326_v48 = vld [vmem:[%s506_s0] sm:$0xff]  ;;  %v327_v49 = vld [vmem:[%s506_s0 + $0x8] sm:$0xff]  ;;  %v216_v52 = vperm.slane %v214_v50, 0  ;;  %v217_v53 = vperm.slane %v214_v50, 1 }
   0xd   :  { %170 = vmatpush.bf16.msra.mxu1 %v309_v17  ;;  %354 = vmatpush.bf16.msra.mxu3 %v309_v17  ;;  %v228_v51 = vld [vmem:[%s508_s3] sm:$0x3] }
   0xe   :  { %v230_v54 = vperm.slane %v228_v51, 0  ;;  %v231_v56 = vperm.slane %v228_v51, 1 }
  0x10   :  { %152 = vmatpush.bf16.msra.mxu0 %v297_v22  ;;  %347 = vmatpush.bf16.msra.mxu2 %v297_v22 }
  0x11   :  { %171 = vmatpush.bf16.msra.mxu1 %v301_v23  ;;  %355 = vmatpush.bf16.msra.mxu3 %v301_v23 }
  0x14   :  { %153 = vmatpush.bf16.msra.mxu0 %v289_v28  ;;  %348 = vmatpush.bf16.msra.mxu2 %v289_v28 }
  0x15   :  { %172 = vmatpush.bf16.msra.mxu1 %v293_v29  ;;  %356 = vmatpush.bf16.msra.mxu3 %v293_v29 }
  0x18   :  { %154 = vmatpush.bf16.msra.mxu0 %v281_v34  ;;  %349 = vmatpush.bf16.msra.mxu2 %v281_v34 }
  0x19   :  { %173 = vmatpush.bf16.msra.mxu1 %v285_v35  ;;  %357 = vmatpush.bf16.msra.mxu3 %v285_v35 }
  0x1c   :  { %155 = vmatpush.bf16.msra.mxu0 %v273_v40  ;;  %350 = vmatpush.bf16.msra.mxu2 %v273_v40 }
  0x1d   :  { %174 = vmatpush.bf16.msra.mxu1 %v277_v41  ;;  %358 = vmatpush.bf16.msra.mxu3 %v277_v41 }
  0x20   :  { %156 = vmatpush.bf16.msra.mxu0 %v265_v46  ;;  %351 = vmatpush.bf16.msra.mxu2 %v265_v46 }
  0x21   :  { %175 = vmatpush.bf16.msra.mxu1 %v269_v47  ;;  %359 = vmatpush.bf16.msra.mxu3 %v269_v47 }
  0x23   :  { %157 = vmatmul.bf16.vlgmr.msra.gmra.mxu0 %v326_v48  ;;  %162 = vmatmul.bf16.vlgmr.msra.gmra.mxu2 %v327_v49 }
  0x24   :  { %176 = vmatmul.bf16.vlgmr.msra.gmra.mxu1 %v326_v48  ;;  %181 = vmatmul.bf16.vlgmr.msra.gmra.mxu3 %v327_v49 }
  0xa0   :  { %v158_v55 = vpop.f32.mrf.mxu0 }
  0xa1   :  { %v220_v57 = vmul.f32 %v216_v52, %v158_v55  ;;  %v177_v58 = vpop.f32.mrf.mxu1 }
  0xa2   :  { %v221_v59 = vmul.f32 %v217_v53, %v177_v58 }
  0xa3   :  { %v234_v60 = vadd.f32 %v230_v54, %v220_v57 }
  0xa4   :  { %v235_v61 = vadd.f32 %v231_v56, %v221_v59 }
  0xa6   :  { %v242_v62 = vpack.c.bf16 %v235_v61, %v234_v60  ;;  %v163_v63 = vpop.f32.mrf.mxu2 }
  0xa7   :  { %v224_v0 = vmul.f32 %v216_v52, %v163_v63  ;;  %v182_v1 = vpop.f32.mrf.mxu3 }
  0xa8   :  { %246 = vst [vmem:[%s509_s4] sm:$0xff] %v242_v62  ;;  %v225_v2 = vmul.f32 %v217_v53, %v182_v1  ;;  %v160_v3 = vpop.f32.mrf.mxu0 }
  0xa9   :  { %v238_v4 = vadd.f32 %v230_v54, %v224_v0  ;;  %v222_v5 = vmul.f32 %v216_v52, %v160_v3  ;;  %v179_v6 = vpop.f32.mrf.mxu1 }
  0xaa   :  { %v239_v7 = vadd.f32 %v231_v56, %v225_v2  ;;  %v223_v8 = vmul.f32 %v217_v53, %v179_v6 }
  0xab   :  { %v236_v9 = vadd.f32 %v230_v54, %v222_v5 }
  0xac   :  { %v244_v10 = vpack.c.bf16 %v239_v7, %v238_v4  ;;  %v237_v11 = vadd.f32 %v231_v56, %v223_v8 }
  0xae   :  { %248 = vst [vmem:[%s509_s4 + $0x10] sm:$0xff] %v244_v10  ;;  %v243_v12 = vpack.c.bf16 %v237_v11, %v236_v9  ;;  %v165_v13 = vpop.f32.mrf.mxu2 }
  0xaf   :  { %v226_v14 = vmul.f32 %v216_v52, %v165_v13  ;;  %v184_v15 = vpop.f32.mrf.mxu3 }
  0xb0   :  { %247 = vst [vmem:[%s509_s4 + $0x8] sm:$0xff] %v243_v12  ;;  %v227_v16 = vmul.f32 %v217_v53, %v184_v15 }
  0xb1   :  { %v240_v17 = vadd.f32 %v230_v54, %v226_v14 }
  0xb2   :  { %v241_v18 = vadd.f32 %v231_v56, %v227_v16 }
  0xb4   :  { %v245_v19 = vpack.c.bf16 %v241_v18, %v240_v17 }
  0xb6   :  { %249 = vst [vmem:[%s509_s4 + $0x18] sm:$0xff] %v245_v19 }

// kernel: custom_resnet18_forward.21
= control target key start
LH: loop header
LB: loop body
LE: loop exit
PB: predicated region body
PF: predicated region fallthrough
CT: control target
= control target key end

     0   :  { %s1307_s18 = smov 0   ;;  %s1309_s19 = smov 0   ;;  %s1480_s0 = inlined_call_operand.vmem [shape: bf16[32,2304], index: 0, kind: input, shape index: {}]   ;;  %s1481_s1 = inlined_call_operand.vmem [shape: bf16[2304,256], index: 1, kind: input, shape index: {}]   ;;  %s1482_s2 = inlined_call_operand.vmem [shape: f32[1,256], index: 2, kind: input, shape index: {}]   ;;  %s1483_s3 = inlined_call_operand.vmem [shape: f32[1,256], index: 3, kind: input, shape index: {}]   ;;  %s1484_s4 = inlined_call_operand.vmem [shape: bf16[32,256], index: 4, kind: input, shape index: {}]   ;;  %s1485_s5 = inlined_call_operand.vmem [shape: bf16[32,256], index: 5, kind: output, shape index: {}]  }
   0x1   :  { %s1311_s20 = smov 0   ;;  %s1313_s21 = smov 0  }
   0x2   :  { %s1315_s22 = smov 0  }
   0x3 LB: > { %s27_s23 = sadd.s32 1, %s1270_s21  ;;  %p50_p1 = scmp.ne.s32.totalorder %s1262_s19, %s1258_s18  ;;  %s1274_s22 = sphi %s1315_s22, %s15_s22   ;;  %s1270_s21 = sphi %s1313_s21, %s1489_s21   ;;  %s1266_s20 = sphi %s1311_s20, %s1488_s20   ;;  %s1262_s19 = sphi %s1309_s19, %s1487_s19   ;;  %s1258_s18 = sphi %s1307_s18, %s1486_s18  }
   0x4   : > { %p28_p0 = scmp.ge.s32.totalorder %s27_s23, 9  ;;  %p51_p2 = scmp.eq.s32.totalorder %s1274_s22, 0 }
   0x5   : > { %s43_s25 = sadd.s32 1, %s1262_s19  ;;  %p998_p5 = scmp.ge.s32.totalorder %s1274_s22, 9 }
   0x6   : > { %s1491_s23 = smov (%p28_p0, %s27_s23), 0  ;;  %p52_p3 = por %p51_p2, %p50_p1 }
   0x7   : > { %s39_s24 = ssub.s32 %s1270_s21, %s1491_s23  ;;  %243 = sbr.rel (%p998_p5) target bundleno = 20 (0x14), region = 28 }
   0x8   : > { %p41_p4 = scmp.eq.s32.totalorder %s39_s24, 0 }
   0xa   : > { %s1342_s26 = scalar_select %p41_p4, %s1262_s19, %s43_s25  }
   0xc   : > { %246 = sbr.rel (!%p52_p3) target bundleno = 20 (0x14), region = 32  ;;  %s248_s27 = sand.u32 (%p52_p3), 1, %s1262_s19  }
   0xd   : > { %s1157_s28 = sshll.u32 (%p52_p3), %s1270_s21, 3  ;;  %s999_s29 = sshll.u32 (%p52_p3), %s248_s27, 5 }
   0xe   : > { %s256_s7 = scalar_lea.vmem (%p52_p3), %s1480_s0, %s1157_s28  ;;  %s250_s8 = scalar_lea.vmem (%p52_p3), [#allocation3], %s999_s29 }
   0xf   : > { %v291_v0 = vld [vmem:[%s256_s7] sm:$0xff] (%p52_p3)  ;;  %v293_v1 = vld [vmem:[%s256_s7 + $0x48] sm:$0xff] (%p52_p3)  ;;  %v295_v2 = vld [vmem:[%s256_s7 + $0x90] sm:$0xff] (%p52_p3) }
  0x10   : > { %292 = vst [vmem:[%s250_s8] sm:$0xff] (%p52_p3), %v291_v0  ;;  %v297_v3 = vld [vmem:[%s256_s7 + $0xd8] sm:$0xff] (%p52_p3) }
  0x11   : > { %294 = vst [vmem:[%s250_s8 + $0x8] sm:$0xff] %v293_v1 }
  0x12   : > { %296 = vst [vmem:[%s250_s8 + $0x10] sm:$0xff] %v295_v2 }
  0x13   : > { %298 = vst [vmem:[%s250_s8 + $0x18] sm:$0xff] %v297_v3 }
  0x14 PF: > { %p1002_p6 = scmp.ge.s32.totalorder %s1274_s22, 1  ;;  %p318_p7 = scmp.lt.s32.totalorder %s1274_s22, 10 }
  0x16   : > { %p319_p8 = pnand %p1002_p6, %p318_p7 }
  0x17   : > { %s325_s9 = sand.u32 (!%p319_p8), 1, %s1258_s18   ;;  %s1004_s10 = sshll.u32 (!%p319_p8), %s1266_s20, 5 }
  0x18   : > { %322 = sbr.rel (%p319_p8) target bundleno = 259 (0x103), region = 74  ;;  %s1003_s11 = sshll.u32 (!%p319_p8), %s325_s9, 5 }
  0x19   : > { %p389_p9 = scmp.lt.s32.totalorder (!%p319_p8), %s1004_s10, 287  ;;  %s1359_s16 = scalar_lea.vmem (!%p319_p8), [#allocation3], %s1003_s11 }
  0x1a   : > { %p1007_p10 = scmp.ne.s32.totalorder (!%p319_p8), %s1266_s20, 0 }
  0x1d   : > { %s1493_s10 = smov (!%p389_p9, %s1004_s10), 287  ;;  %436 = sbr.rel (%p1007_p10) target bundleno = 43 (0x2b), region = 82 }
  0x1e   : > { %s1158_s12 = sshll.u32 %s1493_s10, 3 }
  0x1f   : > { %s1357_s15 = scalar_lea.vmem %s1481_s1, %s1158_s12 }
  0x22   : > { %v1276_v4 = vmov 0.0  }
  0x23   : > { %437 = vst [vmem:[#allocation2 + $0x30] sm:$0xff] %v1276_v4 }
  0x24   : > { %438 = vst [vmem:[#allocation2] sm:$0xff] %v1276_v4 }
  0x25   : > { %439 = vst [vmem:[#allocation2 + $0x18] sm:$0xff] %v1276_v4 }
  0x26   : > { %440 = vst [vmem:[#allocation2 + $0x10] sm:$0xff] %v1276_v4 }
  0x27   : > { %441 = vst [vmem:[#allocation2 + $0x8] sm:$0xff] %v1276_v4 }
  0x28   : > { %442 = vst [vmem:[#allocation2 + $0x20] sm:$0xff] %v1276_v4 }
  0x29   : > { %443 = vst [vmem:[#allocation2 + $0x28] sm:$0xff] %v1276_v4 }
  0x2a   : > { %444 = vst [vmem:[#allocation2 + $0x38] sm:$0xff] %v1276_v4 }
  0x2b PF: > { %v1082_v5 = vld [vmem:[%s1357_s15 + $0x70] sm:$0xf]  ;;  %v1178_v6 = vld [vmem:[%s1357_s15 + $0x74] sm:$0xf0]  ;;  %v1177_v10 = vld [vmem:[%s1357_s15 + $0x74] sm:$0xf] }
  0x2c   : > { %v1146_v7 = vld [vmem:[%s1357_s15 + $0xf0] sm:$0xf]  ;;  %v1083_v8 = vor.u32 %v1178_v6, %v1082_v5  ;;  %v1194_v9 = vld [vmem:[%s1357_s15 + $0xf4] sm:$0xf0]  ;;  %v1084_v11 = vld [vmem:[%s1357_s15 + $0x78] sm:$0xf0] }
  0x2d   : > { %v1147_v12 = vor.u32 %v1194_v9, %v1146_v7  ;;  %v1087_v13 = vor.u32 %v1177_v10, %v1084_v11  ;;  %v1193_v14 = vld [vmem:[%s1357_s15 + $0xf4] sm:$0xf]  ;;  %v1148_v15 = vld [vmem:[%s1357_s15 + $0xf8] sm:$0xf0]  ;;  %v1074_v16 = vld [vmem:[%s1357_s15 + $0x60] sm:$0xf] }
  0x2e   : > { %669 = vmatpush.bf16.msra.mxu0 %v1083_v8  ;;  %v1151_v17 = vor.u32 %v1193_v14, %v1148_v15  ;;  %v1176_v18 = vld [vmem:[%s1357_s15 + $0x64] sm:$0xf0]  ;;  %v1138_v19 = vld [vmem:[%s1357_s15 + $0xe0] sm:$0xf]  ;;  %v1175_v23 = vld [vmem:[%s1357_s15 + $0x64] sm:$0xf] }
  0x2f   : > { %v1192_v20 = vld [vmem:[%s1357_s15 + $0xe4] sm:$0xf0]  ;;  %688 = vmatpush.bf16.msra.mxu1 %v1147_v12  ;;  %707 = vmatpush.bf16.msra.mxu2 %v1087_v13  ;;  %v1075_v21 = vor.u32 %v1176_v18, %v1074_v16  ;;  %v1076_v24 = vld [vmem:[%s1357_s15 + $0x68] sm:$0xf0]  ;;  %v1191_v25 = vld [vmem:[%s1357_s15 + $0xe4] sm:$0xf] }
  0x30   : > { %v1139_v22 = vor.u32 %v1192_v20, %v1138_v19  ;;  %726 = vmatpush.bf16.msra.mxu3 %v1151_v17  ;;  %v1079_v26 = vor.u32 %v1175_v23, %v1076_v24  ;;  %v1140_v27 = vld [vmem:[%s1357_s15 + $0xe8] sm:$0xf0]  ;;  %v1066_v28 = vld [vmem:[%s1357_s15 + $0x50] sm:$0xf]  ;;  %v1174_v29 = vld [vmem:[%s1357_s15 + $0x54] sm:$0xf0] }
  0x31   : > { %v1143_v30 = vor.u32 %v1191_v25, %v1140_v27  ;;  %v1130_v31 = vld [vmem:[%s1357_s15 + $0xd0] sm:$0xf]  ;;  %v1190_v32 = vld [vmem:[%s1357_s15 + $0xd4] sm:$0xf0]  ;;  %v1173_v33 = vld [vmem:[%s1357_s15 + $0x54] sm:$0xf]  ;;  %v1067_v34 = vor.u32 %v1174_v29, %v1066_v28 }
  0x32   : > { %670 = vmatpush.bf16.msra.mxu0 %v1075_v21  ;;  %v1068_v35 = vld [vmem:[%s1357_s15 + $0x58] sm:$0xf0]  ;;  %v1189_v36 = vld [vmem:[%s1357_s15 + $0xd4] sm:$0xf]  ;;  %v1131_v38 = vor.u32 %v1190_v32, %v1130_v31  ;;  %v1058_v40 = vld [vmem:[%s1357_s15 + $0x40] sm:$0xf] }
  0x33   : > { %v1132_v37 = vld [vmem:[%s1357_s15 + $0xd8] sm:$0xf0]  ;;  %689 = vmatpush.bf16.msra.mxu1 %v1139_v22  ;;  %708 = vmatpush.bf16.msra.mxu2 %v1079_v26  ;;  %v1071_v39 = vor.u32 %v1173_v33, %v1068_v35  ;;  %v1172_v41 = vld [vmem:[%s1357_s15 + $0x44] sm:$0xf0]  ;;  %v1122_v42 = vld [vmem:[%s1357_s15 + $0xc0] sm:$0xf] }
  0x34   : > { %727 = vmatpush.bf16.msra.mxu3 %v1143_v30  ;;  %v1135_v43 = vor.u32 %v1189_v36, %v1132_v37  ;;  %v1188_v44 = vld [vmem:[%s1357_s15 + $0xc4] sm:$0xf0]  ;;  %v1171_v45 = vld [vmem:[%s1357_s15 + $0x44] sm:$0xf]  ;;  %v1060_v46 = vld [vmem:[%s1357_s15 + $0x48] sm:$0xf0]  ;;  %v1059_v49 = vor.u32 %v1172_v41, %v1058_v40 }
  0x35   : > { %v1187_v47 = vld [vmem:[%s1357_s15 + $0xc4] sm:$0xf]  ;;  %v1124_v48 = vld [vmem:[%s1357_s15 + $0xc8] sm:$0xf0]  ;;  %v1123_v50 = vor.u32 %v1188_v44, %v1122_v42  ;;  %v1063_v51 = vor.u32 %v1171_v45, %v1060_v46  ;;  %v1050_v52 = vld [vmem:[%s1357_s15 + $0x30] sm:$0xf] }
  0x36   : > { %671 = vmatpush.bf16.msra.mxu0 %v1067_v34  ;;  %v1170_v53 = vld [vmem:[%s1357_s15 + $0x34] sm:$0xf0]  ;;  %v1114_v54 = vld [vmem:[%s1357_s15 + $0xb0] sm:$0xf]  ;;  %v1127_v55 = vor.u32 %v1187_v47, %v1124_v48  ;;  %v1169_v57 = vld [vmem:[%s1357_s15 + $0x34] sm:$0xf] }
  0x37   : > { %690 = vmatpush.bf16.msra.mxu1 %v1131_v38  ;;  %709 = vmatpush.bf16.msra.mxu2 %v1071_v39  ;;  %v1186_v56 = vld [vmem:[%s1357_s15 + $0xb4] sm:$0xf0]  ;;  %v1052_v58 = vld [vmem:[%s1357_s15 + $0x38] sm:$0xf0]  ;;  %v1185_v59 = vld [vmem:[%s1357_s15 + $0xb4] sm:$0xf]  ;;  %v1051_v61 = vor.u32 %v1170_v53, %v1050_v52 }
  0x38   : > { %728 = vmatpush.bf16.msra.mxu3 %v1135_v43  ;;  %v1116_v60 = vld [vmem:[%s1357_s15 + $0xb8] sm:$0xf0]  ;;  %v1115_v62 = vor.u32 %v1186_v56, %v1114_v54  ;;  %v1055_v63 = vor.u32 %v1169_v57, %v1052_v58  ;;  %v1042_v0 = vld [vmem:[%s1357_s15 + $0x20] sm:$0xf]  ;;  %v1168_v1 = vld [vmem:[%s1357_s15 + $0x24] sm:$0xf0] }
  0x39   : > { %v1106_v2 = vld [vmem:[%s1357_s15 + $0xa0] sm:$0xf]  ;;  %v1119_v3 = vor.u32 %v1185_v59, %v1116_v60  ;;  %v1184_v4 = vld [vmem:[%s1357_s15 + $0xa4] sm:$0xf0]  ;;  %v1167_v5 = vld [vmem:[%s1357_s15 + $0x24] sm:$0xf]  ;;  %v1043_v9 = vor.u32 %v1168_v1, %v1042_v0 }
  0x3a   : > { %672 = vmatpush.bf16.msra.mxu0 %v1059_v49  ;;  %v1044_v6 = vld [vmem:[%s1357_s15 + $0x28] sm:$0xf0]  ;;  %v1183_v7 = vld [vmem:[%s1357_s15 + $0xa4] sm:$0xf]  ;;  %v1107_v10 = vor.u32 %v1184_v4, %v1106_v2  ;;  %v1034_v12 = vld [vmem:[%s1357_s15 + $0x10] sm:$0xf] }
  0x3b   : > { %691 = vmatpush.bf16.msra.mxu1 %v1123_v50  ;;  %710 = vmatpush.bf16.msra.mxu2 %v1063_v51  ;;  %v1108_v8 = vld [vmem:[%s1357_s15 + $0xa8] sm:$0xf0]  ;;  %v1047_v11 = vor.u32 %v1167_v5, %v1044_v6  ;;  %v1166_v13 = vld [vmem:[%s1357_s15 + $0x14] sm:$0xf0]  ;;  %v1098_v14 = vld [vmem:[%s1357_s15 + $0x90] sm:$0xf] }
  0x3c   : > { %729 = vmatpush.bf16.msra.mxu3 %v1127_v55  ;;  %v1111_v15 = vor.u32 %v1183_v7, %v1108_v8  ;;  %v1182_v16 = vld [vmem:[%s1357_s15 + $0x94] sm:$0xf0]  ;;  %v1165_v17 = vld [vmem:[%s1357_s15 + $0x14] sm:$0xf]  ;;  %v1036_v18 = vld [vmem:[%s1357_s15 + $0x18] sm:$0xf0]  ;;  %v1035_v21 = vor.u32 %v1166_v13, %v1034_v12 }
  0x3d   : > { %v1181_v19 = vld [vmem:[%s1357_s15 + $0x94] sm:$0xf]  ;;  %v1100_v20 = vld [vmem:[%s1357_s15 + $0x98] sm:$0xf0]  ;;  %v1099_v22 = vor.u32 %v1182_v16, %v1098_v14  ;;  %v1039_v23 = vor.u32 %v1165_v17, %v1036_v18  ;;  %v1026_v24 = vld [vmem:[%s1357_s15] sm:$0xf] }
  0x3e   : > { %673 = vmatpush.bf16.msra.mxu0 %v1051_v61  ;;  %v1164_v25 = vld [vmem:[%s1357_s15 + $0x4] sm:$0xf0]  ;;  %v1090_v26 = vld [vmem:[%s1357_s15 + $0x80] sm:$0xf]  ;;  %v1103_v27 = vor.u32 %v1181_v19, %v1100_v20  ;;  %v1163_v29 = vld [vmem:[%s1357_s15 + $0x4] sm:$0xf] }
  0x3f   : > { %692 = vmatpush.bf16.msra.mxu1 %v1115_v62  ;;  %711 = vmatpush.bf16.msra.mxu2 %v1055_v63  ;;  %v1180_v28 = vld [vmem:[%s1357_s15 + $0x84] sm:$0xf0]  ;;  %v1028_v30 = vld [vmem:[%s1357_s15 + $0x8] sm:$0xf0]  ;;  %v1179_v31 = vld [vmem:[%s1357_s15 + $0x84] sm:$0xf]  ;;  %v1027_v33 = vor.u32 %v1164_v25, %v1026_v24 }
  0x40   : > { %730 = vmatpush.bf16.msra.mxu3 %v1119_v3  ;;  %v1092_v32 = vld [vmem:[%s1357_s15 + $0x88] sm:$0xf0]  ;;  %v1010_v34 = vld [vmem:[%s1359_s16] sm:$0xf]  ;;  %v1160_v35 = vld [vmem:[%s1359_s16 + $0x4] sm:$0xf0]  ;;  %v1091_v36 = vor.u32 %v1180_v28, %v1090_v26  ;;  %v1031_v37 = vor.u32 %v1163_v29, %v1028_v30 }
  0x41   : > { %v1159_v38 = vld [vmem:[%s1359_s16 + $0x4] sm:$0xf]  ;;  %v1012_v39 = vld [vmem:[%s1359_s16 + $0x8] sm:$0xf0]  ;;  %v1095_v40 = vor.u32 %v1179_v31, %v1092_v32  ;;  %v1011_v41 = vor.u32 %v1160_v35, %v1010_v34  ;;  %v1018_v43 = vld [vmem:[%s1359_s16 + $0x10] sm:$0xf] }
  0x42   : > { %674 = vmatpush.bf16.msra.mxu0 %v1043_v9  ;;  %v1015_v42 = vor.u32 %v1159_v38, %v1012_v39  ;;  %v1162_v44 = vld [vmem:[%s1359_s16 + $0x14] sm:$0xf0]  ;;  %v1161_v45 = vld [vmem:[%s1359_s16 + $0x14] sm:$0xf]  ;;  %v1020_v46 = vld [vmem:[%s1359_s16 + $0x18] sm:$0xf0] }
  0x43   : > { %693 = vmatpush.bf16.msra.mxu1 %v1107_v10  ;;  %712 = vmatpush.bf16.msra.mxu2 %v1047_v11  ;;  %v1019_v47 = vor.u32 %v1162_v44, %v1018_v43  ;;  %v1023_v48 = vor.u32 %v1161_v45, %v1020_v46  ;;  %v445_v50 = vld [vmem:[#allocation2 + $0x30] sm:$0xff]  ;;  %v446_v55 = vld [vmem:[#allocation2] sm:$0xff]  ;;  %v447_v59 = vld [vmem:[#allocation2 + $0x18] sm:$0xff]  ;;  %p1152_p11 = scmp.ne.s32.totalorder %s1266_s20, 8 }
  0x44   : > { %731 = vmatpush.bf16.msra.mxu3 %v1111_v15  ;;  %v448_v1 = vld [vmem:[#allocation2 + $0x10] sm:$0xff]  ;;  %v449_v5 = vld [vmem:[#allocation2 + $0x8] sm:$0xff]  ;;  %v450_v11 = vld [vmem:[#allocation2 + $0x20] sm:$0xff] }
  0x45   : > { %v451_v15 = vld [vmem:[#allocation2 + $0x28] sm:$0xff] }
  0x46   : > { %675 = vmatpush.bf16.msra.mxu0 %v1035_v21  ;;  %v452_v21 = vld [vmem:[#allocation2 + $0x38] sm:$0xff] }
  0x47   : > { %694 = vmatpush.bf16.msra.mxu1 %v1099_v22  ;;  %713 = vmatpush.bf16.msra.mxu2 %v1039_v23 }
  0x48   : > { %732 = vmatpush.bf16.msra.mxu3 %v1103_v27 }
  0x4a   : > { %676 = vmatpush.bf16.msra.mxu0 %v1027_v33 }
  0x4b   : > { %695 = vmatpush.bf16.msra.mxu1 %v1091_v36  ;;  %714 = vmatpush.bf16.msra.mxu2 %v1031_v37 }
  0x4c   : > { %733 = vmatpush.bf16.msra.mxu3 %v1095_v40 }
  0x4d   : > { %677 = vmatmul.bf16.vlgmr.msra.gmra.mxu0 %v1011_v41 }
  0x4e   : > { %696 = vmatmul.bf16.vlgmr.msra.gmra.mxu1 %v1015_v42  ;;  %715 = vmatmul.bf16.vlgmr.msra.gmra.mxu2 %v1011_v41 }
  0x4f   : > { %734 = vmatmul.bf16.vlgmr.msra.gmra.mxu3 %v1015_v42 }
  0x5d   : > { %682 = vmatmul.bf16.gmra.mxu0 %v1019_v47 }
  0x5e   : > { %701 = vmatmul.bf16.gmra.mxu1 %v1023_v48  ;;  %720 = vmatmul.bf16.gmra.mxu2 %v1019_v47 }
  0x5f   : > { %739 = vmatmul.bf16.gmra.mxu3 %v1023_v48 }
  0xca   : > { %v678_v49 = vpop.f32.mrf.mxu0 }
  0xcb   : > { %v697_v51 = vpop.f32.mrf.mxu1 }
  0xcc   : > { %v698_v52 = vadd.f32 %v697_v51, %v678_v49 }
  0xce   : > { %v745_v53 = vadd.f32 %v698_v52, %v445_v50 }
  0xd0   : > { %753 = vst [vmem:[#allocation2 + $0x30] sm:$0xff] %v745_v53 }
  0xd1   : > { %v716_v54 = vpop.f32.mrf.mxu2 }
  0xd2   : > { %v735_v56 = vpop.f32.mrf.mxu3  ;;  %v680_v57 = vpop.f32.mrf.mxu0 }
  0xd3   : > { %v736_v58 = vadd.f32 %v735_v56, %v716_v54  ;;  %v699_v60 = vpop.f32.mrf.mxu1 }
  0xd4   : > { %v700_v61 = vadd.f32 %v699_v60, %v680_v57 }
  0xd5   : > { %v746_v62 = vadd.f32 %v736_v58, %v446_v55 }
  0xd6   : > { %v747_v63 = vadd.f32 %v700_v61, %v447_v59 }
  0xd7   : > { %754 = vst [vmem:[#allocation2] sm:$0xff] %v746_v62 }
  0xd8   : > { %755 = vst [vmem:[#allocation2 + $0x18] sm:$0xff] %v747_v63 }
  0xd9   : > { %v718_v0 = vpop.f32.mrf.mxu2 }
  0xda   : > { %v737_v2 = vpop.f32.mrf.mxu3  ;;  %v683_v3 = vpop.f32.mrf.mxu0 }
  0xdb   : > { %v738_v4 = vadd.f32 %v737_v2, %v718_v0  ;;  %v702_v6 = vpop.f32.mrf.mxu1 }
  0xdc   : > { %v703_v7 = vadd.f32 %v702_v6, %v683_v3 }
  0xdd   : > { %v748_v8 = vadd.f32 %v738_v4, %v448_v1 }
  0xde   : > { %v749_v9 = vadd.f32 %v703_v7, %v449_v5 }
  0xdf   : > { %756 = vst [vmem:[#allocation2 + $0x10] sm:$0xff] %v748_v8 }
  0xe0   : > { %757 = vst [vmem:[#allocation2 + $0x8] sm:$0xff] %v749_v9 }
  0xe1   : > { %v721_v10 = vpop.f32.mrf.mxu2 }
  0xe2   : > { %v740_v12 = vpop.f32.mrf.mxu3  ;;  %v685_v13 = vpop.f32.mrf.mxu0 }
  0xe3   : > { %v741_v14 = vadd.f32 %v740_v12, %v721_v10  ;;  %v704_v16 = vpop.f32.mrf.mxu1 }
  0xe4   : > { %v705_v17 = vadd.f32 %v704_v16, %v685_v13 }
  0xe5   : > { %v750_v18 = vadd.f32 %v741_v14, %v450_v11 }
  0xe6   : > { %v751_v19 = vadd.f32 %v705_v17, %v451_v15 }
  0xe7   : > { %758 = vst [vmem:[#allocation2 + $0x20] sm:$0xff] %v750_v18 }
  0xe8   : > { %759 = vst [vmem:[#allocation2 + $0x28] sm:$0xff] %v751_v19 }
  0xe9   : > { %v723_v20 = vpop.f32.mrf.mxu2 }
  0xea   : > { %v742_v22 = vpop.f32.mrf.mxu3 }
  0xeb   : > { %v743_v23 = vadd.f32 %v742_v22, %v723_v20  ;;  %764 = sbr.rel (%p1152_p11) target bundleno = 259 (0x103), region = 86 }
  0xed   : > { %v752_v24 = vadd.f32 %v743_v23, %v452_v21 }
  0xef   : > { %760 = vst [vmem:[#allocation2 + $0x38] sm:$0xff] %v752_v24 }
  0xf0   : > { %v765_v25 = vld [vmem:[#allocation2 + $0x30] sm:$0xff]  ;;  %v766_v26 = vld [vmem:[#allocation2] sm:$0xff]  ;;  %v767_v32 = vld [vmem:[#allocation2 + $0x18] sm:$0xff] }
  0xf1   : > { %v773_v27 = vld [vmem:[%s1482_s2] sm:$0x3]  ;;  %v768_v37 = vld [vmem:[#allocation2 + $0x10] sm:$0xff]  ;;  %v802_v38 = vld [vmem:[%s1484_s4 + $0x8] sm:$0xff] }
  0xf2   : > { %v775_v28 = vperm.slane %v773_v27, 0  ;;  %v776_v29 = vperm.slane %v773_v27, 1  ;;  %v787_v30 = vld [vmem:[%s1483_s3] sm:$0x3]  ;;  %v769_v39 = vld [vmem:[#allocation2 + $0x8] sm:$0xff]  ;;  %v803_v45 = vld [vmem:[%s1484_s4 + $0x10] sm:$0xff]  ;;  %v807_v46 = vunpack.c.l.bf16 %v802_v38  ;;  %v808_v47 = vunpack.c.h.bf16 %v802_v38 }
  0xf3   : > { %v801_v31 = vld [vmem:[%s1484_s4] sm:$0xff]  ;;  %v789_v33 = vperm.slane %v787_v30, 0  ;;  %v790_v34 = vperm.slane %v787_v30, 1  ;;  %v771_v54 = vld [vmem:[#allocation2 + $0x28] sm:$0xff]  ;;  %v809_v58 = vunpack.c.l.bf16 %v803_v45  ;;  %v810_v59 = vunpack.c.h.bf16 %v803_v45  ;;  %v804_v4 = vld [vmem:[%s1484_s4 + $0x18] sm:$0xff] }
  0xf4   : > { %v805_v35 = vunpack.c.l.bf16 %v801_v31  ;;  %v806_v36 = vunpack.c.h.bf16 %v801_v31  ;;  %v779_v40 = vmul.f32 %v775_v28, %v765_v25  ;;  %v780_v41 = vmul.f32 %v776_v29, %v766_v26  ;;  %v770_v44 = vld [vmem:[#allocation2 + $0x20] sm:$0xff] }
  0xf5   : > { %v781_v42 = vmul.f32 %v775_v28, %v767_v32  ;;  %v782_v43 = vmul.f32 %v776_v29, %v768_v37  ;;  %v783_v48 = vmul.f32 %v775_v28, %v769_v39  ;;  %v784_v49 = vmul.f32 %v776_v29, %v770_v44 }
  0xf6   : > { %v793_v50 = vadd.f32 %v789_v33, %v779_v40  ;;  %v794_v51 = vadd.f32 %v790_v34, %v780_v41  ;;  %v772_v55 = vld [vmem:[#allocation2 + $0x38] sm:$0xff]  ;;  %v785_v2 = vmul.f32 %v775_v28, %v771_v54  ;;  %v811_v15 = vunpack.c.l.bf16 %v804_v4 }
  0xf7   : > { %v795_v52 = vadd.f32 %v789_v33, %v781_v42  ;;  %v796_v53 = vadd.f32 %v790_v34, %v782_v43  ;;  %v797_v56 = vadd.f32 %v789_v33, %v783_v48  ;;  %v798_v57 = vadd.f32 %v790_v34, %v784_v49 }
  0xf8   : > { %v813_v60 = vadd.f32 %v805_v35, %v793_v50  ;;  %v814_v61 = vadd.f32 %v806_v36, %v794_v51  ;;  %v786_v3 = vmul.f32 %v776_v29, %v772_v55  ;;  %v799_v11 = vadd.f32 %v789_v33, %v785_v2 }
  0xf9   : > { %v815_v62 = vadd.f32 %v807_v46, %v795_v52  ;;  %v816_v63 = vadd.f32 %v808_v47, %v796_v53  ;;  %v817_v0 = vadd.f32 %v809_v58, %v797_v56  ;;  %v818_v1 = vadd.f32 %v810_v59, %v798_v57 }
  0xfa   : > { %v821_v5 = vmax.f32 %v813_v60, 0.0  ;;  %v822_v6 = vmax.f32 %v814_v61, 0.0  ;;  %v800_v12 = vadd.f32 %v790_v34, %v786_v3  ;;  %v812_v16 = vunpack.c.h.bf16 %v804_v4 }
  0xfb   : > { %v823_v7 = vmax.f32 %v815_v62, 0.0  ;;  %v824_v8 = vmax.f32 %v816_v63, 0.0  ;;  %v825_v9 = vmax.f32 %v817_v0, 0.0  ;;  %v826_v10 = vmax.f32 %v818_v1, 0.0 }
  0xfc   : > { %v829_v13 = vpack.c.bf16 %v822_v6, %v821_v5  ;;  %v819_v18 = vadd.f32 %v811_v15, %v799_v11  ;;  %v820_v19 = vadd.f32 %v812_v16, %v800_v12 }
  0xfd   : > { %v830_v14 = vpack.c.bf16 %v824_v8, %v823_v7  ;;  %v831_v17 = vpack.c.bf16 %v826_v10, %v825_v9 }
  0xfe   : > { %833 = vst [vmem:[%s1485_s5] sm:$0xff] %v829_v13  ;;  %v827_v20 = vmax.f32 %v819_v18, 0.0  ;;  %v828_v21 = vmax.f32 %v820_v19, 0.0 }
  0xff   : > { %834 = vst [vmem:[%s1485_s5 + $0x8] sm:$0xff] %v830_v14 }
 0x100   : > { %835 = vst [vmem:[%s1485_s5 + $0x10] sm:$0xff] %v831_v17  ;;  %v832_v22 = vpack.c.bf16 %v828_v21, %v827_v20 }
 0x102   : > { %836 = vst [vmem:[%s1485_s5 + $0x18] sm:$0xff] %v832_v22 }
 0x103 PF: > { %s15_s22 = sadd.s32 1, %s1274_s22   ;;  %s1486_s18 = smov %s1262_s19 }
 0x104   : > { %p12_p12 = scmp.ge.s32.totalorder %s15_s22, 11   ;;  %s1487_s19 = smov %s1342_s26 }
 0x105   : > { %s1488_s20 = smov %s1270_s21  ;;  %s1489_s21 = smov %s1491_s23 }
 0x106   :  { %14 = sbr.rel (!%p12_p12) target bundleno = 3 (0x3), region = 133 }

// kernel: custom_resnet18_forward.22
= control target key start
LH: loop header
LB: loop body
LE: loop exit
PB: predicated region body
PF: predicated region fallthrough
CT: control target
= control target key end

     0   :  { %s1212_s15 = smov 0   ;;  %s1214_s16 = smov 0   ;;  %s1467_s0 = inlined_call_operand.vmem [shape: bf16[8,2304], index: 0, kind: input, shape index: {}]   ;;  %s1468_s1 = inlined_call_operand.vmem [shape: bf16[2304,512], index: 1, kind: input, shape index: {}]   ;;  %s1469_s2 = inlined_call_operand.vmem [shape: f32[1,512], index: 2, kind: input, shape index: {}]   ;;  %s1470_s3 = inlined_call_operand.vmem [shape: f32[1,512], index: 3, kind: input, shape index: {}]   ;;  %s1471_s4 = inlined_call_operand.vmem [shape: bf16[8,512], index: 4, kind: output, shape index: {}]  }
   0x1   :  { %s1216_s17 = smov 0   ;;  %s1218_s18 = smov 0  }
   0x2   :  { %s1220_s19 = smov 0   ;;  %s1222_s20 = smov 0  }
   0x3   :  { %s1224_s21 = smov 0  }
   0x4 LB: > { %s26_s22 = sadd.s32 1, %s1176_s19  ;;  %s29_s23 = sadd.s32 1, %s1180_s20  ;;  %s1184_s21 = sphi %s1224_s21, %s14_s21   ;;  %s1180_s20 = sphi %s1222_s20, %s1477_s20   ;;  %s1176_s19 = sphi %s1220_s19, %s1476_s19   ;;  %s1172_s18 = sphi %s1218_s18, %s1475_s18   ;;  %s1168_s17 = sphi %s1216_s17, %s1474_s17   ;;  %s1164_s16 = sphi %s1214_s16, %s1473_s16   ;;  %s1160_s15 = sphi %s1212_s15, %s1472_s15  }
   0x5   : > { %p27_p0 = scmp.ge.s32.totalorder %s26_s22, 9  ;;  %p77_p1 = scmp.ne.s32.totalorder %s1164_s16, %s1160_s15 }
   0x6   : > { %p78_p2 = scmp.eq.s32.totalorder %s1184_s21, 0  ;;  %s70_s27 = sadd.s32 1, %s1164_s16 }
   0x7   : > { %s1479_s22 = smov (%p27_p0, %s26_s22), 0  ;;  %s1481_s23 = smov (!%p27_p0, %s29_s23), %s1180_s20 }
   0x8   : > { %p79_p3 = por %p78_p2, %p77_p1  ;;  %p31_p4 = scmp.ge.s32.totalorder %s1481_s23, 2 }
   0x9   : > { %s65_s24 = ssub.s32 %s1176_s19, %s1479_s22  ;;  %p894_p6 = scmp.ge.s32.totalorder %s1184_s21, 18 }
   0xa   : > { %s1483_s23 = smov (%p31_p4, %s1481_s23), 0 }
   0xb   : > { %s66_s25 = ssub.s32 %s1180_s20, %s1483_s23  ;;  %183 = sbr.rel (%p894_p6) target bundleno = 55 (0x37), region = 16 }
   0xc   : > { %s67_s26 = sor.u32 %s66_s25, %s65_s24 }
   0xd   : > { %p68_p5 = scmp.eq.s32.totalorder %s67_s26, 0 }
   0xf   : > { %s1263_s28 = scalar_select %p68_p5, %s1164_s16, %s70_s27  }
  0x10   : > { %199 = sbr.rel (!%p79_p3) target bundleno = 55 (0x37), region = 24  ;;  %s201_s29 = sand.u32 (%p79_p3), 1, %s1164_s16  }
  0x11   : > { %s897_s30 = sshll.u32 (%p79_p3), %s1180_s20, 1  ;;  %s895_s5 = sshll.u32 (%p79_p3), %s201_s29, 8 }
  0x12   : > { %s1040_s6 = sshll.u32 (%p79_p3), %s1176_s19, 7  ;;  %s1277_s12 = scalar_lea.vmem (%p79_p3), [#allocation3], %s895_s5 }
  0x13   : > { %s207_s7 = sadd.s32 (%p79_p3), %s1040_s6, %s897_s30 }
  0x14   : > { %s899_s8 = sshll.u32 (%p79_p3), %s207_s7, 2 }
  0x15   : > { %s1272_s11 = scalar_lea.vmem %s1468_s1, %s899_s8 }
  0x16   : > { %v300_v0 = vld [vmem:[%s1272_s11] sm:$0xff]  ;;  %v302_v1 = vld [vmem:[%s1272_s11 + $0x10] sm:$0xff] }
  0x17   : > { %v304_v2 = vld [vmem:[%s1272_s11 + $0x20] sm:$0xff]  ;;  %301 = vst [vmem:[%s1277_s12] sm:$0xff] %v300_v0  ;;  %v306_v3 = vld [vmem:[%s1272_s11 + $0x30] sm:$0xff] }
  0x18   : > { %303 = vst [vmem:[%s1277_s12 + $0x8] sm:$0xff] %v302_v1  ;;  %v308_v4 = vld [vmem:[%s1272_s11 + $0x40] sm:$0xff]  ;;  %v310_v5 = vld [vmem:[%s1272_s11 + $0x50] sm:$0xff] }
  0x19   : > { %305 = vst [vmem:[%s1277_s12 + $0x10] sm:$0xff] %v304_v2  ;;  %v312_v6 = vld [vmem:[%s1272_s11 + $0x60] sm:$0xff]  ;;  %v314_v7 = vld [vmem:[%s1272_s11 + $0x70] sm:$0xff] }
  0x1a   : > { %307 = vst [vmem:[%s1277_s12 + $0x18] sm:$0xff] %v306_v3  ;;  %v316_v8 = vld [vmem:[%s1272_s11 + $0x80] sm:$0xff]  ;;  %v318_v9 = vld [vmem:[%s1272_s11 + $0x90] sm:$0xff] }
  0x1b   : > { %309 = vst [vmem:[%s1277_s12 + $0x20] sm:$0xff] %v308_v4  ;;  %v320_v10 = vld [vmem:[%s1272_s11 + $0xa0] sm:$0xff]  ;;  %v322_v11 = vld [vmem:[%s1272_s11 + $0xb0] sm:$0xff] }
  0x1c   : > { %311 = vst [vmem:[%s1277_s12 + $0x28] sm:$0xff] %v310_v5  ;;  %v324_v12 = vld [vmem:[%s1272_s11 + $0xc0] sm:$0xff]  ;;  %v326_v13 = vld [vmem:[%s1272_s11 + $0xd0] sm:$0xff] }
  0x1d   : > { %313 = vst [vmem:[%s1277_s12 + $0x30] sm:$0xff] %v312_v6  ;;  %v328_v14 = vld [vmem:[%s1272_s11 + $0xe0] sm:$0xff]  ;;  %v330_v15 = vld [vmem:[%s1272_s11 + $0xf0] sm:$0xff] }
  0x1e   : > { %315 = vst [vmem:[%s1277_s12 + $0x38] sm:$0xff] %v314_v7  ;;  %v332_v16 = vld [vmem:[%s1272_s11 + $0x100] sm:$0xff]  ;;  %v334_v17 = vld [vmem:[%s1272_s11 + $0x110] sm:$0xff] }
  0x1f   : > { %317 = vst [vmem:[%s1277_s12 + $0x40] sm:$0xff] %v316_v8  ;;  %v336_v18 = vld [vmem:[%s1272_s11 + $0x120] sm:$0xff]  ;;  %v338_v19 = vld [vmem:[%s1272_s11 + $0x130] sm:$0xff] }
  0x20   : > { %319 = vst [vmem:[%s1277_s12 + $0x48] sm:$0xff] %v318_v9  ;;  %v340_v20 = vld [vmem:[%s1272_s11 + $0x140] sm:$0xff]  ;;  %v342_v21 = vld [vmem:[%s1272_s11 + $0x150] sm:$0xff] }
  0x21   : > { %321 = vst [vmem:[%s1277_s12 + $0x50] sm:$0xff] %v320_v10  ;;  %v344_v22 = vld [vmem:[%s1272_s11 + $0x160] sm:$0xff]  ;;  %v346_v23 = vld [vmem:[%s1272_s11 + $0x170] sm:$0xff] }
  0x22   : > { %323 = vst [vmem:[%s1277_s12 + $0x58] sm:$0xff] %v322_v11  ;;  %v348_v24 = vld [vmem:[%s1272_s11 + $0x180] sm:$0xff]  ;;  %v350_v25 = vld [vmem:[%s1272_s11 + $0x190] sm:$0xff] }
  0x23   : > { %325 = vst [vmem:[%s1277_s12 + $0x60] sm:$0xff] %v324_v12  ;;  %v352_v26 = vld [vmem:[%s1272_s11 + $0x1a0] sm:$0xff]  ;;  %v354_v27 = vld [vmem:[%s1272_s11 + $0x1b0] sm:$0xff] }
  0x24   : > { %327 = vst [vmem:[%s1277_s12 + $0x68] sm:$0xff] %v326_v13  ;;  %v356_v28 = vld [vmem:[%s1272_s11 + $0x1c0] sm:$0xff]  ;;  %v358_v29 = vld [vmem:[%s1272_s11 + $0x1d0] sm:$0xff] }
  0x25   : > { %329 = vst [vmem:[%s1277_s12 + $0x70] sm:$0xff] %v328_v14  ;;  %v360_v30 = vld [vmem:[%s1272_s11 + $0x1e0] sm:$0xff]  ;;  %v362_v31 = vld [vmem:[%s1272_s11 + $0x1f0] sm:$0xff] }
  0x26   : > { %331 = vst [vmem:[%s1277_s12 + $0x78] sm:$0xff] %v330_v15 }
  0x27   : > { %333 = vst [vmem:[%s1277_s12 + $0x80] sm:$0xff] %v332_v16 }
  0x28   : > { %335 = vst [vmem:[%s1277_s12 + $0x88] sm:$0xff] %v334_v17 }
  0x29   : > { %337 = vst [vmem:[%s1277_s12 + $0x90] sm:$0xff] %v336_v18 }
  0x2a   : > { %339 = vst [vmem:[%s1277_s12 + $0x98] sm:$0xff] %v338_v19 }
  0x2b   : > { %341 = vst [vmem:[%s1277_s12 + $0xa0] sm:$0xff] %v340_v20 }
  0x2c   : > { %343 = vst [vmem:[%s1277_s12 + $0xa8] sm:$0xff] %v342_v21 }
  0x2d   : > { %345 = vst [vmem:[%s1277_s12 + $0xb0] sm:$0xff] %v344_v22 }
  0x2e   : > { %347 = vst [vmem:[%s1277_s12 + $0xb8] sm:$0xff] %v346_v23 }
  0x2f   : > { %349 = vst [vmem:[%s1277_s12 + $0xc0] sm:$0xff] %v348_v24 }
  0x30   : > { %351 = vst [vmem:[%s1277_s12 + $0xc8] sm:$0xff] %v350_v25 }
  0x31   : > { %353 = vst [vmem:[%s1277_s12 + $0xd0] sm:$0xff] %v352_v26 }
  0x32   : > { %355 = vst [vmem:[%s1277_s12 + $0xd8] sm:$0xff] %v354_v27 }
  0x33   : > { %357 = vst [vmem:[%s1277_s12 + $0xe0] sm:$0xff] %v356_v28 }
  0x34   : > { %359 = vst [vmem:[%s1277_s12 + $0xe8] sm:$0xff] %v358_v29 }
  0x35   : > { %361 = vst [vmem:[%s1277_s12 + $0xf0] sm:$0xff] %v360_v30 }
  0x36   : > { %363 = vst [vmem:[%s1277_s12 + $0xf8] sm:$0xff] %v362_v31 }
  0x37 PF: > { %p900_p7 = scmp.ge.s32.totalorder %s1184_s21, 1  ;;  %p384_p8 = scmp.lt.s32.totalorder %s1184_s21, 19 }
  0x39   : > { %p385_p9 = pnand %p900_p7, %p384_p8 }
  0x3a   : > { %s391_s13 = sand.u32 (!%p385_p9), 1, %s1160_s15   ;;  %s902_s14 = sshll.u32 (!%p385_p9), %s1168_s17, 1 }
  0x3b   : > { %388 = sbr.rel (%p385_p9) target bundleno = 264 (0x108), region = 70  ;;  %s901_s24 = sshll.u32 (!%p385_p9), %s391_s13, 8 }
  0x3c   : > { %p440_p10 = scmp.lt.s32.totalorder (!%p385_p9), %s902_s14, 17  ;;  %s904_s25 = sshll.u32 (!%p385_p9), %s1172_s18, 1 }
  0x3d   : > { %p450_p11 = scmp.lt.s32.totalorder (!%p385_p9), %s904_s25, 3  ;;  %s1366_s13 = scalar_lea.vmem (!%p385_p9), [#allocation3], %s901_s24 }
  0x3e   : > { %p908_p12 = scmp.ne.s32.totalorder (!%p385_p9), %s1168_s17, 0 }
  0x40   : > { %s1485_s14 = smov (!%p440_p10, %s902_s14), 17  ;;  %s1487_s25 = smov (!%p450_p11, %s904_s25), 3 }
  0x41   : > { %s903_s26 = sshll.u32 %s1485_s14, 2  ;;  %s452_s15 = scalar_lea.vmem %s1469_s2, %s1487_s25 }
  0x42   : > { %s1348_s30 = scalar_lea.vmem %s1467_s0, %s903_s26  ;;  %s457_s18 = scalar_lea.vmem %s1470_s3, %s1487_s25 }
  0x43   : > { %s907_s9 = sshll.u32 %s1487_s25, 2  ;;  %472 = sbr.rel (%p908_p12) target bundleno = 75 (0x4b), region = 78 }
  0x44   : > { %s1364_s12 = scalar_lea.vmem %s1471_s4, %s907_s9 }
  0x48   : > { %v1186_v32 = vmov 0.0  }
  0x49   : > { %473 = vst [vmem:[#allocation2] sm:$0xff] %v1186_v32 }
  0x4a   : > { %474 = vst [vmem:[#allocation2 + $0x8] sm:$0xff] %v1186_v32 }
  0x4b PF: > { %v967_v33 = vld [vmem:[%s1366_s13 + $0x70] sm:$0xf]  ;;  %v1056_v34 = vld [vmem:[%s1366_s13 + $0x74] sm:$0xf0]  ;;  %v1055_v38 = vld [vmem:[%s1366_s13 + $0x74] sm:$0xf] }
  0x4c   : > { %v1031_v35 = vld [vmem:[%s1366_s13 + $0xf0] sm:$0xf]  ;;  %v968_v36 = vor.u32 %v1056_v34, %v967_v33  ;;  %v1072_v37 = vld [vmem:[%s1366_s13 + $0xf4] sm:$0xf0]  ;;  %v969_v39 = vld [vmem:[%s1366_s13 + $0x78] sm:$0xf0] }
  0x4d   : > { %v1032_v40 = vor.u32 %v1072_v37, %v1031_v35  ;;  %v972_v41 = vor.u32 %v1055_v38, %v969_v39  ;;  %v1071_v42 = vld [vmem:[%s1366_s13 + $0xf4] sm:$0xf]  ;;  %v1033_v43 = vld [vmem:[%s1366_s13 + $0xf8] sm:$0xf0]  ;;  %v959_v44 = vld [vmem:[%s1366_s13 + $0x60] sm:$0xf] }
  0x4e   : > { %677 = vmatpush.bf16.msra.mxu0 %v968_v36  ;;  %v1036_v45 = vor.u32 %v1071_v42, %v1033_v43  ;;  %v1054_v46 = vld [vmem:[%s1366_s13 + $0x64] sm:$0xf0]  ;;  %v1023_v47 = vld [vmem:[%s1366_s13 + $0xe0] sm:$0xf]  ;;  %v1053_v51 = vld [vmem:[%s1366_s13 + $0x64] sm:$0xf] }
  0x4f   : > { %v1070_v48 = vld [vmem:[%s1366_s13 + $0xe4] sm:$0xf0]  ;;  %690 = vmatpush.bf16.msra.mxu1 %v1032_v40  ;;  %703 = vmatpush.bf16.msra.mxu2 %v972_v41  ;;  %v960_v49 = vor.u32 %v1054_v46, %v959_v44  ;;  %v961_v52 = vld [vmem:[%s1366_s13 + $0x68] sm:$0xf0]  ;;  %v1069_v53 = vld [vmem:[%s1366_s13 + $0xe4] sm:$0xf] }
  0x50   : > { %v1024_v50 = vor.u32 %v1070_v48, %v1023_v47  ;;  %716 = vmatpush.bf16.msra.mxu3 %v1036_v45  ;;  %v964_v54 = vor.u32 %v1053_v51, %v961_v52  ;;  %v1025_v55 = vld [vmem:[%s1366_s13 + $0xe8] sm:$0xf0]  ;;  %v951_v56 = vld [vmem:[%s1366_s13 + $0x50] sm:$0xf]  ;;  %v1052_v57 = vld [vmem:[%s1366_s13 + $0x54] sm:$0xf0] }
  0x51   : > { %v1028_v58 = vor.u32 %v1069_v53, %v1025_v55  ;;  %v1015_v59 = vld [vmem:[%s1366_s13 + $0xd0] sm:$0xf]  ;;  %v1068_v60 = vld [vmem:[%s1366_s13 + $0xd4] sm:$0xf0]  ;;  %v1051_v61 = vld [vmem:[%s1366_s13 + $0x54] sm:$0xf]  ;;  %v952_v62 = vor.u32 %v1052_v57, %v951_v56 }
  0x52   : > { %678 = vmatpush.bf16.msra.mxu0 %v960_v49  ;;  %v953_v63 = vld [vmem:[%s1366_s13 + $0x58] sm:$0xf0]  ;;  %v1067_v0 = vld [vmem:[%s1366_s13 + $0xd4] sm:$0xf]  ;;  %v1016_v2 = vor.u32 %v1068_v60, %v1015_v59  ;;  %v943_v4 = vld [vmem:[%s1366_s13 + $0x40] sm:$0xf] }
  0x53   : > { %v1017_v1 = vld [vmem:[%s1366_s13 + $0xd8] sm:$0xf0]  ;;  %691 = vmatpush.bf16.msra.mxu1 %v1024_v50  ;;  %704 = vmatpush.bf16.msra.mxu2 %v964_v54  ;;  %v956_v3 = vor.u32 %v1051_v61, %v953_v63  ;;  %v1050_v5 = vld [vmem:[%s1366_s13 + $0x44] sm:$0xf0]  ;;  %v1007_v6 = vld [vmem:[%s1366_s13 + $0xc0] sm:$0xf] }
  0x54   : > { %717 = vmatpush.bf16.msra.mxu3 %v1028_v58  ;;  %v1020_v7 = vor.u32 %v1067_v0, %v1017_v1  ;;  %v1066_v8 = vld [vmem:[%s1366_s13 + $0xc4] sm:$0xf0]  ;;  %v1049_v9 = vld [vmem:[%s1366_s13 + $0x44] sm:$0xf]  ;;  %v945_v10 = vld [vmem:[%s1366_s13 + $0x48] sm:$0xf0]  ;;  %v944_v13 = vor.u32 %v1050_v5, %v943_v4 }
  0x55   : > { %v1065_v11 = vld [vmem:[%s1366_s13 + $0xc4] sm:$0xf]  ;;  %v1009_v12 = vld [vmem:[%s1366_s13 + $0xc8] sm:$0xf0]  ;;  %v1008_v14 = vor.u32 %v1066_v8, %v1007_v6  ;;  %v948_v15 = vor.u32 %v1049_v9, %v945_v10  ;;  %v935_v16 = vld [vmem:[%s1366_s13 + $0x30] sm:$0xf] }
  0x56   : > { %679 = vmatpush.bf16.msra.mxu0 %v952_v62  ;;  %v1048_v17 = vld [vmem:[%s1366_s13 + $0x34] sm:$0xf0]  ;;  %v999_v18 = vld [vmem:[%s1366_s13 + $0xb0] sm:$0xf]  ;;  %v1012_v19 = vor.u32 %v1065_v11, %v1009_v12  ;;  %v1047_v21 = vld [vmem:[%s1366_s13 + $0x34] sm:$0xf] }
  0x57   : > { %692 = vmatpush.bf16.msra.mxu1 %v1016_v2  ;;  %705 = vmatpush.bf16.msra.mxu2 %v956_v3  ;;  %v1064_v20 = vld [vmem:[%s1366_s13 + $0xb4] sm:$0xf0]  ;;  %v937_v22 = vld [vmem:[%s1366_s13 + $0x38] sm:$0xf0]  ;;  %v1063_v23 = vld [vmem:[%s1366_s13 + $0xb4] sm:$0xf]  ;;  %v936_v25 = vor.u32 %v1048_v17, %v935_v16 }
  0x58   : > { %718 = vmatpush.bf16.msra.mxu3 %v1020_v7  ;;  %v1001_v24 = vld [vmem:[%s1366_s13 + $0xb8] sm:$0xf0]  ;;  %v1000_v26 = vor.u32 %v1064_v20, %v999_v18  ;;  %v940_v27 = vor.u32 %v1047_v21, %v937_v22  ;;  %v927_v28 = vld [vmem:[%s1366_s13 + $0x20] sm:$0xf]  ;;  %v1046_v29 = vld [vmem:[%s1366_s13 + $0x24] sm:$0xf0] }
  0x59   : > { %v991_v30 = vld [vmem:[%s1366_s13 + $0xa0] sm:$0xf]  ;;  %v1004_v31 = vor.u32 %v1063_v23, %v1001_v24  ;;  %v1062_v32 = vld [vmem:[%s1366_s13 + $0xa4] sm:$0xf0]  ;;  %v1045_v33 = vld [vmem:[%s1366_s13 + $0x24] sm:$0xf]  ;;  %v928_v37 = vor.u32 %v1046_v29, %v927_v28 }
  0x5a   : > { %680 = vmatpush.bf16.msra.mxu0 %v944_v13  ;;  %v929_v34 = vld [vmem:[%s1366_s13 + $0x28] sm:$0xf0]  ;;  %v1061_v35 = vld [vmem:[%s1366_s13 + $0xa4] sm:$0xf]  ;;  %v992_v38 = vor.u32 %v1062_v32, %v991_v30  ;;  %v919_v40 = vld [vmem:[%s1366_s13 + $0x10] sm:$0xf] }
  0x5b   : > { %693 = vmatpush.bf16.msra.mxu1 %v1008_v14  ;;  %706 = vmatpush.bf16.msra.mxu2 %v948_v15  ;;  %v993_v36 = vld [vmem:[%s1366_s13 + $0xa8] sm:$0xf0]  ;;  %v932_v39 = vor.u32 %v1045_v33, %v929_v34  ;;  %v1044_v41 = vld [vmem:[%s1366_s13 + $0x14] sm:$0xf0]  ;;  %v983_v42 = vld [vmem:[%s1366_s13 + $0x90] sm:$0xf] }
  0x5c   : > { %719 = vmatpush.bf16.msra.mxu3 %v1012_v19  ;;  %v996_v43 = vor.u32 %v1061_v35, %v993_v36  ;;  %v1060_v44 = vld [vmem:[%s1366_s13 + $0x94] sm:$0xf0]  ;;  %v1043_v45 = vld [vmem:[%s1366_s13 + $0x14] sm:$0xf]  ;;  %v921_v46 = vld [vmem:[%s1366_s13 + $0x18] sm:$0xf0]  ;;  %v920_v49 = vor.u32 %v1044_v41, %v919_v40 }
  0x5d   : > { %v1059_v47 = vld [vmem:[%s1366_s13 + $0x94] sm:$0xf]  ;;  %v985_v48 = vld [vmem:[%s1366_s13 + $0x98] sm:$0xf0]  ;;  %v984_v51 = vor.u32 %v1060_v44, %v983_v42  ;;  %v924_v52 = vor.u32 %v1043_v45, %v921_v46  ;;  %v911_v53 = vld [vmem:[%s1366_s13] sm:$0xf] }
  0x5e   : > { %681 = vmatpush.bf16.msra.mxu0 %v936_v25  ;;  %v477_v50 = vld [vmem:[%s1348_s30] sm:$0xff]  ;;  %v1042_v54 = vld [vmem:[%s1366_s13 + $0x4] sm:$0xf0]  ;;  %v975_v55 = vld [vmem:[%s1366_s13 + $0x80] sm:$0xf]  ;;  %v988_v56 = vor.u32 %v1059_v47, %v985_v48  ;;  %p1037_p13 = scmp.ne.s32.totalorder %s1168_s17, 8 }
  0x5f   : > { %694 = vmatpush.bf16.msra.mxu1 %v1000_v26  ;;  %707 = vmatpush.bf16.msra.mxu2 %v940_v27  ;;  %v1058_v57 = vld [vmem:[%s1366_s13 + $0x84] sm:$0xf0]  ;;  %v1041_v58 = vld [vmem:[%s1366_s13 + $0x4] sm:$0xf]  ;;  %v913_v59 = vld [vmem:[%s1366_s13 + $0x8] sm:$0xf0]  ;;  %v511_v62 = vunpack.c.l.b16 %v477_v50  ;;  %v912_v63 = vor.u32 %v1042_v54, %v911_v53  ;;  %v512_v0 = vunpack.c.h.b16 %v477_v50 }
  0x60   : > { %720 = vmatpush.bf16.msra.mxu3 %v1004_v31  ;;  %v1057_v60 = vld [vmem:[%s1366_s13 + $0x84] sm:$0xf]  ;;  %v977_v61 = vld [vmem:[%s1366_s13 + $0x88] sm:$0xf0]  ;;  %v976_v1 = vor.u32 %v1058_v57, %v975_v55  ;;  %v916_v2 = vor.u32 %v1041_v58, %v913_v59  ;;  %v475_v7 = vld [vmem:[#allocation2] sm:$0xff] }
  0x61   : > { %v980_v3 = vor.u32 %v1057_v60, %v977_v61  ;;  %v513_v4 = vpack.c.b16 %v511_v62, %v511_v62  ;;  %v514_v5 = vpack.c.b16 %v512_v0, %v512_v0  ;;  %v476_v12 = vld [vmem:[#allocation2 + $0x8] sm:$0xff] }
  0x62   : > { %682 = vmatpush.bf16.msra.mxu0 %v928_v37 }
  0x63   : > { %695 = vmatpush.bf16.msra.mxu1 %v992_v38  ;;  %708 = vmatpush.bf16.msra.mxu2 %v932_v39 }
  0x64   : > { %721 = vmatpush.bf16.msra.mxu3 %v996_v43 }
  0x66   : > { %683 = vmatpush.bf16.msra.mxu0 %v920_v49 }
  0x67   : > { %696 = vmatpush.bf16.msra.mxu1 %v984_v51  ;;  %709 = vmatpush.bf16.msra.mxu2 %v924_v52 }
  0x68   : > { %722 = vmatpush.bf16.msra.mxu3 %v988_v56 }
  0x6a   : > { %684 = vmatpush.bf16.msra.mxu0 %v912_v63 }
  0x6b   : > { %697 = vmatpush.bf16.msra.mxu1 %v976_v1  ;;  %710 = vmatpush.bf16.msra.mxu2 %v916_v2 }
  0x6c   : > { %723 = vmatpush.bf16.msra.mxu3 %v980_v3 }
  0x6d   : > { %685 = vmatmul.bf16.vlgmr.msra.gmra.mxu0 %v513_v4 }
  0x6e   : > { %698 = vmatmul.bf16.vlgmr.msra.gmra.mxu1 %v514_v5  ;;  %711 = vmatmul.bf16.vlgmr.msra.gmra.mxu2 %v513_v4 }
  0x6f   : > { %724 = vmatmul.bf16.vlgmr.msra.gmra.mxu3 %v514_v5 }
  0xea   : > { %v686_v6 = vpop.f32.mrf.mxu0 }
  0xeb   : > { %v699_v8 = vpop.f32.mrf.mxu1 }
  0xec   : > { %v700_v9 = vadd.f32 %v699_v8, %v686_v6 }
  0xee   : > { %v729_v10 = vadd.f32 %v700_v9, %v475_v7 }
  0xf0   : > { %731 = vst [vmem:[#allocation2] sm:$0xff] %v729_v10 }
  0xf1   : > { %v712_v11 = vpop.f32.mrf.mxu2 }
  0xf2   : > { %v725_v13 = vpop.f32.mrf.mxu3  ;;  %v688_v14 = vpop.f32.mrf.mxu0 }
  0xf3   : > { %v726_v15 = vadd.f32 %v725_v13, %v712_v11  ;;  %v701_v16 = vpop.f32.mrf.mxu1 }
  0xf5   : > { %v730_v17 = vadd.f32 %v726_v15, %v476_v12 }
  0xf6   : > { %736 = sbr.rel (%p1037_p13) target bundleno = 264 (0x108), region = 82 }
  0xf7   : > { %732 = vst [vmem:[#allocation2 + $0x8] sm:$0xff] %v730_v17 }
  0xf9   : > { %v714_v18 = vpop.f32.mrf.mxu2 }
  0xfa   : > { %v727_v19 = vpop.f32.mrf.mxu3 }
  0xfb   : > { %v737_v20 = vld [vmem:[#allocation2] sm:$0xff] }
  0xfc   : > { %v739_v22 = vld [vmem:[%s452_s15] sm:$0x3] }
  0xfd   : > { %v741_v23 = vperm.slane %v739_v22, 0  ;;  %v742_v24 = vperm.slane %v739_v22, 1  ;;  %v747_v25 = vld [vmem:[%s457_s18] sm:$0x3] }
  0xfe   : > { %v738_v21 = vld [vmem:[#allocation2 + $0x8] sm:$0xff]  ;;  %v749_v26 = vperm.slane %v747_v25, 0  ;;  %v750_v27 = vperm.slane %v747_v25, 1 }
  0xff   : > { %v745_v28 = vmul.f32 %v741_v23, %v737_v20  ;;  %v746_v29 = vmul.f32 %v742_v24, %v738_v21 }
 0x101   : > { %v753_v30 = vadd.f32 %v749_v26, %v745_v28  ;;  %v754_v31 = vadd.f32 %v750_v27, %v746_v29 }
 0x103   : > { %v755_v32 = vmax.f32 %v753_v30, 0.0  ;;  %v756_v33 = vmax.f32 %v754_v31, 0.0 }
 0x105   : > { %v757_v34 = vpack.c.bf16 %v756_v33, %v755_v32 }
 0x107   : > { %758 = vst [vmem:[%s1364_s12] sm:$0xff] %v757_v34 }
 0x108 PF: > { %s14_s21 = sadd.s32 1, %s1184_s21   ;;  %s1472_s15 = smov %s1164_s16 }
 0x109   : > { %p11_p0 = scmp.ge.s32.totalorder %s14_s21, 20   ;;  %s1473_s16 = smov %s1263_s28 }
 0x10a   : > { %s1474_s17 = smov %s1176_s19  ;;  %s1475_s18 = smov %s1180_s20 }
 0x10b   : > { %s1476_s19 = smov %s1479_s22  ;;  %s1477_s20 = smov %s1483_s23 }
 0x10c   :  { %13 = sbr.rel (!%p11_p0) target bundleno = 4 (0x4), region = 126 }

// kernel: custom_resnet18_forward.23
= control target key start
LH: loop header
LB: loop body
LE: loop exit
PB: predicated region body
PF: predicated region fallthrough
CT: control target
= control target key end

     0   :  { %s1170_s15 = smov 0   ;;  %s1172_s16 = smov 0   ;;  %s1378_s0 = inlined_call_operand.vmem [shape: bf16[8,256], index: 0, kind: input, shape index: {}]   ;;  %s1379_s1 = inlined_call_operand.vmem [shape: bf16[256,512], index: 1, kind: input, shape index: {}]   ;;  %s1380_s2 = inlined_call_operand.vmem [shape: f32[1,512], index: 2, kind: input, shape index: {}]   ;;  %s1381_s3 = inlined_call_operand.vmem [shape: f32[1,512], index: 3, kind: input, shape index: {}]   ;;  %s1382_s4 = inlined_call_operand.vmem [shape: bf16[8,512], index: 4, kind: output, shape index: {}]  }
   0x1   :  { %s1174_s17 = smov 0   ;;  %s1176_s18 = smov 0  }
   0x2   :  { %s1178_s19 = smov 0  }
   0x3 LB: > { %s29_s20 = sadd.s32 1, %s1139_s18  ;;  %p77_p1 = scmp.ne.s32.totalorder %s1131_s16, %s1127_s15  ;;  %s1143_s19 = sphi %s1178_s19, %s14_s19   ;;  %s1139_s18 = sphi %s1176_s18, %s1386_s18   ;;  %s1135_s17 = sphi %s1174_s17, %s1385_s17   ;;  %s1131_s16 = sphi %s1172_s16, %s1384_s16   ;;  %s1127_s15 = sphi %s1170_s15, %s1383_s15  }
   0x4   : > { %p31_p0 = scmp.ge.s32.totalorder %s29_s20, 2  ;;  %p78_p2 = scmp.eq.s32.totalorder %s1143_s19, 0 }
   0x5   : > { %s70_s22 = sadd.s32 1, %s1131_s16  ;;  %p892_p5 = scmp.ge.s32.totalorder %s1143_s19, 2 }
   0x6   : > { %s1388_s20 = smov (%p31_p0, %s29_s20), 0  ;;  %p79_p3 = por %p78_p2, %p77_p1 }
   0x7   : > { %s66_s21 = ssub.s32 %s1139_s18, %s1388_s20  ;;  %196 = sbr.rel (%p892_p5) target bundleno = 48 (0x30), region = 20 }
   0x8   : > { %p68_p4 = scmp.eq.s32.totalorder %s66_s21, 0 }
   0xa   : > { %s1205_s23 = scalar_select %p68_p4, %s1131_s16, %s70_s22  }
   0xc   : > { %199 = sbr.rel (!%p79_p3) target bundleno = 48 (0x30), region = 24  ;;  %s201_s24 = sand.u32 (%p79_p3), 1, %s1131_s16  }
   0xd   : > { %s1032_s25 = sshll.u32 (%p79_p3), %s1139_s18, 3  ;;  %s893_s26 = sshll.u32 (%p79_p3), %s201_s24, 8 }
   0xe   : > { %s1213_s29 = scalar_lea.vmem (%p79_p3), %s1379_s1, %s1032_s25  ;;  %s1218_s30 = scalar_lea.vmem (%p79_p3), [#allocation3], %s893_s26 }
   0xf   : > { %v300_v0 = vld [vmem:[%s1213_s29] sm:$0xff] (%p79_p3)  ;;  %v302_v1 = vld [vmem:[%s1213_s29 + $0x10] sm:$0xff] (%p79_p3) }
  0x10   : > { %v304_v2 = vld [vmem:[%s1213_s29 + $0x20] sm:$0xff] (%p79_p3)  ;;  %301 = vst [vmem:[%s1218_s30] sm:$0xff] (%p79_p3), %v300_v0  ;;  %v306_v3 = vld [vmem:[%s1213_s29 + $0x30] sm:$0xff] (%p79_p3) }
  0x11   : > { %303 = vst [vmem:[%s1218_s30 + $0x8] sm:$0xff] %v302_v1  ;;  %v308_v4 = vld [vmem:[%s1213_s29 + $0x40] sm:$0xff]  ;;  %v310_v5 = vld [vmem:[%s1213_s29 + $0x50] sm:$0xff] }
  0x12   : > { %305 = vst [vmem:[%s1218_s30 + $0x10] sm:$0xff] %v304_v2  ;;  %v312_v6 = vld [vmem:[%s1213_s29 + $0x60] sm:$0xff]  ;;  %v314_v7 = vld [vmem:[%s1213_s29 + $0x70] sm:$0xff] }
  0x13   : > { %307 = vst [vmem:[%s1218_s30 + $0x18] sm:$0xff] %v306_v3  ;;  %v316_v8 = vld [vmem:[%s1213_s29 + $0x80] sm:$0xff]  ;;  %v318_v9 = vld [vmem:[%s1213_s29 + $0x90] sm:$0xff] }
  0x14   : > { %309 = vst [vmem:[%s1218_s30 + $0x20] sm:$0xff] %v308_v4  ;;  %v320_v10 = vld [vmem:[%s1213_s29 + $0xa0] sm:$0xff]  ;;  %v322_v11 = vld [vmem:[%s1213_s29 + $0xb0] sm:$0xff] }
  0x15   : > { %311 = vst [vmem:[%s1218_s30 + $0x28] sm:$0xff] %v310_v5  ;;  %v324_v12 = vld [vmem:[%s1213_s29 + $0xc0] sm:$0xff]  ;;  %v326_v13 = vld [vmem:[%s1213_s29 + $0xd0] sm:$0xff] }
  0x16   : > { %313 = vst [vmem:[%s1218_s30 + $0x30] sm:$0xff] %v312_v6  ;;  %v328_v14 = vld [vmem:[%s1213_s29 + $0xe0] sm:$0xff]  ;;  %v330_v15 = vld [vmem:[%s1213_s29 + $0xf0] sm:$0xff] }
  0x17   : > { %315 = vst [vmem:[%s1218_s30 + $0x38] sm:$0xff] %v314_v7  ;;  %v332_v16 = vld [vmem:[%s1213_s29 + $0x100] sm:$0xff]  ;;  %v334_v17 = vld [vmem:[%s1213_s29 + $0x110] sm:$0xff] }
  0x18   : > { %317 = vst [vmem:[%s1218_s30 + $0x40] sm:$0xff] %v316_v8  ;;  %v336_v18 = vld [vmem:[%s1213_s29 + $0x120] sm:$0xff]  ;;  %v338_v19 = vld [vmem:[%s1213_s29 + $0x130] sm:$0xff] }
  0x19   : > { %319 = vst [vmem:[%s1218_s30 + $0x48] sm:$0xff] %v318_v9  ;;  %v340_v20 = vld [vmem:[%s1213_s29 + $0x140] sm:$0xff]  ;;  %v342_v21 = vld [vmem:[%s1213_s29 + $0x150] sm:$0xff] }
  0x1a   : > { %321 = vst [vmem:[%s1218_s30 + $0x50] sm:$0xff] %v320_v10  ;;  %v344_v22 = vld [vmem:[%s1213_s29 + $0x160] sm:$0xff]  ;;  %v346_v23 = vld [vmem:[%s1213_s29 + $0x170] sm:$0xff] }
  0x1b   : > { %323 = vst [vmem:[%s1218_s30 + $0x58] sm:$0xff] %v322_v11  ;;  %v348_v24 = vld [vmem:[%s1213_s29 + $0x180] sm:$0xff]  ;;  %v350_v25 = vld [vmem:[%s1213_s29 + $0x190] sm:$0xff] }
  0x1c   : > { %325 = vst [vmem:[%s1218_s30 + $0x60] sm:$0xff] %v324_v12  ;;  %v352_v26 = vld [vmem:[%s1213_s29 + $0x1a0] sm:$0xff]  ;;  %v354_v27 = vld [vmem:[%s1213_s29 + $0x1b0] sm:$0xff] }
  0x1d   : > { %327 = vst [vmem:[%s1218_s30 + $0x68] sm:$0xff] %v326_v13  ;;  %v356_v28 = vld [vmem:[%s1213_s29 + $0x1c0] sm:$0xff]  ;;  %v358_v29 = vld [vmem:[%s1213_s29 + $0x1d0] sm:$0xff] }
  0x1e   : > { %329 = vst [vmem:[%s1218_s30 + $0x70] sm:$0xff] %v328_v14  ;;  %v360_v30 = vld [vmem:[%s1213_s29 + $0x1e0] sm:$0xff]  ;;  %v362_v31 = vld [vmem:[%s1213_s29 + $0x1f0] sm:$0xff] }
  0x1f   : > { %331 = vst [vmem:[%s1218_s30 + $0x78] sm:$0xff] %v330_v15 }
  0x20   : > { %333 = vst [vmem:[%s1218_s30 + $0x80] sm:$0xff] %v332_v16 }
  0x21   : > { %335 = vst [vmem:[%s1218_s30 + $0x88] sm:$0xff] %v334_v17 }
  0x22   : > { %337 = vst [vmem:[%s1218_s30 + $0x90] sm:$0xff] %v336_v18 }
  0x23   : > { %339 = vst [vmem:[%s1218_s30 + $0x98] sm:$0xff] %v338_v19 }
  0x24   : > { %341 = vst [vmem:[%s1218_s30 + $0xa0] sm:$0xff] %v340_v20 }
  0x25   : > { %343 = vst [vmem:[%s1218_s30 + $0xa8] sm:$0xff] %v342_v21 }
  0x26   : > { %345 = vst [vmem:[%s1218_s30 + $0xb0] sm:$0xff] %v344_v22 }
  0x27   : > { %347 = vst [vmem:[%s1218_s30 + $0xb8] sm:$0xff] %v346_v23 }
  0x28   : > { %349 = vst [vmem:[%s1218_s30 + $0xc0] sm:$0xff] %v348_v24 }
  0x29   : > { %351 = vst [vmem:[%s1218_s30 + $0xc8] sm:$0xff] %v350_v25 }
  0x2a   : > { %353 = vst [vmem:[%s1218_s30 + $0xd0] sm:$0xff] %v352_v26 }
  0x2b   : > { %355 = vst [vmem:[%s1218_s30 + $0xd8] sm:$0xff] %v354_v27 }
  0x2c   : > { %357 = vst [vmem:[%s1218_s30 + $0xe0] sm:$0xff] %v356_v28 }
  0x2d   : > { %359 = vst [vmem:[%s1218_s30 + $0xe8] sm:$0xff] %v358_v29 }
  0x2e   : > { %361 = vst [vmem:[%s1218_s30 + $0xf0] sm:$0xff] %v360_v30 }
  0x2f   : > { %363 = vst [vmem:[%s1218_s30 + $0xf8] sm:$0xff] %v362_v31 }
  0x30 PF: > { %p896_p6 = scmp.ge.s32.totalorder %s1143_s19, 1  ;;  %p384_p7 = scmp.lt.s32.totalorder %s1143_s19, 3 }
  0x32   : > { %p385_p8 = pnand %p896_p6, %p384_p7 }
  0x33   : > { %s391_s5 = sand.u32 (!%p385_p8), 1, %s1127_s15   ;;  %s898_s10 = sshll.u32 (!%p385_p8), %s1135_s17, 1 }
  0x34   : > { %388 = sbr.rel (%p385_p8) target bundleno = 234 (0xea), region = 70  ;;  %s897_s6 = sshll.u32 (!%p385_p8), %s391_s5, 8 }
  0x35   : > { %s1284_s7 = scalar_lea.vmem (!%p385_p8), [#allocation3], %s897_s6  ;;  %p450_p9 = scmp.lt.s32.totalorder (!%p385_p8), %s898_s10, 3 }
  0x39   : > { %v960_v32 = vld [vmem:[%s1284_s7 + $0x70] sm:$0xf]  ;;  %v1048_v33 = vld [vmem:[%s1284_s7 + $0x74] sm:$0xf0]  ;;  %v1047_v37 = vld [vmem:[%s1284_s7 + $0x74] sm:$0xf] }
  0x3a   : > { %v1024_v34 = vld [vmem:[%s1284_s7 + $0xf0] sm:$0xf]  ;;  %v961_v35 = vor.u32 %v1048_v33, %v960_v32  ;;  %v1064_v36 = vld [vmem:[%s1284_s7 + $0xf4] sm:$0xf0]  ;;  %v962_v38 = vld [vmem:[%s1284_s7 + $0x78] sm:$0xf0] }
  0x3b   : > { %v1025_v39 = vor.u32 %v1064_v36, %v1024_v34  ;;  %v965_v40 = vor.u32 %v1047_v37, %v962_v38  ;;  %v1063_v41 = vld [vmem:[%s1284_s7 + $0xf4] sm:$0xf]  ;;  %v1026_v42 = vld [vmem:[%s1284_s7 + $0xf8] sm:$0xf0]  ;;  %v952_v43 = vld [vmem:[%s1284_s7 + $0x60] sm:$0xf] }
  0x3c   : > { %677 = vmatpush.bf16.msra.mxu0 %v961_v35  ;;  %v1029_v44 = vor.u32 %v1063_v41, %v1026_v42  ;;  %v1046_v45 = vld [vmem:[%s1284_s7 + $0x64] sm:$0xf0]  ;;  %v1016_v46 = vld [vmem:[%s1284_s7 + $0xe0] sm:$0xf]  ;;  %v1045_v50 = vld [vmem:[%s1284_s7 + $0x64] sm:$0xf] }
  0x3d   : > { %v1062_v47 = vld [vmem:[%s1284_s7 + $0xe4] sm:$0xf0]  ;;  %690 = vmatpush.bf16.msra.mxu1 %v1025_v39  ;;  %703 = vmatpush.bf16.msra.mxu2 %v965_v40  ;;  %v953_v48 = vor.u32 %v1046_v45, %v952_v43  ;;  %v954_v51 = vld [vmem:[%s1284_s7 + $0x68] sm:$0xf0]  ;;  %v1061_v52 = vld [vmem:[%s1284_s7 + $0xe4] sm:$0xf] }
  0x3e   : > { %v1017_v49 = vor.u32 %v1062_v47, %v1016_v46  ;;  %716 = vmatpush.bf16.msra.mxu3 %v1029_v44  ;;  %v957_v53 = vor.u32 %v1045_v50, %v954_v51  ;;  %v1018_v54 = vld [vmem:[%s1284_s7 + $0xe8] sm:$0xf0]  ;;  %v944_v55 = vld [vmem:[%s1284_s7 + $0x50] sm:$0xf]  ;;  %v1044_v56 = vld [vmem:[%s1284_s7 + $0x54] sm:$0xf0] }
  0x3f   : > { %v1021_v57 = vor.u32 %v1061_v52, %v1018_v54  ;;  %v1008_v58 = vld [vmem:[%s1284_s7 + $0xd0] sm:$0xf]  ;;  %v1060_v59 = vld [vmem:[%s1284_s7 + $0xd4] sm:$0xf0]  ;;  %v1043_v60 = vld [vmem:[%s1284_s7 + $0x54] sm:$0xf]  ;;  %v945_v61 = vor.u32 %v1044_v56, %v944_v55 }
  0x40   : > { %678 = vmatpush.bf16.msra.mxu0 %v953_v48  ;;  %v946_v62 = vld [vmem:[%s1284_s7 + $0x58] sm:$0xf0]  ;;  %v1059_v63 = vld [vmem:[%s1284_s7 + $0xd4] sm:$0xf]  ;;  %v1009_v1 = vor.u32 %v1060_v59, %v1008_v58  ;;  %v936_v3 = vld [vmem:[%s1284_s7 + $0x40] sm:$0xf] }
  0x41   : > { %v1010_v0 = vld [vmem:[%s1284_s7 + $0xd8] sm:$0xf0]  ;;  %691 = vmatpush.bf16.msra.mxu1 %v1017_v49  ;;  %704 = vmatpush.bf16.msra.mxu2 %v957_v53  ;;  %v949_v2 = vor.u32 %v1043_v60, %v946_v62  ;;  %v1042_v4 = vld [vmem:[%s1284_s7 + $0x44] sm:$0xf0]  ;;  %v1000_v5 = vld [vmem:[%s1284_s7 + $0xc0] sm:$0xf] }
  0x42   : > { %717 = vmatpush.bf16.msra.mxu3 %v1021_v57  ;;  %v1013_v6 = vor.u32 %v1059_v63, %v1010_v0  ;;  %v1058_v7 = vld [vmem:[%s1284_s7 + $0xc4] sm:$0xf0]  ;;  %v1041_v8 = vld [vmem:[%s1284_s7 + $0x44] sm:$0xf]  ;;  %v938_v9 = vld [vmem:[%s1284_s7 + $0x48] sm:$0xf0]  ;;  %v937_v12 = vor.u32 %v1042_v4, %v936_v3 }
  0x43   : > { %v1057_v10 = vld [vmem:[%s1284_s7 + $0xc4] sm:$0xf]  ;;  %v1002_v11 = vld [vmem:[%s1284_s7 + $0xc8] sm:$0xf0]  ;;  %v1001_v13 = vor.u32 %v1058_v7, %v1000_v5  ;;  %v941_v14 = vor.u32 %v1041_v8, %v938_v9  ;;  %v928_v15 = vld [vmem:[%s1284_s7 + $0x30] sm:$0xf] }
  0x44   : > { %679 = vmatpush.bf16.msra.mxu0 %v945_v61  ;;  %v1040_v16 = vld [vmem:[%s1284_s7 + $0x34] sm:$0xf0]  ;;  %v992_v17 = vld [vmem:[%s1284_s7 + $0xb0] sm:$0xf]  ;;  %v1005_v18 = vor.u32 %v1057_v10, %v1002_v11  ;;  %v1039_v20 = vld [vmem:[%s1284_s7 + $0x34] sm:$0xf] }
  0x45   : > { %692 = vmatpush.bf16.msra.mxu1 %v1009_v1  ;;  %705 = vmatpush.bf16.msra.mxu2 %v949_v2  ;;  %v1056_v19 = vld [vmem:[%s1284_s7 + $0xb4] sm:$0xf0]  ;;  %v930_v21 = vld [vmem:[%s1284_s7 + $0x38] sm:$0xf0]  ;;  %v1055_v22 = vld [vmem:[%s1284_s7 + $0xb4] sm:$0xf]  ;;  %v929_v24 = vor.u32 %v1040_v16, %v928_v15 }
  0x46   : > { %718 = vmatpush.bf16.msra.mxu3 %v1013_v6  ;;  %v994_v23 = vld [vmem:[%s1284_s7 + $0xb8] sm:$0xf0]  ;;  %v993_v25 = vor.u32 %v1056_v19, %v992_v17  ;;  %v933_v26 = vor.u32 %v1039_v20, %v930_v21  ;;  %v920_v27 = vld [vmem:[%s1284_s7 + $0x20] sm:$0xf]  ;;  %v1038_v28 = vld [vmem:[%s1284_s7 + $0x24] sm:$0xf0] }
  0x47   : > { %v984_v29 = vld [vmem:[%s1284_s7 + $0xa0] sm:$0xf]  ;;  %v997_v30 = vor.u32 %v1055_v22, %v994_v23  ;;  %v1054_v31 = vld [vmem:[%s1284_s7 + $0xa4] sm:$0xf0]  ;;  %v1037_v32 = vld [vmem:[%s1284_s7 + $0x24] sm:$0xf]  ;;  %v921_v36 = vor.u32 %v1038_v28, %v920_v27 }
  0x48   : > { %680 = vmatpush.bf16.msra.mxu0 %v937_v12  ;;  %v922_v33 = vld [vmem:[%s1284_s7 + $0x28] sm:$0xf0]  ;;  %v1053_v34 = vld [vmem:[%s1284_s7 + $0xa4] sm:$0xf]  ;;  %v985_v37 = vor.u32 %v1054_v31, %v984_v29  ;;  %v912_v39 = vld [vmem:[%s1284_s7 + $0x10] sm:$0xf] }
  0x49   : > { %693 = vmatpush.bf16.msra.mxu1 %v1001_v13  ;;  %706 = vmatpush.bf16.msra.mxu2 %v941_v14  ;;  %v986_v35 = vld [vmem:[%s1284_s7 + $0xa8] sm:$0xf0]  ;;  %v925_v38 = vor.u32 %v1037_v32, %v922_v33  ;;  %v1036_v40 = vld [vmem:[%s1284_s7 + $0x14] sm:$0xf0]  ;;  %v976_v41 = vld [vmem:[%s1284_s7 + $0x90] sm:$0xf] }
  0x4a   : > { %719 = vmatpush.bf16.msra.mxu3 %v1005_v18  ;;  %v989_v42 = vor.u32 %v1053_v34, %v986_v35  ;;  %v1052_v43 = vld [vmem:[%s1284_s7 + $0x94] sm:$0xf0]  ;;  %v1035_v44 = vld [vmem:[%s1284_s7 + $0x14] sm:$0xf]  ;;  %v914_v45 = vld [vmem:[%s1284_s7 + $0x18] sm:$0xf0]  ;;  %v913_v48 = vor.u32 %v1036_v40, %v912_v39 }
  0x4b   : > { %v1051_v46 = vld [vmem:[%s1284_s7 + $0x94] sm:$0xf]  ;;  %v978_v47 = vld [vmem:[%s1284_s7 + $0x98] sm:$0xf0]  ;;  %v477_v49 = vld [vmem:[%s1378_s0] sm:$0xff]  ;;  %v977_v50 = vor.u32 %v1052_v43, %v976_v41  ;;  %v917_v51 = vor.u32 %v1035_v44, %v914_v45  ;;  %s1390_s10 = smov (!%p450_p9, %s898_s10), 3 }
  0x4c   : > { %681 = vmatpush.bf16.msra.mxu0 %v929_v24  ;;  %v904_v52 = vld [vmem:[%s1284_s7] sm:$0xf]  ;;  %v1034_v53 = vld [vmem:[%s1284_s7 + $0x4] sm:$0xf0]  ;;  %v981_v55 = vor.u32 %v1051_v46, %v978_v47  ;;  %v1033_v57 = vld [vmem:[%s1284_s7 + $0x4] sm:$0xf]  ;;  %v511_v61 = vunpack.c.l.b16 %v477_v49  ;;  %v512_v63 = vunpack.c.h.b16 %v477_v49  ;;  %s452_s13 = scalar_lea.vmem %s1380_s2, %s1390_s10  ;;  %s457_s21 = scalar_lea.vmem %s1381_s3, %s1390_s10 }
  0x4d   : > { %694 = vmatpush.bf16.msra.mxu1 %v993_v25  ;;  %707 = vmatpush.bf16.msra.mxu2 %v933_v26  ;;  %v968_v54 = vld [vmem:[%s1284_s7 + $0x80] sm:$0xf]  ;;  %v1050_v56 = vld [vmem:[%s1284_s7 + $0x84] sm:$0xf0]  ;;  %v906_v58 = vld [vmem:[%s1284_s7 + $0x8] sm:$0xf0]  ;;  %v905_v62 = vor.u32 %v1034_v53, %v904_v52 }
  0x4e   : > { %720 = vmatpush.bf16.msra.mxu3 %v997_v30  ;;  %v1049_v59 = vld [vmem:[%s1284_s7 + $0x84] sm:$0xf]  ;;  %v970_v60 = vld [vmem:[%s1284_s7 + $0x88] sm:$0xf0]  ;;  %v969_v0 = vor.u32 %v1050_v56, %v968_v54  ;;  %v909_v1 = vor.u32 %v1033_v57, %v906_v58  ;;  %v513_v3 = vpack.c.b16 %v511_v61, %v511_v61  ;;  %v514_v4 = vpack.c.b16 %v512_v63, %v512_v63  ;;  %v738_v6 = vld [vmem:[%s452_s13] sm:$0x3] }
  0x4f   : > { %v973_v2 = vor.u32 %v1049_v59, %v970_v60  ;;  %v740_v9 = vperm.slane %v738_v6, 0  ;;  %v746_v10 = vld [vmem:[%s457_s21] sm:$0x3]  ;;  %v741_v14 = vperm.slane %v738_v6, 1  ;;  %s901_s17 = sshll.u32 %s1390_s10, 2 }
  0x50   : > { %682 = vmatpush.bf16.msra.mxu0 %v921_v36  ;;  %v748_v12 = vperm.slane %v746_v10, 0  ;;  %v749_v18 = vperm.slane %v746_v10, 1  ;;  %s467_s25 = scalar_lea.vmem %s1382_s4, %s901_s17 }
  0x51   : > { %695 = vmatpush.bf16.msra.mxu1 %v985_v37  ;;  %708 = vmatpush.bf16.msra.mxu2 %v925_v38 }
  0x52   : > { %721 = vmatpush.bf16.msra.mxu3 %v989_v42 }
  0x54   : > { %683 = vmatpush.bf16.msra.mxu0 %v913_v48 }
  0x55   : > { %696 = vmatpush.bf16.msra.mxu1 %v977_v50  ;;  %709 = vmatpush.bf16.msra.mxu2 %v917_v51 }
  0x56   : > { %722 = vmatpush.bf16.msra.mxu3 %v981_v55 }
  0x58   : > { %684 = vmatpush.bf16.msra.mxu0 %v905_v62 }
  0x59   : > { %697 = vmatpush.bf16.msra.mxu1 %v969_v0  ;;  %710 = vmatpush.bf16.msra.mxu2 %v909_v1 }
  0x5a   : > { %723 = vmatpush.bf16.msra.mxu3 %v973_v2 }
  0x5b   : > { %685 = vmatmul.bf16.vlgmr.msra.gmra.mxu0 %v513_v3 }
  0x5c   : > { %698 = vmatmul.bf16.vlgmr.msra.gmra.mxu1 %v514_v4  ;;  %711 = vmatmul.bf16.vlgmr.msra.gmra.mxu2 %v513_v3 }
  0x5d   : > { %724 = vmatmul.bf16.vlgmr.msra.gmra.mxu3 %v514_v4 }
  0xd8   : > { %v686_v5 = vpop.f32.mrf.mxu0 }
  0xd9   : > { %v699_v7 = vpop.f32.mrf.mxu1 }
  0xda   : > { %v700_v8 = vadd.f32 %v699_v7, %v686_v5 }
  0xdc   : > { %v744_v11 = vmul.f32 %v740_v9, %v700_v8 }
  0xde   : > { %v752_v20 = vadd.f32 %v748_v12, %v744_v11 }
  0xdf   : > { %v712_v13 = vpop.f32.mrf.mxu2 }
  0xe0   : > { %v725_v15 = vpop.f32.mrf.mxu3  ;;  %v688_v16 = vpop.f32.mrf.mxu0 }
  0xe1   : > { %v726_v17 = vadd.f32 %v725_v15, %v712_v13  ;;  %v701_v19 = vpop.f32.mrf.mxu1 }
  0xe3   : > { %v745_v21 = vmul.f32 %v741_v14, %v726_v17 }
  0xe5   : > { %v753_v22 = vadd.f32 %v749_v18, %v745_v21 }
  0xe7   : > { %v754_v23 = vpack.c.bf16 %v753_v22, %v752_v20  ;;  %v714_v24 = vpop.f32.mrf.mxu2 }
  0xe8   : > { %v727_v25 = vpop.f32.mrf.mxu3 }
  0xe9   : > { %755 = vst [vmem:[%s467_s25] sm:$0xff] %v754_v23 }
  0xea PF: > { %s14_s19 = sadd.s32 1, %s1143_s19   ;;  %s1383_s15 = smov %s1131_s16 }
  0xeb   : > { %p11_p10 = scmp.ge.s32.totalorder %s14_s19, 4   ;;  %s1384_s16 = smov %s1205_s23 }
  0xec   : > { %s1385_s17 = smov %s1139_s18  ;;  %s1386_s18 = smov %s1388_s20 }
  0xed   :  { %13 = sbr.rel (!%p11_p10) target bundleno = 3 (0x3), region = 126 }

// kernel: custom_resnet18_forward.24
= control target key start
LH: loop header
LB: loop body
LE: loop exit
PB: predicated region body
PF: predicated region fallthrough
CT: control target
= control target key end

     0   :  { %s1305_s18 = smov 0   ;;  %s1307_s19 = smov 0   ;;  %s1566_s0 = inlined_call_operand.vmem [shape: bf16[8,4608], index: 0, kind: input, shape index: {}]   ;;  %s1567_s1 = inlined_call_operand.vmem [shape: bf16[4608,512], index: 1, kind: input, shape index: {}]   ;;  %s1568_s2 = inlined_call_operand.vmem [shape: f32[1,512], index: 2, kind: input, shape index: {}]   ;;  %s1569_s3 = inlined_call_operand.vmem [shape: f32[1,512], index: 3, kind: input, shape index: {}]   ;;  %s1570_s4 = inlined_call_operand.vmem [shape: bf16[8,512], index: 4, kind: input, shape index: {}]   ;;  %s1571_s5 = inlined_call_operand.vmem [shape: bf16[8,512], index: 5, kind: output, shape index: {}]  }
   0x1   :  { %s1309_s20 = smov 0   ;;  %s1311_s21 = smov 0  }
   0x2   :  { %s1313_s22 = smov 0   ;;  %s1315_s23 = smov 0  }
   0x3   :  { %s1317_s24 = smov 0  }
   0x4 LB: > { %s27_s25 = sadd.s32 1, %s1264_s22  ;;  %s30_s26 = sadd.s32 1, %s1268_s23  ;;  %s1272_s24 = sphi %s1317_s24, %s15_s24   ;;  %s1268_s23 = sphi %s1315_s23, %s1577_s23   ;;  %s1264_s22 = sphi %s1313_s22, %s1576_s22   ;;  %s1260_s21 = sphi %s1311_s21, %s1575_s21   ;;  %s1256_s20 = sphi %s1309_s20, %s1574_s20   ;;  %s1252_s19 = sphi %s1307_s19, %s1573_s19   ;;  %s1248_s18 = sphi %s1305_s18, %s1572_s18  }
   0x5   : > { %p28_p0 = scmp.ge.s32.totalorder %s27_s25, 18  ;;  %p78_p1 = scmp.ne.s32.totalorder %s1252_s19, %s1248_s18 }
   0x6   : > { %p79_p2 = scmp.eq.s32.totalorder %s1272_s24, 0  ;;  %s71_s30 = sadd.s32 1, %s1252_s19 }
   0x7   : > { %s1579_s25 = smov (%p28_p0, %s27_s25), 0  ;;  %s1581_s26 = smov (!%p28_p0, %s30_s26), %s1268_s23 }
   0x8   : > { %p80_p3 = por %p79_p2, %p78_p1  ;;  %p32_p4 = scmp.ge.s32.totalorder %s1581_s26, 2 }
   0x9   : > { %s66_s27 = ssub.s32 %s1264_s22, %s1579_s25  ;;  %p980_p6 = scmp.ge.s32.totalorder %s1272_s24, 36 }
   0xa   : > { %s1583_s26 = smov (%p32_p4, %s1581_s26), 0 }
   0xb   : > { %s67_s28 = ssub.s32 %s1268_s23, %s1583_s26  ;;  %212 = sbr.rel (%p980_p6) target bundleno = 55 (0x37), region = 16 }
   0xc   : > { %s68_s29 = sor.u32 %s67_s28, %s66_s27 }
   0xd   : > { %p69_p5 = scmp.eq.s32.totalorder %s68_s29, 0 }
   0xf   : > { %s1356_s6 = scalar_select %p69_p5, %s1252_s19, %s71_s30  }
  0x10   : > { %228 = sbr.rel (!%p80_p3) target bundleno = 55 (0x37), region = 24  ;;  %s230_s7 = sand.u32 (%p80_p3), 1, %s1252_s19  }
  0x11   : > { %s983_s8 = sshll.u32 (%p80_p3), %s1268_s23, 1  ;;  %s981_s9 = sshll.u32 (%p80_p3), %s230_s7, 8 }
  0x12   : > { %s1128_s10 = sshll.u32 (%p80_p3), %s1264_s22, 7  ;;  %s1370_s16 = scalar_lea.vmem (%p80_p3), [#allocation3], %s981_s9 }
  0x13   : > { %s236_s11 = sadd.s32 (%p80_p3), %s1128_s10, %s983_s8 }
  0x14   : > { %s985_s12 = sshll.u32 (%p80_p3), %s236_s11, 2 }
  0x15   : > { %s1365_s15 = scalar_lea.vmem %s1567_s1, %s985_s12 }
  0x16   : > { %v329_v0 = vld [vmem:[%s1365_s15] sm:$0xff]  ;;  %v331_v1 = vld [vmem:[%s1365_s15 + $0x10] sm:$0xff] }
  0x17   : > { %v333_v2 = vld [vmem:[%s1365_s15 + $0x20] sm:$0xff]  ;;  %330 = vst [vmem:[%s1370_s16] sm:$0xff] %v329_v0  ;;  %v335_v3 = vld [vmem:[%s1365_s15 + $0x30] sm:$0xff] }
  0x18   : > { %332 = vst [vmem:[%s1370_s16 + $0x8] sm:$0xff] %v331_v1  ;;  %v337_v4 = vld [vmem:[%s1365_s15 + $0x40] sm:$0xff]  ;;  %v339_v5 = vld [vmem:[%s1365_s15 + $0x50] sm:$0xff] }
  0x19   : > { %334 = vst [vmem:[%s1370_s16 + $0x10] sm:$0xff] %v333_v2  ;;  %v341_v6 = vld [vmem:[%s1365_s15 + $0x60] sm:$0xff]  ;;  %v343_v7 = vld [vmem:[%s1365_s15 + $0x70] sm:$0xff] }
  0x1a   : > { %336 = vst [vmem:[%s1370_s16 + $0x18] sm:$0xff] %v335_v3  ;;  %v345_v8 = vld [vmem:[%s1365_s15 + $0x80] sm:$0xff]  ;;  %v347_v9 = vld [vmem:[%s1365_s15 + $0x90] sm:$0xff] }
  0x1b   : > { %338 = vst [vmem:[%s1370_s16 + $0x20] sm:$0xff] %v337_v4  ;;  %v349_v10 = vld [vmem:[%s1365_s15 + $0xa0] sm:$0xff]  ;;  %v351_v11 = vld [vmem:[%s1365_s15 + $0xb0] sm:$0xff] }
  0x1c   : > { %340 = vst [vmem:[%s1370_s16 + $0x28] sm:$0xff] %v339_v5  ;;  %v353_v12 = vld [vmem:[%s1365_s15 + $0xc0] sm:$0xff]  ;;  %v355_v13 = vld [vmem:[%s1365_s15 + $0xd0] sm:$0xff] }
  0x1d   : > { %342 = vst [vmem:[%s1370_s16 + $0x30] sm:$0xff] %v341_v6  ;;  %v357_v14 = vld [vmem:[%s1365_s15 + $0xe0] sm:$0xff]  ;;  %v359_v15 = vld [vmem:[%s1365_s15 + $0xf0] sm:$0xff] }
  0x1e   : > { %344 = vst [vmem:[%s1370_s16 + $0x38] sm:$0xff] %v343_v7  ;;  %v361_v16 = vld [vmem:[%s1365_s15 + $0x100] sm:$0xff]  ;;  %v363_v17 = vld [vmem:[%s1365_s15 + $0x110] sm:$0xff] }
  0x1f   : > { %346 = vst [vmem:[%s1370_s16 + $0x40] sm:$0xff] %v345_v8  ;;  %v365_v18 = vld [vmem:[%s1365_s15 + $0x120] sm:$0xff]  ;;  %v367_v19 = vld [vmem:[%s1365_s15 + $0x130] sm:$0xff] }
  0x20   : > { %348 = vst [vmem:[%s1370_s16 + $0x48] sm:$0xff] %v347_v9  ;;  %v369_v20 = vld [vmem:[%s1365_s15 + $0x140] sm:$0xff]  ;;  %v371_v21 = vld [vmem:[%s1365_s15 + $0x150] sm:$0xff] }
  0x21   : > { %350 = vst [vmem:[%s1370_s16 + $0x50] sm:$0xff] %v349_v10  ;;  %v373_v22 = vld [vmem:[%s1365_s15 + $0x160] sm:$0xff]  ;;  %v375_v23 = vld [vmem:[%s1365_s15 + $0x170] sm:$0xff] }
  0x22   : > { %352 = vst [vmem:[%s1370_s16 + $0x58] sm:$0xff] %v351_v11  ;;  %v377_v24 = vld [vmem:[%s1365_s15 + $0x180] sm:$0xff]  ;;  %v379_v25 = vld [vmem:[%s1365_s15 + $0x190] sm:$0xff] }
  0x23   : > { %354 = vst [vmem:[%s1370_s16 + $0x60] sm:$0xff] %v353_v12  ;;  %v381_v26 = vld [vmem:[%s1365_s15 + $0x1a0] sm:$0xff]  ;;  %v383_v27 = vld [vmem:[%s1365_s15 + $0x1b0] sm:$0xff] }
  0x24   : > { %356 = vst [vmem:[%s1370_s16 + $0x68] sm:$0xff] %v355_v13  ;;  %v385_v28 = vld [vmem:[%s1365_s15 + $0x1c0] sm:$0xff]  ;;  %v387_v29 = vld [vmem:[%s1365_s15 + $0x1d0] sm:$0xff] }
  0x25   : > { %358 = vst [vmem:[%s1370_s16 + $0x70] sm:$0xff] %v357_v14  ;;  %v389_v30 = vld [vmem:[%s1365_s15 + $0x1e0] sm:$0xff]  ;;  %v391_v31 = vld [vmem:[%s1365_s15 + $0x1f0] sm:$0xff] }
  0x26   : > { %360 = vst [vmem:[%s1370_s16 + $0x78] sm:$0xff] %v359_v15 }
  0x27   : > { %362 = vst [vmem:[%s1370_s16 + $0x80] sm:$0xff] %v361_v16 }
  0x28   : > { %364 = vst [vmem:[%s1370_s16 + $0x88] sm:$0xff] %v363_v17 }
  0x29   : > { %366 = vst [vmem:[%s1370_s16 + $0x90] sm:$0xff] %v365_v18 }
  0x2a   : > { %368 = vst [vmem:[%s1370_s16 + $0x98] sm:$0xff] %v367_v19 }
  0x2b   : > { %370 = vst [vmem:[%s1370_s16 + $0xa0] sm:$0xff] %v369_v20 }
  0x2c   : > { %372 = vst [vmem:[%s1370_s16 + $0xa8] sm:$0xff] %v371_v21 }
  0x2d   : > { %374 = vst [vmem:[%s1370_s16 + $0xb0] sm:$0xff] %v373_v22 }
  0x2e   : > { %376 = vst [vmem:[%s1370_s16 + $0xb8] sm:$0xff] %v375_v23 }
  0x2f   : > { %378 = vst [vmem:[%s1370_s16 + $0xc0] sm:$0xff] %v377_v24 }
  0x30   : > { %380 = vst [vmem:[%s1370_s16 + $0xc8] sm:$0xff] %v379_v25 }
  0x31   : > { %382 = vst [vmem:[%s1370_s16 + $0xd0] sm:$0xff] %v381_v26 }
  0x32   : > { %384 = vst [vmem:[%s1370_s16 + $0xd8] sm:$0xff] %v383_v27 }
  0x33   : > { %386 = vst [vmem:[%s1370_s16 + $0xe0] sm:$0xff] %v385_v28 }
  0x34   : > { %388 = vst [vmem:[%s1370_s16 + $0xe8] sm:$0xff] %v387_v29 }
  0x35   : > { %390 = vst [vmem:[%s1370_s16 + $0xf0] sm:$0xff] %v389_v30 }
  0x36   : > { %392 = vst [vmem:[%s1370_s16 + $0xf8] sm:$0xff] %v391_v31 }
  0x37 PF: > { %p986_p7 = scmp.ge.s32.totalorder %s1272_s24, 1  ;;  %p426_p8 = scmp.lt.s32.totalorder %s1272_s24, 37 }
  0x39   : > { %p427_p9 = pnand %p986_p7, %p426_p8 }
  0x3a   : > { %s433_s17 = sand.u32 (!%p427_p9), 1, %s1248_s18   ;;  %s988_s27 = sshll.u32 (!%p427_p9), %s1256_s20, 1 }
  0x3b   : > { %430 = sbr.rel (%p427_p9) target bundleno = 266 (0x10a), region = 74  ;;  %s987_s28 = sshll.u32 (!%p427_p9), %s433_s17, 8 }
  0x3c   : > { %p493_p10 = scmp.lt.s32.totalorder (!%p427_p9), %s988_s27, 35  ;;  %s990_s29 = sshll.u32 (!%p427_p9), %s1260_s21, 1 }
  0x3d   : > { %p503_p11 = scmp.lt.s32.totalorder (!%p427_p9), %s990_s29, 3  ;;  %s1464_s8 = scalar_lea.vmem (!%p427_p9), [#allocation3], %s987_s28 }
  0x3e   : > { %p996_p12 = scmp.ne.s32.totalorder (!%p427_p9), %s1256_s20, 0 }
  0x40   : > { %s1585_s27 = smov (!%p493_p10, %s988_s27), 35  ;;  %s1587_s29 = smov (!%p503_p11, %s990_s29), 3 }
  0x41   : > { %s989_s30 = sshll.u32 %s1585_s27, 2  ;;  %s505_s18 = scalar_lea.vmem %s1568_s2, %s1587_s29 }
  0x42   : > { %s1441_s9 = scalar_lea.vmem %s1566_s0, %s989_s30  ;;  %s510_s21 = scalar_lea.vmem %s1569_s3, %s1587_s29 }
  0x43   : > { %s993_s14 = sshll.u32 %s1587_s29, 2  ;;  %535 = sbr.rel (%p996_p12) target bundleno = 75 (0x4b), region = 82 }
  0x44   : > { %s1457_s17 = scalar_lea.vmem %s1570_s4, %s993_s14  ;;  %s1462_s7 = scalar_lea.vmem %s1571_s5, %s993_s14 }
  0x48   : > { %v1274_v32 = vmov 0.0  }
  0x49   : > { %536 = vst [vmem:[#allocation2] sm:$0xff] %v1274_v32 }
  0x4a   : > { %537 = vst [vmem:[#allocation2 + $0x8] sm:$0xff] %v1274_v32 }
  0x4b PF: > { %v1055_v33 = vld [vmem:[%s1464_s8 + $0x70] sm:$0xf]  ;;  %v1144_v34 = vld [vmem:[%s1464_s8 + $0x74] sm:$0xf0]  ;;  %v1143_v38 = vld [vmem:[%s1464_s8 + $0x74] sm:$0xf] }
  0x4c   : > { %v1119_v35 = vld [vmem:[%s1464_s8 + $0xf0] sm:$0xf]  ;;  %v1056_v36 = vor.u32 %v1144_v34, %v1055_v33  ;;  %v1160_v37 = vld [vmem:[%s1464_s8 + $0xf4] sm:$0xf0]  ;;  %v1057_v39 = vld [vmem:[%s1464_s8 + $0x78] sm:$0xf0] }
  0x4d   : > { %v1120_v40 = vor.u32 %v1160_v37, %v1119_v35  ;;  %v1060_v41 = vor.u32 %v1143_v38, %v1057_v39  ;;  %v1159_v42 = vld [vmem:[%s1464_s8 + $0xf4] sm:$0xf]  ;;  %v1121_v43 = vld [vmem:[%s1464_s8 + $0xf8] sm:$0xf0]  ;;  %v1047_v44 = vld [vmem:[%s1464_s8 + $0x60] sm:$0xf] }
  0x4e   : > { %740 = vmatpush.bf16.msra.mxu0 %v1056_v36  ;;  %v1124_v45 = vor.u32 %v1159_v42, %v1121_v43  ;;  %v1142_v46 = vld [vmem:[%s1464_s8 + $0x64] sm:$0xf0]  ;;  %v1111_v47 = vld [vmem:[%s1464_s8 + $0xe0] sm:$0xf]  ;;  %v1141_v51 = vld [vmem:[%s1464_s8 + $0x64] sm:$0xf] }
  0x4f   : > { %v1158_v48 = vld [vmem:[%s1464_s8 + $0xe4] sm:$0xf0]  ;;  %753 = vmatpush.bf16.msra.mxu1 %v1120_v40  ;;  %766 = vmatpush.bf16.msra.mxu2 %v1060_v41  ;;  %v1048_v49 = vor.u32 %v1142_v46, %v1047_v44  ;;  %v1049_v52 = vld [vmem:[%s1464_s8 + $0x68] sm:$0xf0]  ;;  %v1157_v53 = vld [vmem:[%s1464_s8 + $0xe4] sm:$0xf] }
  0x50   : > { %v1112_v50 = vor.u32 %v1158_v48, %v1111_v47  ;;  %779 = vmatpush.bf16.msra.mxu3 %v1124_v45  ;;  %v1052_v54 = vor.u32 %v1141_v51, %v1049_v52  ;;  %v1113_v55 = vld [vmem:[%s1464_s8 + $0xe8] sm:$0xf0]  ;;  %v1039_v56 = vld [vmem:[%s1464_s8 + $0x50] sm:$0xf]  ;;  %v1140_v57 = vld [vmem:[%s1464_s8 + $0x54] sm:$0xf0] }
  0x51   : > { %v1116_v58 = vor.u32 %v1157_v53, %v1113_v55  ;;  %v1103_v59 = vld [vmem:[%s1464_s8 + $0xd0] sm:$0xf]  ;;  %v1156_v60 = vld [vmem:[%s1464_s8 + $0xd4] sm:$0xf0]  ;;  %v1139_v61 = vld [vmem:[%s1464_s8 + $0x54] sm:$0xf]  ;;  %v1040_v62 = vor.u32 %v1140_v57, %v1039_v56 }
  0x52   : > { %741 = vmatpush.bf16.msra.mxu0 %v1048_v49  ;;  %v1041_v63 = vld [vmem:[%s1464_s8 + $0x58] sm:$0xf0]  ;;  %v1155_v0 = vld [vmem:[%s1464_s8 + $0xd4] sm:$0xf]  ;;  %v1104_v2 = vor.u32 %v1156_v60, %v1103_v59  ;;  %v1031_v4 = vld [vmem:[%s1464_s8 + $0x40] sm:$0xf] }
  0x53   : > { %v1105_v1 = vld [vmem:[%s1464_s8 + $0xd8] sm:$0xf0]  ;;  %754 = vmatpush.bf16.msra.mxu1 %v1112_v50  ;;  %767 = vmatpush.bf16.msra.mxu2 %v1052_v54  ;;  %v1044_v3 = vor.u32 %v1139_v61, %v1041_v63  ;;  %v1138_v5 = vld [vmem:[%s1464_s8 + $0x44] sm:$0xf0]  ;;  %v1095_v6 = vld [vmem:[%s1464_s8 + $0xc0] sm:$0xf] }
  0x54   : > { %780 = vmatpush.bf16.msra.mxu3 %v1116_v58  ;;  %v1108_v7 = vor.u32 %v1155_v0, %v1105_v1  ;;  %v1154_v8 = vld [vmem:[%s1464_s8 + $0xc4] sm:$0xf0]  ;;  %v1137_v9 = vld [vmem:[%s1464_s8 + $0x44] sm:$0xf]  ;;  %v1033_v10 = vld [vmem:[%s1464_s8 + $0x48] sm:$0xf0]  ;;  %v1032_v13 = vor.u32 %v1138_v5, %v1031_v4 }
  0x55   : > { %v1153_v11 = vld [vmem:[%s1464_s8 + $0xc4] sm:$0xf]  ;;  %v1097_v12 = vld [vmem:[%s1464_s8 + $0xc8] sm:$0xf0]  ;;  %v1096_v14 = vor.u32 %v1154_v8, %v1095_v6  ;;  %v1036_v15 = vor.u32 %v1137_v9, %v1033_v10  ;;  %v1023_v16 = vld [vmem:[%s1464_s8 + $0x30] sm:$0xf] }
  0x56   : > { %742 = vmatpush.bf16.msra.mxu0 %v1040_v62  ;;  %v1136_v17 = vld [vmem:[%s1464_s8 + $0x34] sm:$0xf0]  ;;  %v1087_v18 = vld [vmem:[%s1464_s8 + $0xb0] sm:$0xf]  ;;  %v1100_v19 = vor.u32 %v1153_v11, %v1097_v12  ;;  %v1135_v21 = vld [vmem:[%s1464_s8 + $0x34] sm:$0xf] }
  0x57   : > { %755 = vmatpush.bf16.msra.mxu1 %v1104_v2  ;;  %768 = vmatpush.bf16.msra.mxu2 %v1044_v3  ;;  %v1152_v20 = vld [vmem:[%s1464_s8 + $0xb4] sm:$0xf0]  ;;  %v1025_v22 = vld [vmem:[%s1464_s8 + $0x38] sm:$0xf0]  ;;  %v1151_v23 = vld [vmem:[%s1464_s8 + $0xb4] sm:$0xf]  ;;  %v1024_v25 = vor.u32 %v1136_v17, %v1023_v16 }
  0x58   : > { %781 = vmatpush.bf16.msra.mxu3 %v1108_v7  ;;  %v1089_v24 = vld [vmem:[%s1464_s8 + $0xb8] sm:$0xf0]  ;;  %v1088_v26 = vor.u32 %v1152_v20, %v1087_v18  ;;  %v1028_v27 = vor.u32 %v1135_v21, %v1025_v22  ;;  %v1015_v28 = vld [vmem:[%s1464_s8 + $0x20] sm:$0xf]  ;;  %v1134_v29 = vld [vmem:[%s1464_s8 + $0x24] sm:$0xf0] }
  0x59   : > { %v1079_v30 = vld [vmem:[%s1464_s8 + $0xa0] sm:$0xf]  ;;  %v1092_v31 = vor.u32 %v1151_v23, %v1089_v24  ;;  %v1150_v32 = vld [vmem:[%s1464_s8 + $0xa4] sm:$0xf0]  ;;  %v1133_v33 = vld [vmem:[%s1464_s8 + $0x24] sm:$0xf]  ;;  %v1016_v37 = vor.u32 %v1134_v29, %v1015_v28 }
  0x5a   : > { %743 = vmatpush.bf16.msra.mxu0 %v1032_v13  ;;  %v1017_v34 = vld [vmem:[%s1464_s8 + $0x28] sm:$0xf0]  ;;  %v1149_v35 = vld [vmem:[%s1464_s8 + $0xa4] sm:$0xf]  ;;  %v1080_v38 = vor.u32 %v1150_v32, %v1079_v30  ;;  %v1007_v40 = vld [vmem:[%s1464_s8 + $0x10] sm:$0xf] }
  0x5b   : > { %756 = vmatpush.bf16.msra.mxu1 %v1096_v14  ;;  %769 = vmatpush.bf16.msra.mxu2 %v1036_v15  ;;  %v1081_v36 = vld [vmem:[%s1464_s8 + $0xa8] sm:$0xf0]  ;;  %v1020_v39 = vor.u32 %v1133_v33, %v1017_v34  ;;  %v1132_v41 = vld [vmem:[%s1464_s8 + $0x14] sm:$0xf0]  ;;  %v1071_v42 = vld [vmem:[%s1464_s8 + $0x90] sm:$0xf] }
  0x5c   : > { %782 = vmatpush.bf16.msra.mxu3 %v1100_v19  ;;  %v1084_v43 = vor.u32 %v1149_v35, %v1081_v36  ;;  %v1148_v44 = vld [vmem:[%s1464_s8 + $0x94] sm:$0xf0]  ;;  %v1131_v45 = vld [vmem:[%s1464_s8 + $0x14] sm:$0xf]  ;;  %v1009_v46 = vld [vmem:[%s1464_s8 + $0x18] sm:$0xf0]  ;;  %v1008_v49 = vor.u32 %v1132_v41, %v1007_v40 }
  0x5d   : > { %v1147_v47 = vld [vmem:[%s1464_s8 + $0x94] sm:$0xf]  ;;  %v1073_v48 = vld [vmem:[%s1464_s8 + $0x98] sm:$0xf0]  ;;  %v1072_v51 = vor.u32 %v1148_v44, %v1071_v42  ;;  %v1012_v52 = vor.u32 %v1131_v45, %v1009_v46  ;;  %v999_v53 = vld [vmem:[%s1464_s8] sm:$0xf] }
  0x5e   : > { %744 = vmatpush.bf16.msra.mxu0 %v1024_v25  ;;  %v540_v50 = vld [vmem:[%s1441_s9] sm:$0xff]  ;;  %v1130_v54 = vld [vmem:[%s1464_s8 + $0x4] sm:$0xf0]  ;;  %v1063_v55 = vld [vmem:[%s1464_s8 + $0x80] sm:$0xf]  ;;  %v1076_v56 = vor.u32 %v1147_v47, %v1073_v48  ;;  %p1125_p13 = scmp.ne.s32.totalorder %s1256_s20, 17 }
  0x5f   : > { %757 = vmatpush.bf16.msra.mxu1 %v1088_v26  ;;  %770 = vmatpush.bf16.msra.mxu2 %v1028_v27  ;;  %v1146_v57 = vld [vmem:[%s1464_s8 + $0x84] sm:$0xf0]  ;;  %v1129_v58 = vld [vmem:[%s1464_s8 + $0x4] sm:$0xf]  ;;  %v1001_v59 = vld [vmem:[%s1464_s8 + $0x8] sm:$0xf0]  ;;  %v574_v62 = vunpack.c.l.b16 %v540_v50  ;;  %v1000_v63 = vor.u32 %v1130_v54, %v999_v53  ;;  %v575_v0 = vunpack.c.h.b16 %v540_v50 }
  0x60   : > { %783 = vmatpush.bf16.msra.mxu3 %v1092_v31  ;;  %v1145_v60 = vld [vmem:[%s1464_s8 + $0x84] sm:$0xf]  ;;  %v1065_v61 = vld [vmem:[%s1464_s8 + $0x88] sm:$0xf0]  ;;  %v1064_v1 = vor.u32 %v1146_v57, %v1063_v55  ;;  %v1004_v2 = vor.u32 %v1129_v58, %v1001_v59  ;;  %v538_v7 = vld [vmem:[#allocation2] sm:$0xff] }
  0x61   : > { %v1068_v3 = vor.u32 %v1145_v60, %v1065_v61  ;;  %v576_v4 = vpack.c.b16 %v574_v62, %v574_v62  ;;  %v577_v5 = vpack.c.b16 %v575_v0, %v575_v0  ;;  %v539_v12 = vld [vmem:[#allocation2 + $0x8] sm:$0xff] }
  0x62   : > { %745 = vmatpush.bf16.msra.mxu0 %v1016_v37 }
  0x63   : > { %758 = vmatpush.bf16.msra.mxu1 %v1080_v38  ;;  %771 = vmatpush.bf16.msra.mxu2 %v1020_v39 }
  0x64   : > { %784 = vmatpush.bf16.msra.mxu3 %v1084_v43 }
  0x66   : > { %746 = vmatpush.bf16.msra.mxu0 %v1008_v49 }
  0x67   : > { %759 = vmatpush.bf16.msra.mxu1 %v1072_v51  ;;  %772 = vmatpush.bf16.msra.mxu2 %v1012_v52 }
  0x68   : > { %785 = vmatpush.bf16.msra.mxu3 %v1076_v56 }
  0x6a   : > { %747 = vmatpush.bf16.msra.mxu0 %v1000_v63 }
  0x6b   : > { %760 = vmatpush.bf16.msra.mxu1 %v1064_v1  ;;  %773 = vmatpush.bf16.msra.mxu2 %v1004_v2 }
  0x6c   : > { %786 = vmatpush.bf16.msra.mxu3 %v1068_v3 }
  0x6d   : > { %748 = vmatmul.bf16.vlgmr.msra.gmra.mxu0 %v576_v4 }
  0x6e   : > { %761 = vmatmul.bf16.vlgmr.msra.gmra.mxu1 %v577_v5  ;;  %774 = vmatmul.bf16.vlgmr.msra.gmra.mxu2 %v576_v4 }
  0x6f   : > { %787 = vmatmul.bf16.vlgmr.msra.gmra.mxu3 %v577_v5 }
  0xea   : > { %v749_v6 = vpop.f32.mrf.mxu0 }
  0xeb   : > { %v762_v8 = vpop.f32.mrf.mxu1 }
  0xec   : > { %v763_v9 = vadd.f32 %v762_v8, %v749_v6 }
  0xee   : > { %v792_v10 = vadd.f32 %v763_v9, %v538_v7 }
  0xf0   : > { %794 = vst [vmem:[#allocation2] sm:$0xff] %v792_v10 }
  0xf1   : > { %v775_v11 = vpop.f32.mrf.mxu2 }
  0xf2   : > { %v788_v13 = vpop.f32.mrf.mxu3  ;;  %v751_v14 = vpop.f32.mrf.mxu0 }
  0xf3   : > { %v789_v15 = vadd.f32 %v788_v13, %v775_v11  ;;  %v764_v16 = vpop.f32.mrf.mxu1 }
  0xf5   : > { %v793_v17 = vadd.f32 %v789_v15, %v539_v12 }
  0xf6   : > { %799 = sbr.rel (%p1125_p13) target bundleno = 266 (0x10a), region = 86 }
  0xf7   : > { %795 = vst [vmem:[#allocation2 + $0x8] sm:$0xff] %v793_v17 }
  0xf9   : > { %v777_v18 = vpop.f32.mrf.mxu2 }
  0xfa   : > { %v790_v19 = vpop.f32.mrf.mxu3 }
  0xfb   : > { %v800_v20 = vld [vmem:[#allocation2] sm:$0xff] }
  0xfc   : > { %v802_v22 = vld [vmem:[%s505_s18] sm:$0x3] }
  0xfd   : > { %v804_v23 = vperm.slane %v802_v22, 0  ;;  %v805_v24 = vperm.slane %v802_v22, 1  ;;  %v810_v25 = vld [vmem:[%s510_s21] sm:$0x3] }
  0xfe   : > { %v801_v21 = vld [vmem:[#allocation2 + $0x8] sm:$0xff]  ;;  %v818_v26 = vld [vmem:[%s1457_s17] sm:$0xff]  ;;  %v812_v27 = vperm.slane %v810_v25, 0  ;;  %v813_v28 = vperm.slane %v810_v25, 1 }
  0xff   : > { %v808_v29 = vmul.f32 %v804_v23, %v800_v20  ;;  %v809_v30 = vmul.f32 %v805_v24, %v801_v21  ;;  %v819_v31 = vunpack.c.l.bf16 %v818_v26  ;;  %v820_v32 = vunpack.c.h.bf16 %v818_v26 }
 0x101   : > { %v816_v33 = vadd.f32 %v812_v27, %v808_v29  ;;  %v817_v34 = vadd.f32 %v813_v28, %v809_v30 }
 0x103   : > { %v821_v35 = vadd.f32 %v819_v31, %v816_v33  ;;  %v822_v36 = vadd.f32 %v820_v32, %v817_v34 }
 0x105   : > { %v823_v37 = vmax.f32 %v821_v35, 0.0  ;;  %v824_v38 = vmax.f32 %v822_v36, 0.0 }
 0x107   : > { %v825_v39 = vpack.c.bf16 %v824_v38, %v823_v37 }
 0x109   : > { %826 = vst [vmem:[%s1462_s7] sm:$0xff] %v825_v39 }
 0x10a PF: > { %s15_s24 = sadd.s32 1, %s1272_s24   ;;  %s1572_s18 = smov %s1252_s19 }
 0x10b   : > { %p12_p0 = scmp.ge.s32.totalorder %s15_s24, 38   ;;  %s1573_s19 = smov %s1356_s6 }
 0x10c   : > { %s1574_s20 = smov %s1264_s22  ;;  %s1575_s21 = smov %s1268_s23 }
 0x10d   : > { %s1576_s22 = smov %s1579_s25  ;;  %s1577_s23 = smov %s1583_s26 }
 0x10e   :  { %14 = sbr.rel (!%p12_p0) target bundleno = 4 (0x4), region = 133 }

// kernel: custom_resnet18_forward.25
= control target key start
LH: loop header
LB: loop body
LE: loop exit
PB: predicated region body
PF: predicated region fallthrough
CT: control target
= control target key end

     0   :  { %s775_s15 = smov 0   ;;  %s777_s16 = smov 0   ;;  %s844_s0 = inlined_call_operand.vmem [shape: bf16[8,512], index: 0, kind: input, shape index: {}]   ;;  %s845_s1 = inlined_call_operand.vmem [shape: bf16[512,128], index: 1, kind: input, shape index: {}]   ;;  %s846_s2 = inlined_call_operand.vmem [shape: f32[1,128], index: 2, kind: input, shape index: {}]   ;;  %s847_s3 = inlined_call_operand.vmem [shape: f32[1,128], index: 3, kind: input, shape index: {}]   ;;  %s848_s4 = inlined_call_operand.vmem [shape: f32[8,128], index: 4, kind: output, shape index: {}]  }
   0x1   :  { %s779_s17 = smov 0  }
   0x2 LB: > { %s26_s18 = sadd.s32 1, %s743_s16  ;;  %p608_p0 = scmp.ge.s32.totalorder %s747_s17, 1  ;;  %s747_s17 = sphi %s779_s17, %s14_s17   ;;  %s743_s16 = sphi %s777_s16, %s850_s16   ;;  %s739_s15 = sphi %s775_s15, %s849_s15  }
   0x3   : > { %p27_p1 = scmp.ge.s32.totalorder %s26_s18, 2  ;;  %p222_p2 = scmp.lt.s32.totalorder %s747_s17, 3 }
   0x5   : > { %s852_s18 = smov (%p27_p1, %s26_s18), 0  ;;  %p223_p3 = pnand %p608_p0, %p222_p2 }
   0x6   : > { %s609_s19 = sshll.u32 (!%p223_p3), %s739_s15, 1  ;;  %s611_s20 = sshll.u32 (!%p223_p3), %s739_s15, 5 }
   0x7   : > { %226 = sbr.rel (%p223_p3) target bundleno = 198 (0xc6), region = 36  ;;  %p271_p4 = scmp.lt.s32.totalorder (!%p223_p3), %s609_s19, 3 }
   0x8   : > { %p279_p5 = scmp.lt.s32.totalorder (!%p223_p3), %s611_s20, 63  ;;  %p613_p6 = scmp.ne.s32.totalorder (!%p223_p3), %s739_s15, 0 }
   0xc   : > { %s854_s19 = smov (!%p271_p4, %s609_s19), 3  ;;  %s856_s20 = smov (!%p279_p5, %s611_s20), 63 }
   0xd   : > { %s610_s21 = sshll.u32 %s854_s19, 2  ;;  %s612_s25 = sshll.u32 %s856_s20, 2 }
   0xe   : > { %s800_s24 = scalar_lea.vmem %s844_s0, %s610_s21  ;;  %s805_s28 = scalar_lea.vmem %s845_s1, %s612_s25 }
   0xf   : > { %303 = sbr.rel (%p613_p6) target bundleno = 22 (0x16), region = 40 }
  0x14   : > { %v749_v0 = vmov 0.0  }
  0x15   : > { %304 = vst [vmem:[#allocation2] sm:$0xff] %v749_v0 }
  0x16 PF: > { %v689_v1 = vld [vmem:[%s805_s28 + $0x38] sm:$0xff]  ;;  %v688_v3 = vld [vmem:[%s805_s28 + $0x30] sm:$0xff]  ;;  %v687_v5 = vld [vmem:[%s805_s28 + $0x28] sm:$0xff]  ;;  %p678_p7 = scmp.ne.s32.totalorder %s739_s15, 1 }
  0x17   : > { %v697_v2 = vld [vmem:[%s805_s28 + $0x78] sm:$0xff]  ;;  %442 = vmatpush.bf16.msra.mxu0 %v689_v1  ;;  %v696_v4 = vld [vmem:[%s805_s28 + $0x70] sm:$0xff]  ;;  %v695_v6 = vld [vmem:[%s805_s28 + $0x68] sm:$0xff] }
  0x18   : > { %455 = vmatpush.bf16.msra.mxu1 %v697_v2  ;;  %v686_v7 = vld [vmem:[%s805_s28 + $0x20] sm:$0xff]  ;;  %v685_v9 = vld [vmem:[%s805_s28 + $0x18] sm:$0xff]  ;;  %v684_v11 = vld [vmem:[%s805_s28 + $0x10] sm:$0xff] }
  0x19   : > { %v694_v8 = vld [vmem:[%s805_s28 + $0x60] sm:$0xff]  ;;  %v693_v10 = vld [vmem:[%s805_s28 + $0x58] sm:$0xff]  ;;  %v692_v12 = vld [vmem:[%s805_s28 + $0x50] sm:$0xff] }
  0x1a   : > { %v683_v13 = vld [vmem:[%s805_s28 + $0x8] sm:$0xff]  ;;  %v306_v15 = vld [vmem:[%s800_s24] sm:$0xff] }
  0x1b   : > { %443 = vmatpush.bf16.msra.mxu0 %v688_v3  ;;  %v691_v14 = vld [vmem:[%s805_s28 + $0x48] sm:$0xff]  ;;  %v340_v16 = vunpack.c.l.b16 %v306_v15  ;;  %v341_v17 = vunpack.c.h.b16 %v306_v15  ;;  %v682_v18 = vld [vmem:[%s805_s28] sm:$0xff] }
  0x1c   : > { %456 = vmatpush.bf16.msra.mxu1 %v696_v4  ;;  %v690_v19 = vld [vmem:[%s805_s28 + $0x40] sm:$0xff] }
  0x1d   : > { %v342_v20 = vpack.c.b16 %v340_v16, %v340_v16  ;;  %v343_v21 = vpack.c.b16 %v341_v17, %v341_v17  ;;  %v305_v23 = vld [vmem:[#allocation2] sm:$0xff] }
  0x1f   : > { %444 = vmatpush.bf16.msra.mxu0 %v687_v5 }
  0x20   : > { %457 = vmatpush.bf16.msra.mxu1 %v695_v6 }
  0x23   : > { %445 = vmatpush.bf16.msra.mxu0 %v686_v7 }
  0x24   : > { %458 = vmatpush.bf16.msra.mxu1 %v694_v8 }
  0x27   : > { %446 = vmatpush.bf16.msra.mxu0 %v685_v9 }
  0x28   : > { %459 = vmatpush.bf16.msra.mxu1 %v693_v10 }
  0x2b   : > { %447 = vmatpush.bf16.msra.mxu0 %v684_v11 }
  0x2c   : > { %460 = vmatpush.bf16.msra.mxu1 %v692_v12 }
  0x2f   : > { %448 = vmatpush.bf16.msra.mxu0 %v683_v13 }
  0x30   : > { %461 = vmatpush.bf16.msra.mxu1 %v691_v14 }
  0x33   : > { %449 = vmatpush.bf16.msra.mxu0 %v682_v18 }
  0x34   : > { %462 = vmatpush.bf16.msra.mxu1 %v690_v19 }
  0x36   : > { %450 = vmatmul.bf16.vlgmr.msra.gmra.mxu0 %v342_v20 }
  0x37   : > { %463 = vmatmul.bf16.vlgmr.msra.gmra.mxu1 %v343_v21 }
  0xb3   : > { %v451_v22 = vpop.f32.mrf.mxu0 }
  0xb4   : > { %v464_v24 = vpop.f32.mrf.mxu1 }
  0xb5   : > { %v465_v25 = vadd.f32 %v464_v24, %v451_v22 }
  0xb7   : > { %v468_v26 = vadd.f32 %v465_v25, %v305_v23 }
  0xb8   : > { %473 = sbr.rel (%p678_p7) target bundleno = 198 (0xc6), region = 44 }
  0xb9   : > { %469 = vst [vmem:[#allocation2] sm:$0xff] %v468_v26 }
  0xbb   : > { %v453_v27 = vpop.f32.mrf.mxu0 }
  0xbc   : > { %v466_v28 = vpop.f32.mrf.mxu1 }
  0xbd   : > { %v723_v30 = vld [vmem:[%s846_s2] ss:$0 sm:$0xff] }
  0xbe   : > { %v724_v31 = vld [vmem:[%s847_s3] ss:$0 sm:$0xff] }
  0xc0   : > { %v474_v29 = vld [vmem:[#allocation2] sm:$0xff] }
  0xc1   : > { %v479_v32 = vmul.f32 %v723_v30, %v474_v29 }
  0xc3   : > { %v484_v33 = vadd.f32 %v724_v31, %v479_v32 }
  0xc5   : > { %485 = vst [vmem:[%s848_s4] sm:$0xff] %v484_v33 }
  0xc6 PF: > { %s14_s17 = sadd.s32 1, %s747_s17   ;;  %s849_s15 = smov %s743_s16 }
  0xc7   : > { %p11_p8 = scmp.ge.s32.totalorder %s14_s17, 4   ;;  %s850_s16 = smov %s852_s18 }
  0xc9   :  { %13 = sbr.rel (!%p11_p8) target bundleno = 2 (0x2), region = 83 }

</bundles_post_ra>
